<compile_context>
chip_gen: v7x
topology: tpu7x:2x2x1
jax: 0.10.0
libtpu: 0.0.40
codegen_flags: <defaults>
</compile_context>

<pallas_src>
import math
import functools

import jax
import jax.numpy as jnp
from jax.experimental import pallas as pl
from jax.experimental.pallas import tpu as pltpu


_VMEM_BUDGET = 48 * 1024 * 1024  # per-step working-set target (v7x VMEM = 64 MiB)


def _footprint_bytes(Bt, S, E, DFF, x_bytes, attn_bytes, w_bytes, w_bufs,
                     need_weights):
    """Rough per-grid-step VMEM footprint (in/out blocks double-buffered)."""
    f32 = 4
    fp = 2 * Bt * S * E * (x_bytes + f32)          # input + output blocks
    if need_weights:
        fp += 2 * Bt * S * S * attn_bytes          # attention-weights block
    fp += w_bytes * w_bufs                         # resident weights
    fp += Bt * S * 3 * E * f32                     # fused QKV activations
    fp += 2 * Bt * S * S * E * f32                 # q*k outer product / expanded p
    fp += Bt * S * DFF * f32                       # FFN hidden activations
    fp += 4 * Bt * S * E * f32                     # residual / LayerNorm temporaries
    return fp


def _pick_batch_tile(B, S, E, DFF, x_bytes, attn_bytes, w_bytes, w_bufs,
                     need_weights, use_bf16):
    # Target the MXU-native M rows per grid step (256 bf16 on v6e/v7x, 128
    # otherwise), then shrink until the per-step working set fits in VMEM.
    rows = 256 if use_bf16 else 128
    bt = min(B, max(1, rows // max(S, 1)))
    while bt > 1 and _footprint_bytes(bt, S, E, DFF, x_bytes, attn_bytes,
                                      w_bytes, w_bufs, need_weights) > _VMEM_BUDGET:
        bt = max(1, bt // 2)
    if bt < B and bt >= 8:
        bt = (bt // 8) * 8          # keep flattened output blocks sublane-aligned
    if bt >= B and B >= 16:
        # give v7x's two TensorCores at least two "parallel" grid steps
        bt = max(8, ((B // 2 + 7) // 8) * 8)
    return max(1, min(bt, B))


def _make_kernel(Bt, S, E, H, eps, mm_dtype, need_weights, flat_out):
    def kernel(x_ref, wqkv_ref, bqkv_ref, hmap_ref, hmapt_ref,
               wo_ref, bo_ref, g1_ref, beta1_ref,
               w1_ref, b1_ref, w2_ref, b2_ref, g2_ref, beta2_ref,
               out_ref, *attn_refs):
        x = x_ref[...].astype(jnp.float32)                      # (Bt, S, E)

        def mm(a, w_ref):   # (..., K) @ (K, N) on the MXU, f32 accumulation
            return jax.lax.dot_general(
                a.astype(mm_dtype), w_ref[...],
                (((a.ndim - 1,), (0,)), ((), ())),
                preferred_element_type=jnp.float32)

        # Fused QKV projection (one MXU call, N = 3E).  The 1/sqrt(head_dim)
        # scale is already folded into the Q columns / bias wrapper-side.
        qkv = mm(x, wqkv_ref) + bqkv_ref[...]                   # (Bt, S, 3E)
        q = qkv[:, :, 0 * E:1 * E]
        k = qkv[:, :, 1 * E:2 * E]
        v = qkv[:, :, 2 * E:3 * E]

        # Attention with heads kept packed along the lane/feature dim:
        # per-head dot products = elementwise q*k outer product (VPU) followed
        # by one skinny matmul against the constant 0/1 head map, so the MXU
        # never sees (S, HD) x (HD, S) per-head tiles.
        # TODO(synk): for large window_size add a K-axis grid dimension with an
        # online-softmax accumulator instead of materialising (S, S, E).
        op = q[:, :, None, :] * k[:, None, :, :]                # (Bt, Sq, Sk, E)
        scores = jax.lax.dot_general(                           # (Bt*Sq, Sk, H)
            op.reshape(Bt * S, S, E), hmap_ref[...],
            (((2,), (0,)), ((), ())), preferred_element_type=jnp.float32)

        m = jnp.max(scores, axis=1, keepdims=True)
        e = jnp.exp(scores - m)
        p = e * pl.reciprocal(jnp.sum(e, axis=1, keepdims=True), approx=True)

        if need_weights:
            attn_ref = attn_refs[0]
            # PyTorch average_attn_weights=True: mean over heads.
            attn = jnp.mean(p.reshape(Bt, S, S, H), axis=-1)    # (Bt, Sq, Sk)
            if flat_out:
                attn_ref[...] = attn.reshape(Bt, S * S).astype(attn_ref.dtype)
            else:
                attn_ref[...] = attn.astype(attn_ref.dtype)

        # Expand head probabilities back onto E lanes (p_e[..., e] = p[..., e//HD])
        # and weight V on the VPU; then one (Bt, S, E) @ (E, E) output projection.
        p_e = jax.lax.dot_general(
            p, hmapt_ref[...], (((2,), (0,)), ((), ())),
            preferred_element_type=jnp.float32).reshape(Bt, S, S, E)
        ctx = jnp.sum(p_e * v[:, None, :, :], axis=2)           # (Bt, Sq, E)
        ctx = mm(ctx, wo_ref) + bo_ref[...]                     # (Bt, S, E)

        def ln_seq(z, g_ref, b_ref):  # LayerNorm(window_size) over the S axis
            mu = jnp.mean(z, axis=1, keepdims=True)
            var = jnp.mean((z - mu) ** 2, axis=1, keepdims=True)
            return (z - mu) * jax.lax.rsqrt(var + eps) * g_ref[...] + b_ref[...]

        s1 = ln_seq(x + ctx, g1_ref, beta1_ref)
        h1 = jnp.maximum(mm(s1, w1_ref) + b1_ref[...], 0.0)     # (Bt, S, DFF)
        ff = mm(h1, w2_ref) + b2_ref[...]
        s2 = ln_seq(s1 + ff, g2_ref, beta2_ref)

        if flat_out:
            out_ref[...] = s2.reshape(Bt, S * E)                # lane-dense store
        else:
            out_ref[...] = s2

    return kernel


def sparse_encoder_layer(src, params, *, nhead, eps=1e-5, use_bf16=False,
                         need_weights=True, flat_out=True,
                         single_buffer_weights=True):
    """src: (S, B, E) float32 (PyTorch batch_first=False).  Returns (out, attn)."""
    S, B, E = src.shape
    H = nhead
    HD = E // H
    DFF = params["w1"].shape[1]
    mm_dtype = jnp.bfloat16 if use_bf16 else jnp.float32
    x_dtype = jnp.bfloat16 if use_bf16 else jnp.float32
    attn_dtype = jnp.bfloat16 if use_bf16 else jnp.float32

    # (B, S, E) working layout; bf16 input halves the HBM->VMEM DMA (v5e).
    x = jnp.transpose(src, (1, 0, 2)).astype(x_dtype)

    # Fused QKV weights with the 1/sqrt(head_dim) scale folded into Q.
    scale = 1.0 / math.sqrt(HD)
    wqkv = jnp.concatenate(
        [params["wq"] * scale, params["wk"], params["wv"]], axis=1).astype(mm_dtype)
    bqkv = jnp.concatenate(
        [params["bq"] * scale, params["bk"], params["bv"]], axis=1)

    # Constant 0/1 head map: head_map[e, h] = 1 iff feature e belongs to head h.
    head_ids = jnp.arange(E, dtype=jnp.int32) // HD
    head_map = (head_ids[:, None] == jnp.arange(H, dtype=jnp.int32)[None, :]
                ).astype(jnp.float32)

    weights = [
        wqkv, bqkv, head_map, head_map.T,
        params["wo"].astype(mm_dtype), params["bo"],
        params["g1"], params["beta1"],
        params["w1"].astype(mm_dtype), params["b1"],
        params["w2"].astype(mm_dtype), params["b2"],
        params["g2"], params["beta2"],
    ]
    w_bytes = sum(int(w.size) * w.dtype.itemsize for w in weights)
    w_bufs = 1 if single_buffer_weights else 2

    x_bytes = 2 if use_bf16 else 4
    attn_bytes = 2 if use_bf16 else 4
    Bt = _pick_batch_tile(B, S, E, DFF, x_bytes, attn_bytes, w_bytes, w_bufs,
                          need_weights, use_bf16)
    G = pl.cdiv(B, Bt)
    Bp = G * Bt
    if Bp != B:
        x = jnp.pad(x, ((0, Bp - B), (0, 0), (0, 0)))

    def wspec(arr):
        n = arr.ndim
        kwargs = {}
        if single_buffer_weights:
            # constant index_map -> a second pipeline buffer is pure VMEM waste
            kwargs["pipeline_mode"] = pl.Buffered(1)
        return pl.BlockSpec(arr.shape, lambda b, _n=n: (0,) * _n, **kwargs)

    in_specs = ([pl.BlockSpec((Bt, S, E), lambda b: (b, 0, 0))]
                + [wspec(w) for w in weights])

    if flat_out:   # lane-dense stores: last block dim S*E / S*S instead of E / S
        out_shapes = [jax.ShapeDtypeStruct((Bp, S * E), jnp.float32)]
        out_specs = [pl.BlockSpec((Bt, S * E), lambda b: (b, 0))]
        if need_weights:
            out_shapes.append(jax.ShapeDtypeStruct((Bp, S * S), attn_dtype))
            out_specs.append(pl.BlockSpec((Bt, S * S), lambda b: (b, 0)))
    else:
        out_shapes = [jax.ShapeDtypeStruct((Bp, S, E), jnp.float32)]
        out_specs = [pl.BlockSpec((Bt, S, E), lambda b: (b, 0, 0))]
        if need_weights:
            out_shapes.append(jax.ShapeDtypeStruct((Bp, S, S), attn_dtype))
            out_specs.append(pl.BlockSpec((Bt, S, S), lambda b: (b, 0, 0)))

    fp = _footprint_bytes(Bt, S, E, DFF, x_bytes, attn_bytes, w_bytes, w_bufs,
                          need_weights)
    vmem_limit = int(min(64 << 20, max(32 << 20, 2 * fp)))

    kernel = _make_kernel(Bt, S, E, H, eps, mm_dtype, need_weights, flat_out)

    results = pl.pallas_call(
        kernel,
        out_shape=tuple(out_shapes),
        grid_spec=pltpu.PrefetchScalarGridSpec(
            num_scalar_prefetch=0,
            grid=(G,),
            in_specs=in_specs,
            out_specs=out_specs,
        ),
        compiler_params=pltpu.CompilerParams(
            dimension_semantics=("parallel",),
            vmem_limit_bytes=vmem_limit),
    )(x, *weights)
    if not isinstance(results, (tuple, list)):
        results = (results,)

    out = results[0][:B]
    if flat_out:
        out = out.reshape(B, S, E)
    out = jnp.transpose(out, (1, 0, 2))          # back to (S, B, E)

    if not need_weights:
        return out, None
    attn = results[1][:B]
    if flat_out:
        attn = attn.reshape(B, S, S)
    return out, attn.astype(jnp.float32)


def reference(src, params, *, nhead, eps=1e-5):
    """Pure-JAX reference mirroring the PyTorch forward (dropout=0)."""
    S, B, E = src.shape
    HD = E // nhead
    x = jnp.transpose(src, (1, 0, 2))  # (B, S, E)
    q = x @ params["wq"] + params["bq"]
    k = x @ params["wk"] + params["bk"]
    v = x @ params["wv"] + params["bv"]

    def split(t):  # (B,S,E) -> (B,H,S,HD)
        return t.reshape(B, S, nhead, HD).transpose(0, 2, 1, 3)

    qh, kh, vh = split(q), split(k), split(v)
    scores = jnp.einsum("bhqd,bhkd->bhqk", qh, kh) / math.sqrt(HD)
    p = jax.nn.softmax(scores, axis=-1)
    attn = p.mean(axis=1)
    o = jnp.einsum("bhqk,bhkd->bhqd", p, vh).transpose(0, 2, 1, 3).reshape(B, S, E)
    ctx = o @ params["wo"] + params["bo"]

    def ln_seq(z, g, b):  # normalize over S (axis=1 in (B,S,E))
        mu = z.mean(axis=1, keepdims=True)
        var = ((z - mu) ** 2).mean(axis=1, keepdims=True)
        return (z - mu) / jnp.sqrt(var + eps) * g.reshape(1, S, 1) + b.reshape(1, S, 1)

    s1 = ln_seq(x + ctx, params["g1"], params["beta1"])
    ff = jnp.maximum(s1 @ params["w1"] + params["b1"], 0.0) @ params["w2"] + params["b2"]
    s2 = ln_seq(s1 + ff, params["g2"], params["beta2"])
    return jnp.transpose(s2, (1, 0, 2)), attn


def init_params(key, S, E, DFF):
    ks = jax.random.split(key, 12)
    f32 = jnp.float32
    return {
        "wq": 0.1 * jax.random.normal(ks[0], (E, E), f32),
        "bq": 0.05 * jax.random.normal(ks[1], (1, E), f32),
        "wk": 0.1 * jax.random.normal(ks[2], (E, E), f32),
        "bk": 0.05 * jax.random.normal(ks[3], (1, E), f32),
        "wv": 0.1 * jax.random.normal(ks[4], (E, E), f32),
        "bv": 0.05 * jax.random.normal(ks[5], (1, E), f32),
        "wo": 0.1 * jax.random.normal(ks[6], (E, E), f32),
        "bo": 0.05 * jax.random.normal(ks[7], (1, E), f32),
        "w1": 0.1 * jax.random.normal(ks[8], (E, DFF), f32),
        "b1": 0.05 * jax.random.normal(ks[9], (1, DFF), f32),
        "w2": 0.1 * jax.random.normal(ks[10], (DFF, E), f32),
        "b2": 0.05 * jax.random.normal(ks[11], (1, E), f32),
        # LayerNorm(window_size=S) params, stored (S,1) for in-kernel broadcast
        "g1": jnp.ones((S, 1), f32),
        "beta1": jnp.zeros((S, 1), f32),
        "g2": jnp.ones((S, 1), f32),
        "beta2": jnp.zeros((S, 1), f32),
    }


if __name__ == "__main__":
    S, B, E, H, DFF = 8, 2, 32, 4, 64  # window_size=S=8, d_model=32, nhead=4

    key = jax.random.PRNGKey(0)
    k_src, k_par = jax.random.split(key)
    src = jax.random.normal(k_src, (S, B, E), jnp.float32)
    params = init_params(k_par, S, E, DFF)

    ref_out, ref_attn = reference(src, params, nhead=H)

    # Single-buffered constant weights and flattened lane-dense output blocks
    # depend on backend/version lowering support; pick the best config that
    # compiles (the first entry is the intended fast path).
    configs = (dict(flat_out=True, single_buffer_weights=True),
               dict(flat_out=False, single_buffer_weights=True),
               dict(flat_out=True, single_buffer_weights=False),
               dict(flat_out=False, single_buffer_weights=False))
    out = attn = None
    last_err = None
    for cfg in configs:
        try:
            run = jax.jit(functools.partial(sparse_encoder_layer, nhead=H, **cfg))
            out, attn = run(src, params)
            jax.block_until_ready(out)
            jax.block_until_ready(attn)
            break
        except Exception as err:  # unsupported layout feature on this backend
            last_err = err
            out = attn = None
    if out is None:
        raise last_err

    assert out.shape == (S, B, E) and attn.shape == (B, S, S)
    # 5e-3 tolerance: softmax uses the EUP approximate reciprocal.
    assert jnp.allclose(out, ref_out, atol=5e-3, rtol=5e-3), "output mismatch"
    assert jnp.allclose(attn, ref_attn, atol=5e-3, rtol=5e-3), "attention mismatch"

    # bf16 MXU/DMA fast path (softmax, LayerNorm and accumulation stay f32).
    run16 = jax.jit(functools.partial(sparse_encoder_layer, nhead=H,
                                      use_bf16=True, **cfg))
    out16, attn16 = run16(src, params)
    jax.block_until_ready(out16)
    assert jnp.allclose(out16, ref_out, atol=1e-1, rtol=1e-1), "bf16 output mismatch"

    # need_weights=False variant skips the attention-weights writeback entirely.
    run_nw = jax.jit(functools.partial(sparse_encoder_layer, nhead=H,
                                       need_weights=False, **cfg))
    out_nw, none_attn = run_nw(src, params)
    jax.block_until_ready(out_nw)
    assert none_attn is None
    assert jnp.allclose(out_nw, ref_out, atol=5e-3, rtol=5e-3), "need_weights=False mismatch"

    # TODO(synk): SparseTopP / Sparse attention variants and the BatchNorm1d
    # (args.batch_norm) training-mode branch are config paths not exercised
    # here (args.attention='Base', args.batch_norm=False); dropout p=0.0 is
    # the identity.
    print("KERNEL_OK")
</pallas_src>

<mosaic_0001>
module attributes {stable_mosaic.version = 11 : i64} {
  func.func @kernel(%arg0: i32, %arg1: memref<2x8x32xf32, #tpu.memory_space<vmem>>, %arg2: memref<32x96xf32, #tpu.memory_space<vmem>>, %arg3: memref<1x96xf32, #tpu.memory_space<vmem>>, %arg4: memref<32x4xf32, #tpu.memory_space<vmem>>, %arg5: memref<4x32xf32, #tpu.memory_space<vmem>>, %arg6: memref<32x32xf32, #tpu.memory_space<vmem>>, %arg7: memref<1x32xf32, #tpu.memory_space<vmem>>, %arg8: memref<8x1xf32, #tpu.memory_space<vmem>>, %arg9: memref<8x1xf32, #tpu.memory_space<vmem>>, %arg10: memref<32x64xf32, #tpu.memory_space<vmem>>, %arg11: memref<1x64xf32, #tpu.memory_space<vmem>>, %arg12: memref<64x32xf32, #tpu.memory_space<vmem>>, %arg13: memref<1x32xf32, #tpu.memory_space<vmem>>, %arg14: memref<8x1xf32, #tpu.memory_space<vmem>>, %arg15: memref<8x1xf32, #tpu.memory_space<vmem>>, %arg16: memref<2x256xf32, #tpu.memory_space<vmem>>, %arg17: memref<2x64xf32, #tpu.memory_space<vmem>>) attributes {dimension_semantics = [#tpu.dimension_semantics<parallel>], iteration_bounds = array<i64: 1>, scalar_prefetch = 0 : i64, scratch_operands = 0 : i64, tpu.core_type = #tpu.core_type<tc>, window_params = [{transform_indices = @transform_0, window_bounds = array<i64: 2, 8, 32>}, {pipeline_mode = #tpu.pipeline_mode<synchronous>, transform_indices = @transform_1, window_bounds = array<i64: 32, 96>}, {pipeline_mode = #tpu.pipeline_mode<synchronous>, transform_indices = @transform_2, window_bounds = array<i64: 1, 96>}, {pipeline_mode = #tpu.pipeline_mode<synchronous>, transform_indices = @transform_3, window_bounds = array<i64: 32, 4>}, {pipeline_mode = #tpu.pipeline_mode<synchronous>, transform_indices = @transform_4, window_bounds = array<i64: 4, 32>}, {pipeline_mode = #tpu.pipeline_mode<synchronous>, transform_indices = @transform_5, window_bounds = array<i64: 32, 32>}, {pipeline_mode = #tpu.pipeline_mode<synchronous>, transform_indices = @transform_6, window_bounds = array<i64: 1, 32>}, {pipeline_mode = #tpu.pipeline_mode<synchronous>, transform_indices = @transform_7, window_bounds = array<i64: 8, 1>}, {pipeline_mode = #tpu.pipeline_mode<synchronous>, transform_indices = @transform_8, window_bounds = array<i64: 8, 1>}, {pipeline_mode = #tpu.pipeline_mode<synchronous>, transform_indices = @transform_9, window_bounds = array<i64: 32, 64>}, {pipeline_mode = #tpu.pipeline_mode<synchronous>, transform_indices = @transform_10, window_bounds = array<i64: 1, 64>}, {pipeline_mode = #tpu.pipeline_mode<synchronous>, transform_indices = @transform_11, window_bounds = array<i64: 64, 32>}, {pipeline_mode = #tpu.pipeline_mode<synchronous>, transform_indices = @transform_12, window_bounds = array<i64: 1, 32>}, {pipeline_mode = #tpu.pipeline_mode<synchronous>, transform_indices = @transform_13, window_bounds = array<i64: 8, 1>}, {pipeline_mode = #tpu.pipeline_mode<synchronous>, transform_indices = @transform_14, window_bounds = array<i64: 8, 1>}, {transform_indices = @transform_15, window_bounds = array<i64: 2, 256>}, {transform_indices = @transform_16, window_bounds = array<i64: 2, 64>}]} {
    %c0 = arith.constant 0 : index
    %c0_0 = arith.constant 0 : index
    %c0_1 = arith.constant 0 : index
    %0 = vector.load %arg1[%c0, %c0_0, %c0_1] : memref<2x8x32xf32, #tpu.memory_space<vmem>>, vector<2x8x32xf32>
    %c0_2 = arith.constant 0 : index
    %c0_3 = arith.constant 0 : index
    %1 = vector.load %arg2[%c0_2, %c0_3] : memref<32x96xf32, #tpu.memory_space<vmem>>, vector<32x96xf32>
    %cst = arith.constant dense<0.000000e+00> : vector<2x8x96xf32>
    %2 = tpu.matmul %0, %1, %cst {dimension_numbers = #tpu.dot_dimension_numbers<[2], [0], [0, 1], [1], [0, 0, 0, 1, 1, 1], [], []>} : vector<2x8x32xf32>, vector<32x96xf32>, vector<2x8x96xf32> -> vector<2x8x96xf32>
    %c0_4 = arith.constant 0 : index
    %c0_5 = arith.constant 0 : index
    %3 = vector.load %arg3[%c0_4, %c0_5] : memref<1x96xf32, #tpu.memory_space<vmem>>, vector<1x96xf32>
    %4 = vector.shape_cast %3 : vector<1x96xf32> to vector<1x1x96xf32>
    %5 = vector.broadcast %4 : vector<1x1x96xf32> to vector<2x8x96xf32>
    %6 = arith.addf %2, %5 : vector<2x8x96xf32>
    %7 = vector.extract_strided_slice %6 {offsets = [0, 0, 0], sizes = [2, 8, 32], strides = [1, 1, 1]} : vector<2x8x96xf32> to vector<2x8x32xf32>
    %8 = vector.extract_strided_slice %6 {offsets = [0, 0, 32], sizes = [2, 8, 32], strides = [1, 1, 1]} : vector<2x8x96xf32> to vector<2x8x32xf32>
    %9 = vector.extract_strided_slice %6 {offsets = [0, 0, 64], sizes = [2, 8, 32], strides = [1, 1, 1]} : vector<2x8x96xf32> to vector<2x8x32xf32>
    %10 = vector.shape_cast %7 : vector<2x8x32xf32> to vector<2x8x1x32xf32>
    %11 = vector.shape_cast %8 : vector<2x8x32xf32> to vector<2x1x8x32xf32>
    %12 = vector.broadcast %10 : vector<2x8x1x32xf32> to vector<2x8x8x32xf32>
    %13 = vector.broadcast %11 : vector<2x1x8x32xf32> to vector<2x8x8x32xf32>
    %14 = arith.mulf %12, %13 : vector<2x8x8x32xf32>
    %15 = vector.shape_cast %14 : vector<2x8x8x32xf32> to vector<16x8x32xf32>
    %c0_6 = arith.constant 0 : index
    %c0_7 = arith.constant 0 : index
    %16 = vector.load %arg4[%c0_6, %c0_7] : memref<32x4xf32, #tpu.memory_space<vmem>>, vector<32x4xf32>
    %cst_8 = arith.constant dense<0.000000e+00> : vector<16x8x4xf32>
    %17 = tpu.matmul %15, %16, %cst_8 {dimension_numbers = #tpu.dot_dimension_numbers<[2], [0], [0, 1], [1], [0, 0, 0, 1, 1, 1], [], []>} : vector<16x8x32xf32>, vector<32x4xf32>, vector<16x8x4xf32> -> vector<16x8x4xf32>
    %cst_9 = arith.constant dense<0xFF800000> : vector<16x4xf32>
    %18 = vector.multi_reduction <maximumf>, %17, %cst_9 [1] : vector<16x8x4xf32> to vector<16x4xf32>
    %19 = vector.shape_cast %18 : vector<16x4xf32> to vector<16x1x4xf32>
    %20 = vector.broadcast %19 : vector<16x1x4xf32> to vector<16x8x4xf32>
    %21 = arith.subf %17, %20 : vector<16x8x4xf32>
    %22 = math.exp %21 : vector<16x8x4xf32>
    %cst_10 = arith.constant dense<0.000000e+00> : vector<16x4xf32>
    %23 = vector.multi_reduction <add>, %22, %cst_10 [1] : vector<16x8x4xf32> to vector<16x4xf32>
    %24 = vector.shape_cast %23 : vector<16x4xf32> to vector<16x1x4xf32>
    %25 = tpu.reciprocal %24 {approx = true} : vector<16x1x4xf32> -> vector<16x1x4xf32>
    %26 = vector.broadcast %25 : vector<16x1x4xf32> to vector<16x8x4xf32>
    %27 = arith.mulf %22, %26 : vector<16x8x4xf32>
    %28 = vector.shape_cast %27 : vector<16x8x4xf32> to vector<2x8x8x4xf32>
    %cst_11 = arith.constant dense<0.000000e+00> : vector<2x8x8xf32>
    %29 = vector.multi_reduction <add>, %28, %cst_11 [3] : vector<2x8x8x4xf32> to vector<2x8x8xf32>
    %cst_12 = arith.constant 4.000000e+00 : f32
    %30 = vector.broadcast %cst_12 : f32 to vector<2x8x8xf32>
    %31 = arith.divf %29, %30 : vector<2x8x8xf32>
    %32 = vector.shape_cast %31 : vector<2x8x8xf32> to vector<2x64xf32>
    %c0_13 = arith.constant 0 : index
    %c0_14 = arith.constant 0 : index
    %33 = vector.load %arg17[%c0_13, %c0_14] : memref<2x64xf32, #tpu.memory_space<vmem>>, vector<2x64xf32>
    tpu.vector_store %arg17[%c0_13, %c0_14], %32 {strides = array<i32>} : memref<2x64xf32, #tpu.memory_space<vmem>>, vector<2x64xf32>,
    %c0_15 = arith.constant 0 : index
    %c0_16 = arith.constant 0 : index
    %34 = vector.load %arg5[%c0_15, %c0_16] : memref<4x32xf32, #tpu.memory_space<vmem>>, vector<4x32xf32>
    %cst_17 = arith.constant dense<0.000000e+00> : vector<16x8x32xf32>
    %35 = tpu.matmul %27, %34, %cst_17 {dimension_numbers = #tpu.dot_dimension_numbers<[2], [0], [0, 1], [1], [0, 0, 0, 1, 1, 1], [], []>} : vector<16x8x4xf32>, vector<4x32xf32>, vector<16x8x32xf32> -> vector<16x8x32xf32>
    %36 = vector.shape_cast %35 : vector<16x8x32xf32> to vector<2x8x8x32xf32>
    %37 = vector.shape_cast %9 : vector<2x8x32xf32> to vector<2x1x8x32xf32>
    %38 = vector.broadcast %37 : vector<2x1x8x32xf32> to vector<2x8x8x32xf32>
    %39 = arith.mulf %36, %38 : vector<2x8x8x32xf32>
    %cst_18 = arith.constant dense<0.000000e+00> : vector<2x8x32xf32>
    %40 = vector.multi_reduction <add>, %39, %cst_18 [2] : vector<2x8x8x32xf32> to vector<2x8x32xf32>
    %c0_19 = arith.constant 0 : index
    %c0_20 = arith.constant 0 : index
    %41 = vector.load %arg6[%c0_19, %c0_20] : memref<32x32xf32, #tpu.memory_space<vmem>>, vector<32x32xf32>
    %cst_21 = arith.constant dense<0.000000e+00> : vector<2x8x32xf32>
    %42 = tpu.matmul %40, %41, %cst_21 {dimension_numbers = #tpu.dot_dimension_numbers<[2], [0], [0, 1], [1], [0, 0, 0, 1, 1, 1], [], []>} : vector<2x8x32xf32>, vector<32x32xf32>, vector<2x8x32xf32> -> vector<2x8x32xf32>
    %c0_22 = arith.constant 0 : index
    %c0_23 = arith.constant 0 : index
    %43 = vector.load %arg7[%c0_22, %c0_23] : memref<1x32xf32, #tpu.memory_space<vmem>>, vector<1x32xf32>
    %44 = vector.shape_cast %43 : vector<1x32xf32> to vector<1x1x32xf32>
    %45 = vector.broadcast %44 : vector<1x1x32xf32> to vector<2x8x32xf32>
    %46 = arith.addf %42, %45 : vector<2x8x32xf32>
    %47 = arith.addf %0, %46 : vector<2x8x32xf32>
    %cst_24 = arith.constant dense<0.000000e+00> : vector<2x32xf32>
    %48 = vector.multi_reduction <add>, %47, %cst_24 [1] : vector<2x8x32xf32> to vector<2x32xf32>
    %49 = vector.shape_cast %48 : vector<2x32xf32> to vector<2x1x32xf32>
    %cst_25 = arith.constant 8.000000e+00 : f32
    %50 = vector.broadcast %cst_25 : f32 to vector<2x1x32xf32>
    %51 = arith.divf %49, %50 : vector<2x1x32xf32>
    %52 = vector.broadcast %51 : vector<2x1x32xf32> to vector<2x8x32xf32>
    %53 = arith.subf %47, %52 : vector<2x8x32xf32>
    %54 = arith.mulf %53, %53 : vector<2x8x32xf32>
    %cst_26 = arith.constant dense<0.000000e+00> : vector<2x32xf32>
    %55 = vector.multi_reduction <add>, %54, %cst_26 [1] : vector<2x8x32xf32> to vector<2x32xf32>
    %56 = vector.shape_cast %55 : vector<2x32xf32> to vector<2x1x32xf32>
    %cst_27 = arith.constant 8.000000e+00 : f32
    %57 = vector.broadcast %cst_27 : f32 to vector<2x1x32xf32>
    %58 = arith.divf %56, %57 : vector<2x1x32xf32>
    %59 = vector.broadcast %51 : vector<2x1x32xf32> to vector<2x8x32xf32>
    %60 = arith.subf %47, %59 : vector<2x8x32xf32>
    %cst_28 = arith.constant 9.99999974E-6 : f32
    %61 = vector.broadcast %cst_28 : f32 to vector<2x1x32xf32>
    %62 = arith.addf %58, %61 : vector<2x1x32xf32>
    %63 = math.rsqrt %62 : vector<2x1x32xf32>
    %64 = vector.broadcast %63 : vector<2x1x32xf32> to vector<2x8x32xf32>
    %65 = arith.mulf %60, %64 : vector<2x8x32xf32>
    %c0_29 = arith.constant 0 : index
    %c0_30 = arith.constant 0 : index
    %66 = vector.load %arg8[%c0_29, %c0_30] : memref<8x1xf32, #tpu.memory_space<vmem>>, vector<8x1xf32>
    %67 = vector.shape_cast %66 : vector<8x1xf32> to vector<1x8x1xf32>
    %68 = vector.broadcast %67 : vector<1x8x1xf32> to vector<2x8x32xf32>
    %69 = arith.mulf %65, %68 : vector<2x8x32xf32>
    %c0_31 = arith.constant 0 : index
    %c0_32 = arith.constant 0 : index
    %70 = vector.load %arg9[%c0_31, %c0_32] : memref<8x1xf32, #tpu.memory_space<vmem>>, vector<8x1xf32>
    %71 = vector.shape_cast %70 : vector<8x1xf32> to vector<1x8x1xf32>
    %72 = vector.broadcast %71 : vector<1x8x1xf32> to vector<2x8x32xf32>
    %73 = arith.addf %69, %72 : vector<2x8x32xf32>
    %c0_33 = arith.constant 0 : index
    %c0_34 = arith.constant 0 : index
    %74 = vector.load %arg10[%c0_33, %c0_34] : memref<32x64xf32, #tpu.memory_space<vmem>>, vector<32x64xf32>
    %cst_35 = arith.constant dense<0.000000e+00> : vector<2x8x64xf32>
    %75 = tpu.matmul %73, %74, %cst_35 {dimension_numbers = #tpu.dot_dimension_numbers<[2], [0], [0, 1], [1], [0, 0, 0, 1, 1, 1], [], []>} : vector<2x8x32xf32>, vector<32x64xf32>, vector<2x8x64xf32> -> vector<2x8x64xf32>
    %c0_36 = arith.constant 0 : index
    %c0_37 = arith.constant 0 : index
    %76 = vector.load %arg11[%c0_36, %c0_37] : memref<1x64xf32, #tpu.memory_space<vmem>>, vector<1x64xf32>
    %77 = vector.shape_cast %76 : vector<1x64xf32> to vector<1x1x64xf32>
    %78 = vector.broadcast %77 : vector<1x1x64xf32> to vector<2x8x64xf32>
    %79 = arith.addf %75, %78 : vector<2x8x64xf32>
    %cst_38 = arith.constant 0.000000e+00 : f32
    %80 = vector.broadcast %cst_38 : f32 to vector<2x8x64xf32>
    %81 = arith.maximumf %79, %80 : vector<2x8x64xf32>
    %c0_39 = arith.constant 0 : index
    %c0_40 = arith.constant 0 : index
    %82 = vector.load %arg12[%c0_39, %c0_40] : memref<64x32xf32, #tpu.memory_space<vmem>>, vector<64x32xf32>
    %cst_41 = arith.constant dense<0.000000e+00> : vector<2x8x32xf32>
    %83 = tpu.matmul %81, %82, %cst_41 {dimension_numbers = #tpu.dot_dimension_numbers<[2], [0], [0, 1], [1], [0, 0, 0, 1, 1, 1], [], []>} : vector<2x8x64xf32>, vector<64x32xf32>, vector<2x8x32xf32> -> vector<2x8x32xf32>
    %c0_42 = arith.constant 0 : index
    %c0_43 = arith.constant 0 : index
    %84 = vector.load %arg13[%c0_42, %c0_43] : memref<1x32xf32, #tpu.memory_space<vmem>>, vector<1x32xf32>
    %85 = vector.shape_cast %84 : vector<1x32xf32> to vector<1x1x32xf32>
    %86 = vector.broadcast %85 : vector<1x1x32xf32> to vector<2x8x32xf32>
    %87 = arith.addf %83, %86 : vector<2x8x32xf32>
    %88 = arith.addf %73, %87 : vector<2x8x32xf32>
    %cst_44 = arith.constant dense<0.000000e+00> : vector<2x32xf32>
    %89 = vector.multi_reduction <add>, %88, %cst_44 [1] : vector<2x8x32xf32> to vector<2x32xf32>
    %90 = vector.shape_cast %89 : vector<2x32xf32> to vector<2x1x32xf32>
    %cst_45 = arith.constant 8.000000e+00 : f32
    %91 = vector.broadcast %cst_45 : f32 to vector<2x1x32xf32>
    %92 = arith.divf %90, %91 : vector<2x1x32xf32>
    %93 = vector.broadcast %92 : vector<2x1x32xf32> to vector<2x8x32xf32>
    %94 = arith.subf %88, %93 : vector<2x8x32xf32>
    %95 = arith.mulf %94, %94 : vector<2x8x32xf32>
    %cst_46 = arith.constant dense<0.000000e+00> : vector<2x32xf32>
    %96 = vector.multi_reduction <add>, %95, %cst_46 [1] : vector<2x8x32xf32> to vector<2x32xf32>
    %97 = vector.shape_cast %96 : vector<2x32xf32> to vector<2x1x32xf32>
    %cst_47 = arith.constant 8.000000e+00 : f32
    %98 = vector.broadcast %cst_47 : f32 to vector<2x1x32xf32>
    %99 = arith.divf %97, %98 : vector<2x1x32xf32>
    %100 = vector.broadcast %92 : vector<2x1x32xf32> to vector<2x8x32xf32>
    %101 = arith.subf %88, %100 : vector<2x8x32xf32>
    %cst_48 = arith.constant 9.99999974E-6 : f32
    %102 = vector.broadcast %cst_48 : f32 to vector<2x1x32xf32>
    %103 = arith.addf %99, %102 : vector<2x1x32xf32>
    %104 = math.rsqrt %103 : vector<2x1x32xf32>
    %105 = vector.broadcast %104 : vector<2x1x32xf32> to vector<2x8x32xf32>
    %106 = arith.mulf %101, %105 : vector<2x8x32xf32>
    %c0_49 = arith.constant 0 : index
    %c0_50 = arith.constant 0 : index
    %107 = vector.load %arg14[%c0_49, %c0_50] : memref<8x1xf32, #tpu.memory_space<vmem>>, vector<8x1xf32>
    %108 = vector.shape_cast %107 : vector<8x1xf32> to vector<1x8x1xf32>
    %109 = vector.broadcast %108 : vector<1x8x1xf32> to vector<2x8x32xf32>
    %110 = arith.mulf %106, %109 : vector<2x8x32xf32>
    %c0_51 = arith.constant 0 : index
    %c0_52 = arith.constant 0 : index
    %111 = vector.load %arg15[%c0_51, %c0_52] : memref<8x1xf32, #tpu.memory_space<vmem>>, vector<8x1xf32>
    %112 = vector.shape_cast %111 : vector<8x1xf32> to vector<1x8x1xf32>
    %113 = vector.broadcast %112 : vector<1x8x1xf32> to vector<2x8x32xf32>
    %114 = arith.addf %110, %113 : vector<2x8x32xf32>
    %115 = vector.shape_cast %114 : vector<2x8x32xf32> to vector<2x256xf32>
    %c0_53 = arith.constant 0 : index
    %c0_54 = arith.constant 0 : index
    %116 = vector.load %arg16[%c0_53, %c0_54] : memref<2x256xf32, #tpu.memory_space<vmem>>, vector<2x256xf32>
    tpu.vector_store %arg16[%c0_53, %c0_54], %115 {strides = array<i32>} : memref<2x256xf32, #tpu.memory_space<vmem>>, vector<2x256xf32>,
    return
  }
  func.func @transform_0(%arg0: i32) -> (i32, i32, i32) {
    %c0_i32 = arith.constant 0 : i32
    %c0_i32_0 = arith.constant 0 : i32
    %c0_i32_1 = arith.constant 0 : i32
    return %arg0, %c0_i32, %c0_i32_0 : i32, i32, i32
  }
  func.func @transform_1(%arg0: i32) -> (i32, i32) {
    %c0_i32 = arith.constant 0 : i32
    %c0_i32_0 = arith.constant 0 : i32
    %c0_i32_1 = arith.constant 0 : i32
    return %c0_i32, %c0_i32_0 : i32, i32
  }
  func.func @transform_2(%arg0: i32) -> (i32, i32) {
    %c0_i32 = arith.constant 0 : i32
    %c0_i32_0 = arith.constant 0 : i32
    %c0_i32_1 = arith.constant 0 : i32
    return %c0_i32, %c0_i32_0 : i32, i32
  }
  func.func @transform_3(%arg0: i32) -> (i32, i32) {
    %c0_i32 = arith.constant 0 : i32
    %c0_i32_0 = arith.constant 0 : i32
    %c0_i32_1 = arith.constant 0 : i32
    return %c0_i32, %c0_i32_0 : i32, i32
  }
  func.func @transform_4(%arg0: i32) -> (i32, i32) {
    %c0_i32 = arith.constant 0 : i32
    %c0_i32_0 = arith.constant 0 : i32
    %c0_i32_1 = arith.constant 0 : i32
    return %c0_i32, %c0_i32_0 : i32, i32
  }
  func.func @transform_5(%arg0: i32) -> (i32, i32) {
    %c0_i32 = arith.constant 0 : i32
    %c0_i32_0 = arith.constant 0 : i32
    %c0_i32_1 = arith.constant 0 : i32
    return %c0_i32, %c0_i32_0 : i32, i32
  }
  func.func @transform_6(%arg0: i32) -> (i32, i32) {
    %c0_i32 = arith.constant 0 : i32
    %c0_i32_0 = arith.constant 0 : i32
    %c0_i32_1 = arith.constant 0 : i32
    return %c0_i32, %c0_i32_0 : i32, i32
  }
  func.func @transform_7(%arg0: i32) -> (i32, i32) {
    %c0_i32 = arith.constant 0 : i32
    %c0_i32_0 = arith.constant 0 : i32
    %c0_i32_1 = arith.constant 0 : i32
    return %c0_i32, %c0_i32_0 : i32, i32
  }
  func.func @transform_8(%arg0: i32) -> (i32, i32) {
    %c0_i32 = arith.constant 0 : i32
    %c0_i32_0 = arith.constant 0 : i32
    %c0_i32_1 = arith.constant 0 : i32
    return %c0_i32, %c0_i32_0 : i32, i32
  }
  func.func @transform_9(%arg0: i32) -> (i32, i32) {
    %c0_i32 = arith.constant 0 : i32
    %c0_i32_0 = arith.constant 0 : i32
    %c0_i32_1 = arith.constant 0 : i32
    return %c0_i32, %c0_i32_0 : i32, i32
  }
  func.func @transform_10(%arg0: i32) -> (i32, i32) {
    %c0_i32 = arith.constant 0 : i32
    %c0_i32_0 = arith.constant 0 : i32
    %c0_i32_1 = arith.constant 0 : i32
    return %c0_i32, %c0_i32_0 : i32, i32
  }
  func.func @transform_11(%arg0: i32) -> (i32, i32) {
    %c0_i32 = arith.constant 0 : i32
    %c0_i32_0 = arith.constant 0 : i32
    %c0_i32_1 = arith.constant 0 : i32
    return %c0_i32, %c0_i32_0 : i32, i32
  }
  func.func @transform_12(%arg0: i32) -> (i32, i32) {
    %c0_i32 = arith.constant 0 : i32
    %c0_i32_0 = arith.constant 0 : i32
    %c0_i32_1 = arith.constant 0 : i32
    return %c0_i32, %c0_i32_0 : i32, i32
  }
  func.func @transform_13(%arg0: i32) -> (i32, i32) {
    %c0_i32 = arith.constant 0 : i32
    %c0_i32_0 = arith.constant 0 : i32
    %c0_i32_1 = arith.constant 0 : i32
    return %c0_i32, %c0_i32_0 : i32, i32
  }
  func.func @transform_14(%arg0: i32) -> (i32, i32) {
    %c0_i32 = arith.constant 0 : i32
    %c0_i32_0 = arith.constant 0 : i32
    %c0_i32_1 = arith.constant 0 : i32
    return %c0_i32, %c0_i32_0 : i32, i32
  }
  func.func @transform_15(%arg0: i32) -> (i32, i32) {
    %c0_i32 = arith.constant 0 : i32
    %c0_i32_0 = arith.constant 0 : i32
    return %arg0, %c0_i32 : i32, i32
  }
  func.func @transform_16(%arg0: i32) -> (i32, i32) {
    %c0_i32 = arith.constant 0 : i32
    %c0_i32_0 = arith.constant 0 : i32
    return %arg0, %c0_i32 : i32, i32
  }
}

module attributes {stable_mosaic.version = 11 : i64} {
  func.func @kernel(%arg0: i32, %arg1: memref<2x8x32xf32, #tpu.memory_space<vmem>>, %arg2: memref<32x96xf32, #tpu.memory_space<vmem>>, %arg3: memref<1x96xf32, #tpu.memory_space<vmem>>, %arg4: memref<32x4xf32, #tpu.memory_space<vmem>>, %arg5: memref<4x32xf32, #tpu.memory_space<vmem>>, %arg6: memref<32x32xf32, #tpu.memory_space<vmem>>, %arg7: memref<1x32xf32, #tpu.memory_space<vmem>>, %arg8: memref<8x1xf32, #tpu.memory_space<vmem>>, %arg9: memref<8x1xf32, #tpu.memory_space<vmem>>, %arg10: memref<32x64xf32, #tpu.memory_space<vmem>>, %arg11: memref<1x64xf32, #tpu.memory_space<vmem>>, %arg12: memref<64x32xf32, #tpu.memory_space<vmem>>, %arg13: memref<1x32xf32, #tpu.memory_space<vmem>>, %arg14: memref<8x1xf32, #tpu.memory_space<vmem>>, %arg15: memref<8x1xf32, #tpu.memory_space<vmem>>, %arg16: memref<2x8x32xf32, #tpu.memory_space<vmem>>, %arg17: memref<2x8x8xf32, #tpu.memory_space<vmem>>) attributes {dimension_semantics = [#tpu.dimension_semantics<parallel>], iteration_bounds = array<i64: 1>, scalar_prefetch = 0 : i64, scratch_operands = 0 : i64, tpu.core_type = #tpu.core_type<tc>, window_params = [{transform_indices = @transform_0, window_bounds = array<i64: 2, 8, 32>}, {pipeline_mode = #tpu.pipeline_mode<synchronous>, transform_indices = @transform_1, window_bounds = array<i64: 32, 96>}, {pipeline_mode = #tpu.pipeline_mode<synchronous>, transform_indices = @transform_2, window_bounds = array<i64: 1, 96>}, {pipeline_mode = #tpu.pipeline_mode<synchronous>, transform_indices = @transform_3, window_bounds = array<i64: 32, 4>}, {pipeline_mode = #tpu.pipeline_mode<synchronous>, transform_indices = @transform_4, window_bounds = array<i64: 4, 32>}, {pipeline_mode = #tpu.pipeline_mode<synchronous>, transform_indices = @transform_5, window_bounds = array<i64: 32, 32>}, {pipeline_mode = #tpu.pipeline_mode<synchronous>, transform_indices = @transform_6, window_bounds = array<i64: 1, 32>}, {pipeline_mode = #tpu.pipeline_mode<synchronous>, transform_indices = @transform_7, window_bounds = array<i64: 8, 1>}, {pipeline_mode = #tpu.pipeline_mode<synchronous>, transform_indices = @transform_8, window_bounds = array<i64: 8, 1>}, {pipeline_mode = #tpu.pipeline_mode<synchronous>, transform_indices = @transform_9, window_bounds = array<i64: 32, 64>}, {pipeline_mode = #tpu.pipeline_mode<synchronous>, transform_indices = @transform_10, window_bounds = array<i64: 1, 64>}, {pipeline_mode = #tpu.pipeline_mode<synchronous>, transform_indices = @transform_11, window_bounds = array<i64: 64, 32>}, {pipeline_mode = #tpu.pipeline_mode<synchronous>, transform_indices = @transform_12, window_bounds = array<i64: 1, 32>}, {pipeline_mode = #tpu.pipeline_mode<synchronous>, transform_indices = @transform_13, window_bounds = array<i64: 8, 1>}, {pipeline_mode = #tpu.pipeline_mode<synchronous>, transform_indices = @transform_14, window_bounds = array<i64: 8, 1>}, {transform_indices = @transform_15, window_bounds = array<i64: 2, 8, 32>}, {transform_indices = @transform_16, window_bounds = array<i64: 2, 8, 8>}]} {
    %c0 = arith.constant 0 : index
    %c0_0 = arith.constant 0 : index
    %c0_1 = arith.constant 0 : index
    %0 = vector.load %arg1[%c0, %c0_0, %c0_1] : memref<2x8x32xf32, #tpu.memory_space<vmem>>, vector<2x8x32xf32>
    %c0_2 = arith.constant 0 : index
    %c0_3 = arith.constant 0 : index
    %1 = vector.load %arg2[%c0_2, %c0_3] : memref<32x96xf32, #tpu.memory_space<vmem>>, vector<32x96xf32>
    %cst = arith.constant dense<0.000000e+00> : vector<2x8x96xf32>
    %2 = tpu.matmul %0, %1, %cst {dimension_numbers = #tpu.dot_dimension_numbers<[2], [0], [0, 1], [1], [0, 0, 0, 1, 1, 1], [], []>} : vector<2x8x32xf32>, vector<32x96xf32>, vector<2x8x96xf32> -> vector<2x8x96xf32>
    %c0_4 = arith.constant 0 : index
    %c0_5 = arith.constant 0 : index
    %3 = vector.load %arg3[%c0_4, %c0_5] : memref<1x96xf32, #tpu.memory_space<vmem>>, vector<1x96xf32>
    %4 = vector.shape_cast %3 : vector<1x96xf32> to vector<1x1x96xf32>
    %5 = vector.broadcast %4 : vector<1x1x96xf32> to vector<2x8x96xf32>
    %6 = arith.addf %2, %5 : vector<2x8x96xf32>
    %7 = vector.extract_strided_slice %6 {offsets = [0, 0, 0], sizes = [2, 8, 32], strides = [1, 1, 1]} : vector<2x8x96xf32> to vector<2x8x32xf32>
    %8 = vector.extract_strided_slice %6 {offsets = [0, 0, 32], sizes = [2, 8, 32], strides = [1, 1, 1]} : vector<2x8x96xf32> to vector<2x8x32xf32>
    %9 = vector.extract_strided_slice %6 {offsets = [0, 0, 64], sizes = [2, 8, 32], strides = [1, 1, 1]} : vector<2x8x96xf32> to vector<2x8x32xf32>
    %10 = vector.shape_cast %7 : vector<2x8x32xf32> to vector<2x8x1x32xf32>
    %11 = vector.shape_cast %8 : vector<2x8x32xf32> to vector<2x1x8x32xf32>
    %12 = vector.broadcast %10 : vector<2x8x1x32xf32> to vector<2x8x8x32xf32>
    %13 = vector.broadcast %11 : vector<2x1x8x32xf32> to vector<2x8x8x32xf32>
    %14 = arith.mulf %12, %13 : vector<2x8x8x32xf32>
    %15 = vector.shape_cast %14 : vector<2x8x8x32xf32> to vector<16x8x32xf32>
    %c0_6 = arith.constant 0 : index
    %c0_7 = arith.constant 0 : index
    %16 = vector.load %arg4[%c0_6, %c0_7] : memref<32x4xf32, #tpu.memory_space<vmem>>, vector<32x4xf32>
    %cst_8 = arith.constant dense<0.000000e+00> : vector<16x8x4xf32>
    %17 = tpu.matmul %15, %16, %cst_8 {dimension_numbers = #tpu.dot_dimension_numbers<[2], [0], [0, 1], [1], [0, 0, 0, 1, 1, 1], [], []>} : vector<16x8x32xf32>, vector<32x4xf32>, vector<16x8x4xf32> -> vector<16x8x4xf32>
    %cst_9 = arith.constant dense<0xFF800000> : vector<16x4xf32>
    %18 = vector.multi_reduction <maximumf>, %17, %cst_9 [1] : vector<16x8x4xf32> to vector<16x4xf32>
    %19 = vector.shape_cast %18 : vector<16x4xf32> to vector<16x1x4xf32>
    %20 = vector.broadcast %19 : vector<16x1x4xf32> to vector<16x8x4xf32>
    %21 = arith.subf %17, %20 : vector<16x8x4xf32>
    %22 = math.exp %21 : vector<16x8x4xf32>
    %cst_10 = arith.constant dense<0.000000e+00> : vector<16x4xf32>
    %23 = vector.multi_reduction <add>, %22, %cst_10 [1] : vector<16x8x4xf32> to vector<16x4xf32>
    %24 = vector.shape_cast %23 : vector<16x4xf32> to vector<16x1x4xf32>
    %25 = tpu.reciprocal %24 {approx = true} : vector<16x1x4xf32> -> vector<16x1x4xf32>
    %26 = vector.broadcast %25 : vector<16x1x4xf32> to vector<16x8x4xf32>
    %27 = arith.mulf %22, %26 : vector<16x8x4xf32>
    %28 = vector.shape_cast %27 : vector<16x8x4xf32> to vector<2x8x8x4xf32>
    %cst_11 = arith.constant dense<0.000000e+00> : vector<2x8x8xf32>
    %29 = vector.multi_reduction <add>, %28, %cst_11 [3] : vector<2x8x8x4xf32> to vector<2x8x8xf32>
    %cst_12 = arith.constant 4.000000e+00 : f32
    %30 = vector.broadcast %cst_12 : f32 to vector<2x8x8xf32>
    %31 = arith.divf %29, %30 : vector<2x8x8xf32>
    %c0_13 = arith.constant 0 : index
    %c0_14 = arith.constant 0 : index
    %c0_15 = arith.constant 0 : index
    %32 = vector.load %arg17[%c0_13, %c0_14, %c0_15] : memref<2x8x8xf32, #tpu.memory_space<vmem>>, vector<2x8x8xf32>
    tpu.vector_store %arg17[%c0_13, %c0_14, %c0_15], %31 {strides = array<i32>} : memref<2x8x8xf32, #tpu.memory_space<vmem>>, vector<2x8x8xf32>,
    %c0_16 = arith.constant 0 : index
    %c0_17 = arith.constant 0 : index
    %33 = vector.load %arg5[%c0_16, %c0_17] : memref<4x32xf32, #tpu.memory_space<vmem>>, vector<4x32xf32>
    %cst_18 = arith.constant dense<0.000000e+00> : vector<16x8x32xf32>
    %34 = tpu.matmul %27, %33, %cst_18 {dimension_numbers = #tpu.dot_dimension_numbers<[2], [0], [0, 1], [1], [0, 0, 0, 1, 1, 1], [], []>} : vector<16x8x4xf32>, vector<4x32xf32>, vector<16x8x32xf32> -> vector<16x8x32xf32>
    %35 = vector.shape_cast %34 : vector<16x8x32xf32> to vector<2x8x8x32xf32>
    %36 = vector.shape_cast %9 : vector<2x8x32xf32> to vector<2x1x8x32xf32>
    %37 = vector.broadcast %36 : vector<2x1x8x32xf32> to vector<2x8x8x32xf32>
    %38 = arith.mulf %35, %37 : vector<2x8x8x32xf32>
    %cst_19 = arith.constant dense<0.000000e+00> : vector<2x8x32xf32>
    %39 = vector.multi_reduction <add>, %38, %cst_19 [2] : vector<2x8x8x32xf32> to vector<2x8x32xf32>
    %c0_20 = arith.constant 0 : index
    %c0_21 = arith.constant 0 : index
    %40 = vector.load %arg6[%c0_20, %c0_21] : memref<32x32xf32, #tpu.memory_space<vmem>>, vector<32x32xf32>
    %cst_22 = arith.constant dense<0.000000e+00> : vector<2x8x32xf32>
    %41 = tpu.matmul %39, %40, %cst_22 {dimension_numbers = #tpu.dot_dimension_numbers<[2], [0], [0, 1], [1], [0, 0, 0, 1, 1, 1], [], []>} : vector<2x8x32xf32>, vector<32x32xf32>, vector<2x8x32xf32> -> vector<2x8x32xf32>
    %c0_23 = arith.constant 0 : index
    %c0_24 = arith.constant 0 : index
    %42 = vector.load %arg7[%c0_23, %c0_24] : memref<1x32xf32, #tpu.memory_space<vmem>>, vector<1x32xf32>
    %43 = vector.shape_cast %42 : vector<1x32xf32> to vector<1x1x32xf32>
    %44 = vector.broadcast %43 : vector<1x1x32xf32> to vector<2x8x32xf32>
    %45 = arith.addf %41, %44 : vector<2x8x32xf32>
    %46 = arith.addf %0, %45 : vector<2x8x32xf32>
    %cst_25 = arith.constant dense<0.000000e+00> : vector<2x32xf32>
    %47 = vector.multi_reduction <add>, %46, %cst_25 [1] : vector<2x8x32xf32> to vector<2x32xf32>
    %48 = vector.shape_cast %47 : vector<2x32xf32> to vector<2x1x32xf32>
    %cst_26 = arith.constant 8.000000e+00 : f32
    %49 = vector.broadcast %cst_26 : f32 to vector<2x1x32xf32>
    %50 = arith.divf %48, %49 : vector<2x1x32xf32>
    %51 = vector.broadcast %50 : vector<2x1x32xf32> to vector<2x8x32xf32>
    %52 = arith.subf %46, %51 : vector<2x8x32xf32>
    %53 = arith.mulf %52, %52 : vector<2x8x32xf32>
    %cst_27 = arith.constant dense<0.000000e+00> : vector<2x32xf32>
    %54 = vector.multi_reduction <add>, %53, %cst_27 [1] : vector<2x8x32xf32> to vector<2x32xf32>
    %55 = vector.shape_cast %54 : vector<2x32xf32> to vector<2x1x32xf32>
    %cst_28 = arith.constant 8.000000e+00 : f32
    %56 = vector.broadcast %cst_28 : f32 to vector<2x1x32xf32>
    %57 = arith.divf %55, %56 : vector<2x1x32xf32>
    %58 = vector.broadcast %50 : vector<2x1x32xf32> to vector<2x8x32xf32>
    %59 = arith.subf %46, %58 : vector<2x8x32xf32>
    %cst_29 = arith.constant 9.99999974E-6 : f32
    %60 = vector.broadcast %cst_29 : f32 to vector<2x1x32xf32>
    %61 = arith.addf %57, %60 : vector<2x1x32xf32>
    %62 = math.rsqrt %61 : vector<2x1x32xf32>
    %63 = vector.broadcast %62 : vector<2x1x32xf32> to vector<2x8x32xf32>
    %64 = arith.mulf %59, %63 : vector<2x8x32xf32>
    %c0_30 = arith.constant 0 : index
    %c0_31 = arith.constant 0 : index
    %65 = vector.load %arg8[%c0_30, %c0_31] : memref<8x1xf32, #tpu.memory_space<vmem>>, vector<8x1xf32>
    %66 = vector.shape_cast %65 : vector<8x1xf32> to vector<1x8x1xf32>
    %67 = vector.broadcast %66 : vector<1x8x1xf32> to vector<2x8x32xf32>
    %68 = arith.mulf %64, %67 : vector<2x8x32xf32>
    %c0_32 = arith.constant 0 : index
    %c0_33 = arith.constant 0 : index
    %69 = vector.load %arg9[%c0_32, %c0_33] : memref<8x1xf32, #tpu.memory_space<vmem>>, vector<8x1xf32>
    %70 = vector.shape_cast %69 : vector<8x1xf32> to vector<1x8x1xf32>
    %71 = vector.broadcast %70 : vector<1x8x1xf32> to vector<2x8x32xf32>
    %72 = arith.addf %68, %71 : vector<2x8x32xf32>
    %c0_34 = arith.constant 0 : index
    %c0_35 = arith.constant 0 : index
    %73 = vector.load %arg10[%c0_34, %c0_35] : memref<32x64xf32, #tpu.memory_space<vmem>>, vector<32x64xf32>
    %cst_36 = arith.constant dense<0.000000e+00> : vector<2x8x64xf32>
    %74 = tpu.matmul %72, %73, %cst_36 {dimension_numbers = #tpu.dot_dimension_numbers<[2], [0], [0, 1], [1], [0, 0, 0, 1, 1, 1], [], []>} : vector<2x8x32xf32>, vector<32x64xf32>, vector<2x8x64xf32> -> vector<2x8x64xf32>
    %c0_37 = arith.constant 0 : index
    %c0_38 = arith.constant 0 : index
    %75 = vector.load %arg11[%c0_37, %c0_38] : memref<1x64xf32, #tpu.memory_space<vmem>>, vector<1x64xf32>
    %76 = vector.shape_cast %75 : vector<1x64xf32> to vector<1x1x64xf32>
    %77 = vector.broadcast %76 : vector<1x1x64xf32> to vector<2x8x64xf32>
    %78 = arith.addf %74, %77 : vector<2x8x64xf32>
    %cst_39 = arith.constant 0.000000e+00 : f32
    %79 = vector.broadcast %cst_39 : f32 to vector<2x8x64xf32>
    %80 = arith.maximumf %78, %79 : vector<2x8x64xf32>
    %c0_40 = arith.constant 0 : index
    %c0_41 = arith.constant 0 : index
    %81 = vector.load %arg12[%c0_40, %c0_41] : memref<64x32xf32, #tpu.memory_space<vmem>>, vector<64x32xf32>
    %cst_42 = arith.constant dense<0.000000e+00> : vector<2x8x32xf32>
    %82 = tpu.matmul %80, %81, %cst_42 {dimension_numbers = #tpu.dot_dimension_numbers<[2], [0], [0, 1], [1], [0, 0, 0, 1, 1, 1], [], []>} : vector<2x8x64xf32>, vector<64x32xf32>, vector<2x8x32xf32> -> vector<2x8x32xf32>
    %c0_43 = arith.constant 0 : index
    %c0_44 = arith.constant 0 : index
    %83 = vector.load %arg13[%c0_43, %c0_44] : memref<1x32xf32, #tpu.memory_space<vmem>>, vector<1x32xf32>
    %84 = vector.shape_cast %83 : vector<1x32xf32> to vector<1x1x32xf32>
    %85 = vector.broadcast %84 : vector<1x1x32xf32> to vector<2x8x32xf32>
    %86 = arith.addf %82, %85 : vector<2x8x32xf32>
    %87 = arith.addf %72, %86 : vector<2x8x32xf32>
    %cst_45 = arith.constant dense<0.000000e+00> : vector<2x32xf32>
    %88 = vector.multi_reduction <add>, %87, %cst_45 [1] : vector<2x8x32xf32> to vector<2x32xf32>
    %89 = vector.shape_cast %88 : vector<2x32xf32> to vector<2x1x32xf32>
    %cst_46 = arith.constant 8.000000e+00 : f32
    %90 = vector.broadcast %cst_46 : f32 to vector<2x1x32xf32>
    %91 = arith.divf %89, %90 : vector<2x1x32xf32>
    %92 = vector.broadcast %91 : vector<2x1x32xf32> to vector<2x8x32xf32>
    %93 = arith.subf %87, %92 : vector<2x8x32xf32>
    %94 = arith.mulf %93, %93 : vector<2x8x32xf32>
    %cst_47 = arith.constant dense<0.000000e+00> : vector<2x32xf32>
    %95 = vector.multi_reduction <add>, %94, %cst_47 [1] : vector<2x8x32xf32> to vector<2x32xf32>
    %96 = vector.shape_cast %95 : vector<2x32xf32> to vector<2x1x32xf32>
    %cst_48 = arith.constant 8.000000e+00 : f32
    %97 = vector.broadcast %cst_48 : f32 to vector<2x1x32xf32>
    %98 = arith.divf %96, %97 : vector<2x1x32xf32>
    %99 = vector.broadcast %91 : vector<2x1x32xf32> to vector<2x8x32xf32>
    %100 = arith.subf %87, %99 : vector<2x8x32xf32>
    %cst_49 = arith.constant 9.99999974E-6 : f32
    %101 = vector.broadcast %cst_49 : f32 to vector<2x1x32xf32>
    %102 = arith.addf %98, %101 : vector<2x1x32xf32>
    %103 = math.rsqrt %102 : vector<2x1x32xf32>
    %104 = vector.broadcast %103 : vector<2x1x32xf32> to vector<2x8x32xf32>
    %105 = arith.mulf %100, %104 : vector<2x8x32xf32>
    %c0_50 = arith.constant 0 : index
    %c0_51 = arith.constant 0 : index
    %106 = vector.load %arg14[%c0_50, %c0_51] : memref<8x1xf32, #tpu.memory_space<vmem>>, vector<8x1xf32>
    %107 = vector.shape_cast %106 : vector<8x1xf32> to vector<1x8x1xf32>
    %108 = vector.broadcast %107 : vector<1x8x1xf32> to vector<2x8x32xf32>
    %109 = arith.mulf %105, %108 : vector<2x8x32xf32>
    %c0_52 = arith.constant 0 : index
    %c0_53 = arith.constant 0 : index
    %110 = vector.load %arg15[%c0_52, %c0_53] : memref<8x1xf32, #tpu.memory_space<vmem>>, vector<8x1xf32>
    %111 = vector.shape_cast %110 : vector<8x1xf32> to vector<1x8x1xf32>
    %112 = vector.broadcast %111 : vector<1x8x1xf32> to vector<2x8x32xf32>
    %113 = arith.addf %109, %112 : vector<2x8x32xf32>
    %c0_54 = arith.constant 0 : index
    %c0_55 = arith.constant 0 : index
    %c0_56 = arith.constant 0 : index
    %114 = vector.load %arg16[%c0_54, %c0_55, %c0_56] : memref<2x8x32xf32, #tpu.memory_space<vmem>>, vector<2x8x32xf32>
    tpu.vector_store %arg16[%c0_54, %c0_55, %c0_56], %113 {strides = array<i32>} : memref<2x8x32xf32, #tpu.memory_space<vmem>>, vector<2x8x32xf32>,
    return
  }
  func.func @transform_0(%arg0: i32) -> (i32, i32, i32) {
    %c0_i32 = arith.constant 0 : i32
    %c0_i32_0 = arith.constant 0 : i32
    %c0_i32_1 = arith.constant 0 : i32
    return %arg0, %c0_i32, %c0_i32_0 : i32, i32, i32
  }
  func.func @transform_1(%arg0: i32) -> (i32, i32) {
    %c0_i32 = arith.constant 0 : i32
    %c0_i32_0 = arith.constant 0 : i32
    %c0_i32_1 = arith.constant 0 : i32
    return %c0_i32, %c0_i32_0 : i32, i32
  }
  func.func @transform_2(%arg0: i32) -> (i32, i32) {
    %c0_i32 = arith.constant 0 : i32
    %c0_i32_0 = arith.constant 0 : i32
    %c0_i32_1 = arith.constant 0 : i32
    return %c0_i32, %c0_i32_0 : i32, i32
  }
  func.func @transform_3(%arg0: i32) -> (i32, i32) {
    %c0_i32 = arith.constant 0 : i32
    %c0_i32_0 = arith.constant 0 : i32
    %c0_i32_1 = arith.constant 0 : i32
    return %c0_i32, %c0_i32_0 : i32, i32
  }
  func.func @transform_4(%arg0: i32) -> (i32, i32) {
    %c0_i32 = arith.constant 0 : i32
    %c0_i32_0 = arith.constant 0 : i32
    %c0_i32_1 = arith.constant 0 : i32
    return %c0_i32, %c0_i32_0 : i32, i32
  }
  func.func @transform_5(%arg0: i32) -> (i32, i32) {
    %c0_i32 = arith.constant 0 : i32
    %c0_i32_0 = arith.constant 0 : i32
    %c0_i32_1 = arith.constant 0 : i32
    return %c0_i32, %c0_i32_0 : i32, i32
  }
  func.func @transform_6(%arg0: i32) -> (i32, i32) {
    %c0_i32 = arith.constant 0 : i32
    %c0_i32_0 = arith.constant 0 : i32
    %c0_i32_1 = arith.constant 0 : i32
    return %c0_i32, %c0_i32_0 : i32, i32
  }
  func.func @transform_7(%arg0: i32) -> (i32, i32) {
    %c0_i32 = arith.constant 0 : i32
    %c0_i32_0 = arith.constant 0 : i32
    %c0_i32_1 = arith.constant 0 : i32
    return %c0_i32, %c0_i32_0 : i32, i32
  }
  func.func @transform_8(%arg0: i32) -> (i32, i32) {
    %c0_i32 = arith.constant 0 : i32
    %c0_i32_0 = arith.constant 0 : i32
    %c0_i32_1 = arith.constant 0 : i32
    return %c0_i32, %c0_i32_0 : i32, i32
  }
  func.func @transform_9(%arg0: i32) -> (i32, i32) {
    %c0_i32 = arith.constant 0 : i32
    %c0_i32_0 = arith.constant 0 : i32
    %c0_i32_1 = arith.constant 0 : i32
    return %c0_i32, %c0_i32_0 : i32, i32
  }
  func.func @transform_10(%arg0: i32) -> (i32, i32) {
    %c0_i32 = arith.constant 0 : i32
    %c0_i32_0 = arith.constant 0 : i32
    %c0_i32_1 = arith.constant 0 : i32
    return %c0_i32, %c0_i32_0 : i32, i32
  }
  func.func @transform_11(%arg0: i32) -> (i32, i32) {
    %c0_i32 = arith.constant 0 : i32
    %c0_i32_0 = arith.constant 0 : i32
    %c0_i32_1 = arith.constant 0 : i32
    return %c0_i32, %c0_i32_0 : i32, i32
  }
  func.func @transform_12(%arg0: i32) -> (i32, i32) {
    %c0_i32 = arith.constant 0 : i32
    %c0_i32_0 = arith.constant 0 : i32
    %c0_i32_1 = arith.constant 0 : i32
    return %c0_i32, %c0_i32_0 : i32, i32
  }
  func.func @transform_13(%arg0: i32) -> (i32, i32) {
    %c0_i32 = arith.constant 0 : i32
    %c0_i32_0 = arith.constant 0 : i32
    %c0_i32_1 = arith.constant 0 : i32
    return %c0_i32, %c0_i32_0 : i32, i32
  }
  func.func @transform_14(%arg0: i32) -> (i32, i32) {
    %c0_i32 = arith.constant 0 : i32
    %c0_i32_0 = arith.constant 0 : i32
    %c0_i32_1 = arith.constant 0 : i32
    return %c0_i32, %c0_i32_0 : i32, i32
  }
  func.func @transform_15(%arg0: i32) -> (i32, i32, i32) {
    %c0_i32 = arith.constant 0 : i32
    %c0_i32_0 = arith.constant 0 : i32
    %c0_i32_1 = arith.constant 0 : i32
    return %arg0, %c0_i32, %c0_i32_0 : i32, i32, i32
  }
  func.func @transform_16(%arg0: i32) -> (i32, i32, i32) {
    %c0_i32 = arith.constant 0 : i32
    %c0_i32_0 = arith.constant 0 : i32
    %c0_i32_1 = arith.constant 0 : i32
    return %arg0, %c0_i32, %c0_i32_0 : i32, i32, i32
  }
}

module attributes {stable_mosaic.version = 11 : i64} {
  func.func @kernel(%arg0: i32, %arg1: memref<2x8x32xf32, #tpu.memory_space<vmem>>, %arg2: memref<32x96xf32, #tpu.memory_space<vmem>>, %arg3: memref<1x96xf32, #tpu.memory_space<vmem>>, %arg4: memref<32x4xf32, #tpu.memory_space<vmem>>, %arg5: memref<4x32xf32, #tpu.memory_space<vmem>>, %arg6: memref<32x32xf32, #tpu.memory_space<vmem>>, %arg7: memref<1x32xf32, #tpu.memory_space<vmem>>, %arg8: memref<8x1xf32, #tpu.memory_space<vmem>>, %arg9: memref<8x1xf32, #tpu.memory_space<vmem>>, %arg10: memref<32x64xf32, #tpu.memory_space<vmem>>, %arg11: memref<1x64xf32, #tpu.memory_space<vmem>>, %arg12: memref<64x32xf32, #tpu.memory_space<vmem>>, %arg13: memref<1x32xf32, #tpu.memory_space<vmem>>, %arg14: memref<8x1xf32, #tpu.memory_space<vmem>>, %arg15: memref<8x1xf32, #tpu.memory_space<vmem>>, %arg16: memref<2x256xf32, #tpu.memory_space<vmem>>, %arg17: memref<2x64xf32, #tpu.memory_space<vmem>>) attributes {dimension_semantics = [#tpu.dimension_semantics<parallel>], iteration_bounds = array<i64: 1>, scalar_prefetch = 0 : i64, scratch_operands = 0 : i64, tpu.core_type = #tpu.core_type<tc>, window_params = [{transform_indices = @transform_0, window_bounds = array<i64: 2, 8, 32>}, {pipeline_mode = #tpu.pipeline_mode<synchronous>, transform_indices = @transform_1, window_bounds = array<i64: 32, 96>}, {pipeline_mode = #tpu.pipeline_mode<synchronous>, transform_indices = @transform_2, window_bounds = array<i64: 1, 96>}, {pipeline_mode = #tpu.pipeline_mode<synchronous>, transform_indices = @transform_3, window_bounds = array<i64: 32, 4>}, {pipeline_mode = #tpu.pipeline_mode<synchronous>, transform_indices = @transform_4, window_bounds = array<i64: 4, 32>}, {pipeline_mode = #tpu.pipeline_mode<synchronous>, transform_indices = @transform_5, window_bounds = array<i64: 32, 32>}, {pipeline_mode = #tpu.pipeline_mode<synchronous>, transform_indices = @transform_6, window_bounds = array<i64: 1, 32>}, {pipeline_mode = #tpu.pipeline_mode<synchronous>, transform_indices = @transform_7, window_bounds = array<i64: 8, 1>}, {pipeline_mode = #tpu.pipeline_mode<synchronous>, transform_indices = @transform_8, window_bounds = array<i64: 8, 1>}, {pipeline_mode = #tpu.pipeline_mode<synchronous>, transform_indices = @transform_9, window_bounds = array<i64: 32, 64>}, {pipeline_mode = #tpu.pipeline_mode<synchronous>, transform_indices = @transform_10, window_bounds = array<i64: 1, 64>}, {pipeline_mode = #tpu.pipeline_mode<synchronous>, transform_indices = @transform_11, window_bounds = array<i64: 64, 32>}, {pipeline_mode = #tpu.pipeline_mode<synchronous>, transform_indices = @transform_12, window_bounds = array<i64: 1, 32>}, {pipeline_mode = #tpu.pipeline_mode<synchronous>, transform_indices = @transform_13, window_bounds = array<i64: 8, 1>}, {pipeline_mode = #tpu.pipeline_mode<synchronous>, transform_indices = @transform_14, window_bounds = array<i64: 8, 1>}, {transform_indices = @transform_15, window_bounds = array<i64: 2, 256>}, {transform_indices = @transform_16, window_bounds = array<i64: 2, 64>}]} {
    %c0 = arith.constant 0 : index
    %c0_0 = arith.constant 0 : index
    %c0_1 = arith.constant 0 : index
    %0 = vector.load %arg1[%c0, %c0_0, %c0_1] : memref<2x8x32xf32, #tpu.memory_space<vmem>>, vector<2x8x32xf32>
    %c0_2 = arith.constant 0 : index
    %c0_3 = arith.constant 0 : index
    %1 = vector.load %arg2[%c0_2, %c0_3] : memref<32x96xf32, #tpu.memory_space<vmem>>, vector<32x96xf32>
    %cst = arith.constant dense<0.000000e+00> : vector<2x8x96xf32>
    %2 = tpu.matmul %0, %1, %cst {dimension_numbers = #tpu.dot_dimension_numbers<[2], [0], [0, 1], [1], [0, 0, 0, 1, 1, 1], [], []>} : vector<2x8x32xf32>, vector<32x96xf32>, vector<2x8x96xf32> -> vector<2x8x96xf32>
    %c0_4 = arith.constant 0 : index
    %c0_5 = arith.constant 0 : index
    %3 = vector.load %arg3[%c0_4, %c0_5] : memref<1x96xf32, #tpu.memory_space<vmem>>, vector<1x96xf32>
    %4 = vector.shape_cast %3 : vector<1x96xf32> to vector<1x1x96xf32>
    %5 = vector.broadcast %4 : vector<1x1x96xf32> to vector<2x8x96xf32>
    %6 = arith.addf %2, %5 : vector<2x8x96xf32>
    %7 = vector.extract_strided_slice %6 {offsets = [0, 0, 0], sizes = [2, 8, 32], strides = [1, 1, 1]} : vector<2x8x96xf32> to vector<2x8x32xf32>
    %8 = vector.extract_strided_slice %6 {offsets = [0, 0, 32], sizes = [2, 8, 32], strides = [1, 1, 1]} : vector<2x8x96xf32> to vector<2x8x32xf32>
    %9 = vector.extract_strided_slice %6 {offsets = [0, 0, 64], sizes = [2, 8, 32], strides = [1, 1, 1]} : vector<2x8x96xf32> to vector<2x8x32xf32>
    %10 = vector.shape_cast %7 : vector<2x8x32xf32> to vector<2x8x1x32xf32>
    %11 = vector.shape_cast %8 : vector<2x8x32xf32> to vector<2x1x8x32xf32>
    %12 = vector.broadcast %10 : vector<2x8x1x32xf32> to vector<2x8x8x32xf32>
    %13 = vector.broadcast %11 : vector<2x1x8x32xf32> to vector<2x8x8x32xf32>
    %14 = arith.mulf %12, %13 : vector<2x8x8x32xf32>
    %15 = vector.shape_cast %14 : vector<2x8x8x32xf32> to vector<16x8x32xf32>
    %c0_6 = arith.constant 0 : index
    %c0_7 = arith.constant 0 : index
    %16 = vector.load %arg4[%c0_6, %c0_7] : memref<32x4xf32, #tpu.memory_space<vmem>>, vector<32x4xf32>
    %cst_8 = arith.constant dense<0.000000e+00> : vector<16x8x4xf32>
    %17 = tpu.matmul %15, %16, %cst_8 {dimension_numbers = #tpu.dot_dimension_numbers<[2], [0], [0, 1], [1], [0, 0, 0, 1, 1, 1], [], []>} : vector<16x8x32xf32>, vector<32x4xf32>, vector<16x8x4xf32> -> vector<16x8x4xf32>
    %cst_9 = arith.constant dense<0xFF800000> : vector<16x4xf32>
    %18 = vector.multi_reduction <maximumf>, %17, %cst_9 [1] : vector<16x8x4xf32> to vector<16x4xf32>
    %19 = vector.shape_cast %18 : vector<16x4xf32> to vector<16x1x4xf32>
    %20 = vector.broadcast %19 : vector<16x1x4xf32> to vector<16x8x4xf32>
    %21 = arith.subf %17, %20 : vector<16x8x4xf32>
    %22 = math.exp %21 : vector<16x8x4xf32>
    %cst_10 = arith.constant dense<0.000000e+00> : vector<16x4xf32>
    %23 = vector.multi_reduction <add>, %22, %cst_10 [1] : vector<16x8x4xf32> to vector<16x4xf32>
    %24 = vector.shape_cast %23 : vector<16x4xf32> to vector<16x1x4xf32>
    %25 = tpu.reciprocal %24 {approx = true} : vector<16x1x4xf32> -> vector<16x1x4xf32>
    %26 = vector.broadcast %25 : vector<16x1x4xf32> to vector<16x8x4xf32>
    %27 = arith.mulf %22, %26 : vector<16x8x4xf32>
    %28 = vector.shape_cast %27 : vector<16x8x4xf32> to vector<2x8x8x4xf32>
    %cst_11 = arith.constant dense<0.000000e+00> : vector<2x8x8xf32>
    %29 = vector.multi_reduction <add>, %28, %cst_11 [3] : vector<2x8x8x4xf32> to vector<2x8x8xf32>
    %cst_12 = arith.constant 4.000000e+00 : f32
    %30 = vector.broadcast %cst_12 : f32 to vector<2x8x8xf32>
    %31 = arith.divf %29, %30 : vector<2x8x8xf32>
    %32 = vector.shape_cast %31 : vector<2x8x8xf32> to vector<2x64xf32>
    %c0_13 = arith.constant 0 : index
    %c0_14 = arith.constant 0 : index
    %33 = vector.load %arg17[%c0_13, %c0_14] : memref<2x64xf32, #tpu.memory_space<vmem>>, vector<2x64xf32>
    tpu.vector_store %arg17[%c0_13, %c0_14], %32 {strides = array<i32>} : memref<2x64xf32, #tpu.memory_space<vmem>>, vector<2x64xf32>,
    %c0_15 = arith.constant 0 : index
    %c0_16 = arith.constant 0 : index
    %34 = vector.load %arg5[%c0_15, %c0_16] : memref<4x32xf32, #tpu.memory_space<vmem>>, vector<4x32xf32>
    %cst_17 = arith.constant dense<0.000000e+00> : vector<16x8x32xf32>
    %35 = tpu.matmul %27, %34, %cst_17 {dimension_numbers = #tpu.dot_dimension_numbers<[2], [0], [0, 1], [1], [0, 0, 0, 1, 1, 1], [], []>} : vector<16x8x4xf32>, vector<4x32xf32>, vector<16x8x32xf32> -> vector<16x8x32xf32>
    %36 = vector.shape_cast %35 : vector<16x8x32xf32> to vector<2x8x8x32xf32>
    %37 = vector.shape_cast %9 : vector<2x8x32xf32> to vector<2x1x8x32xf32>
    %38 = vector.broadcast %37 : vector<2x1x8x32xf32> to vector<2x8x8x32xf32>
    %39 = arith.mulf %36, %38 : vector<2x8x8x32xf32>
    %cst_18 = arith.constant dense<0.000000e+00> : vector<2x8x32xf32>
    %40 = vector.multi_reduction <add>, %39, %cst_18 [2] : vector<2x8x8x32xf32> to vector<2x8x32xf32>
    %c0_19 = arith.constant 0 : index
    %c0_20 = arith.constant 0 : index
    %41 = vector.load %arg6[%c0_19, %c0_20] : memref<32x32xf32, #tpu.memory_space<vmem>>, vector<32x32xf32>
    %cst_21 = arith.constant dense<0.000000e+00> : vector<2x8x32xf32>
    %42 = tpu.matmul %40, %41, %cst_21 {dimension_numbers = #tpu.dot_dimension_numbers<[2], [0], [0, 1], [1], [0, 0, 0, 1, 1, 1], [], []>} : vector<2x8x32xf32>, vector<32x32xf32>, vector<2x8x32xf32> -> vector<2x8x32xf32>
    %c0_22 = arith.constant 0 : index
    %c0_23 = arith.constant 0 : index
    %43 = vector.load %arg7[%c0_22, %c0_23] : memref<1x32xf32, #tpu.memory_space<vmem>>, vector<1x32xf32>
    %44 = vector.shape_cast %43 : vector<1x32xf32> to vector<1x1x32xf32>
    %45 = vector.broadcast %44 : vector<1x1x32xf32> to vector<2x8x32xf32>
    %46 = arith.addf %42, %45 : vector<2x8x32xf32>
    %47 = arith.addf %0, %46 : vector<2x8x32xf32>
    %cst_24 = arith.constant dense<0.000000e+00> : vector<2x32xf32>
    %48 = vector.multi_reduction <add>, %47, %cst_24 [1] : vector<2x8x32xf32> to vector<2x32xf32>
    %49 = vector.shape_cast %48 : vector<2x32xf32> to vector<2x1x32xf32>
    %cst_25 = arith.constant 8.000000e+00 : f32
    %50 = vector.broadcast %cst_25 : f32 to vector<2x1x32xf32>
    %51 = arith.divf %49, %50 : vector<2x1x32xf32>
    %52 = vector.broadcast %51 : vector<2x1x32xf32> to vector<2x8x32xf32>
    %53 = arith.subf %47, %52 : vector<2x8x32xf32>
    %54 = arith.mulf %53, %53 : vector<2x8x32xf32>
    %cst_26 = arith.constant dense<0.000000e+00> : vector<2x32xf32>
    %55 = vector.multi_reduction <add>, %54, %cst_26 [1] : vector<2x8x32xf32> to vector<2x32xf32>
    %56 = vector.shape_cast %55 : vector<2x32xf32> to vector<2x1x32xf32>
    %cst_27 = arith.constant 8.000000e+00 : f32
    %57 = vector.broadcast %cst_27 : f32 to vector<2x1x32xf32>
    %58 = arith.divf %56, %57 : vector<2x1x32xf32>
    %59 = vector.broadcast %51 : vector<2x1x32xf32> to vector<2x8x32xf32>
    %60 = arith.subf %47, %59 : vector<2x8x32xf32>
    %cst_28 = arith.constant 9.99999974E-6 : f32
    %61 = vector.broadcast %cst_28 : f32 to vector<2x1x32xf32>
    %62 = arith.addf %58, %61 : vector<2x1x32xf32>
    %63 = math.rsqrt %62 : vector<2x1x32xf32>
    %64 = vector.broadcast %63 : vector<2x1x32xf32> to vector<2x8x32xf32>
    %65 = arith.mulf %60, %64 : vector<2x8x32xf32>
    %c0_29 = arith.constant 0 : index
    %c0_30 = arith.constant 0 : index
    %66 = vector.load %arg8[%c0_29, %c0_30] : memref<8x1xf32, #tpu.memory_space<vmem>>, vector<8x1xf32>
    %67 = vector.shape_cast %66 : vector<8x1xf32> to vector<1x8x1xf32>
    %68 = vector.broadcast %67 : vector<1x8x1xf32> to vector<2x8x32xf32>
    %69 = arith.mulf %65, %68 : vector<2x8x32xf32>
    %c0_31 = arith.constant 0 : index
    %c0_32 = arith.constant 0 : index
    %70 = vector.load %arg9[%c0_31, %c0_32] : memref<8x1xf32, #tpu.memory_space<vmem>>, vector<8x1xf32>
    %71 = vector.shape_cast %70 : vector<8x1xf32> to vector<1x8x1xf32>
    %72 = vector.broadcast %71 : vector<1x8x1xf32> to vector<2x8x32xf32>
    %73 = arith.addf %69, %72 : vector<2x8x32xf32>
    %c0_33 = arith.constant 0 : index
    %c0_34 = arith.constant 0 : index
    %74 = vector.load %arg10[%c0_33, %c0_34] : memref<32x64xf32, #tpu.memory_space<vmem>>, vector<32x64xf32>
    %cst_35 = arith.constant dense<0.000000e+00> : vector<2x8x64xf32>
    %75 = tpu.matmul %73, %74, %cst_35 {dimension_numbers = #tpu.dot_dimension_numbers<[2], [0], [0, 1], [1], [0, 0, 0, 1, 1, 1], [], []>} : vector<2x8x32xf32>, vector<32x64xf32>, vector<2x8x64xf32> -> vector<2x8x64xf32>
    %c0_36 = arith.constant 0 : index
    %c0_37 = arith.constant 0 : index
    %76 = vector.load %arg11[%c0_36, %c0_37] : memref<1x64xf32, #tpu.memory_space<vmem>>, vector<1x64xf32>
    %77 = vector.shape_cast %76 : vector<1x64xf32> to vector<1x1x64xf32>
    %78 = vector.broadcast %77 : vector<1x1x64xf32> to vector<2x8x64xf32>
    %79 = arith.addf %75, %78 : vector<2x8x64xf32>
    %cst_38 = arith.constant 0.000000e+00 : f32
    %80 = vector.broadcast %cst_38 : f32 to vector<2x8x64xf32>
    %81 = arith.maximumf %79, %80 : vector<2x8x64xf32>
    %c0_39 = arith.constant 0 : index
    %c0_40 = arith.constant 0 : index
    %82 = vector.load %arg12[%c0_39, %c0_40] : memref<64x32xf32, #tpu.memory_space<vmem>>, vector<64x32xf32>
    %cst_41 = arith.constant dense<0.000000e+00> : vector<2x8x32xf32>
    %83 = tpu.matmul %81, %82, %cst_41 {dimension_numbers = #tpu.dot_dimension_numbers<[2], [0], [0, 1], [1], [0, 0, 0, 1, 1, 1], [], []>} : vector<2x8x64xf32>, vector<64x32xf32>, vector<2x8x32xf32> -> vector<2x8x32xf32>
    %c0_42 = arith.constant 0 : index
    %c0_43 = arith.constant 0 : index
    %84 = vector.load %arg13[%c0_42, %c0_43] : memref<1x32xf32, #tpu.memory_space<vmem>>, vector<1x32xf32>
    %85 = vector.shape_cast %84 : vector<1x32xf32> to vector<1x1x32xf32>
    %86 = vector.broadcast %85 : vector<1x1x32xf32> to vector<2x8x32xf32>
    %87 = arith.addf %83, %86 : vector<2x8x32xf32>
    %88 = arith.addf %73, %87 : vector<2x8x32xf32>
    %cst_44 = arith.constant dense<0.000000e+00> : vector<2x32xf32>
    %89 = vector.multi_reduction <add>, %88, %cst_44 [1] : vector<2x8x32xf32> to vector<2x32xf32>
    %90 = vector.shape_cast %89 : vector<2x32xf32> to vector<2x1x32xf32>
    %cst_45 = arith.constant 8.000000e+00 : f32
    %91 = vector.broadcast %cst_45 : f32 to vector<2x1x32xf32>
    %92 = arith.divf %90, %91 : vector<2x1x32xf32>
    %93 = vector.broadcast %92 : vector<2x1x32xf32> to vector<2x8x32xf32>
    %94 = arith.subf %88, %93 : vector<2x8x32xf32>
    %95 = arith.mulf %94, %94 : vector<2x8x32xf32>
    %cst_46 = arith.constant dense<0.000000e+00> : vector<2x32xf32>
    %96 = vector.multi_reduction <add>, %95, %cst_46 [1] : vector<2x8x32xf32> to vector<2x32xf32>
    %97 = vector.shape_cast %96 : vector<2x32xf32> to vector<2x1x32xf32>
    %cst_47 = arith.constant 8.000000e+00 : f32
    %98 = vector.broadcast %cst_47 : f32 to vector<2x1x32xf32>
    %99 = arith.divf %97, %98 : vector<2x1x32xf32>
    %100 = vector.broadcast %92 : vector<2x1x32xf32> to vector<2x8x32xf32>
    %101 = arith.subf %88, %100 : vector<2x8x32xf32>
    %cst_48 = arith.constant 9.99999974E-6 : f32
    %102 = vector.broadcast %cst_48 : f32 to vector<2x1x32xf32>
    %103 = arith.addf %99, %102 : vector<2x1x32xf32>
    %104 = math.rsqrt %103 : vector<2x1x32xf32>
    %105 = vector.broadcast %104 : vector<2x1x32xf32> to vector<2x8x32xf32>
    %106 = arith.mulf %101, %105 : vector<2x8x32xf32>
    %c0_49 = arith.constant 0 : index
    %c0_50 = arith.constant 0 : index
    %107 = vector.load %arg14[%c0_49, %c0_50] : memref<8x1xf32, #tpu.memory_space<vmem>>, vector<8x1xf32>
    %108 = vector.shape_cast %107 : vector<8x1xf32> to vector<1x8x1xf32>
    %109 = vector.broadcast %108 : vector<1x8x1xf32> to vector<2x8x32xf32>
    %110 = arith.mulf %106, %109 : vector<2x8x32xf32>
    %c0_51 = arith.constant 0 : index
    %c0_52 = arith.constant 0 : index
    %111 = vector.load %arg15[%c0_51, %c0_52] : memref<8x1xf32, #tpu.memory_space<vmem>>, vector<8x1xf32>
    %112 = vector.shape_cast %111 : vector<8x1xf32> to vector<1x8x1xf32>
    %113 = vector.broadcast %112 : vector<1x8x1xf32> to vector<2x8x32xf32>
    %114 = arith.addf %110, %113 : vector<2x8x32xf32>
    %115 = vector.shape_cast %114 : vector<2x8x32xf32> to vector<2x256xf32>
    %c0_53 = arith.constant 0 : index
    %c0_54 = arith.constant 0 : index
    %116 = vector.load %arg16[%c0_53, %c0_54] : memref<2x256xf32, #tpu.memory_space<vmem>>, vector<2x256xf32>
    tpu.vector_store %arg16[%c0_53, %c0_54], %115 {strides = array<i32>} : memref<2x256xf32, #tpu.memory_space<vmem>>, vector<2x256xf32>,
    return
  }
  func.func @transform_0(%arg0: i32) -> (i32, i32, i32) {
    %c0_i32 = arith.constant 0 : i32
    %c0_i32_0 = arith.constant 0 : i32
    %c0_i32_1 = arith.constant 0 : i32
    return %arg0, %c0_i32, %c0_i32_0 : i32, i32, i32
  }
  func.func @transform_1(%arg0: i32) -> (i32, i32) {
    %c0_i32 = arith.constant 0 : i32
    %c0_i32_0 = arith.constant 0 : i32
    %c0_i32_1 = arith.constant 0 : i32
    return %c0_i32, %c0_i32_0 : i32, i32
  }
  func.func @transform_2(%arg0: i32) -> (i32, i32) {
    %c0_i32 = arith.constant 0 : i32
    %c0_i32_0 = arith.constant 0 : i32
    %c0_i32_1 = arith.constant 0 : i32
    return %c0_i32, %c0_i32_0 : i32, i32
  }
  func.func @transform_3(%arg0: i32) -> (i32, i32) {
    %c0_i32 = arith.constant 0 : i32
    %c0_i32_0 = arith.constant 0 : i32
    %c0_i32_1 = arith.constant 0 : i32
    return %c0_i32, %c0_i32_0 : i32, i32
  }
  func.func @transform_4(%arg0: i32) -> (i32, i32) {
    %c0_i32 = arith.constant 0 : i32
    %c0_i32_0 = arith.constant 0 : i32
    %c0_i32_1 = arith.constant 0 : i32
    return %c0_i32, %c0_i32_0 : i32, i32
  }
  func.func @transform_5(%arg0: i32) -> (i32, i32) {
    %c0_i32 = arith.constant 0 : i32
    %c0_i32_0 = arith.constant 0 : i32
    %c0_i32_1 = arith.constant 0 : i32
    return %c0_i32, %c0_i32_0 : i32, i32
  }
  func.func @transform_6(%arg0: i32) -> (i32, i32) {
    %c0_i32 = arith.constant 0 : i32
    %c0_i32_0 = arith.constant 0 : i32
    %c0_i32_1 = arith.constant 0 : i32
    return %c0_i32, %c0_i32_0 : i32, i32
  }
  func.func @transform_7(%arg0: i32) -> (i32, i32) {
    %c0_i32 = arith.constant 0 : i32
    %c0_i32_0 = arith.constant 0 : i32
    %c0_i32_1 = arith.constant 0 : i32
    return %c0_i32, %c0_i32_0 : i32, i32
  }
  func.func @transform_8(%arg0: i32) -> (i32, i32) {
    %c0_i32 = arith.constant 0 : i32
    %c0_i32_0 = arith.constant 0 : i32
    %c0_i32_1 = arith.constant 0 : i32
    return %c0_i32, %c0_i32_0 : i32, i32
  }
  func.func @transform_9(%arg0: i32) -> (i32, i32) {
    %c0_i32 = arith.constant 0 : i32
    %c0_i32_0 = arith.constant 0 : i32
    %c0_i32_1 = arith.constant 0 : i32
    return %c0_i32, %c0_i32_0 : i32, i32
  }
  func.func @transform_10(%arg0: i32) -> (i32, i32) {
    %c0_i32 = arith.constant 0 : i32
    %c0_i32_0 = arith.constant 0 : i32
    %c0_i32_1 = arith.constant 0 : i32
    return %c0_i32, %c0_i32_0 : i32, i32
  }
  func.func @transform_11(%arg0: i32) -> (i32, i32) {
    %c0_i32 = arith.constant 0 : i32
    %c0_i32_0 = arith.constant 0 : i32
    %c0_i32_1 = arith.constant 0 : i32
    return %c0_i32, %c0_i32_0 : i32, i32
  }
  func.func @transform_12(%arg0: i32) -> (i32, i32) {
    %c0_i32 = arith.constant 0 : i32
    %c0_i32_0 = arith.constant 0 : i32
    %c0_i32_1 = arith.constant 0 : i32
    return %c0_i32, %c0_i32_0 : i32, i32
  }
  func.func @transform_13(%arg0: i32) -> (i32, i32) {
    %c0_i32 = arith.constant 0 : i32
    %c0_i32_0 = arith.constant 0 : i32
    %c0_i32_1 = arith.constant 0 : i32
    return %c0_i32, %c0_i32_0 : i32, i32
  }
  func.func @transform_14(%arg0: i32) -> (i32, i32) {
    %c0_i32 = arith.constant 0 : i32
    %c0_i32_0 = arith.constant 0 : i32
    %c0_i32_1 = arith.constant 0 : i32
    return %c0_i32, %c0_i32_0 : i32, i32
  }
  func.func @transform_15(%arg0: i32) -> (i32, i32) {
    %c0_i32 = arith.constant 0 : i32
    %c0_i32_0 = arith.constant 0 : i32
    return %arg0, %c0_i32 : i32, i32
  }
  func.func @transform_16(%arg0: i32) -> (i32, i32) {
    %c0_i32 = arith.constant 0 : i32
    %c0_i32_0 = arith.constant 0 : i32
    return %arg0, %c0_i32 : i32, i32
  }
}

module attributes {stable_mosaic.version = 11 : i64} {
  func.func @kernel(%arg0: i32, %arg1: memref<2x8x32xf32, #tpu.memory_space<vmem>>, %arg2: memref<32x96xf32, #tpu.memory_space<vmem>>, %arg3: memref<1x96xf32, #tpu.memory_space<vmem>>, %arg4: memref<32x4xf32, #tpu.memory_space<vmem>>, %arg5: memref<4x32xf32, #tpu.memory_space<vmem>>, %arg6: memref<32x32xf32, #tpu.memory_space<vmem>>, %arg7: memref<1x32xf32, #tpu.memory_space<vmem>>, %arg8: memref<8x1xf32, #tpu.memory_space<vmem>>, %arg9: memref<8x1xf32, #tpu.memory_space<vmem>>, %arg10: memref<32x64xf32, #tpu.memory_space<vmem>>, %arg11: memref<1x64xf32, #tpu.memory_space<vmem>>, %arg12: memref<64x32xf32, #tpu.memory_space<vmem>>, %arg13: memref<1x32xf32, #tpu.memory_space<vmem>>, %arg14: memref<8x1xf32, #tpu.memory_space<vmem>>, %arg15: memref<8x1xf32, #tpu.memory_space<vmem>>, %arg16: memref<2x8x32xf32, #tpu.memory_space<vmem>>, %arg17: memref<2x8x8xf32, #tpu.memory_space<vmem>>) attributes {dimension_semantics = [#tpu.dimension_semantics<parallel>], iteration_bounds = array<i64: 1>, scalar_prefetch = 0 : i64, scratch_operands = 0 : i64, tpu.core_type = #tpu.core_type<tc>, window_params = [{transform_indices = @transform_0, window_bounds = array<i64: 2, 8, 32>}, {pipeline_mode = #tpu.pipeline_mode<synchronous>, transform_indices = @transform_1, window_bounds = array<i64: 32, 96>}, {pipeline_mode = #tpu.pipeline_mode<synchronous>, transform_indices = @transform_2, window_bounds = array<i64: 1, 96>}, {pipeline_mode = #tpu.pipeline_mode<synchronous>, transform_indices = @transform_3, window_bounds = array<i64: 32, 4>}, {pipeline_mode = #tpu.pipeline_mode<synchronous>, transform_indices = @transform_4, window_bounds = array<i64: 4, 32>}, {pipeline_mode = #tpu.pipeline_mode<synchronous>, transform_indices = @transform_5, window_bounds = array<i64: 32, 32>}, {pipeline_mode = #tpu.pipeline_mode<synchronous>, transform_indices = @transform_6, window_bounds = array<i64: 1, 32>}, {pipeline_mode = #tpu.pipeline_mode<synchronous>, transform_indices = @transform_7, window_bounds = array<i64: 8, 1>}, {pipeline_mode = #tpu.pipeline_mode<synchronous>, transform_indices = @transform_8, window_bounds = array<i64: 8, 1>}, {pipeline_mode = #tpu.pipeline_mode<synchronous>, transform_indices = @transform_9, window_bounds = array<i64: 32, 64>}, {pipeline_mode = #tpu.pipeline_mode<synchronous>, transform_indices = @transform_10, window_bounds = array<i64: 1, 64>}, {pipeline_mode = #tpu.pipeline_mode<synchronous>, transform_indices = @transform_11, window_bounds = array<i64: 64, 32>}, {pipeline_mode = #tpu.pipeline_mode<synchronous>, transform_indices = @transform_12, window_bounds = array<i64: 1, 32>}, {pipeline_mode = #tpu.pipeline_mode<synchronous>, transform_indices = @transform_13, window_bounds = array<i64: 8, 1>}, {pipeline_mode = #tpu.pipeline_mode<synchronous>, transform_indices = @transform_14, window_bounds = array<i64: 8, 1>}, {transform_indices = @transform_15, window_bounds = array<i64: 2, 8, 32>}, {transform_indices = @transform_16, window_bounds = array<i64: 2, 8, 8>}]} {
    %c0 = arith.constant 0 : index
    %c0_0 = arith.constant 0 : index
    %c0_1 = arith.constant 0 : index
    %0 = vector.load %arg1[%c0, %c0_0, %c0_1] : memref<2x8x32xf32, #tpu.memory_space<vmem>>, vector<2x8x32xf32>
    %c0_2 = arith.constant 0 : index
    %c0_3 = arith.constant 0 : index
    %1 = vector.load %arg2[%c0_2, %c0_3] : memref<32x96xf32, #tpu.memory_space<vmem>>, vector<32x96xf32>
    %cst = arith.constant dense<0.000000e+00> : vector<2x8x96xf32>
    %2 = tpu.matmul %0, %1, %cst {dimension_numbers = #tpu.dot_dimension_numbers<[2], [0], [0, 1], [1], [0, 0, 0, 1, 1, 1], [], []>} : vector<2x8x32xf32>, vector<32x96xf32>, vector<2x8x96xf32> -> vector<2x8x96xf32>
    %c0_4 = arith.constant 0 : index
    %c0_5 = arith.constant 0 : index
    %3 = vector.load %arg3[%c0_4, %c0_5] : memref<1x96xf32, #tpu.memory_space<vmem>>, vector<1x96xf32>
    %4 = vector.shape_cast %3 : vector<1x96xf32> to vector<1x1x96xf32>
    %5 = vector.broadcast %4 : vector<1x1x96xf32> to vector<2x8x96xf32>
    %6 = arith.addf %2, %5 : vector<2x8x96xf32>
    %7 = vector.extract_strided_slice %6 {offsets = [0, 0, 0], sizes = [2, 8, 32], strides = [1, 1, 1]} : vector<2x8x96xf32> to vector<2x8x32xf32>
    %8 = vector.extract_strided_slice %6 {offsets = [0, 0, 32], sizes = [2, 8, 32], strides = [1, 1, 1]} : vector<2x8x96xf32> to vector<2x8x32xf32>
    %9 = vector.extract_strided_slice %6 {offsets = [0, 0, 64], sizes = [2, 8, 32], strides = [1, 1, 1]} : vector<2x8x96xf32> to vector<2x8x32xf32>
    %10 = vector.shape_cast %7 : vector<2x8x32xf32> to vector<2x8x1x32xf32>
    %11 = vector.shape_cast %8 : vector<2x8x32xf32> to vector<2x1x8x32xf32>
    %12 = vector.broadcast %10 : vector<2x8x1x32xf32> to vector<2x8x8x32xf32>
    %13 = vector.broadcast %11 : vector<2x1x8x32xf32> to vector<2x8x8x32xf32>
    %14 = arith.mulf %12, %13 : vector<2x8x8x32xf32>
    %15 = vector.shape_cast %14 : vector<2x8x8x32xf32> to vector<16x8x32xf32>
    %c0_6 = arith.constant 0 : index
    %c0_7 = arith.constant 0 : index
    %16 = vector.load %arg4[%c0_6, %c0_7] : memref<32x4xf32, #tpu.memory_space<vmem>>, vector<32x4xf32>
    %cst_8 = arith.constant dense<0.000000e+00> : vector<16x8x4xf32>
    %17 = tpu.matmul %15, %16, %cst_8 {dimension_numbers = #tpu.dot_dimension_numbers<[2], [0], [0, 1], [1], [0, 0, 0, 1, 1, 1], [], []>} : vector<16x8x32xf32>, vector<32x4xf32>, vector<16x8x4xf32> -> vector<16x8x4xf32>
    %cst_9 = arith.constant dense<0xFF800000> : vector<16x4xf32>
    %18 = vector.multi_reduction <maximumf>, %17, %cst_9 [1] : vector<16x8x4xf32> to vector<16x4xf32>
    %19 = vector.shape_cast %18 : vector<16x4xf32> to vector<16x1x4xf32>
    %20 = vector.broadcast %19 : vector<16x1x4xf32> to vector<16x8x4xf32>
    %21 = arith.subf %17, %20 : vector<16x8x4xf32>
    %22 = math.exp %21 : vector<16x8x4xf32>
    %cst_10 = arith.constant dense<0.000000e+00> : vector<16x4xf32>
    %23 = vector.multi_reduction <add>, %22, %cst_10 [1] : vector<16x8x4xf32> to vector<16x4xf32>
    %24 = vector.shape_cast %23 : vector<16x4xf32> to vector<16x1x4xf32>
    %25 = tpu.reciprocal %24 {approx = true} : vector<16x1x4xf32> -> vector<16x1x4xf32>
    %26 = vector.broadcast %25 : vector<16x1x4xf32> to vector<16x8x4xf32>
    %27 = arith.mulf %22, %26 : vector<16x8x4xf32>
    %28 = vector.shape_cast %27 : vector<16x8x4xf32> to vector<2x8x8x4xf32>
    %cst_11 = arith.constant dense<0.000000e+00> : vector<2x8x8xf32>
    %29 = vector.multi_reduction <add>, %28, %cst_11 [3] : vector<2x8x8x4xf32> to vector<2x8x8xf32>
    %cst_12 = arith.constant 4.000000e+00 : f32
    %30 = vector.broadcast %cst_12 : f32 to vector<2x8x8xf32>
    %31 = arith.divf %29, %30 : vector<2x8x8xf32>
    %c0_13 = arith.constant 0 : index
    %c0_14 = arith.constant 0 : index
    %c0_15 = arith.constant 0 : index
    %32 = vector.load %arg17[%c0_13, %c0_14, %c0_15] : memref<2x8x8xf32, #tpu.memory_space<vmem>>, vector<2x8x8xf32>
    tpu.vector_store %arg17[%c0_13, %c0_14, %c0_15], %31 {strides = array<i32>} : memref<2x8x8xf32, #tpu.memory_space<vmem>>, vector<2x8x8xf32>,
    %c0_16 = arith.constant 0 : index
    %c0_17 = arith.constant 0 : index
    %33 = vector.load %arg5[%c0_16, %c0_17] : memref<4x32xf32, #tpu.memory_space<vmem>>, vector<4x32xf32>
    %cst_18 = arith.constant dense<0.000000e+00> : vector<16x8x32xf32>
    %34 = tpu.matmul %27, %33, %cst_18 {dimension_numbers = #tpu.dot_dimension_numbers<[2], [0], [0, 1], [1], [0, 0, 0, 1, 1, 1], [], []>} : vector<16x8x4xf32>, vector<4x32xf32>, vector<16x8x32xf32> -> vector<16x8x32xf32>
    %35 = vector.shape_cast %34 : vector<16x8x32xf32> to vector<2x8x8x32xf32>
    %36 = vector.shape_cast %9 : vector<2x8x32xf32> to vector<2x1x8x32xf32>
    %37 = vector.broadcast %36 : vector<2x1x8x32xf32> to vector<2x8x8x32xf32>
    %38 = arith.mulf %35, %37 : vector<2x8x8x32xf32>
    %cst_19 = arith.constant dense<0.000000e+00> : vector<2x8x32xf32>
    %39 = vector.multi_reduction <add>, %38, %cst_19 [2] : vector<2x8x8x32xf32> to vector<2x8x32xf32>
    %c0_20 = arith.constant 0 : index
    %c0_21 = arith.constant 0 : index
    %40 = vector.load %arg6[%c0_20, %c0_21] : memref<32x32xf32, #tpu.memory_space<vmem>>, vector<32x32xf32>
    %cst_22 = arith.constant dense<0.000000e+00> : vector<2x8x32xf32>
    %41 = tpu.matmul %39, %40, %cst_22 {dimension_numbers = #tpu.dot_dimension_numbers<[2], [0], [0, 1], [1], [0, 0, 0, 1, 1, 1], [], []>} : vector<2x8x32xf32>, vector<32x32xf32>, vector<2x8x32xf32> -> vector<2x8x32xf32>
    %c0_23 = arith.constant 0 : index
    %c0_24 = arith.constant 0 : index
    %42 = vector.load %arg7[%c0_23, %c0_24] : memref<1x32xf32, #tpu.memory_space<vmem>>, vector<1x32xf32>
    %43 = vector.shape_cast %42 : vector<1x32xf32> to vector<1x1x32xf32>
    %44 = vector.broadcast %43 : vector<1x1x32xf32> to vector<2x8x32xf32>
    %45 = arith.addf %41, %44 : vector<2x8x32xf32>
    %46 = arith.addf %0, %45 : vector<2x8x32xf32>
    %cst_25 = arith.constant dense<0.000000e+00> : vector<2x32xf32>
    %47 = vector.multi_reduction <add>, %46, %cst_25 [1] : vector<2x8x32xf32> to vector<2x32xf32>
    %48 = vector.shape_cast %47 : vector<2x32xf32> to vector<2x1x32xf32>
    %cst_26 = arith.constant 8.000000e+00 : f32
    %49 = vector.broadcast %cst_26 : f32 to vector<2x1x32xf32>
    %50 = arith.divf %48, %49 : vector<2x1x32xf32>
    %51 = vector.broadcast %50 : vector<2x1x32xf32> to vector<2x8x32xf32>
    %52 = arith.subf %46, %51 : vector<2x8x32xf32>
    %53 = arith.mulf %52, %52 : vector<2x8x32xf32>
    %cst_27 = arith.constant dense<0.000000e+00> : vector<2x32xf32>
    %54 = vector.multi_reduction <add>, %53, %cst_27 [1] : vector<2x8x32xf32> to vector<2x32xf32>
    %55 = vector.shape_cast %54 : vector<2x32xf32> to vector<2x1x32xf32>
    %cst_28 = arith.constant 8.000000e+00 : f32
    %56 = vector.broadcast %cst_28 : f32 to vector<2x1x32xf32>
    %57 = arith.divf %55, %56 : vector<2x1x32xf32>
    %58 = vector.broadcast %50 : vector<2x1x32xf32> to vector<2x8x32xf32>
    %59 = arith.subf %46, %58 : vector<2x8x32xf32>
    %cst_29 = arith.constant 9.99999974E-6 : f32
    %60 = vector.broadcast %cst_29 : f32 to vector<2x1x32xf32>
    %61 = arith.addf %57, %60 : vector<2x1x32xf32>
    %62 = math.rsqrt %61 : vector<2x1x32xf32>
    %63 = vector.broadcast %62 : vector<2x1x32xf32> to vector<2x8x32xf32>
    %64 = arith.mulf %59, %63 : vector<2x8x32xf32>
    %c0_30 = arith.constant 0 : index
    %c0_31 = arith.constant 0 : index
    %65 = vector.load %arg8[%c0_30, %c0_31] : memref<8x1xf32, #tpu.memory_space<vmem>>, vector<8x1xf32>
    %66 = vector.shape_cast %65 : vector<8x1xf32> to vector<1x8x1xf32>
    %67 = vector.broadcast %66 : vector<1x8x1xf32> to vector<2x8x32xf32>
    %68 = arith.mulf %64, %67 : vector<2x8x32xf32>
    %c0_32 = arith.constant 0 : index
    %c0_33 = arith.constant 0 : index
    %69 = vector.load %arg9[%c0_32, %c0_33] : memref<8x1xf32, #tpu.memory_space<vmem>>, vector<8x1xf32>
    %70 = vector.shape_cast %69 : vector<8x1xf32> to vector<1x8x1xf32>
    %71 = vector.broadcast %70 : vector<1x8x1xf32> to vector<2x8x32xf32>
    %72 = arith.addf %68, %71 : vector<2x8x32xf32>
    %c0_34 = arith.constant 0 : index
    %c0_35 = arith.constant 0 : index
    %73 = vector.load %arg10[%c0_34, %c0_35] : memref<32x64xf32, #tpu.memory_space<vmem>>, vector<32x64xf32>
    %cst_36 = arith.constant dense<0.000000e+00> : vector<2x8x64xf32>
    %74 = tpu.matmul %72, %73, %cst_36 {dimension_numbers = #tpu.dot_dimension_numbers<[2], [0], [0, 1], [1], [0, 0, 0, 1, 1, 1], [], []>} : vector<2x8x32xf32>, vector<32x64xf32>, vector<2x8x64xf32> -> vector<2x8x64xf32>
    %c0_37 = arith.constant 0 : index
    %c0_38 = arith.constant 0 : index
    %75 = vector.load %arg11[%c0_37, %c0_38] : memref<1x64xf32, #tpu.memory_space<vmem>>, vector<1x64xf32>
    %76 = vector.shape_cast %75 : vector<1x64xf32> to vector<1x1x64xf32>
    %77 = vector.broadcast %76 : vector<1x1x64xf32> to vector<2x8x64xf32>
    %78 = arith.addf %74, %77 : vector<2x8x64xf32>
    %cst_39 = arith.constant 0.000000e+00 : f32
    %79 = vector.broadcast %cst_39 : f32 to vector<2x8x64xf32>
    %80 = arith.maximumf %78, %79 : vector<2x8x64xf32>
    %c0_40 = arith.constant 0 : index
    %c0_41 = arith.constant 0 : index
    %81 = vector.load %arg12[%c0_40, %c0_41] : memref<64x32xf32, #tpu.memory_space<vmem>>, vector<64x32xf32>
    %cst_42 = arith.constant dense<0.000000e+00> : vector<2x8x32xf32>
    %82 = tpu.matmul %80, %81, %cst_42 {dimension_numbers = #tpu.dot_dimension_numbers<[2], [0], [0, 1], [1], [0, 0, 0, 1, 1, 1], [], []>} : vector<2x8x64xf32>, vector<64x32xf32>, vector<2x8x32xf32> -> vector<2x8x32xf32>
    %c0_43 = arith.constant 0 : index
    %c0_44 = arith.constant 0 : index
    %83 = vector.load %arg13[%c0_43, %c0_44] : memref<1x32xf32, #tpu.memory_space<vmem>>, vector<1x32xf32>
    %84 = vector.shape_cast %83 : vector<1x32xf32> to vector<1x1x32xf32>
    %85 = vector.broadcast %84 : vector<1x1x32xf32> to vector<2x8x32xf32>
    %86 = arith.addf %82, %85 : vector<2x8x32xf32>
    %87 = arith.addf %72, %86 : vector<2x8x32xf32>
    %cst_45 = arith.constant dense<0.000000e+00> : vector<2x32xf32>
    %88 = vector.multi_reduction <add>, %87, %cst_45 [1] : vector<2x8x32xf32> to vector<2x32xf32>
    %89 = vector.shape_cast %88 : vector<2x32xf32> to vector<2x1x32xf32>
    %cst_46 = arith.constant 8.000000e+00 : f32
    %90 = vector.broadcast %cst_46 : f32 to vector<2x1x32xf32>
    %91 = arith.divf %89, %90 : vector<2x1x32xf32>
    %92 = vector.broadcast %91 : vector<2x1x32xf32> to vector<2x8x32xf32>
    %93 = arith.subf %87, %92 : vector<2x8x32xf32>
    %94 = arith.mulf %93, %93 : vector<2x8x32xf32>
    %cst_47 = arith.constant dense<0.000000e+00> : vector<2x32xf32>
    %95 = vector.multi_reduction <add>, %94, %cst_47 [1] : vector<2x8x32xf32> to vector<2x32xf32>
    %96 = vector.shape_cast %95 : vector<2x32xf32> to vector<2x1x32xf32>
    %cst_48 = arith.constant 8.000000e+00 : f32
    %97 = vector.broadcast %cst_48 : f32 to vector<2x1x32xf32>
    %98 = arith.divf %96, %97 : vector<2x1x32xf32>
    %99 = vector.broadcast %91 : vector<2x1x32xf32> to vector<2x8x32xf32>
    %100 = arith.subf %87, %99 : vector<2x8x32xf32>
    %cst_49 = arith.constant 9.99999974E-6 : f32
    %101 = vector.broadcast %cst_49 : f32 to vector<2x1x32xf32>
    %102 = arith.addf %98, %101 : vector<2x1x32xf32>
    %103 = math.rsqrt %102 : vector<2x1x32xf32>
    %104 = vector.broadcast %103 : vector<2x1x32xf32> to vector<2x8x32xf32>
    %105 = arith.mulf %100, %104 : vector<2x8x32xf32>
    %c0_50 = arith.constant 0 : index
    %c0_51 = arith.constant 0 : index
    %106 = vector.load %arg14[%c0_50, %c0_51] : memref<8x1xf32, #tpu.memory_space<vmem>>, vector<8x1xf32>
    %107 = vector.shape_cast %106 : vector<8x1xf32> to vector<1x8x1xf32>
    %108 = vector.broadcast %107 : vector<1x8x1xf32> to vector<2x8x32xf32>
    %109 = arith.mulf %105, %108 : vector<2x8x32xf32>
    %c0_52 = arith.constant 0 : index
    %c0_53 = arith.constant 0 : index
    %110 = vector.load %arg15[%c0_52, %c0_53] : memref<8x1xf32, #tpu.memory_space<vmem>>, vector<8x1xf32>
    %111 = vector.shape_cast %110 : vector<8x1xf32> to vector<1x8x1xf32>
    %112 = vector.broadcast %111 : vector<1x8x1xf32> to vector<2x8x32xf32>
    %113 = arith.addf %109, %112 : vector<2x8x32xf32>
    %c0_54 = arith.constant 0 : index
    %c0_55 = arith.constant 0 : index
    %c0_56 = arith.constant 0 : index
    %114 = vector.load %arg16[%c0_54, %c0_55, %c0_56] : memref<2x8x32xf32, #tpu.memory_space<vmem>>, vector<2x8x32xf32>
    tpu.vector_store %arg16[%c0_54, %c0_55, %c0_56], %113 {strides = array<i32>} : memref<2x8x32xf32, #tpu.memory_space<vmem>>, vector<2x8x32xf32>,
    return
  }
  func.func @transform_0(%arg0: i32) -> (i32, i32, i32) {
    %c0_i32 = arith.constant 0 : i32
    %c0_i32_0 = arith.constant 0 : i32
    %c0_i32_1 = arith.constant 0 : i32
    return %arg0, %c0_i32, %c0_i32_0 : i32, i32, i32
  }
  func.func @transform_1(%arg0: i32) -> (i32, i32) {
    %c0_i32 = arith.constant 0 : i32
    %c0_i32_0 = arith.constant 0 : i32
    %c0_i32_1 = arith.constant 0 : i32
    return %c0_i32, %c0_i32_0 : i32, i32
  }
  func.func @transform_2(%arg0: i32) -> (i32, i32) {
    %c0_i32 = arith.constant 0 : i32
    %c0_i32_0 = arith.constant 0 : i32
    %c0_i32_1 = arith.constant 0 : i32
    return %c0_i32, %c0_i32_0 : i32, i32
  }
  func.func @transform_3(%arg0: i32) -> (i32, i32) {
    %c0_i32 = arith.constant 0 : i32
    %c0_i32_0 = arith.constant 0 : i32
    %c0_i32_1 = arith.constant 0 : i32
    return %c0_i32, %c0_i32_0 : i32, i32
  }
  func.func @transform_4(%arg0: i32) -> (i32, i32) {
    %c0_i32 = arith.constant 0 : i32
    %c0_i32_0 = arith.constant 0 : i32
    %c0_i32_1 = arith.constant 0 : i32
    return %c0_i32, %c0_i32_0 : i32, i32
  }
  func.func @transform_5(%arg0: i32) -> (i32, i32) {
    %c0_i32 = arith.constant 0 : i32
    %c0_i32_0 = arith.constant 0 : i32
    %c0_i32_1 = arith.constant 0 : i32
    return %c0_i32, %c0_i32_0 : i32, i32
  }
  func.func @transform_6(%arg0: i32) -> (i32, i32) {
    %c0_i32 = arith.constant 0 : i32
    %c0_i32_0 = arith.constant 0 : i32
    %c0_i32_1 = arith.constant 0 : i32
    return %c0_i32, %c0_i32_0 : i32, i32
  }
  func.func @transform_7(%arg0: i32) -> (i32, i32) {
    %c0_i32 = arith.constant 0 : i32
    %c0_i32_0 = arith.constant 0 : i32
    %c0_i32_1 = arith.constant 0 : i32
    return %c0_i32, %c0_i32_0 : i32, i32
  }
  func.func @transform_8(%arg0: i32) -> (i32, i32) {
    %c0_i32 = arith.constant 0 : i32
    %c0_i32_0 = arith.constant 0 : i32
    %c0_i32_1 = arith.constant 0 : i32
    return %c0_i32, %c0_i32_0 : i32, i32
  }
  func.func @transform_9(%arg0: i32) -> (i32, i32) {
    %c0_i32 = arith.constant 0 : i32
    %c0_i32_0 = arith.constant 0 : i32
    %c0_i32_1 = arith.constant 0 : i32
    return %c0_i32, %c0_i32_0 : i32, i32
  }
  func.func @transform_10(%arg0: i32) -> (i32, i32) {
    %c0_i32 = arith.constant 0 : i32
    %c0_i32_0 = arith.constant 0 : i32
    %c0_i32_1 = arith.constant 0 : i32
    return %c0_i32, %c0_i32_0 : i32, i32
  }
  func.func @transform_11(%arg0: i32) -> (i32, i32) {
    %c0_i32 = arith.constant 0 : i32
    %c0_i32_0 = arith.constant 0 : i32
    %c0_i32_1 = arith.constant 0 : i32
    return %c0_i32, %c0_i32_0 : i32, i32
  }
  func.func @transform_12(%arg0: i32) -> (i32, i32) {
    %c0_i32 = arith.constant 0 : i32
    %c0_i32_0 = arith.constant 0 : i32
    %c0_i32_1 = arith.constant 0 : i32
    return %c0_i32, %c0_i32_0 : i32, i32
  }
  func.func @transform_13(%arg0: i32) -> (i32, i32) {
    %c0_i32 = arith.constant 0 : i32
    %c0_i32_0 = arith.constant 0 : i32
    %c0_i32_1 = arith.constant 0 : i32
    return %c0_i32, %c0_i32_0 : i32, i32
  }
  func.func @transform_14(%arg0: i32) -> (i32, i32) {
    %c0_i32 = arith.constant 0 : i32
    %c0_i32_0 = arith.constant 0 : i32
    %c0_i32_1 = arith.constant 0 : i32
    return %c0_i32, %c0_i32_0 : i32, i32
  }
  func.func @transform_15(%arg0: i32) -> (i32, i32, i32) {
    %c0_i32 = arith.constant 0 : i32
    %c0_i32_0 = arith.constant 0 : i32
    %c0_i32_1 = arith.constant 0 : i32
    return %arg0, %c0_i32, %c0_i32_0 : i32, i32, i32
  }
  func.func @transform_16(%arg0: i32) -> (i32, i32, i32) {
    %c0_i32 = arith.constant 0 : i32
    %c0_i32_0 = arith.constant 0 : i32
    %c0_i32_1 = arith.constant 0 : i32
    return %arg0, %c0_i32, %c0_i32_0 : i32, i32, i32
  }
}

</mosaic_0001>

<bundles_post_ra>
// kernel: sparse_encoder_layer.1
= control target key start
LH: loop header
LB: loop body
LE: loop exit
PB: predicated region body
PF: predicated region fallthrough
CT: control target
= control target key end

     0   :  { %vm65_vm0 = vcmask 261120   ;;  %s2374_s29 = smov 64   ;;  %v2376_v19 = vmov 1966171168   ;;  %v153_v21 = vlaneseq  ;;  %vm1179_vm1 = vcmask 1043456   ;;  %s2382_s27 = smov 8   ;;  %s3011_s1 = inlined_call_operand.vmem [shape: f32[32,96], index: 1, kind: input, shape index: {}]   ;;  %s3012_s0 = inlined_call_operand.vmem [shape: f32[2,8,32], index: 0, kind: input, shape index: {}]   ;;  %s3013_s3 = inlined_call_operand.vmem [shape: f32[32,4], index: 3, kind: input, shape index: {}]   ;;  %s3014_s2 = inlined_call_operand.vmem [shape: f32[1,96], index: 2, kind: input, shape index: {}]   ;;  %s3015_s8 = inlined_call_operand.vmem [shape: f32[8,1], index: 8, kind: input, shape index: {}]   ;;  %s3016_s7 = inlined_call_operand.vmem [shape: f32[8,1], index: 7, kind: input, shape index: {}]   ;;  %s3017_s4 = inlined_call_operand.vmem [shape: f32[4,32], index: 4, kind: input, shape index: {}]   ;;  %s3018_s13 = inlined_call_operand.vmem [shape: f32[8,1], index: 13, kind: input, shape index: {}]   ;;  %s3019_s14 = inlined_call_operand.vmem [shape: f32[8,1], index: 14, kind: input, shape index: {}]   ;;  %s3020_s5 = inlined_call_operand.vmem [shape: f32[32,32], index: 5, kind: input, shape index: {}]   ;;  %s3021_s9 = inlined_call_operand.vmem [shape: f32[32,64], index: 9, kind: input, shape index: {}]   ;;  %s3022_s11 = inlined_call_operand.vmem [shape: f32[64,32], index: 11, kind: input, shape index: {}]   ;;  %s3023_s6 = inlined_call_operand.vmem [shape: f32[1,32], index: 6, kind: input, shape index: {}]   ;;  %s3024_s10 = inlined_call_operand.vmem [shape: f32[1,64], index: 10, kind: input, shape index: {}]   ;;  %s3025_s12 = inlined_call_operand.vmem [shape: f32[1,32], index: 12, kind: input, shape index: {}]   ;;  %s3026_s15 = inlined_call_operand.vmem [shape: f32[2,256], index: 15, kind: output, shape index: {0}]   ;;  %s3027_s16 = inlined_call_operand.vmem [shape: f32[2,64], index: 16, kind: output, shape index: {1}]  }
   0x1   :  { %3029 = sst [smem:[#allocation2_spill]] %s3011_s1  ;;  %v52_v5 = vld [vmem:[%s3012_s0] sm:$0xff]  ;;  %v53_v7 = vld [vmem:[%s3012_s0 + $0x8] sm:$0xff]  ;;  %v351_v10 = vld [vmem:[%s3013_s3 + $0x10] sm:$0xff]  ;;  %v151_v20 = vunpack.c.l.s4 %v2376_v19  ;;  %vm546_vm2 = vcmask 31744   ;;  %vm998_vm3 = vcmask 1041409  }
   0x2   :  { %s3030_s23 = sld [smem:[#allocation2_spill]]  ;;  %2130 = vmatprep.mubr.msk.f32.mxu0 %vm65_vm0, %v52_v5  ;;  %v349_v8 = vld [vmem:[%s3013_s3] sm:$0xff]  ;;  %v350_v9 = vld [vmem:[%s3013_s3 + $0x8] sm:$0xff]  ;;  %v352_v12 = vld [vmem:[%s3013_s3 + $0x18] sm:$0xff]  ;;  %s2375_s3 = smov 96   ;;  %v2513_v23 = vshrl.u32 %v153_v21, 7 }
   0x3   :  { %v2240_v11 = vpack.c.bf16 %v350_v9, %v349_v8  ;;  %v2244_v13 = vpack.c.bf16 %v352_v12, %v351_v10  ;;  %v2011_v14 = vld [vmem:[%s3014_s2] ss:$0 sm:$0xff]  ;;  %v152_v22 = vunpack.c.0.s8 %v151_v20  ;;  %vm1000_vm4 = vcmask 1042434   ;;  %s2383_s28 = smov 32   ;;  %s2384_s2 = smov 24  }
   0x4   :  { %v2517_v31 = vsub.s32 0, %v2513_v23  ;;  %vm1002_vm5 = vcmask 1043459   ;;  %vm1004_vm6 = vcmask 1044484   ;;  %vm1006_vm7 = vcmask 1045509   ;;  %s2385_s30 = smov 40  }
   0x5   :  { %2280 = vmatprep.subr.bf16.mxu1 %v2240_v11  ;;  %v155_v24 = vsub.s32 %v152_v22, %v2513_v23  ;;  %vm1008_vm8 = vcmask 1046534   ;;  %vm1010_vm9 = vcmask 1047559   ;;  %vm1752_vm10 = vcmask 523264  }
   0x6   :  { %2282 = vmatpush3.bf16.msra.mxu1 %v2240_v11  ;;  %vm1115_vm11 = vcmask 64512   ;;  %vm1117_vm12 = vcmask 130048   ;;  %vm1119_vm13 = vcmask 195584   ;;  %vm1986_vm14 = vcmask 785408  }
   0x7   :  { %2281 = vmatprep.subr.bf16.mxu1 %v2244_v13  ;;  %vm1122_vm15 = vcmask 326656  }
   0x8   :  { %v54_v0 = vld [vmem:[%s3030_s23] sm:$0xff]  ;;  %v55_v1 = vld [vmem:[%s3030_s23 + $0x8] sm:$0xff]  ;;  %v56_v2 = vld [vmem:[%s3030_s23 + $0x10] sm:$0xff] }
   0x9   :  { %v2232_v3 = vpack.c.bf16 %v55_v1, %v54_v0  ;;  %v57_v4 = vld [vmem:[%s3030_s23 + $0x18] sm:$0xff] }
   0xa   :  { %v2236_v6 = vpack.c.bf16 %v57_v4, %v56_v2  ;;  %2283 = vmatpush3.bf16.msra.mxu1 %v2244_v13 }
   0xb   :  { %2233 = vmatprep.subr.bf16.mxu0 %v2232_v3 }
   0xc   :  { %2235 = vmatpush3.bf16.msra.mxu0 %v2232_v3 }
   0xd   :  { %2237 = vmatprep.subr.bf16.mxu0 %v2236_v6 }
  0x10   :  { %2239 = vmatpush3.bf16.msra.mxu0 %v2236_v6 }
  0x11   :  { %2241 = vmatprep.subr.bf16.mxu0 %v2240_v11 }
  0x13   :  { %2131 = vmatmul.mubr.msk.f32.vlgmr.msra.gmra.mrb[0].mxu0 %vm65_vm0, %v53_v7 }
  0x14   :  { %2243 = vmatpush3.bf16.msra.mxu0 %v2240_v11 }
  0x15   :  { %2245 = vmatprep.subr.bf16.mxu0 %v2244_v13 }
  0x18   :  { %2247 = vmatpush3.bf16.msra.mxu0 %v2244_v13 }
  0xe6   :  { %v2132_v15 = vpop.f32.mrb[0].mxu0 }
  0xe7   :  { %v138_v16 = vpop.f32.mrb[1].mxu0  ;;  %v144_v18 = vadd.f32 %v2132_v15, %v2011_v14 }
  0xe8   :  { %v139_v17 = vadd.f32 %v2011_v14, %v138_v16 }
  0xe9   :  { %v205_v40 = vrot.slane %v144_v18, %v155_v24  ;;  %v198_v49 = vcombine.high %v144_v18, %v144_v18 }
  0xea   :  { %1328 = vrot.lane.b32.xlu1 %v139_v17, %s2374_s29  ;;  %327 = vrot.lane.b32.xlu0 %v139_v17, %s2375_s3  ;;  %v156_v25 = vrot.slane %v139_v17, %v155_v24  ;;  %v149_v27 = vcombine.high %v139_v17, %v139_v17 }
  0xeb   :  { %v213_v51 = vcombine.high %v205_v40, %v205_v40  ;;  %v221_v54 = vrot.slane %v205_v40, %v155_v24  ;;  %v212_v58 = vrot.slane %v198_v49, %v155_v24 }
  0xec   :  { %v164_v26 = vcombine.high %v156_v25, %v156_v25  ;;  %v172_v28 = vrot.slane %v156_v25, %v155_v24  ;;  %v163_v30 = vrot.slane %v149_v27, %v155_v24  ;;  %v1635_v25 = vld [vmem:[%s3015_s8] sm:$0xff] }
  0xed   :  { %v235_v61 = vrot.slane %v213_v51, %v155_v24  ;;  %v282_v62 = vrot.slane %v221_v54, %v2517_v31  ;;  %v243_v63 = vcombine.high %v221_v54, %v221_v54  ;;  %v214_v2 = vcombine.high %v212_v58, %v212_v58  ;;  %v1130_v27 = vld [vmem:[%s3017_s4] sm:$0xf] }
  0xee   :  { %1330 = vrot.lane.b32.xlu1 %v144_v18, %s2374_s29  ;;  %329 = vrot.lane.b32.xlu0 %v144_v18, %s2375_s3  ;;  %v186_v29 = vrot.slane %v164_v26, %v155_v24  ;;  %v194_v32 = vcombine.high %v172_v28, %v172_v28  ;;  %v165_v34 = vcombine.high %v163_v30, %v163_v30  ;;  %v1627_v26 = vld [vmem:[%s3016_s7] sm:$0xff] }
  0xef   :  { %v179_v35 = vrot.slane %v163_v30, %v155_v24  ;;  %v250_v36 = vrot.slane %v172_v28, %v2517_v31  ;;  %v286_v3 = vrot.slane %v235_v61, %v2517_v31  ;;  %v245_v4 = vcombine.high %v235_v61, %v235_v61  ;;  %2165 = vmatprep.subr.msk.mxu0 %vm1179_vm1, %v1130_v27 }
  0xf0   :  { %v196_v33 = vcombine.high %v186_v29, %v186_v29  ;;  %v258_v37 = vrot.slane %v194_v32, %v2517_v31  ;;  %v254_v38 = vrot.slane %v186_v29, %v2517_v31  ;;  %v193_v43 = vrot.slane %v165_v34, %v155_v24 }
  0xf1   :  { %v266_v42 = vrot.slane %v179_v35, %v2517_v31  ;;  %v195_v44 = vcombine.high %v179_v35, %v179_v35  ;;  %v290_v5 = vrot.slane %v243_v63, %v2517_v31  ;;  %v228_v6 = vrot.slane %v212_v58, %v155_v24 }
  0xf2   :  { %v262_v39 = vrot.slane %v196_v33, %v2517_v31  ;;  %v270_v52 = vrot.slane %v193_v43, %v2517_v31  ;;  %v197_v53 = vcombine.high %v193_v43, %v193_v43  ;;  %v294_v9 = vrot.slane %v245_v4, %v2517_v31 }
  0xf3   :  { %v274_v55 = vrot.slane %v195_v44, %v2517_v31  ;;  %v242_v10 = vrot.slane %v214_v2, %v155_v24  ;;  %v298_v11 = vrot.slane %v228_v6, %v2517_v31  ;;  %v244_v12 = vcombine.high %v228_v6, %v228_v6 }
  0xf4   :  { %v278_v60 = vrot.slane %v197_v53, %v2517_v31  ;;  %v2377_v24 = vmov 0  }
  0xf5   :  { %v302_v15 = vrot.slane %v242_v10, %v2517_v31  ;;  %v246_v16 = vcombine.high %v242_v10, %v242_v10  ;;  %v306_v17 = vrot.slane %v244_v12, %v2517_v31  ;;  %2299 = vset.pattern.permute.xlu1 %v2377_v24  ;;  %2298 = vset.pattern.permute.xlu0 %v2377_v24 }
  0xf6   :  { %1638 = vperm.xlu1 %2299, %v1635_v25   ;;  %1630 = vperm.xlu0 %2298, %v1627_v26  }
  0xf7   :  { %v310_v20 = vrot.slane %v246_v16, %v2517_v31 }
 0x15c   :  { %v328_v41 = vpop.permute.xlu0 %327 }
 0x15d   :  { %v333_v45 = vmul.f32 %v328_v41, %v250_v36  ;;  %v335_v46 = vmul.f32 %v328_v41, %v258_v37  ;;  %v334_v47 = vmul.f32 %v328_v41, %v254_v38  ;;  %v336_v48 = vmul.f32 %v328_v41, %v262_v39 }
 0x15e   :  { %v337_v50 = vmul.f32 %v328_v41, %v266_v42  ;;  %v338_v56 = vmul.f32 %v328_v41, %v270_v52  ;;  %v339_v57 = vmul.f32 %v328_v41, %v274_v55  ;;  %v340_v0 = vmul.f32 %v328_v41, %v278_v60 }
 0x15f   :  { %2141 = vmatprep.mubr.msk.f32.mxu0 %vm65_vm0, %v333_v45  ;;  %2144 = vmatprep.mubr.msk.f32.mxu1 %vm65_vm0, %v335_v46 }
 0x160   :  { %2142 = vmatmul.mubr.msk.f32.vlgmr.msra.gmra.mrb[2].mxu0 %vm65_vm0, %v334_v47  ;;  %2145 = vmatmul.mubr.msk.f32.vlgmr.msra.gmra.mrb[0].mxu1 %vm65_vm0, %v336_v48  ;;  %v330_v59 = vpop.permute.xlu0 %329 }
 0x161   :  { %2147 = vmatprep.mubr.msk.f32.mxu1 %vm65_vm0, %v337_v50  ;;  %v341_v1 = vmul.f32 %v330_v59, %v282_v62  ;;  %v342_v7 = vmul.f32 %v330_v59, %v286_v3  ;;  %v343_v8 = vmul.f32 %v330_v59, %v290_v5  ;;  %v344_v13 = vmul.f32 %v330_v59, %v294_v9 }
 0x162   :  { %v345_v14 = vmul.f32 %v330_v59, %v298_v11  ;;  %v346_v18 = vmul.f32 %v330_v59, %v302_v15  ;;  %v347_v19 = vmul.f32 %v330_v59, %v306_v17  ;;  %v348_v22 = vmul.f32 %v330_v59, %v310_v20  ;;  %2166 = vmatpush3.msk.msra.mxu0 %vm1179_vm1, %v1130_v27 }
 0x163   :  { %vm1124_vm1 = vcmask 392192  }
 0x164   :  { %2148 = vmatmul.mubr.msk.f32.gmra.mrb[2].mxu1 %vm65_vm0, %v338_v56 }
 0x165   :  { %2150 = vmatprep.mubr.msk.f32.mxu1 %vm65_vm0, %v339_v57 }
 0x168   :  { %2151 = vmatmul.mubr.msk.f32.gmra.mrb[4].mxu1 %vm65_vm0, %v340_v0 }
 0x169   :  { %2153 = vmatprep.mubr.msk.f32.mxu1 %vm65_vm0, %v341_v1 }
 0x16c   :  { %2154 = vmatmul.mubr.msk.f32.gmra.mrb[6].mxu1 %vm65_vm0, %v342_v7 }
 0x16d   :  { %2156 = vmatprep.mubr.msk.f32.mxu1 %vm65_vm0, %v343_v8 }
 0x170   :  { %2157 = vmatmul.mubr.msk.f32.gmra.mrb[8].mxu1 %vm65_vm0, %v344_v13 }
 0x171   :  { %2159 = vmatprep.mubr.msk.f32.mxu1 %vm65_vm0, %v345_v14 }
 0x174   :  { %2160 = vmatmul.mubr.msk.f32.gmra.mrb[10].mxu1 %vm65_vm0, %v346_v18 }
 0x175   :  { %2162 = vmatprep.mubr.msk.f32.mxu1 %vm65_vm0, %v347_v19 }
 0x178   :  { %2163 = vmatmul.mubr.msk.f32.gmra.mrb[12].mxu1 %vm65_vm0, %v348_v22 }
 0x233   :  { %v2143_v28 = vpop.f32.mrb[2].mxu0  ;;  %v2146_v29 = vpop.f32.mrb[0].mxu1 }
 0x234   :  { %v554_v30 = vsel %vm546_vm2, %v2143_v28, -inf  ;;  %v568_v31 = vsel %vm546_vm2, %v2146_v29, -inf  ;;  %v467_v32 = vpop.f32.mrb[3].mxu0  ;;  %v477_v33 = vpop.f32.mrb[1].mxu1 }
 0x235   :  { %v555_v34 = vrot.slane %v554_v30, 4  ;;  %v569_v35 = vrot.slane %v568_v31, 4  ;;  %v547_v36 = vsel %vm546_vm2, %v467_v32, -inf  ;;  %v561_v37 = vsel %vm546_vm2, %v477_v33, -inf }
 0x236   :  { %v548_v38 = vrot.slane %v547_v36, 4  ;;  %v562_v39 = vrot.slane %v561_v37, 4 }
 0x237   :  { %v556_v40 = vmax.f32 %v554_v30, %v555_v34  ;;  %v570_v41 = vmax.f32 %v568_v31, %v569_v35  ;;  %v2564_v42 = vpop.f32.mrb[2].mxu1 }
 0x238   :  { %v549_v43 = vmax.f32 %v547_v36, %v548_v38  ;;  %v563_v44 = vmax.f32 %v561_v37, %v562_v39  ;;  %v582_v45 = vsel %vm546_vm2, %v2564_v42, -inf  ;;  %v2568_v46 = vpop.f32.mrb[3].mxu1 }
 0x239   :  { %v557_v47 = vrot.slane %v556_v40, 2  ;;  %v571_v48 = vrot.slane %v570_v41, 2  ;;  %v583_v49 = vrot.slane %v582_v45, 4  ;;  %v575_v50 = vsel %vm546_vm2, %v2568_v46, -inf }
 0x23a   :  { %v550_v51 = vrot.slane %v549_v43, 2  ;;  %v564_v52 = vrot.slane %v563_v44, 2  ;;  %v576_v53 = vrot.slane %v575_v50, 4 }
 0x23b   :  { %v558_v54 = vmax.f32 %v556_v40, %v557_v47  ;;  %v572_v55 = vmax.f32 %v570_v41, %v571_v48  ;;  %v584_v56 = vmax.f32 %v582_v45, %v583_v49  ;;  %v2572_v57 = vpop.f32.mrb[4].mxu1 }
 0x23c   :  { %v551_v58 = vmax.f32 %v549_v43, %v550_v51  ;;  %v565_v59 = vmax.f32 %v563_v44, %v564_v52  ;;  %v577_v60 = vmax.f32 %v575_v50, %v576_v53  ;;  %v596_v61 = vsel %vm546_vm2, %v2572_v57, -inf  ;;  %v2576_v62 = vpop.f32.mrb[5].mxu1 }
 0x23d   :  { %v559_v63 = vrot.slane %v558_v54, 1  ;;  %v573_v0 = vrot.slane %v572_v55, 1  ;;  %v585_v1 = vrot.slane %v584_v56, 2  ;;  %v597_v2 = vrot.slane %v596_v61, 4 }
 0x23e   :  { %v552_v3 = vrot.slane %v551_v58, 1  ;;  %v566_v4 = vrot.slane %v565_v59, 1  ;;  %v578_v5 = vrot.slane %v577_v60, 2  ;;  %v589_v6 = vsel %vm546_vm2, %v2576_v62, -inf }
 0x23f   :  { %v560_v7 = vmax.f32 %v558_v54, %v559_v63  ;;  %v574_v8 = vmax.f32 %v572_v55, %v573_v0  ;;  %v586_v9 = vmax.f32 %v584_v56, %v585_v1  ;;  %v598_v10 = vmax.f32 %v596_v61, %v597_v2  ;;  %v2580_v11 = vpop.f32.mrb[6].mxu1 }
 0x240   :  { %v553_v12 = vmax.f32 %v551_v58, %v552_v3  ;;  %v567_v13 = vmax.f32 %v565_v59, %v566_v4  ;;  %v579_v14 = vmax.f32 %v577_v60, %v578_v5  ;;  %v590_v15 = vrot.slane %v589_v6, 4  ;;  %v2582_v16 = vpop.f32.mrb[7].mxu1 }
 0x241   :  { %v660_v17 = vsub.f32 %v2143_v28, %v560_v7  ;;  %v662_v18 = vsub.f32 %v2146_v29, %v574_v8  ;;  %v587_v19 = vrot.slane %v586_v9, 1  ;;  %v599_v20 = vrot.slane %v598_v10, 2 }
 0x242   :  { %v659_v22 = vsub.f32 %v467_v32, %v553_v12  ;;  %v661_v24 = vsub.f32 %v477_v33, %v567_v13  ;;  %v580_v25 = vrot.slane %v579_v14, 1  ;;  %v591_v26 = vmax.f32 %v589_v6, %v590_v15 }
 0x243   :  { %v677_v27 = vmul.f32 1.442695, %v660_v17  ;;  %v681_v30 = vmul.f32 1.442695, %v662_v18  ;;  %v588_v31 = vmax.f32 %v586_v9, %v587_v19  ;;  %v600_v34 = vmax.f32 %v598_v10, %v599_v20  ;;  %v2584_v35 = vpop.f32.mrb[8].mxu1 }
 0x244   :  { %v675_v36 = vmul.f32 1.442695, %v659_v22  ;;  %v679_v37 = vmul.f32 1.442695, %v661_v24  ;;  %v581_v38 = vmax.f32 %v579_v14, %v580_v25  ;;  %v592_v39 = vrot.slane %v591_v26, 2  ;;  %v2586_v40 = vpop.f32.mrb[9].mxu1 }
 0x245   :  { %2300 = vpow2.f32 %v677_v27  ;;  %v664_v28 = vsub.f32 %v2564_v42, %v588_v31  ;;  %v601_v29 = vrot.slane %v600_v34, 1  ;;  %v610_v32 = vsel %vm546_vm2, %v2580_v11, -inf }
 0x246   :  { %2302 = vpow2.f32 %v681_v30  ;;  %v663_v33 = vsub.f32 %v2568_v46, %v581_v38  ;;  %v593_v41 = vmax.f32 %v591_v26, %v592_v39  ;;  %v611_v43 = vrot.slane %v610_v32, 4 }
 0x247   :  { %2304 = vpow2.f32 %v675_v36  ;;  %v685_v44 = vmul.f32 1.442695, %v664_v28  ;;  %v602_v45 = vmax.f32 %v600_v34, %v601_v29  ;;  %v603_v47 = vsel %vm546_vm2, %v2582_v16, -inf  ;;  %v2594_v48 = vpop.f32.mrb[10].mxu1 }
 0x248   :  { %2306 = vpow2.f32 %v679_v37  ;;  %v683_v49 = vmul.f32 1.442695, %v663_v33  ;;  %v594_v42 = vrot.slane %v593_v41, 1  ;;  %v612_v50 = vmax.f32 %v610_v32, %v611_v43  ;;  %v2596_v51 = vpop.f32.mrb[11].mxu1 }
 0x249   :  { %2308 = vpow2.f32 %v685_v44  ;;  %v666_v52 = vsub.f32 %v2572_v57, %v602_v45  ;;  %v604_v46 = vrot.slane %v603_v47, 4  ;;  %v624_v53 = vsel %vm546_vm2, %v2584_v35, -inf }
 0x24a   :  { %2310 = vpow2.f32 %v683_v49  ;;  %v595_v54 = vmax.f32 %v593_v41, %v594_v42  ;;  %v613_v55 = vrot.slane %v612_v50, 2  ;;  %v625_v56 = vrot.slane %v624_v53, 4 }
 0x24b   :  { %v689_v58 = vmul.f32 1.442695, %v666_v52  ;;  %v605_v59 = vmax.f32 %v603_v47, %v604_v46  ;;  %v617_v60 = vsel %vm546_vm2, %v2586_v40, -inf  ;;  %v638_v61 = vsel %vm546_vm2, %v2594_v48, -inf  ;;  %v2605_v63 = vpop.f32.mrb[12].mxu1 }
 0x24c   :  { %v665_v57 = vsub.f32 %v2576_v62, %v595_v54  ;;  %v614_v0 = vmax.f32 %v612_v50, %v613_v55  ;;  %v626_v1 = vmax.f32 %v624_v53, %v625_v56  ;;  %v618_v2 = vrot.slane %v617_v60, 4  ;;  %v2608_v3 = vpop.f32.mrb[13].mxu1 }
 0x24d   :  { %2312 = vpow2.f32 %v689_v58  ;;  %v606_v4 = vrot.slane %v605_v59, 2  ;;  %v639_v5 = vrot.slane %v638_v61, 4  ;;  %v2612_v6 = vsel %vm546_vm2, %v2596_v51, -inf }
 0x24e   :  { %v687_v7 = vmul.f32 1.442695, %v665_v57  ;;  %v615_v8 = vrot.slane %v614_v0, 1  ;;  %v627_v9 = vrot.slane %v626_v1, 2  ;;  %v619_v13 = vmax.f32 %v617_v60, %v618_v2 }
 0x24f   :  { %v2614_v10 = vpop.eup %2300  ;;  %v607_v12 = vmax.f32 %v605_v59, %v606_v4  ;;  %v2616_v62 = vmax.f32 %v638_v61, %v639_v5  ;;  %v632_v14 = vrot.slane %v2612_v6, 4  ;;  %v2629_v26 = vsel %vm546_vm2, %v2605_v63, -inf }
 0x250   :  { %v2619_v15 = vpop.eup %2302  ;;  %v714_v17 = vsel %vm546_vm2, %v2614_v10, 0.0  ;;  %2314 = vpow2.f32 %v687_v7  ;;  %v616_v18 = vmax.f32 %v614_v0, %v615_v8  ;;  %v628_v19 = vmax.f32 %v626_v1, %v627_v9 }
 0x251   :  { %v2623_v20 = vpop.eup %2304  ;;  %v715_v22 = vrot.slane %v714_v17, 4  ;;  %v728_v24 = vsel %vm546_vm2, %v2619_v15, 0.0  ;;  %v608_v25 = vrot.slane %v607_v12, 1  ;;  %v620_v44 = vrot.slane %v619_v13, 2 }
 0x252   :  { %v2631_v27 = vpop.eup %2306  ;;  %v729_v30 = vrot.slane %v728_v24, 4  ;;  %v707_v31 = vsel %vm546_vm2, %v2623_v20, 0.0  ;;  %v668_v34 = vsub.f32 %v2580_v11, %v616_v18  ;;  %v629_v36 = vrot.slane %v628_v19, 1 }
 0x253   :  { %v2636_v37 = vpop.eup %2308  ;;  %v2638_v38 = vadd.f32 %v715_v22, %v714_v17  ;;  %v708_v39 = vrot.slane %v707_v31, 4  ;;  %v721_v28 = vsel %vm546_vm2, %v2631_v27, 0.0  ;;  %v609_v29 = vmax.f32 %v607_v12, %v608_v25 }
 0x254   :  { %v2642_v32 = vpop.eup %2310  ;;  %v722_v33 = vrot.slane %v721_v28, 4  ;;  %v742_v41 = vsel %vm546_vm2, %v2636_v37, 0.0  ;;  %v693_v43 = vmul.f32 1.442695, %v668_v34  ;;  %v2646_v45 = vadd.f32 %v729_v30, %v728_v24 }
 0x255   :  { %v709_v11 = vadd.f32 %v708_v39, %v707_v31  ;;  %v743_v47 = vrot.slane %v742_v41, 4  ;;  %v735_v49 = vsel %vm546_vm2, %v2642_v32, 0.0  ;;  %v717_v42 = vrot.slane %v2638_v38, 2 }
 0x256   :  { %v723_v50 = vadd.f32 %v722_v33, %v721_v28  ;;  %v736_v52 = vrot.slane %v735_v49, 4  ;;  %2316 = vpow2.f32 %v693_v43  ;;  %v667_v55 = vsub.f32 %v2582_v16, %v609_v29 }
 0x257   :  { %v2651_v46 = vpop.eup %2312  ;;  %v710_v53 = vrot.slane %v709_v11, 2  ;;  %v744_v54 = vadd.f32 %v743_v47, %v742_v41  ;;  %v630_v56 = vmax.f32 %v628_v19, %v629_v36  ;;  %v621_v61 = vmax.f32 %v619_v13, %v620_v44 }
 0x258   :  { %v724_v58 = vrot.slane %v723_v50, 2  ;;  %v737_v59 = vadd.f32 %v736_v52, %v735_v49  ;;  %v756_v60 = vsel %vm546_vm2, %v2651_v46, 0.0  ;;  %v691_v2 = vmul.f32 1.442695, %v667_v55 }
 0x259   :  { %v711_v57 = vadd.f32 %v710_v53, %v709_v11  ;;  %v745_v0 = vrot.slane %v744_v54, 2  ;;  %v757_v1 = vrot.slane %v756_v60, 4  ;;  %v670_v8 = vsub.f32 %v2584_v35, %v630_v56 }
 0x25a   :  { %v2656_v4 = vpop.eup %2314  ;;  %v725_v5 = vadd.f32 %v724_v58, %v723_v50  ;;  %v738_v7 = vrot.slane %v737_v59, 2  ;;  %v622_v9 = vrot.slane %v621_v61, 1  ;;  %2318 = vpow2.f32 %v691_v2 }
 0x25b   :  { %v712_v12 = vrot.slane %v711_v57, 1  ;;  %v746_v16 = vadd.f32 %v745_v0, %v744_v54  ;;  %v758_v17 = vadd.f32 %v757_v1, %v756_v60  ;;  %v749_v18 = vsel %vm546_vm2, %v2656_v4, 0.0 }
 0x25c   :  { %v726_v19 = vrot.slane %v725_v5, 1  ;;  %v739_v22 = vadd.f32 %v738_v7, %v737_v59  ;;  %v750_v13 = vrot.slane %v749_v18, 4  ;;  %v731_v24 = vrot.slane %v2646_v45, 2 }
 0x25d   :  { %v747_v25 = vrot.slane %v746_v16, 1  ;;  %v759_v30 = vrot.slane %v758_v17, 2  ;;  %v697_v31 = vmul.f32 1.442695, %v670_v8  ;;  %v713_v34 = vadd.f32 %v712_v12, %v711_v57 }
 0x25e   :  { %v740_v36 = vrot.slane %v739_v22, 1  ;;  %v751_v39 = vadd.f32 %v750_v13, %v749_v18  ;;  %v623_v35 = vmax.f32 %v621_v61, %v622_v9  ;;  %v727_v28 = vadd.f32 %v726_v19, %v725_v5 }
 0x25f   :  { %v2662_v29 = vadd.f32 %v759_v30, %v758_v17  ;;  %2320 = vpow2.f32 %v697_v31  ;;  %v641_v33 = vrot.slane %v2616_v62, 2  ;;  %v2667_v43 = vadd.f32 %v747_v25, %v746_v16 }
 0x260   :  { %v2665_v41 = vpop.eup %2316  ;;  %v752_v44 = vrot.slane %v751_v39, 2  ;;  %v669_v11 = vsub.f32 %v2586_v40, %v623_v35  ;;  %v633_v47 = vmax.f32 %v2612_v6, %v632_v14  ;;  %v741_v49 = vadd.f32 %v740_v36, %v739_v22 }
 0x261   :  { %v770_v50 = vsel %vm546_vm2, %v2665_v41, 0.0  ;;  %v642_v52 = vmax.f32 %v2616_v62, %v641_v33  ;;  %v653_v53 = vrot.slane %v2629_v26, 4  ;;  %v761_v59 = vrot.slane %v2662_v29, 1 }
 0x262   :  { %v753_v54 = vadd.f32 %v752_v44, %v751_v39  ;;  %v771_v55 = vrot.slane %v770_v50, 4  ;;  %v695_v56 = vmul.f32 1.442695, %v669_v11  ;;  %v634_v58 = vrot.slane %v633_v47, 2 }
 0x263   :  { %v643_v60 = vrot.slane %v642_v52, 1  ;;  %v654_v40 = vmax.f32 %v2629_v26, %v653_v53  ;;  %v645_v6 = vsel %vm546_vm2, %v2608_v3, -inf  ;;  %v718_v2 = vadd.f32 %v717_v42, %v2638_v38 }
 0x264   :  { %v754_v14 = vrot.slane %v753_v54, 1  ;;  %v772_v61 = vadd.f32 %v771_v55, %v770_v50  ;;  %2322 = vpow2.f32 %v695_v56  ;;  %v635_v57 = vmax.f32 %v633_v47, %v634_v58  ;;  %v2684_v5 = vpop.eup %2318 }
 0x265   :  { %v644_v0 = vmax.f32 %v642_v52, %v643_v60  ;;  %v655_v62 = vrot.slane %v654_v40, 2  ;;  %v646_v1 = vrot.slane %v645_v6, 4  ;;  %2324 = vrcp.f32 %v713_v34 }
 0x266   :  { %v755_v7 = vadd.f32 %v754_v14, %v753_v54  ;;  %v773_v8 = vrot.slane %v772_v61, 2  ;;  %v636_v9 = vrot.slane %v635_v57, 1  ;;  %v763_v26 = vsel %vm546_vm2, %v2684_v5, 0.0 }
 0x267   :  { %v672_v12 = vsub.f32 %v2594_v48, %v644_v0  ;;  %v656_v16 = vmax.f32 %v654_v40, %v655_v62  ;;  %v647_v17 = vmax.f32 %v645_v6, %v646_v1  ;;  %v764_v18 = vrot.slane %v763_v26, 4 }
 0x268   :  { %v637_v19 = vmax.f32 %v635_v57, %v636_v9  ;;  %v719_v22 = vrot.slane %v718_v2, 1  ;;  %2326 = vrcp.f32 %v727_v28  ;;  %v732_v30 = vadd.f32 %v731_v24, %v2646_v45 }
 0x269   :  { %v2689_v13 = vpop.eup %2320  ;;  %v701_v38 = vmul.f32 1.442695, %v672_v12  ;;  %v657_v42 = vrot.slane %v656_v16, 1  ;;  %v648_v25 = vrot.slane %v647_v17, 2  ;;  %v765_v31 = vadd.f32 %v764_v18, %v763_v26 }
 0x26a   :  { %v784_v34 = vsel %vm546_vm2, %v2689_v13, 0.0  ;;  %v671_v36 = vsub.f32 %v2596_v51, %v637_v19  ;;  %v720_v48 = vadd.f32 %v719_v22, %v718_v2  ;;  %v733_v11 = vrot.slane %v732_v30, 1 }
 0x26b   :  { %v785_v39 = vrot.slane %v784_v34, 4  ;;  %2328 = vpow2.f32 %v701_v38  ;;  %v658_v35 = vmax.f32 %v656_v16, %v657_v42  ;;  %v649_v33 = vmax.f32 %v647_v17, %v648_v25 }
 0x26c   :  { %v766_v44 = vrot.slane %v765_v31, 2  ;;  %v699_v28 = vmul.f32 1.442695, %v671_v36  ;;  %2330 = vrcp.f32 %v720_v48  ;;  %v734_v53 = vadd.f32 %v733_v11, %v732_v30 }
 0x26d   :  { %v786_v47 = vadd.f32 %v785_v39, %v784_v34  ;;  %v674_v50 = vsub.f32 %v2605_v63, %v658_v35  ;;  %v650_v52 = vrot.slane %v649_v33, 1  ;;  %2332 = vrcp.f32 %v741_v49 }
 0x26e   :  { %v2696_v45 = vpop.eup %2322  ;;  %v767_v24 = vadd.f32 %v766_v44, %v765_v31  ;;  %2334 = vpow2.f32 %v699_v28  ;;  %v774_v51 = vadd.f32 %v773_v8, %v772_v61  ;;  %v762_v61 = vadd.f32 %v761_v59, %v2662_v29 }
 0x26f   :  { %v787_v54 = vrot.slane %v786_v47, 2  ;;  %v777_v55 = vsel %vm546_vm2, %v2696_v45, 0.0  ;;  %v705_v56 = vmul.f32 1.442695, %v674_v50  ;;  %v651_v58 = vmax.f32 %v649_v33, %v650_v52  ;;  %v2325_v60 = vpop.eup %2324 }
 0x270   :  { %v768_v40 = vrot.slane %v767_v24, 1  ;;  %v778_v6 = vrot.slane %v777_v55, 4  ;;  %2336 = vrcp.f32 %v734_v53  ;;  %v775_v14 = vrot.slane %v774_v51, 1 }
 0x271   :  { %2338 = vpow2.f32 %v705_v56  ;;  %v673_v63 = vsub.f32 %v2608_v3, %v651_v58  ;;  %v835_v49 = vmul.f32 %v2325_v60, %v2623_v20  ;;  %v788_v57 = vadd.f32 %v787_v54, %v786_v47 }
 0x272   :  { %v2327_v0 = vpop.eup %2326  ;;  %v779_v62 = vadd.f32 %v778_v6, %v777_v55  ;;  %2340 = vrcp.f32 %v2667_v43  ;;  %v776_v1 = vadd.f32 %v775_v14, %v774_v51  ;;  %v769_v2 = vadd.f32 %v768_v40, %v767_v24 }
 0x273   :  { %v703_v8 = vmul.f32 1.442695, %v673_v63  ;;  %2167 = vmatprep.mubr.msk.f32.mxu0 %vm546_vm2, %v835_v49  ;;  %v851_v9 = vsel %vm546_vm2, %v835_v49, 0.0  ;;  %2342 = vrcp.f32 %v755_v7  ;;  %v789_v20 = vrot.slane %v788_v57, 1 }
 0x274   :  { %v780_v3 = vrot.slane %v779_v62, 2  ;;  %852 = vadd.xlane.f32.xlu1 %v851_v9  ;;  %2344 = vrcp.f32 %v776_v1  ;;  %v837_v22 = vmul.f32 %v2327_v0, %v2631_v27 }
 0x275   :  { %v2708_v26 = vpop.eup %2328  ;;  %2346 = vpow2.f32 %v703_v8  ;;  %v790_v59 = vadd.f32 %v789_v20, %v788_v57 }
 0x276   :  { %v2331_v12 = vpop.eup %2330  ;;  %v781_v29 = vadd.f32 %v780_v3, %v779_v62  ;;  %v798_v43 = vsel %vm546_vm2, %v2708_v26, 0.0  ;;  %2348 = vrcp.f32 %v762_v61  ;;  %v857_v14 = vsel %vm546_vm2, %v837_v22, 0.0 }
 0x277   :  { %v2333_v16 = vpop.eup %2332  ;;  %v799_v17 = vrot.slane %v798_v43, 4  ;;  %v836_v18 = vmul.f32 %v2331_v12, %v2614_v10  ;;  %2350 = vrcp.f32 %v769_v2 }
 0x278   :  { %v2713_v7 = vpop.eup %2334  ;;  %v782_v19 = vrot.slane %v781_v29, 1  ;;  %2352 = vrcp.f32 %v790_v59  ;;  %v839_v33 = vmul.f32 %v2333_v16, %v2642_v32 }
 0x279   :  { %v800_v38 = vadd.f32 %v799_v17, %v798_v43  ;;  %v791_v42 = vsel %vm546_vm2, %v2713_v7, 0.0  ;;  %v854_v25 = vsel %vm546_vm2, %v836_v18, 0.0  ;;  %2168 = vmatmul.mubr.msk.f32.vlgmr.msra.gmra.mrb[4].mxu0 %vm546_vm2, %v836_v18 }
 0x27a   :  { %v2337_v30 = vpop.eup %2336  ;;  %v783_v31 = vadd.f32 %v782_v19, %v781_v29  ;;  %v792_v34 = vrot.slane %v791_v42, 4  ;;  %855 = vadd.xlane.f32.xlu0 %v854_v25  ;;  %2170 = vmatprep.mubr.msk.f32.mxu0 %vm546_vm2, %v837_v22  ;;  %v863_v29 = vsel %vm546_vm2, %v839_v33, 0.0 }
 0x27b   :  { %v2721_v10 = vpop.eup %2338  ;;  %v801_v36 = vrot.slane %v800_v38, 2  ;;  %v838_v27 = vmul.f32 %v2337_v30, %v2619_v15 }
 0x27c   :  { %v2341_v48 = vpop.eup %2340  ;;  %v793_v39 = vadd.f32 %v792_v34, %v791_v42  ;;  %v812_v35 = vsel %vm546_vm2, %v2721_v10, 0.0  ;;  %2354 = vrcp.f32 %v783_v31 }
 0x27d   :  { %v2343_v44 = vpop.eup %2342  ;;  %v813_v28 = vrot.slane %v812_v35, 4  ;;  %v860_v11 = vsel %vm546_vm2, %v838_v27, 0.0  ;;  %2171 = vmatmul.mubr.msk.f32.gmra.mrb[6].mxu0 %vm546_vm2, %v838_v27  ;;  %v802_v47 = vadd.f32 %v801_v36, %v800_v38  ;;  %v840_v53 = vmul.f32 %v2341_v48, %v2636_v37  ;;  %v1878_v27 = vld [vmem:[%s3018_s13] sm:$0xff] }
 0x27e   :  { %v2345_v50 = vpop.eup %2344  ;;  %v794_v52 = vrot.slane %v793_v39, 2  ;;  %861 = vadd.xlane.f32.xlu0 %v860_v11  ;;  %2173 = vmatprep.mubr.msk.f32.mxu0 %vm546_vm2, %v839_v33  ;;  %v841_v58 = vmul.f32 %v2343_v44, %v2656_v4  ;;  %v1462_v48 = vld [vmem:[%s3020_s5] sm:$0xff]  ;;  %v2781_v33 = vpop.permute.xlu1 %1328  ;;  %v1464_v44 = vld [vmem:[%s3020_s5 + $0x10] sm:$0xff] }
 0x27f   :  { %v2730_v15 = vpop.eup %2346  ;;  %v814_v24 = vadd.f32 %v813_v28, %v812_v35  ;;  %v844_v32 = vmul.f32 %v2345_v50, %v2665_v41  ;;  %v803_v51 = vrot.slane %v802_v47, 1  ;;  %v866_v9 = vsel %vm546_vm2, %v840_v53, 0.0  ;;  %v1465_v28 = vld [vmem:[%s3020_s5 + $0x18] sm:$0xff] }
 0x280   :  { %v2349_v54 = vpop.eup %2348  ;;  %v795_v55 = vadd.f32 %v794_v52, %v793_v39  ;;  %v805_v56 = vsel %vm546_vm2, %v2730_v15, 0.0  ;;  %v869_v22 = vsel %vm546_vm2, %v841_v58, 0.0  ;;  %v1463_v39 = vld [vmem:[%s3020_s5 + $0x8] sm:$0xff]  ;;  %v2252_v11 = vpack.c.bf16 %v1465_v28, %v1464_v44  ;;  %s2381_s5 = smov 16  }
 0x281   :  { %v2351_v60 = vpop.eup %2350  ;;  %v815_v40 = vrot.slane %v814_v24, 2  ;;  %v806_v6 = vrot.slane %v805_v56, 4  ;;  %2174 = vmatmul.mubr.msk.f32.gmra.mrb[8].mxu0 %vm546_vm2, %v840_v53  ;;  %v878_v63 = vsel %vm546_vm2, %v844_v32, 0.0  ;;  %v804_v41 = vadd.f32 %v803_v51, %v802_v47  ;;  %v2789_v47 = vpop.permute.xlu0 %1630 }
 0x282   :  { %v2353_v37 = vpop.eup %2352  ;;  %v796_v49 = vrot.slane %v795_v55, 1  ;;  %858 = vadd.xlane.f32.xlu0 %v857_v14  ;;  %2176 = vmatprep.mubr.msk.f32.mxu0 %vm546_vm2, %v841_v58  ;;  %v842_v4 = vmul.f32 %v2349_v54, %v2651_v46  ;;  %v843_v1 = vmul.f32 %v2351_v60, %v2684_v5  ;;  %v2248_v35 = vpack.c.bf16 %v1463_v39, %v1462_v48  ;;  %v2791_v50 = vpop.permute.xlu1 %1330 }
 0x283   :  { %v816_v57 = vadd.f32 %v815_v40, %v814_v24  ;;  %v807_v0 = vadd.f32 %v806_v6, %v805_v56  ;;  %879 = vadd.xlane.f32.xlu1 %v878_v63  ;;  %v846_v61 = vmul.f32 %v2353_v37, %v2689_v13  ;;  %2356 = vrcp.f32 %v804_v41 }
 0x284   :  { %v797_v62 = vadd.f32 %v796_v49, %v795_v55  ;;  %v872_v16 = vsel %vm546_vm2, %v842_v4, 0.0  ;;  %v875_v25 = vsel %vm546_vm2, %v843_v1, 0.0  ;;  %2249 = vmatprep.subr.bf16.mxu1 %v2248_v35  ;;  %v933_v56 = vand.u32 127, %v153_v21 }
 0x285   :  { %v817_v2 = vrot.slane %v816_v57, 1  ;;  %v808_v8 = vrot.slane %v807_v0, 2  ;;  %2177 = vmatmul.mubr.msk.f32.gmra.mrb[10].mxu0 %vm546_vm2, %v842_v4  ;;  %v884_v3 = vsel %vm546_vm2, %v846_v61, 0.0  ;;  %2251 = vmatpush3.bf16.msra.mxu1 %v2248_v35  ;;  %v2379_v35 = vmov 1934713408  }
 0x286   :  { %v2355_v20 = vpop.eup %2354  ;;  %867 = vadd.xlane.f32.xlu0 %v866_v9  ;;  %2179 = vmatprep.mubr.msk.f32.mxu0 %vm546_vm2, %v843_v1  ;;  %2358 = vrcp.f32 %v797_v62  ;;  %v2793_v52 = vpop.permute.xlu1 %1638  ;;  %v2797_v60 = vsub.s32 %v933_v56, %v2513_v23  ;;  %v1054_v44 = vunpack.c.l.s4 %v2379_v35 }
 0x287   :  { %v818_v46 = vadd.f32 %v817_v2, %v816_v57  ;;  %v809_v12 = vadd.f32 %v808_v8, %v807_v0  ;;  %885 = vadd.xlane.f32.xlu1 %v884_v3  ;;  %v845_v13 = vmul.f32 %v2355_v20, %v2696_v45  ;;  %2253 = vmatprep.subr.bf16.mxu1 %v2252_v11 }
 0x288   :  { %v1055_v56 = vunpack.c.0.s8 %v1054_v44 }
 0x289   :  { %v810_v5 = vrot.slane %v809_v12, 1  ;;  %2180 = vmatmul.mubr.msk.f32.gmra.mrb[12].mxu0 %vm546_vm2, %v844_v32  ;;  %2360 = vrcp.f32 %v818_v46  ;;  %v881_v43 = vsel %vm546_vm2, %v845_v13, 0.0  ;;  %2255 = vmatpush3.bf16.msra.mxu1 %v2252_v11 }
 0x28a   :  { %864 = vadd.xlane.f32.xlu0 %v863_v29  ;;  %2182 = vmatprep.mubr.msk.f32.mxu0 %vm546_vm2, %v845_v13 }
 0x28b   :  { %v811_v59 = vadd.f32 %v810_v5, %v809_v12  ;;  %882 = vadd.xlane.f32.xlu1 %v881_v43  ;;  %v2378_v43 = vmov 1983009808  }
 0x28d   :  { %2183 = vmatmul.mubr.msk.f32.gmra.mrb[14].mxu0 %vm546_vm2, %v846_v61  ;;  %2362 = vrcp.f32 %v811_v59  ;;  %v2357_v17 = vpop.eup %2356  ;;  %v1023_v59 = vunpack.c.l.s4 %v2378_v43 }
 0x28e   :  { %873 = vadd.xlane.f32.xlu0 %v872_v16  ;;  %v848_v45 = vmul.f32 %v2357_v17, %v2708_v26 }
 0x290   :  { %v2359_v18 = vpop.eup %2358  ;;  %v890_v38 = vsel %vm546_vm2, %v848_v45, 0.0 }
 0x291   :  { %v847_v19 = vmul.f32 %v2359_v18, %v2713_v7  ;;  %891 = vadd.xlane.f32.xlu1 %v890_v38 }
 0x292   :  { %870 = vadd.xlane.f32.xlu0 %v869_v22 }
 0x293   :  { %v2361_v42 = vpop.eup %2360  ;;  %2185 = vmatprep.mubr.msk.f32.mxu0 %vm546_vm2, %v847_v19  ;;  %v887_v30 = vsel %vm546_vm2, %v847_v19, 0.0 }
 0x294   :  { %2186 = vmatmul.mubr.msk.f32.gmra.mrb[16].mxu0 %vm546_vm2, %v848_v45  ;;  %v850_v26 = vmul.f32 %v2361_v42, %v2721_v10  ;;  %v1886_v10 = vld [vmem:[%s3019_s14] sm:$0xff] }
 0x295   :  { %888 = vadd.xlane.f32.xlu1 %v887_v30 }
 0x296   :  { %876 = vadd.xlane.f32.xlu0 %v875_v25  ;;  %v896_v34 = vsel %vm546_vm2, %v850_v26, 0.0 }
 0x297   :  { %v2363_v7 = vpop.eup %2362 }
 0x298   :  { %v849_v31 = vmul.f32 %v2363_v7, %v2730_v15 }
 0x299   :  { %897 = vadd.xlane.f32.xlu1 %v896_v34 }
 0x29a   :  { %2188 = vmatprep.mubr.msk.f32.mxu0 %vm546_vm2, %v849_v31  ;;  %v893_v36 = vsel %vm546_vm2, %v849_v31, 0.0  ;;  %v1024_v31 = vunpack.c.0.s8 %v1023_v59 }
 0x29b   :  { %2189 = vmatmul.mubr.msk.f32.gmra.mrb[18].mxu0 %vm546_vm2, %v850_v26  ;;  %vm1126_vm2 = vcmask 457728  }
 0x29d   :  { %894 = vadd.xlane.f32.xlu1 %v893_v36 }
 0x2ac   :  { %1881 = vperm.xlu0 %2298, %v1878_v27  }
 0x2ae   :  { %1889 = vperm.xlu1 %2299, %v1886_v10  }
 0x301   :  { %v853_v53 = vpop.xlane.xlu1 %852 }
 0x302   :  { %v900_v6 = vmul.f32 0.25, %v853_v53 }
 0x304   :  { %v937_v41 = vrot.slane %v900_v6, %v2797_v60 }
 0x307   :  { %v856_v15 = vpop.xlane.xlu0 %855 }
 0x308   :  { %v901_v40 = vmul.f32 0.25, %v856_v15 }
 0x30a   :  { %v941_v49 = vrot.slane %v901_v40, %v2797_v60 }
 0x30b   :  { %v862_v24 = vpop.xlane.xlu0 %861 }
 0x30c   :  { %v903_v4 = vmul.f32 0.25, %v862_v24  ;;  %v999_v62 = vsel %vm998_vm3, %v941_v49, %v937_v41 }
 0x30e   :  { %v949_v3 = vrot.slane %v903_v4, %v2797_v60 }
 0x30f   :  { %v859_v32 = vpop.xlane.xlu0 %858 }
 0x310   :  { %v880_v51 = vpop.xlane.xlu1 %879  ;;  %v902_v63 = vmul.f32 0.25, %v859_v32 }
 0x311   :  { %v909_v1 = vmul.f32 0.25, %v880_v51 }
 0x312   :  { %v945_v57 = vrot.slane %v902_v63, %v2797_v60 }
 0x313   :  { %v868_v54 = vpop.xlane.xlu0 %867  ;;  %v973_v16 = vrot.slane %v909_v1, %v2797_v60 }
 0x314   :  { %v886_v55 = vpop.xlane.xlu1 %885  ;;  %v1001_v2 = vsel %vm1000_vm4, %v945_v57, %v999_v62  ;;  %v905_v20 = vmul.f32 0.25, %v868_v54  ;;  %v2836_v57 = vsub.s32 %v1055_v56, %v2513_v23 }
 0x315   :  { %v911_v5 = vmul.f32 0.25, %v886_v55  ;;  %v1003_v17 = vsel %vm1002_vm5, %v949_v3, %v1001_v2  ;;  %v2826_v55 = vsub.s32 %v1024_v31, %v2513_v23 }
 0x316   :  { %v957_v38 = vrot.slane %v905_v20, %v2797_v60 }
 0x317   :  { %v865_v58 = vpop.xlane.xlu0 %864  ;;  %v981_v26 = vrot.slane %v911_v5, %v2797_v60 }
 0x318   :  { %v883_v14 = vpop.xlane.xlu1 %882  ;;  %v904_v0 = vmul.f32 0.25, %v865_v58 }
 0x319   :  { %v910_v46 = vmul.f32 0.25, %v883_v14  ;;  %v2380_v14 = vmov 0.0  }
 0x31a   :  { %v953_v8 = vrot.slane %v904_v0, %v2797_v60 }
 0x31b   :  { %v874_v37 = vpop.xlane.xlu0 %873  ;;  %v977_v25 = vrot.slane %v910_v46, %v2797_v60 }
 0x31c   :  { %v1005_v45 = vsel %vm1004_vm6, %v953_v8, %v1003_v17  ;;  %v907_v42 = vmul.f32 0.25, %v874_v37 }
 0x31d   :  { %v1007_v34 = vsel %vm1006_vm7, %v957_v38, %v1005_v45 }
 0x31e   :  { %v892_v61 = vpop.xlane.xlu1 %891  ;;  %v965_v28 = vrot.slane %v907_v42, %v2797_v60 }
 0x31f   :  { %v871_v21 = vpop.xlane.xlu0 %870  ;;  %v913_v36 = vmul.f32 0.25, %v892_v61 }
 0x320   :  { %v906_v9 = vmul.f32 0.25, %v871_v21 }
 0x321   :  { %v989_v32 = vrot.slane %v913_v36, %v2797_v60 }
 0x322   :  { %v889_v13 = vpop.xlane.xlu1 %888  ;;  %v961_v18 = vrot.slane %v906_v9, %v2797_v60 }
 0x323   :  { %v877_v12 = vpop.xlane.xlu0 %876  ;;  %v912_v22 = vmul.f32 0.25, %v889_v13 }
 0x324   :  { %v908_v29 = vmul.f32 0.25, %v877_v12  ;;  %v1009_v10 = vsel %vm1008_vm8, %v961_v18, %v1007_v34 }
 0x325   :  { %v985_v39 = vrot.slane %v912_v22, %v2797_v60  ;;  %v1011_v51 = vsel %vm1010_vm9, %v965_v28, %v1009_v10 }
 0x326   :  { %v969_v19 = vrot.slane %v908_v29, %v2797_v60  ;;  %v898_v30 = vpop.xlane.xlu1 %897  ;;  %v1021_v63 = vcombine.high %v1011_v51, %v2380_v14  ;;  %v1028_v49 = vrot.slane %v1011_v51, %v2826_v55 }
 0x327   :  { %v915_v11 = vmul.f32 0.25, %v898_v30 }
 0x328   :  { %v1012_v7 = vsel %vm998_vm3, %v973_v16, %v969_v19  ;;  %v2840_v21 = vrot.slane %v1021_v63, %v2826_v55 }
 0x329   :  { %v1013_v27 = vsel %vm1000_vm4, %v977_v25, %v1012_v7  ;;  %v997_v58 = vrot.slane %v915_v11, %v2797_v60 }
 0x32a   :  { %v1014_v48 = vsel %vm1002_vm5, %v981_v26, %v1013_v27  ;;  %v895_v15 = vpop.xlane.xlu1 %894 }
 0x32b   :  { %v1015_v24 = vsel %vm1004_vm6, %v985_v39, %v1014_v48  ;;  %v914_v53 = vmul.f32 0.25, %v895_v15 }
 0x32c   :  { %v1016_v40 = vsel %vm1006_vm7, %v989_v32, %v1015_v24 }
 0x32d   :  { %v993_v54 = vrot.slane %v914_v53, %v2797_v60 }
 0x32f   :  { %v1017_v6 = vsel %vm1008_vm8, %v993_v54, %v1016_v40 }
 0x330   :  { %v1018_v37 = vsel %vm1010_vm9, %v997_v58, %v1017_v6 }
 0x331   :  { %v1043_v41 = vrot.slane %v1018_v37, %v2826_v55  ;;  %v1036_v0 = vcombine.high %v1018_v37, %v2380_v14 }
 0x333   :  { %v1052_v4 = vcombine.high %v1028_v49, %v1043_v41  ;;  %v1051_v60 = vcombine.low %v1028_v49, %v1043_v41  ;;  %v2843_v61 = vrot.slane %v1036_v0, %v2826_v55 }
 0x335   :  { %v1066_v62 = vrot.slane %v1052_v4, %v2836_v57  ;;  %v2847_v1 = vrot.slane %v1051_v60, %v2836_v57  ;;  %v1067_v2 = vcombine.low %v2840_v21, %v2843_v61  ;;  %v1068_v23 = vcombine.high %v2840_v21, %v2843_v61 }
 0x337   :  { %1092 = vrot.lane.b32.xlu0 %v1066_v62, %s2381_s5  ;;  %v1083_v8 = vcombine.high %v2847_v1, %v2380_v14  ;;  %v1075_v9 = vrot.slane %v1067_v2, %v2836_v57  ;;  %v1084_v3 = vcombine.high %v1066_v62, %v2380_v14 }
 0x339   :  { %1088 = vrot.lane.b32.xlu1 %v1083_v8, %s2382_s27  ;;  %v1085_v20 = vcombine.high %v1075_v9, %v2380_v14 }
 0x33b   :  { %1100 = vrot.lane.b32.xlu0 %v1075_v9, %s2383_s28 }
 0x33d   :  { %1096 = vrot.lane.b32.xlu1 %v1084_v3, %s2384_s2 }
 0x341   :  { %1104 = vrot.lane.b32.xlu1 %v1085_v20, %s2385_s30 }
 0x34c   :  { %v2169_v46 = vpop.f32.mrb[4].mxu0 }
 0x34d   :  { %v1335_v12 = vmul.f32 %v2169_v46, %v2781_v33  ;;  %v1249_v13 = vpop.f32.mrb[5].mxu0 }
 0x34e   :  { %v1334_v5 = vmul.f32 %v2781_v33, %v1249_v13 }
 0x34f   :  { %v1357_v29 = vsel %vm65_vm0, %v1335_v12, 0.0 }
 0x350   :  { %v1358_v43 = vrot.slane %v1357_v29, 4  ;;  %v1350_v59 = vsel %vm65_vm0, %v1334_v5, 0.0  ;;  %v2172_v16 = vpop.f32.mrb[6].mxu0 }
 0x351   :  { %v1351_v17 = vrot.slane %v1350_v59, 4  ;;  %v1337_v45 = vmul.f32 %v2172_v16, %v2781_v33  ;;  %v1259_v18 = vpop.f32.mrb[7].mxu0 }
 0x352   :  { %v1359_v19 = vadd.f32 %v1358_v43, %v1357_v29  ;;  %v1336_v22 = vmul.f32 %v2781_v33, %v1259_v18 }
 0x353   :  { %v1352_v38 = vadd.f32 %v1351_v17, %v1350_v59  ;;  %v1371_v42 = vsel %vm65_vm0, %v1337_v45, 0.0 }
 0x354   :  { %v1360_v25 = vrot.slane %v1359_v19, 2  ;;  %v1372_v30 = vrot.slane %v1371_v42, 4  ;;  %v1364_v26 = vsel %vm65_vm0, %v1336_v22, 0.0  ;;  %v2175_v7 = vpop.f32.mrb[8].mxu0 }
 0x355   :  { %v1353_v31 = vrot.slane %v1352_v38, 2  ;;  %v1365_v34 = vrot.slane %v1364_v26, 4  ;;  %v1339_v36 = vmul.f32 %v2175_v7, %v2781_v33  ;;  %v1269_v27 = vpop.f32.mrb[9].mxu0 }
 0x356   :  { %v1361_v10 = vadd.f32 %v1360_v25, %v1359_v19  ;;  %v1373_v48 = vadd.f32 %v1372_v30, %v1371_v42  ;;  %v1338_v39 = vmul.f32 %v2781_v33, %v1269_v27 }
 0x357   :  { %v1354_v35 = vadd.f32 %v1353_v31, %v1352_v38  ;;  %v1366_v44 = vadd.f32 %v1365_v34, %v1364_v26  ;;  %v1385_v28 = vsel %vm65_vm0, %v1339_v36, 0.0 }
 0x358   :  { %v1362_v11 = vrot.slane %v1361_v10, 1  ;;  %v1374_v15 = vrot.slane %v1373_v48, 2  ;;  %v1386_v24 = vrot.slane %v1385_v28, 4  ;;  %v1378_v53 = vsel %vm65_vm0, %v1338_v39, 0.0  ;;  %v2178_v32 = vpop.f32.mrb[10].mxu0 }
 0x359   :  { %v1355_v51 = vrot.slane %v1354_v35, 1  ;;  %v1367_v54 = vrot.slane %v1366_v44, 2  ;;  %v1379_v56 = vrot.slane %v1378_v53, 4  ;;  %v1341_v58 = vmul.f32 %v2178_v32, %v2781_v33  ;;  %v1279_v40 = vpop.f32.mrb[11].mxu0 }
 0x35a   :  { %v1363_v6 = vadd.f32 %v1362_v11, %v1361_v10  ;;  %v1375_v63 = vadd.f32 %v1374_v15, %v1373_v48  ;;  %v1387_v37 = vadd.f32 %v1386_v24, %v1385_v28  ;;  %v1340_v49 = vmul.f32 %v2781_v33, %v1279_v40 }
 0x35b   :  { %v1356_v41 = vadd.f32 %v1355_v51, %v1354_v35  ;;  %v1368_v0 = vadd.f32 %v1367_v54, %v1366_v44  ;;  %v1380_v4 = vadd.f32 %v1379_v56, %v1378_v53  ;;  %v1399_v60 = vsel %vm65_vm0, %v1341_v58, 0.0 }
 0x35c   :  { %v1376_v62 = vrot.slane %v1375_v63, 1  ;;  %v1388_v2 = vrot.slane %v1387_v37, 2  ;;  %v1400_v8 = vrot.slane %v1399_v60, 4  ;;  %v1392_v9 = vsel %vm65_vm0, %v1340_v49, 0.0  ;;  %v2181_v3 = vpop.f32.mrb[12].mxu0 }
 0x35d   :  { %v1489_v20 = vsel %vm998_vm3, %v1363_v6, %v1356_v41  ;;  %v1369_v46 = vrot.slane %v1368_v0, 1  ;;  %v1381_v12 = vrot.slane %v1380_v4, 2  ;;  %v1393_v13 = vrot.slane %v1392_v9, 4  ;;  %v1289_v5 = vpop.f32.mrb[13].mxu0 }
 0x35e   :  { %v1389_v29 = vadd.f32 %v1388_v2, %v1387_v37  ;;  %v1401_v43 = vadd.f32 %v1400_v8, %v1399_v60  ;;  %v1343_v33 = vmul.f32 %v2181_v3, %v2791_v50  ;;  %v1342_v45 = vmul.f32 %v2791_v50, %v1289_v5 }
 0x35f   :  { %v1370_v59 = vadd.f32 %v1369_v46, %v1368_v0  ;;  %v1382_v16 = vadd.f32 %v1381_v12, %v1380_v4  ;;  %v1394_v17 = vadd.f32 %v1393_v13, %v1392_v9  ;;  %v1377_v18 = vadd.f32 %v1376_v62, %v1375_v63 }
 0x360   :  { %v1402_v19 = vrot.slane %v1401_v43, 2  ;;  %v1413_v22 = vsel %vm65_vm0, %v1343_v33, 0.0  ;;  %v2184_v38 = vpop.f32.mrb[14].mxu0  ;;  %v1390_v31 = vrot.slane %v1389_v29, 1  ;;  %v1406_v36 = vsel %vm65_vm0, %v1342_v45, 0.0 }
 0x361   :  { %v1490_v42 = vsel %vm1000_vm4, %v1370_v59, %v1489_v20  ;;  %v1383_v25 = vrot.slane %v1382_v16, 1  ;;  %v1395_v30 = vrot.slane %v1394_v17, 2  ;;  %v1414_v26 = vrot.slane %v1413_v22, 4  ;;  %v1299_v7 = vpop.f32.mrb[15].mxu0 }
 0x362   :  { %v1403_v34 = vadd.f32 %v1402_v19, %v1401_v43  ;;  %v1345_v27 = vmul.f32 %v2184_v38, %v2791_v50  ;;  %v1407_v35 = vrot.slane %v1406_v36, 4  ;;  %v1344_v28 = vmul.f32 %v2791_v50, %v1299_v7 }
 0x363   :  { %v1384_v10 = vadd.f32 %v1383_v25, %v1382_v16  ;;  %v1396_v48 = vadd.f32 %v1395_v30, %v1394_v17  ;;  %v1415_v39 = vadd.f32 %v1414_v26, %v1413_v22  ;;  %v1491_v11 = vsel %vm1002_vm5, %v1377_v18, %v1490_v42 }
 0x364   :  { %v1427_v44 = vsel %vm65_vm0, %v1345_v27, 0.0  ;;  %v1408_v53 = vadd.f32 %v1407_v35, %v1406_v36  ;;  %v1391_v51 = vadd.f32 %v1390_v31, %v1389_v29  ;;  %v1404_v54 = vrot.slane %v1403_v34, 1 }
 0x365   :  { %v1397_v15 = vrot.slane %v1396_v48, 1  ;;  %v1416_v24 = vrot.slane %v1415_v39, 2  ;;  %v1428_v32 = vrot.slane %v1427_v44, 4  ;;  %v1420_v56 = vsel %vm65_vm0, %v1344_v28, 0.0 }
 0x366   :  { %v1492_v58 = vsel %vm1004_vm6, %v1384_v10, %v1491_v11  ;;  %v1409_v63 = vrot.slane %v1408_v53, 2  ;;  %v1421_v41 = vrot.slane %v1420_v56, 4  ;;  %v1405_v3 = vadd.f32 %v1404_v54, %v1403_v34 }
 0x367   :  { %v1398_v40 = vadd.f32 %v1397_v15, %v1396_v48  ;;  %v1417_v6 = vadd.f32 %v1416_v24, %v1415_v39  ;;  %v1429_v37 = vadd.f32 %v1428_v32, %v1427_v44  ;;  %v2187_v49 = vpop.f32.mrb[16].mxu0  ;;  %v1493_v60 = vsel %vm1006_vm7, %v1391_v51, %v1492_v58 }
 0x368   :  { %v1347_v0 = vmul.f32 %v2187_v49, %v2791_v50  ;;  %v1309_v4 = vpop.f32.mrb[17].mxu0  ;;  %v1410_v2 = vadd.f32 %v1409_v63, %v1408_v53  ;;  %v1422_v20 = vadd.f32 %v1421_v41, %v1420_v56 }
 0x369   :  { %v1418_v62 = vrot.slane %v1417_v6, 1  ;;  %v1430_v8 = vrot.slane %v1429_v37, 2  ;;  %v1346_v9 = vmul.f32 %v2791_v50, %v1309_v4  ;;  %v1494_v12 = vsel %vm1008_vm8, %v1398_v40, %v1493_v60 }
 0x36a   :  { %v1441_v46 = vsel %vm65_vm0, %v1347_v0, 0.0  ;;  %v1411_v5 = vrot.slane %v1410_v2, 1  ;;  %v1423_v33 = vrot.slane %v1422_v20, 2  ;;  %v1495_v16 = vsel %vm1010_vm9, %v1405_v3, %v1494_v12 }
 0x36b   :  { %v1419_v13 = vadd.f32 %v1418_v62, %v1417_v6  ;;  %v1431_v29 = vadd.f32 %v1430_v8, %v1429_v37  ;;  %v1442_v43 = vrot.slane %v1441_v46, 4  ;;  %v1434_v59 = vsel %vm65_vm0, %v1346_v9, 0.0  ;;  %2199 = vmatprep.mubr.msk.f32.mxu1 %vm65_vm0, %v1495_v16  ;;  %v1643_v8 = vld [vmem:[%s3021_s9] sm:$0xff]  ;;  %v1644_v9 = vld [vmem:[%s3021_s9 + $0x8] sm:$0xff] }
 0x36c   :  { %v1412_v17 = vadd.f32 %v1411_v5, %v1410_v2  ;;  %v1435_v18 = vrot.slane %v1434_v59, 4  ;;  %v1424_v19 = vadd.f32 %v1423_v33, %v1422_v20  ;;  %v2256_v3 = vpack.c.bf16 %v1644_v9, %v1643_v8  ;;  %v1645_v20 = vld [vmem:[%s3021_s9 + $0x10] sm:$0xff]  ;;  %v1738_v5 = vld [vmem:[%s3022_s11 + $0x8] sm:$0xff]  ;;  %v1740_v33 = vld [vmem:[%s3022_s11 + $0x18] sm:$0xff] }
 0x36d   :  { %v1443_v45 = vadd.f32 %v1442_v43, %v1441_v46  ;;  %v1432_v42 = vrot.slane %v1431_v29, 1  ;;  %v1646_v46 = vld [vmem:[%s3021_s9 + $0x18] sm:$0xff]  ;;  %v1741_v16 = vld [vmem:[%s3022_s11 + $0x20] sm:$0xff] }
 0x36e   :  { %v2190_v22 = vpop.f32.mrb[18].mxu0  ;;  %v1496_v38 = vsel %vm998_vm3, %v1419_v13, %v1412_v17  ;;  %v1436_v30 = vadd.f32 %v1435_v18, %v1434_v59  ;;  %v1425_v7 = vrot.slane %v1424_v19, 1  ;;  %2257 = vmatprep.subr.bf16.mxu0 %v2256_v3  ;;  %v2260_v12 = vpack.c.bf16 %v1646_v46, %v1645_v20  ;;  %v1737_v13 = vld [vmem:[%s3022_s11] sm:$0xff]  ;;  %v1742_v17 = vld [vmem:[%s3022_s11 + $0x28] sm:$0xff] }
 0x36f   :  { %v1444_v25 = vrot.slane %v1443_v45, 2  ;;  %v1319_v26 = vpop.f32.mrb[19].mxu0  ;;  %v1349_v31 = vmul.f32 %v2190_v22, %v2791_v50  ;;  %v1433_v35 = vadd.f32 %v1432_v42, %v1431_v29  ;;  %2259 = vmatpush3.bf16.msra.mxu0 %v2256_v3  ;;  %v1739_v29 = vld [vmem:[%s3022_s11 + $0x10] sm:$0xff]  ;;  %v2264_v43 = vpack.c.bf16 %v1738_v5, %v1737_v13  ;;  %v2047_v18 = vld [vmem:[%s3023_s6] ss:$0 sm:$0xff] }
 0x370   :  { %v1348_v34 = vmul.f32 %v2791_v50, %v1319_v26  ;;  %v1437_v27 = vrot.slane %v1436_v30, 2  ;;  %v1426_v10 = vadd.f32 %v1425_v7, %v1424_v19  ;;  %2261 = vmatprep.subr.bf16.mxu0 %v2260_v12  ;;  %v2268_v59 = vpack.c.bf16 %v1740_v33, %v1739_v29  ;;  %v2373_v26 = vld [vmem:[%s3012_s0] sm:$0xff] }
 0x371   :  { %v1445_v36 = vadd.f32 %v1444_v25, %v1443_v45  ;;  %v1455_v48 = vsel %vm65_vm0, %v1349_v31, 0.0  ;;  %2265 = vmatprep.subr.bf16.mxu1 %v2264_v43  ;;  %v2272_v45 = vpack.c.bf16 %v1742_v17, %v1741_v16  ;;  %v2372_v25 = vld [vmem:[%s3012_s0 + $0x8] sm:$0xff]  ;;  %vm1128_vm3 = vcmask 517120  }
 0x372   :  { %v1448_v39 = vsel %vm65_vm0, %v1348_v34, 0.0  ;;  %v1438_v44 = vadd.f32 %v1437_v27, %v1436_v30  ;;  %v1456_v28 = vrot.slane %v1455_v48, 4  ;;  %v1497_v15 = vsel %vm1000_vm4, %v1426_v10, %v1496_v38 }
 0x373   :  { %v1449_v11 = vrot.slane %v1448_v39, 4  ;;  %v1446_v24 = vrot.slane %v1445_v36, 1  ;;  %v1498_v32 = vsel %vm1002_vm5, %v1433_v35, %v1497_v15  ;;  %2263 = vmatpush3.bf16.msra.mxu0 %v2260_v12 }
 0x374   :  { %v1439_v53 = vrot.slane %v1438_v44, 1  ;;  %v1457_v51 = vadd.f32 %v1456_v28, %v1455_v48 }
 0x375   :  { %v1450_v54 = vadd.f32 %v1449_v11, %v1448_v39  ;;  %v1447_v58 = vadd.f32 %v1446_v24, %v1445_v36 }
 0x376   :  { %v1440_v50 = vadd.f32 %v1439_v53, %v1438_v44  ;;  %v1458_v56 = vrot.slane %v1457_v51, 2 }
 0x377   :  { %v1451_v40 = vrot.slane %v1450_v54, 2 }
 0x378   :  { %v1499_v6 = vsel %vm1004_vm6, %v1440_v50, %v1498_v32  ;;  %v1459_v63 = vadd.f32 %v1458_v56, %v1457_v51 }
 0x379   :  { %v1452_v37 = vadd.f32 %v1451_v40, %v1450_v54  ;;  %v1500_v49 = vsel %vm1006_vm7, %v1447_v58, %v1499_v6 }
 0x37a   :  { %v1460_v41 = vrot.slane %v1459_v63, 1 }
 0x37b   :  { %v1453_v0 = vrot.slane %v1452_v37, 1 }
 0x37c   :  { %v1461_v60 = vadd.f32 %v1460_v41, %v1459_v63 }
 0x37d   :  { %v1454_v4 = vadd.f32 %v1453_v0, %v1452_v37 }
 0x37f   :  { %v1501_v62 = vsel %vm1008_vm8, %v1454_v4, %v1500_v49 }
 0x380   :  { %v1502_v2 = vsel %vm1010_vm9, %v1461_v60, %v1501_v62 }
 0x381   :  { %2200 = vmatmul.mubr.msk.f32.vlgmr.msra.gmra.mrb[14].mxu1 %vm65_vm0, %v1502_v2 }
 0x382   :  { %2267 = vmatpush3.bf16.msra.mxu1 %v2264_v43 }
 0x383   :  { %2269 = vmatprep.subr.bf16.mxu1 %v2268_v59 }
 0x386   :  { %2271 = vmatpush3.bf16.msra.mxu1 %v2268_v59 }
 0x387   :  { %2273 = vmatprep.subr.bf16.mxu1 %v2272_v45 }
 0x38a   :  { %2275 = vmatpush3.bf16.msra.mxu1 %v2272_v45 }
 0x454   :  { %v2201_v19 = vpop.f32.mrb[14].mxu1 }
 0x455   :  { %v1579_v22 = vadd.f32 %v2201_v19, %v2047_v18  ;;  %v1573_v38 = vpop.f32.mrb[15].mxu1  ;;  %v1744_v19 = vld [vmem:[%s3022_s11 + $0x38] sm:$0xff] }
 0x456   :  { %v1574_v42 = vadd.f32 %v2047_v18, %v1573_v38  ;;  %v1743_v18 = vld [vmem:[%s3022_s11 + $0x30] sm:$0xff] }
 0x457   :  { %v1583_v30 = vadd.f32 %v2372_v25, %v1579_v22  ;;  %v2276_v22 = vpack.c.bf16 %v1744_v19, %v1743_v18  ;;  %v1882_v19 = vpop.permute.xlu0 %1881 }
 0x458   :  { %v1582_v7 = vadd.f32 %v2373_v26, %v1574_v42 }
 0x459   :  { %v1591_v31 = vsel %vm65_vm0, %v1583_v30, 0.0  ;;  %2277 = vmatprep.subr.bf16.mxu1 %v2276_v22 }
 0x45a   :  { %v1592_v34 = vrot.slane %v1591_v31, 4  ;;  %v1584_v36 = vsel %vm65_vm0, %v1582_v7, 0.0  ;;  %2279 = vmatpush3.bf16.msra.mxu1 %v2276_v22 }
 0x45b   :  { %v1585_v27 = vrot.slane %v1584_v36, 4 }
 0x45c   :  { %v1593_v10 = vadd.f32 %v1592_v34, %v1591_v31 }
 0x45d   :  { %v1586_v48 = vadd.f32 %v1585_v27, %v1584_v36 }
 0x45e   :  { %v1594_v39 = vrot.slane %v1593_v10, 2 }
 0x45f   :  { %v1587_v35 = vrot.slane %v1586_v48, 2 }
 0x460   :  { %v1595_v44 = vadd.f32 %v1594_v39, %v1593_v10 }
 0x461   :  { %v1588_v28 = vadd.f32 %v1587_v35, %v1586_v48 }
 0x462   :  { %v1596_v11 = vrot.slane %v1595_v44, 1 }
 0x463   :  { %v1589_v15 = vrot.slane %v1588_v28, 1 }
 0x464   :  { %v1597_v24 = vadd.f32 %v1596_v11, %v1595_v44 }
 0x465   :  { %v1590_v53 = vadd.f32 %v1589_v15, %v1588_v28 }
 0x466   :  { %v1600_v32 = vmul.f32 0.125, %v1597_v24 }
 0x467   :  { %v1599_v51 = vmul.f32 0.125, %v1590_v53 }
 0x468   :  { %v1602_v54 = vsub.f32 %v1583_v30, %v1600_v32 }
 0x469   :  { %v1601_v50 = vsub.f32 %v1582_v7, %v1599_v51  ;;  %v2053_v7 = vld [vmem:[%s3025_s12] ss:$0 sm:$0xff]  ;;  %s2387_s12 = smov 48  }
 0x46a   :  { %v1604_v56 = vmul.f32 %v1602_v54, %v1602_v54 }
 0x46b   :  { %v1603_v58 = vmul.f32 %v1601_v50, %v1601_v50 }
 0x46c   :  { %v1612_v40 = vsel %vm65_vm0, %v1604_v56, 0.0 }
 0x46d   :  { %v1613_v6 = vrot.slane %v1612_v40, 4  ;;  %v1605_v63 = vsel %vm65_vm0, %v1603_v58, 0.0 }
 0x46e   :  { %v1606_v37 = vrot.slane %v1605_v63, 4 }
 0x46f   :  { %v1614_v49 = vadd.f32 %v1613_v6, %v1612_v40 }
 0x470   :  { %v1607_v41 = vadd.f32 %v1606_v37, %v1605_v63 }
 0x471   :  { %v1615_v0 = vrot.slane %v1614_v49, 2 }
 0x472   :  { %v1608_v4 = vrot.slane %v1607_v41, 2 }
 0x473   :  { %v1616_v60 = vadd.f32 %v1615_v0, %v1614_v49 }
 0x474   :  { %v1609_v62 = vadd.f32 %v1608_v4, %v1607_v41 }
 0x475   :  { %v1617_v2 = vrot.slane %v1616_v60, 1 }
 0x476   :  { %v1610_v8 = vrot.slane %v1609_v62, 1 }
 0x477   :  { %v1618_v9 = vadd.f32 %v1617_v2, %v1616_v60 }
 0x478   :  { %v1611_v3 = vadd.f32 %v1610_v8, %v1609_v62 }
 0x479   :  { %v1620_v20 = vmul.f32 0.125, %v1618_v9 }
 0x47a   :  { %v1619_v46 = vmul.f32 0.125, %v1611_v3 }
 0x47b   :  { %v1622_v12 = vadd.f32 1e-05, %v1620_v20 }
 0x47c   :  { %v1621_v13 = vadd.f32 1e-05, %v1619_v46 }
 0x47d   :  { %2364 = vrsqrt.f32 %v1622_v12 }
 0x47e   :  { %2366 = vrsqrt.f32 %v1621_v13 }
 0x487   :  { %v2365_v5 = vpop.eup %2364 }
 0x488   :  { %v2367_v29 = vpop.eup %2366  ;;  %v1626_v43 = vmul.f32 %v2365_v5, %v1602_v54 }
 0x489   :  { %v1625_v33 = vmul.f32 %v2367_v29, %v1601_v50 }
 0x48a   :  { %v1634_v59 = vmul.f32 %v2789_v47, %v1626_v43 }
 0x48b   :  { %v1633_v16 = vmul.f32 %v2789_v47, %v1625_v33  ;;  %v2050_v47 = vld [vmem:[%s3024_s10] ss:$0 sm:$0xff]  ;;  %s2386_s10 = smov 56  }
 0x48c   :  { %v1642_v45 = vadd.f32 %v2793_v52, %v1634_v59 }
 0x48d   :  { %v1641_v17 = vadd.f32 %v2793_v52, %v1633_v16 }
 0x48f   :  { %2210 = vmatprep.mubr.msk.f32.mxu0 %vm65_vm0, %v1641_v17 }
 0x490   :  { %2211 = vmatmul.mubr.msk.f32.vlgmr.msra.gmra.mrb[20].mxu0 %vm65_vm0, %v1642_v45 }
 0x563   :  { %v2212_v52 = vpop.f32.mrb[20].mxu0 }
 0x564   :  { %v1732_v38 = vadd.f32 %v2212_v52, %v2050_v47  ;;  %v1726_v42 = vpop.f32.mrb[21].mxu0  ;;  %v1890_v52 = vpop.permute.xlu1 %1889 }
 0x565   :  { %v1727_v25 = vadd.f32 %v2050_v47, %v1726_v42 }
 0x566   :  { %v1736_v26 = vmax.f32 %v1732_v38, 0.0 }
 0x567   :  { %v1735_v30 = vmax.f32 %v1727_v25, 0.0 }
 0x569   :  { %2229 = vmatprep.mubr.msk.f32.mxu1 %vm1752_vm10, %v1735_v30 }
 0x56a   :  { %2230 = vmatmul.mubr.msk.f32.vlgmr.msra.gmra.mrb[16].mxu1 %vm1752_vm10, %v1736_v26 }
 0x63d   :  { %v2231_v31 = vpop.f32.mrb[16].mxu1 }
 0x63e   :  { %v1831_v34 = vadd.f32 %v2231_v31, %v2053_v7  ;;  %v1825_v36 = vpop.f32.mrb[17].mxu1 }
 0x63f   :  { %v1826_v27 = vadd.f32 %v2053_v7, %v1825_v36 }
 0x640   :  { %v1835_v10 = vadd.f32 %v1831_v34, %v1642_v45 }
 0x641   :  { %v1834_v48 = vadd.f32 %v1826_v27, %v1641_v17 }
 0x642   :  { %v1843_v39 = vsel %vm65_vm0, %v1835_v10, 0.0 }
 0x643   :  { %v1844_v35 = vrot.slane %v1843_v39, 4  ;;  %v1836_v44 = vsel %vm65_vm0, %v1834_v48, 0.0 }
 0x644   :  { %v1837_v28 = vrot.slane %v1836_v44, 4 }
 0x645   :  { %v1845_v11 = vadd.f32 %v1844_v35, %v1843_v39 }
 0x646   :  { %v1838_v15 = vadd.f32 %v1837_v28, %v1836_v44 }
 0x647   :  { %v1846_v24 = vrot.slane %v1845_v11, 2 }
 0x648   :  { %v1839_v53 = vrot.slane %v1838_v15, 2 }
 0x649   :  { %v1847_v32 = vadd.f32 %v1846_v24, %v1845_v11 }
 0x64a   :  { %v1840_v51 = vadd.f32 %v1839_v53, %v1838_v15  ;;  %v1082_v53 = vrot.slane %v1068_v23, %v2836_v57 }
 0x64b   :  { %v1848_v54 = vrot.slane %v1847_v32, 1 }
 0x64c   :  { %v1841_v50 = vrot.slane %v1840_v51, 1 }
 0x64d   :  { %v1849_v56 = vadd.f32 %v1848_v54, %v1847_v32  ;;  %v1089_v54 = vpop.permute.xlu1 %1088 }
 0x64e   :  { %v1842_v58 = vadd.f32 %v1841_v50, %v1840_v51  ;;  %v1086_v51 = vcombine.high %v1082_v53, %v2380_v14  ;;  %v1116_v23 = vsel %vm1115_vm11, %v2847_v1, %v1089_v54 }
 0x64f   :  { %v1851_v40 = vmul.f32 0.125, %v1849_v56  ;;  %v1093_v56 = vpop.permute.xlu0 %1092 }
 0x650   :  { %v1850_v6 = vmul.f32 0.125, %v1842_v58 }
 0x651   :  { %v1853_v63 = vsub.f32 %v1835_v10, %v1851_v40  ;;  %v1097_v50 = vpop.permute.xlu1 %1096 }
 0x652   :  { %v1852_v37 = vsub.f32 %v1834_v48, %v1850_v6 }
 0x653   :  { %v1855_v49 = vmul.f32 %v1853_v63, %v1853_v63  ;;  %v1101_v40 = vpop.permute.xlu0 %1100 }
 0x654   :  { %v1854_v41 = vmul.f32 %v1852_v37, %v1852_v37 }
 0x655   :  { %v1863_v0 = vsel %vm65_vm0, %v1855_v49, 0.0  ;;  %v1105_v58 = vpop.permute.xlu1 %1104 }
 0x656   :  { %v1864_v4 = vrot.slane %v1863_v0, 4  ;;  %v1856_v60 = vsel %vm65_vm0, %v1854_v41, 0.0  ;;  %v1118_v41 = vsel %vm1117_vm12, %v1116_v23, %v1093_v56 }
 0x657   :  { %v1857_v62 = vrot.slane %v1856_v60, 4 }
 0x658   :  { %v1865_v2 = vadd.f32 %v1864_v4, %v1863_v0  ;;  %v1120_v0 = vsel %vm1119_vm13, %v1118_v41, %v1097_v50 }
 0x659   :  { %v1858_v8 = vadd.f32 %v1857_v62, %v1856_v60  ;;  %v1121_v1 = vsel %vm65_vm0, %v1120_v0, %v1101_v40 }
 0x65a   :  { %v1866_v9 = vrot.slane %v1865_v2, 2 }
 0x65b   :  { %v1859_v3 = vrot.slane %v1858_v8, 2 }
 0x65c   :  { %v1867_v20 = vadd.f32 %v1866_v9, %v1865_v2  ;;  %v1123_v9 = vsel %vm1122_vm15, %v1121_v1, %v1105_v58 }
 0x65d   :  { %v1860_v46 = vadd.f32 %v1859_v3, %v1858_v8 }
 0x65e   :  { %v1868_v12 = vrot.slane %v1867_v20, 1 }
 0x65f   :  { %v1861_v13 = vrot.slane %v1860_v46, 1 }
 0x660   :  { %v1869_v5 = vadd.f32 %v1868_v12, %v1867_v20 }
 0x661   :  { %v1862_v29 = vadd.f32 %v1861_v13, %v1860_v46 }
 0x662   :  { %v1871_v43 = vmul.f32 0.125, %v1869_v5 }
 0x663   :  { %v1870_v33 = vmul.f32 0.125, %v1862_v29 }
 0x664   :  { %v1873_v59 = vadd.f32 1e-05, %v1871_v43 }
 0x665   :  { %v1872_v16 = vadd.f32 1e-05, %v1870_v33 }
 0x666   :  { %2368 = vrsqrt.f32 %v1873_v59 }
 0x667   :  { %2370 = vrsqrt.f32 %v1872_v16 }
 0x670   :  { %v2369_v17 = vpop.eup %2368 }
 0x671   :  { %v2371_v45 = vpop.eup %2370  ;;  %v1877_v18 = vmul.f32 %v2369_v17, %v1853_v63 }
 0x672   :  { %v1876_v22 = vmul.f32 %v2371_v45, %v1852_v37 }
 0x673   :  { %v1885_v47 = vmul.f32 %v1882_v19, %v1877_v18 }
 0x674   :  { %v1884_v38 = vmul.f32 %v1882_v19, %v1876_v22 }
 0x675   :  { %v1893_v42 = vadd.f32 %v1890_v52, %v1885_v47 }
 0x676   :  { %v1892_v25 = vadd.f32 %v1890_v52, %v1884_v38 }
 0x677   :  { %v1916_v30 = vrot.slane %v1893_v42, %v2826_v55  ;;  %v1909_v26 = vcombine.high %v1893_v42, %v2380_v14 }
 0x678   :  { %v1901_v7 = vrot.slane %v1892_v25, %v2826_v55  ;;  %v1894_v31 = vcombine.high %v1892_v25, %v2380_v14 }
 0x679   :  { %v1923_v34 = vrot.slane %v1909_v26, %v2826_v55 }
 0x67a   :  { %v1925_v36 = vcombine.high %v1901_v7, %v1916_v30  ;;  %v1924_v27 = vcombine.low %v1901_v7, %v1916_v30  ;;  %v1908_v10 = vrot.slane %v1894_v31, %v2826_v55 }
 0x67c   :  { %v1939_v48 = vrot.slane %v1925_v36, %v2836_v57  ;;  %v1932_v39 = vrot.slane %v1924_v27, %v2836_v57  ;;  %v1940_v35 = vcombine.low %v1908_v10, %v1923_v34  ;;  %v1941_v44 = vcombine.high %v1908_v10, %v1923_v34 }
 0x67e   :  { %1965 = vrot.lane.b32.xlu1 %v1939_v48, %s2374_s29  ;;  %v1956_v28 = vcombine.high %v1932_v39, %v2380_v14  ;;  %v1948_v11 = vrot.slane %v1940_v35, %v2836_v57  ;;  %v1955_v24 = vrot.slane %v1941_v44, %v2836_v57  ;;  %v1957_v32 = vcombine.high %v1939_v48, %v2380_v14 }
 0x680   :  { %1961 = vrot.lane.b32.xlu0 %v1956_v28, %s2383_s28  ;;  %v1958_v15 = vcombine.high %v1948_v11, %v2380_v14  ;;  %v1959_v55 = vcombine.high %v1955_v24, %v2380_v14 }
 0x682   :  { %1973 = vrot.lane.b32.xlu1 %v1958_v15, %s2383_s28 }
 0x684   :  { %1977 = vrot.lane.b32.xlu0 %v1955_v24, %s2374_s29 }
 0x686   :  { %1981 = vrot.lane.b32.xlu1 %v1959_v55, %s2375_s3 }
 0x688   :  { %1969 = vrot.lane.b32.xlu0 %v1957_v32, %s2375_s3 }
 0x68a   :  { %1112 = vrot.lane.b32.xlu1 %v1086_v51, %s2386_s10 }
 0x68c   :  { %1108 = vrot.lane.b32.xlu0 %v1082_v53, %s2387_s12 }
 0x6f0   :  { %v1966_v6 = vpop.permute.xlu1 %1965 }
 0x6f2   :  { %v1962_v21 = vpop.permute.xlu0 %1961 }
 0x6f3   :  { %v1984_v14 = vsel %vm65_vm0, %v1932_v39, %v1962_v21 }
 0x6f4   :  { %v1974_v57 = vpop.permute.xlu1 %1973  ;;  %v1985_v60 = vsel %vm1752_vm10, %v1984_v14, %v1966_v6 }
 0x6f5   :  { %v1988_v61 = vsel %vm65_vm0, %v1948_v11, %v1974_v57 }
 0x6f6   :  { %v1978_v63 = vpop.permute.xlu0 %1977 }
 0x6f7   :  { %v1989_v37 = vsel %vm1752_vm10, %v1988_v61, %v1978_v63 }
 0x6f8   :  { %v1982_v49 = vpop.permute.xlu1 %1981 }
 0x6f9   :  { %v1990_v62 = vsel %vm1986_vm14, %v1989_v37, %v1982_v49 }
 0x6fa   :  { %v1970_v4 = vpop.permute.xlu0 %1969 }
 0x6fb   :  { %v1987_v2 = vsel %vm1986_vm14, %v1985_v60, %v1970_v4 }
 0x6fc   :  { %v1993_v8 = vcombine.low %v1987_v2, %v1990_v62  ;;  %v1113_v20 = vpop.permute.xlu1 %1112 }
 0x6fe   :  { %2056 = vst.sshfl [vmem:[%s3026_s15] sm:$0x33 pattern:$0x76325410] %v1993_v8  ;;  %v1109_v3 = vpop.permute.xlu0 %1108 }
 0x6ff   :  { %v1125_v46 = vsel %vm1124_vm1, %v1123_v9, %v1109_v3 }
 0x700   :  { %v1127_v12 = vsel %vm1126_vm2, %v1125_v46, %v1113_v20 }
 0x701   :  { %1129 = vst.msk [vmem:[%s3027_s16] sm:$0x3] %vm1128_vm3, %v1127_v12 }

// kernel: sparse_encoder_layer.1
= control target key start
LH: loop header
LB: loop body
LE: loop exit
PB: predicated region body
PF: predicated region fallthrough
CT: control target
= control target key end

     0   :  { %s2762_s0 = inlined_call_operand.vmem [shape: f32[2,8,32], index: 0, kind: input, shape index: {}]   ;;  %s2763_s1 = inlined_call_operand.vmem [shape: f32[32,96], index: 1, kind: input, shape index: {}]   ;;  %s2764_s2 = inlined_call_operand.vmem [shape: f32[1,96], index: 2, kind: input, shape index: {}]   ;;  %s2765_s3 = inlined_call_operand.vmem [shape: f32[32,4], index: 3, kind: input, shape index: {}]   ;;  %s2766_s4 = inlined_call_operand.vmem [shape: f32[4,32], index: 4, kind: input, shape index: {}]   ;;  %s2767_s5 = inlined_call_operand.vmem [shape: f32[32,32], index: 5, kind: input, shape index: {}]   ;;  %s2768_s6 = inlined_call_operand.vmem [shape: f32[1,32], index: 6, kind: input, shape index: {}]   ;;  %s2769_s7 = inlined_call_operand.vmem [shape: f32[8,1], index: 7, kind: input, shape index: {}]   ;;  %s2770_s8 = inlined_call_operand.vmem [shape: f32[8,1], index: 8, kind: input, shape index: {}]   ;;  %s2771_s9 = inlined_call_operand.vmem [shape: f32[32,64], index: 9, kind: input, shape index: {}]   ;;  %s2772_s10 = inlined_call_operand.vmem [shape: f32[1,64], index: 10, kind: input, shape index: {}]   ;;  %s2773_s11 = inlined_call_operand.vmem [shape: f32[64,32], index: 11, kind: input, shape index: {}]   ;;  %s2774_s12 = inlined_call_operand.vmem [shape: f32[1,32], index: 12, kind: input, shape index: {}]   ;;  %s2775_s13 = inlined_call_operand.vmem [shape: f32[8,1], index: 13, kind: input, shape index: {}]   ;;  %s2776_s14 = inlined_call_operand.vmem [shape: f32[8,1], index: 14, kind: input, shape index: {}]   ;;  %s2777_s15 = inlined_call_operand.vmem [shape: f32[2,8,32], index: 15, kind: output, shape index: {0}]   ;;  %s2778_s16 = inlined_call_operand.hbm [shape: f32[2,8,8], index: 16, kind: output, shape index: {1}]  }
   0x1   :  { %2780 = sst [smem:[#allocation5_spill]] %s2762_s0 }
   0x2   :  { %v55_v0 = vld [vmem:[%s2763_s1] sm:$0xff]  ;;  %v56_v1 = vld [vmem:[%s2763_s1 + $0x8] sm:$0xff]  ;;  %v57_v2 = vld [vmem:[%s2763_s1 + $0x10] sm:$0xff]  ;;  %vm66_vm0 = vcmask 261120   ;;  %s2781_s0 = sld [smem:[#allocation5_spill]] }
   0x3   :  { %v2031_v3 = vpack.c.bf16 %v56_v1, %v55_v0  ;;  %v58_v4 = vld [vmem:[%s2763_s1 + $0x18] sm:$0xff] }
   0x4   :  { %v2035_v6 = vpack.c.bf16 %v58_v4, %v57_v2 }
   0x8   :  { %v53_v5 = vld [vmem:[%s2781_s0] sm:$0xff] }
   0x9   :  { %1929 = vmatprep.mubr.msk.f32.mxu0 %vm66_vm0, %v53_v5 }
   0xa   :  { %22 = vsyncpa [#allocation3], 0  ;;  %2032 = vmatprep.subr.bf16.mxu0 %v2031_v3  ;;  %v54_v7 = vld [vmem:[%s2781_s0 + $0x8] sm:$0xff]  ;;  %v154_v8 = vlaneseq  ;;  %v350_v11 = vld [vmem:[%s2765_s3] sm:$0xff]  ;;  %s2190_s28 = smov 64   ;;  %s2191_s29 = smov 96  }
   0xb   :  { %2034 = vmatpush3.bf16.msra.mxu0 %v2031_v3  ;;  %v351_v12 = vld [vmem:[%s2765_s3 + $0x8] sm:$0xff]  ;;  %v352_v13 = vld [vmem:[%s2765_s3 + $0x10] sm:$0xff]  ;;  %v353_v16 = vld [vmem:[%s2765_s3 + $0x18] sm:$0xff]  ;;  %v2192_v23 = vmov 1966171168   ;;  %vm1074_vm1 = vcmask 1043456  }
   0xc   :  { %2036 = vmatprep.subr.bf16.mxu0 %v2035_v6  ;;  %v155_v9 = vshrl.u32 %v154_v8, 7  ;;  %v934_v10 = vand.u32 127, %v154_v8  ;;  %v2039_v15 = vpack.c.bf16 %v351_v12, %v350_v11  ;;  %v2043_v17 = vpack.c.bf16 %v353_v16, %v352_v13  ;;  %v1811_v18 = vld [vmem:[%s2764_s2] ss:$0 sm:$0xff]  ;;  %s2194_s3 = smov [#allocation2]  }
   0xd   :  { %v152_v24 = vunpack.c.l.s4 %v2192_v23  ;;  %vm547_vm2 = vcmask 31744   ;;  %vm999_vm3 = vcmask 1041409   ;;  %vm1001_vm4 = vcmask 1042434   ;;  %s1798_s30 = sshll.u32 %s2194_s3, 4  ;;  %s1799_s30 = int_to_ptr.vmem [resolvable:$true] %s1798_s30 }
   0xe   :  { %v2311_v14 = vsub.s32 %v934_v10, %v155_v9  ;;  %2079 = vmatprep.subr.bf16.mxu1 %v2039_v15  ;;  %v2319_v33 = vsub.s32 0, %v155_v9  ;;  %vm1003_vm5 = vcmask 1043459   ;;  %vm1005_vm6 = vcmask 1044484   ;;  %p2171_p1 = scmp.lt.s32.totalorder %s1799_s30, %s1799_s30 }
   0xf   :  { %2038 = vmatpush3.bf16.msra.mxu0 %v2035_v6  ;;  %2081 = vmatpush3.bf16.msra.mxu1 %v2039_v15  ;;  %v153_v25 = vunpack.c.0.s8 %v152_v24  ;;  %vm1007_vm7 = vcmask 1045509   ;;  %vm1009_vm8 = vcmask 1046534   ;;  %vm1011_vm9 = vcmask 1047559  }
  0x10   :  { %2040 = vmatprep.subr.bf16.mxu0 %v2039_v15  ;;  %2080 = vmatprep.subr.bf16.mxu1 %v2043_v17  ;;  %vm1022_vm10 = vcmask 64512   ;;  %vm1647_vm11 = vcmask 523264  }
  0x11   :  { %v156_v26 = vsub.s32 %v153_v25, %v155_v9  ;;  %v2193_v25 = vmov 0  }
  0x12   :  { %1930 = vmatmul.mubr.msk.f32.vlgmr.msra.gmra.mrb[0].mxu0 %vm66_vm0, %v54_v7  ;;  %2091 = vset.pattern.permute.xlu1 %v2193_v25 }
  0x13   :  { %2042 = vmatpush3.bf16.msra.mxu0 %v2039_v15  ;;  %2082 = vmatpush3.bf16.msra.mxu1 %v2043_v17 }
  0x14   :  { %2044 = vmatprep.subr.bf16.mxu0 %v2043_v17  ;;  %2090 = vset.pattern.permute.xlu0 %v2193_v25 }
  0x17   :  { %2046 = vmatpush3.bf16.msra.mxu0 %v2043_v17 }
  0xe5   :  { %v1931_v19 = vpop.f32.mrb[0].mxu0 }
  0xe6   :  { %v139_v20 = vpop.f32.mrb[1].mxu0  ;;  %v145_v22 = vadd.f32 %v1931_v19, %v1811_v18 }
  0xe7   :  { %v140_v21 = vadd.f32 %v1811_v18, %v139_v20 }
  0xe8   :  { %v206_v42 = vrot.slane %v145_v22, %v156_v26  ;;  %v199_v51 = vcombine.high %v145_v22, %v145_v22 }
  0xe9   :  { %1223 = vrot.lane.b32.xlu1 %v140_v21, %s2190_s28  ;;  %328 = vrot.lane.b32.xlu0 %v140_v21, %s2191_s29  ;;  %v157_v27 = vrot.slane %v140_v21, %v156_v26  ;;  %v150_v29 = vcombine.high %v140_v21, %v140_v21 }
  0xea   :  { %v214_v53 = vcombine.high %v206_v42, %v206_v42  ;;  %v222_v56 = vrot.slane %v206_v42, %v156_v26  ;;  %v213_v60 = vrot.slane %v199_v51, %v156_v26 }
  0xeb   :  { %v165_v28 = vcombine.high %v157_v27, %v157_v27  ;;  %v173_v30 = vrot.slane %v157_v27, %v156_v26  ;;  %v164_v32 = vrot.slane %v150_v29, %v156_v26  ;;  %v1522_v27 = vld [vmem:[%s2769_s7] sm:$0xff] }
  0xec   :  { %v236_v63 = vrot.slane %v214_v53, %v156_v26  ;;  %v283_v0 = vrot.slane %v222_v56, %v2319_v33  ;;  %v244_v1 = vcombine.high %v222_v56, %v222_v56  ;;  %v215_v4 = vcombine.high %v213_v60, %v213_v60 }
  0xed   :  { %1225 = vrot.lane.b32.xlu1 %v145_v22, %s2190_s28  ;;  %330 = vrot.lane.b32.xlu0 %v145_v22, %s2191_s29  ;;  %v187_v31 = vrot.slane %v165_v28, %v156_v26  ;;  %v195_v34 = vcombine.high %v173_v30, %v173_v30  ;;  %v166_v36 = vcombine.high %v164_v32, %v164_v32  ;;  %v1025_v28 = vld [vmem:[%s2766_s4] sm:$0xf] }
  0xee   :  { %v180_v37 = vrot.slane %v164_v32, %v156_v26  ;;  %v251_v38 = vrot.slane %v173_v30, %v2319_v33  ;;  %v287_v5 = vrot.slane %v236_v63, %v2319_v33  ;;  %v246_v6 = vcombine.high %v236_v63, %v236_v63  ;;  %1964 = vmatprep.subr.msk.mxu0 %vm1074_vm1, %v1025_v28 }
  0xef   :  { %v197_v35 = vcombine.high %v187_v31, %v187_v31  ;;  %v259_v39 = vrot.slane %v195_v34, %v2319_v33  ;;  %v255_v40 = vrot.slane %v187_v31, %v2319_v33  ;;  %v194_v45 = vrot.slane %v166_v36, %v156_v26 }
  0xf0   :  { %v267_v44 = vrot.slane %v180_v37, %v2319_v33  ;;  %v196_v46 = vcombine.high %v180_v37, %v180_v37  ;;  %v291_v7 = vrot.slane %v244_v1, %v2319_v33  ;;  %v229_v8 = vrot.slane %v213_v60, %v156_v26 }
  0xf1   :  { %v263_v41 = vrot.slane %v197_v35, %v2319_v33  ;;  %v271_v54 = vrot.slane %v194_v45, %v2319_v33  ;;  %v198_v55 = vcombine.high %v194_v45, %v194_v45  ;;  %v295_v11 = vrot.slane %v246_v6, %v2319_v33  ;;  %1525 = vperm.xlu0 %2090, %v1522_v27  }
  0xf2   :  { %v275_v57 = vrot.slane %v196_v46, %v2319_v33  ;;  %v243_v12 = vrot.slane %v215_v4, %v156_v26  ;;  %v299_v13 = vrot.slane %v229_v8, %v2319_v33  ;;  %v245_v15 = vcombine.high %v229_v8, %v229_v8  ;;  %v1530_v26 = vld [vmem:[%s2770_s8] sm:$0xff] }
  0xf3   :  { %v279_v62 = vrot.slane %v198_v55, %v2319_v33  ;;  %1533 = vperm.xlu1 %2091, %v1530_v26  }
  0xf4   :  { %v303_v18 = vrot.slane %v243_v12, %v2319_v33  ;;  %v247_v19 = vcombine.high %v243_v12, %v243_v12  ;;  %v307_v20 = vrot.slane %v245_v15, %v2319_v33 }
  0xf6   :  { %v311_v23 = vrot.slane %v247_v19, %v2319_v33 }
 0x15b   :  { %v329_v43 = vpop.permute.xlu0 %328 }
 0x15c   :  { %v334_v47 = vmul.f32 %v329_v43, %v251_v38  ;;  %v336_v48 = vmul.f32 %v329_v43, %v259_v39  ;;  %v335_v49 = vmul.f32 %v329_v43, %v255_v40  ;;  %v337_v50 = vmul.f32 %v329_v43, %v263_v41 }
 0x15d   :  { %v338_v52 = vmul.f32 %v329_v43, %v267_v44  ;;  %v339_v58 = vmul.f32 %v329_v43, %v271_v54  ;;  %v340_v59 = vmul.f32 %v329_v43, %v275_v57  ;;  %v341_v2 = vmul.f32 %v329_v43, %v279_v62 }
 0x15e   :  { %1940 = vmatprep.mubr.msk.f32.mxu0 %vm66_vm0, %v334_v47  ;;  %1943 = vmatprep.mubr.msk.f32.mxu1 %vm66_vm0, %v336_v48 }
 0x15f   :  { %1941 = vmatmul.mubr.msk.f32.vlgmr.msra.gmra.mrb[2].mxu0 %vm66_vm0, %v335_v49  ;;  %1944 = vmatmul.mubr.msk.f32.vlgmr.msra.gmra.mrb[0].mxu1 %vm66_vm0, %v337_v50  ;;  %v331_v61 = vpop.permute.xlu0 %330 }
 0x160   :  { %1946 = vmatprep.mubr.msk.f32.mxu1 %vm66_vm0, %v338_v52  ;;  %v342_v3 = vmul.f32 %v331_v61, %v283_v0  ;;  %v343_v9 = vmul.f32 %v331_v61, %v287_v5  ;;  %v344_v10 = vmul.f32 %v331_v61, %v291_v7  ;;  %v345_v16 = vmul.f32 %v331_v61, %v295_v11 }
 0x161   :  { %v346_v17 = vmul.f32 %v331_v61, %v299_v13  ;;  %v347_v21 = vmul.f32 %v331_v61, %v303_v18  ;;  %v348_v22 = vmul.f32 %v331_v61, %v307_v20  ;;  %v349_v24 = vmul.f32 %v331_v61, %v311_v23  ;;  %1965 = vmatpush3.msk.msra.mxu0 %vm1074_vm1, %v1025_v28 }
 0x163   :  { %1947 = vmatmul.mubr.msk.f32.gmra.mrb[2].mxu1 %vm66_vm0, %v339_v58 }
 0x164   :  { %1949 = vmatprep.mubr.msk.f32.mxu1 %vm66_vm0, %v340_v59 }
 0x167   :  { %1950 = vmatmul.mubr.msk.f32.gmra.mrb[4].mxu1 %vm66_vm0, %v341_v2 }
 0x168   :  { %1952 = vmatprep.mubr.msk.f32.mxu1 %vm66_vm0, %v342_v3 }
 0x16b   :  { %1953 = vmatmul.mubr.msk.f32.gmra.mrb[6].mxu1 %vm66_vm0, %v343_v9 }
 0x16c   :  { %1955 = vmatprep.mubr.msk.f32.mxu1 %vm66_vm0, %v344_v10 }
 0x16f   :  { %1956 = vmatmul.mubr.msk.f32.gmra.mrb[8].mxu1 %vm66_vm0, %v345_v16 }
 0x170   :  { %1958 = vmatprep.mubr.msk.f32.mxu1 %vm66_vm0, %v346_v17 }
 0x173   :  { %1959 = vmatmul.mubr.msk.f32.gmra.mrb[10].mxu1 %vm66_vm0, %v347_v21 }
 0x174   :  { %1961 = vmatprep.mubr.msk.f32.mxu1 %vm66_vm0, %v348_v22 }
 0x177   :  { %1962 = vmatmul.mubr.msk.f32.gmra.mrb[12].mxu1 %vm66_vm0, %v349_v24 }
 0x232   :  { %v1942_v29 = vpop.f32.mrb[2].mxu0  ;;  %v1945_v30 = vpop.f32.mrb[0].mxu1 }
 0x233   :  { %v555_v31 = vsel %vm547_vm2, %v1942_v29, -inf  ;;  %v569_v32 = vsel %vm547_vm2, %v1945_v30, -inf  ;;  %v468_v33 = vpop.f32.mrb[3].mxu0  ;;  %v478_v34 = vpop.f32.mrb[1].mxu1 }
 0x234   :  { %v556_v35 = vrot.slane %v555_v31, 4  ;;  %v570_v36 = vrot.slane %v569_v32, 4  ;;  %v548_v37 = vsel %vm547_vm2, %v468_v33, -inf  ;;  %v562_v38 = vsel %vm547_vm2, %v478_v34, -inf }
 0x235   :  { %v549_v39 = vrot.slane %v548_v37, 4  ;;  %v563_v40 = vrot.slane %v562_v38, 4 }
 0x236   :  { %v557_v41 = vmax.f32 %v555_v31, %v556_v35  ;;  %v571_v42 = vmax.f32 %v569_v32, %v570_v36  ;;  %v2366_v43 = vpop.f32.mrb[2].mxu1 }
 0x237   :  { %v550_v44 = vmax.f32 %v548_v37, %v549_v39  ;;  %v564_v45 = vmax.f32 %v562_v38, %v563_v40  ;;  %v583_v46 = vsel %vm547_vm2, %v2366_v43, -inf  ;;  %v2370_v47 = vpop.f32.mrb[3].mxu1 }
 0x238   :  { %v558_v48 = vrot.slane %v557_v41, 2  ;;  %v572_v49 = vrot.slane %v571_v42, 2  ;;  %v584_v50 = vrot.slane %v583_v46, 4  ;;  %v576_v51 = vsel %vm547_vm2, %v2370_v47, -inf }
 0x239   :  { %v551_v52 = vrot.slane %v550_v44, 2  ;;  %v565_v53 = vrot.slane %v564_v45, 2  ;;  %v577_v54 = vrot.slane %v576_v51, 4 }
 0x23a   :  { %v559_v55 = vmax.f32 %v557_v41, %v558_v48  ;;  %v573_v56 = vmax.f32 %v571_v42, %v572_v49  ;;  %v585_v57 = vmax.f32 %v583_v46, %v584_v50  ;;  %v2374_v58 = vpop.f32.mrb[4].mxu1 }
 0x23b   :  { %v552_v59 = vmax.f32 %v550_v44, %v551_v52  ;;  %v566_v60 = vmax.f32 %v564_v45, %v565_v53  ;;  %v578_v61 = vmax.f32 %v576_v51, %v577_v54  ;;  %v597_v62 = vsel %vm547_vm2, %v2374_v58, -inf  ;;  %v2378_v63 = vpop.f32.mrb[5].mxu1 }
 0x23c   :  { %v560_v0 = vrot.slane %v559_v55, 1  ;;  %v574_v1 = vrot.slane %v573_v56, 1  ;;  %v586_v2 = vrot.slane %v585_v57, 2  ;;  %v598_v3 = vrot.slane %v597_v62, 4 }
 0x23d   :  { %v553_v4 = vrot.slane %v552_v59, 1  ;;  %v567_v5 = vrot.slane %v566_v60, 1  ;;  %v579_v6 = vrot.slane %v578_v61, 2  ;;  %v590_v7 = vsel %vm547_vm2, %v2378_v63, -inf }
 0x23e   :  { %v561_v8 = vmax.f32 %v559_v55, %v560_v0  ;;  %v575_v9 = vmax.f32 %v573_v56, %v574_v1  ;;  %v587_v10 = vmax.f32 %v585_v57, %v586_v2  ;;  %v599_v11 = vmax.f32 %v597_v62, %v598_v3  ;;  %v2382_v12 = vpop.f32.mrb[6].mxu1 }
 0x23f   :  { %v554_v13 = vmax.f32 %v552_v59, %v553_v4  ;;  %v568_v15 = vmax.f32 %v566_v60, %v567_v5  ;;  %v580_v16 = vmax.f32 %v578_v61, %v579_v6  ;;  %v591_v17 = vrot.slane %v590_v7, 4  ;;  %v2384_v18 = vpop.f32.mrb[7].mxu1 }
 0x240   :  { %v661_v19 = vsub.f32 %v1942_v29, %v561_v8  ;;  %v663_v20 = vsub.f32 %v1945_v30, %v575_v9  ;;  %v588_v21 = vrot.slane %v587_v10, 1  ;;  %v600_v22 = vrot.slane %v599_v11, 2 }
 0x241   :  { %v660_v23 = vsub.f32 %v468_v33, %v554_v13  ;;  %v662_v24 = vsub.f32 %v478_v34, %v568_v15  ;;  %v581_v25 = vrot.slane %v580_v16, 1  ;;  %v592_v26 = vmax.f32 %v590_v7, %v591_v17 }
 0x242   :  { %v678_v27 = vmul.f32 1.442695, %v661_v19  ;;  %v682_v28 = vmul.f32 1.442695, %v663_v20  ;;  %v589_v31 = vmax.f32 %v587_v10, %v588_v21  ;;  %v601_v32 = vmax.f32 %v599_v11, %v600_v22  ;;  %v2386_v35 = vpop.f32.mrb[8].mxu1 }
 0x243   :  { %v676_v36 = vmul.f32 1.442695, %v660_v23  ;;  %v680_v37 = vmul.f32 1.442695, %v662_v24  ;;  %v582_v38 = vmax.f32 %v580_v16, %v581_v25  ;;  %v593_v39 = vrot.slane %v592_v26, 2  ;;  %v2388_v40 = vpop.f32.mrb[9].mxu1 }
 0x244   :  { %2092 = vpow2.f32 %v678_v27  ;;  %v665_v29 = vsub.f32 %v2366_v43, %v589_v31  ;;  %v602_v30 = vrot.slane %v601_v32, 1  ;;  %v611_v33 = vsel %vm547_vm2, %v2382_v12, -inf }
 0x245   :  { %2094 = vpow2.f32 %v682_v28  ;;  %v664_v34 = vsub.f32 %v2370_v47, %v582_v38  ;;  %v594_v41 = vmax.f32 %v592_v26, %v593_v39  ;;  %v612_v42 = vrot.slane %v611_v33, 4 }
 0x246   :  { %2096 = vpow2.f32 %v676_v36  ;;  %v686_v44 = vmul.f32 1.442695, %v665_v29  ;;  %v603_v45 = vmax.f32 %v601_v32, %v602_v30  ;;  %v604_v46 = vsel %vm547_vm2, %v2384_v18, -inf  ;;  %v2396_v48 = vpop.f32.mrb[10].mxu1 }
 0x247   :  { %2098 = vpow2.f32 %v680_v37  ;;  %v684_v49 = vmul.f32 1.442695, %v664_v34  ;;  %v595_v43 = vrot.slane %v594_v41, 1  ;;  %v613_v50 = vmax.f32 %v611_v33, %v612_v42  ;;  %v2398_v51 = vpop.f32.mrb[11].mxu1 }
 0x248   :  { %2100 = vpow2.f32 %v686_v44  ;;  %v667_v52 = vsub.f32 %v2374_v58, %v603_v45  ;;  %v605_v47 = vrot.slane %v604_v46, 4  ;;  %v625_v53 = vsel %vm547_vm2, %v2386_v35, -inf }
 0x249   :  { %2102 = vpow2.f32 %v684_v49  ;;  %v596_v54 = vmax.f32 %v594_v41, %v595_v43  ;;  %v614_v55 = vrot.slane %v613_v50, 2  ;;  %v626_v56 = vrot.slane %v625_v53, 4 }
 0x24a   :  { %v690_v57 = vmul.f32 1.442695, %v667_v52  ;;  %v606_v59 = vmax.f32 %v604_v46, %v605_v47  ;;  %v618_v60 = vsel %vm547_vm2, %v2388_v40, -inf  ;;  %v639_v61 = vsel %vm547_vm2, %v2396_v48, -inf  ;;  %v2407_v62 = vpop.f32.mrb[12].mxu1 }
 0x24b   :  { %v666_v58 = vsub.f32 %v2378_v63, %v596_v54  ;;  %v615_v0 = vmax.f32 %v613_v50, %v614_v55  ;;  %v627_v1 = vmax.f32 %v625_v53, %v626_v56  ;;  %v619_v2 = vrot.slane %v618_v60, 4  ;;  %v2410_v3 = vpop.f32.mrb[13].mxu1 }
 0x24c   :  { %2104 = vpow2.f32 %v690_v57  ;;  %v607_v4 = vrot.slane %v606_v59, 2  ;;  %v640_v5 = vrot.slane %v639_v61, 4  ;;  %v2414_v6 = vsel %vm547_vm2, %v2398_v51, -inf }
 0x24d   :  { %v688_v7 = vmul.f32 1.442695, %v666_v58  ;;  %v616_v8 = vrot.slane %v615_v0, 1  ;;  %v628_v9 = vrot.slane %v627_v1, 2  ;;  %v620_v13 = vmax.f32 %v618_v60, %v619_v2 }
 0x24e   :  { %v2416_v10 = vpop.eup %2092  ;;  %v608_v11 = vmax.f32 %v606_v59, %v607_v4  ;;  %v2418_v63 = vmax.f32 %v639_v61, %v640_v5  ;;  %v633_v15 = vrot.slane %v2414_v6, 4  ;;  %v2431_v25 = vsel %vm547_vm2, %v2407_v62, -inf }
 0x24f   :  { %v2421_v16 = vpop.eup %2094  ;;  %v715_v17 = vsel %vm547_vm2, %v2416_v10, 0.0  ;;  %2106 = vpow2.f32 %v688_v7  ;;  %v617_v19 = vmax.f32 %v615_v0, %v616_v8  ;;  %v629_v20 = vmax.f32 %v627_v1, %v628_v9 }
 0x250   :  { %v2425_v21 = vpop.eup %2096  ;;  %v716_v22 = vrot.slane %v715_v17, 4  ;;  %v729_v23 = vsel %vm547_vm2, %v2421_v16, 0.0  ;;  %v609_v24 = vrot.slane %v608_v11, 1  ;;  %v621_v42 = vrot.slane %v620_v13, 2 }
 0x251   :  { %v2433_v26 = vpop.eup %2098  ;;  %v730_v27 = vrot.slane %v729_v23, 4  ;;  %v708_v28 = vsel %vm547_vm2, %v2425_v21, 0.0  ;;  %v669_v31 = vsub.f32 %v2382_v12, %v617_v19  ;;  %v630_v32 = vrot.slane %v629_v20, 1 }
 0x252   :  { %v2438_v36 = vpop.eup %2100  ;;  %v2440_v37 = vadd.f32 %v716_v22, %v715_v17  ;;  %v709_v38 = vrot.slane %v708_v28, 4  ;;  %v722_v39 = vsel %vm547_vm2, %v2433_v26, 0.0  ;;  %v610_v29 = vmax.f32 %v608_v11, %v609_v24 }
 0x253   :  { %v2444_v30 = vpop.eup %2102  ;;  %v723_v33 = vrot.slane %v722_v39, 4  ;;  %v743_v34 = vsel %vm547_vm2, %v2438_v36, 0.0  ;;  %v694_v41 = vmul.f32 1.442695, %v669_v31  ;;  %v2448_v44 = vadd.f32 %v730_v27, %v729_v23 }
 0x254   :  { %v710_v12 = vadd.f32 %v709_v38, %v708_v28  ;;  %v744_v45 = vrot.slane %v743_v34, 4  ;;  %v736_v46 = vsel %vm547_vm2, %v2444_v30, 0.0  ;;  %v718_v49 = vrot.slane %v2440_v37, 2 }
 0x255   :  { %v724_v43 = vadd.f32 %v723_v33, %v722_v39  ;;  %v737_v50 = vrot.slane %v736_v46, 4  ;;  %2108 = vpow2.f32 %v694_v41  ;;  %v668_v54 = vsub.f32 %v2384_v18, %v610_v29 }
 0x256   :  { %v2453_v52 = vpop.eup %2104  ;;  %v711_v47 = vrot.slane %v710_v12, 2  ;;  %v745_v53 = vadd.f32 %v744_v45, %v743_v34  ;;  %v631_v55 = vmax.f32 %v629_v20, %v630_v32  ;;  %v622_v60 = vmax.f32 %v620_v13, %v621_v42 }
 0x257   :  { %v725_v56 = vrot.slane %v724_v43, 2  ;;  %v738_v57 = vadd.f32 %v737_v50, %v736_v46  ;;  %v757_v59 = vsel %vm547_vm2, %v2453_v52, 0.0  ;;  %v692_v1 = vmul.f32 1.442695, %v668_v54 }
 0x258   :  { %v712_v61 = vadd.f32 %v711_v47, %v710_v12  ;;  %v746_v58 = vrot.slane %v745_v53, 2  ;;  %v758_v0 = vrot.slane %v757_v59, 4  ;;  %v671_v7 = vsub.f32 %v2386_v35, %v631_v55 }
 0x259   :  { %v2458_v2 = vpop.eup %2106  ;;  %v726_v4 = vadd.f32 %v725_v56, %v724_v43  ;;  %v739_v5 = vrot.slane %v738_v57, 2  ;;  %v623_v8 = vrot.slane %v622_v60, 1  ;;  %2110 = vpow2.f32 %v692_v1 }
 0x25a   :  { %v713_v9 = vrot.slane %v712_v61, 1  ;;  %v747_v18 = vadd.f32 %v746_v58, %v745_v53  ;;  %v759_v11 = vadd.f32 %v758_v0, %v757_v59  ;;  %v750_v17 = vsel %vm547_vm2, %v2458_v2, 0.0 }
 0x25b   :  { %v727_v19 = vrot.slane %v726_v4, 1  ;;  %v740_v20 = vadd.f32 %v739_v5, %v738_v57  ;;  %v751_v13 = vrot.slane %v750_v17, 4  ;;  %v732_v22 = vrot.slane %v2448_v44, 2 }
 0x25c   :  { %v748_v23 = vrot.slane %v747_v18, 1  ;;  %v760_v24 = vrot.slane %v759_v11, 2  ;;  %v698_v27 = vmul.f32 1.442695, %v671_v7  ;;  %v714_v28 = vadd.f32 %v713_v9, %v712_v61 }
 0x25d   :  { %v741_v31 = vrot.slane %v740_v20, 1  ;;  %v752_v32 = vadd.f32 %v751_v13, %v750_v17  ;;  %v624_v35 = vmax.f32 %v622_v60, %v623_v8  ;;  %v728_v38 = vadd.f32 %v727_v19, %v726_v4 }
 0x25e   :  { %v2464_v39 = vadd.f32 %v760_v24, %v759_v11  ;;  %2112 = vpow2.f32 %v698_v27  ;;  %v642_v29 = vrot.slane %v2418_v63, 2  ;;  %v2469_v34 = vadd.f32 %v748_v23, %v747_v18 }
 0x25f   :  { %v2467_v33 = vpop.eup %2108  ;;  %v753_v41 = vrot.slane %v752_v32, 2  ;;  %v670_v42 = vsub.f32 %v2388_v40, %v624_v35  ;;  %v634_v12 = vmax.f32 %v2414_v6, %v633_v15  ;;  %v742_v45 = vadd.f32 %v741_v31, %v740_v20 }
 0x260   :  { %v771_v46 = vsel %vm547_vm2, %v2467_v33, 0.0  ;;  %v643_v43 = vmax.f32 %v2418_v63, %v642_v29  ;;  %v654_v50 = vrot.slane %v2431_v25, 4  ;;  %v762_v56 = vrot.slane %v2464_v39, 1 }
 0x261   :  { %v754_v47 = vadd.f32 %v753_v41, %v752_v32  ;;  %v772_v53 = vrot.slane %v771_v46, 4  ;;  %v696_v54 = vmul.f32 1.442695, %v670_v42  ;;  %v635_v55 = vrot.slane %v634_v12, 2 }
 0x262   :  { %v644_v57 = vrot.slane %v643_v43, 1  ;;  %v655_v40 = vmax.f32 %v2431_v25, %v654_v50  ;;  %v646_v6 = vsel %vm547_vm2, %v2410_v3, -inf  ;;  %v719_v0 = vadd.f32 %v718_v49, %v2440_v37 }
 0x263   :  { %v755_v15 = vrot.slane %v754_v47, 1  ;;  %v773_v59 = vadd.f32 %v772_v53, %v771_v46  ;;  %2114 = vpow2.f32 %v696_v54  ;;  %v636_v60 = vmax.f32 %v634_v12, %v635_v55  ;;  %v2486_v1 = vpop.eup %2110 }
 0x264   :  { %v645_v61 = vmax.f32 %v643_v43, %v644_v57  ;;  %v656_v63 = vrot.slane %v655_v40, 2  ;;  %v647_v58 = vrot.slane %v646_v6, 4  ;;  %2116 = vrcp.f32 %v714_v28 }
 0x265   :  { %v756_v4 = vadd.f32 %v755_v15, %v754_v47  ;;  %v774_v5 = vrot.slane %v773_v59, 2  ;;  %v637_v7 = vrot.slane %v636_v60, 1  ;;  %v764_v25 = vsel %vm547_vm2, %v2486_v1, 0.0 }
 0x266   :  { %v673_v8 = vsub.f32 %v2396_v48, %v645_v61  ;;  %v657_v9 = vmax.f32 %v655_v40, %v656_v63  ;;  %v648_v18 = vmax.f32 %v646_v6, %v647_v58  ;;  %v765_v11 = vrot.slane %v764_v25, 4 }
 0x267   :  { %v638_v17 = vmax.f32 %v636_v60, %v637_v7  ;;  %v720_v19 = vrot.slane %v719_v0, 1  ;;  %2118 = vrcp.f32 %v728_v38  ;;  %v733_v23 = vadd.f32 %v732_v22, %v2448_v44 }
 0x268   :  { %v2491_v20 = vpop.eup %2112  ;;  %v702_v37 = vmul.f32 1.442695, %v673_v8  ;;  %v658_v49 = vrot.slane %v657_v9, 1  ;;  %v649_v13 = vrot.slane %v648_v18, 2  ;;  %v766_v24 = vadd.f32 %v765_v11, %v764_v25 }
 0x269   :  { %v785_v27 = vsel %vm547_vm2, %v2491_v20, 0.0  ;;  %v672_v28 = vsub.f32 %v2398_v51, %v638_v17  ;;  %v721_v48 = vadd.f32 %v720_v19, %v719_v0  ;;  %v734_v41 = vrot.slane %v733_v23, 1 }
 0x26a   :  { %v786_v31 = vrot.slane %v785_v27, 4  ;;  %2120 = vpow2.f32 %v702_v37  ;;  %v659_v32 = vmax.f32 %v657_v9, %v658_v49  ;;  %v650_v35 = vmax.f32 %v648_v18, %v649_v13 }
 0x26b   :  { %v767_v29 = vrot.slane %v766_v24, 2  ;;  %v700_v38 = vmul.f32 1.442695, %v672_v28  ;;  %2122 = vrcp.f32 %v721_v48  ;;  %v735_v43 = vadd.f32 %v734_v41, %v733_v23 }
 0x26c   :  { %v787_v42 = vadd.f32 %v786_v31, %v785_v27  ;;  %v675_v12 = vsub.f32 %v2407_v62, %v659_v32  ;;  %v651_v46 = vrot.slane %v650_v35, 1  ;;  %2124 = vrcp.f32 %v742_v45 }
 0x26d   :  { %v2498_v44 = vpop.eup %2114  ;;  %v768_v22 = vadd.f32 %v767_v29, %v766_v24  ;;  %2126 = vpow2.f32 %v700_v38  ;;  %v775_v51 = vadd.f32 %v774_v5, %v773_v59  ;;  %v763_v59 = vadd.f32 %v762_v56, %v2464_v39 }
 0x26e   :  { %v788_v50 = vrot.slane %v787_v42, 2  ;;  %v778_v47 = vsel %vm547_vm2, %v2498_v44, 0.0  ;;  %v706_v53 = vmul.f32 1.442695, %v675_v12  ;;  %v652_v54 = vmax.f32 %v650_v35, %v651_v46  ;;  %v2117_v55 = vpop.eup %2116 }
 0x26f   :  { %v769_v57 = vrot.slane %v768_v22, 1  ;;  %v779_v40 = vrot.slane %v778_v47, 4  ;;  %2128 = vrcp.f32 %v735_v43  ;;  %v776_v6 = vrot.slane %v775_v51, 1 }
 0x270   :  { %2130 = vpow2.f32 %v706_v53  ;;  %v674_v62 = vsub.f32 %v2410_v3, %v652_v54  ;;  %v836_v45 = vmul.f32 %v2117_v55, %v2425_v21  ;;  %v789_v15 = vadd.f32 %v788_v50, %v787_v42 }
 0x271   :  { %v2119_v60 = vpop.eup %2118  ;;  %v780_v61 = vadd.f32 %v779_v40, %v778_v47  ;;  %2132 = vrcp.f32 %v2469_v34  ;;  %v777_v63 = vadd.f32 %v776_v6, %v775_v51  ;;  %v770_v58 = vadd.f32 %v769_v57, %v768_v22 }
 0x272   :  { %v704_v0 = vmul.f32 1.442695, %v674_v62  ;;  %1966 = vmatprep.mubr.msk.f32.mxu0 %vm547_vm2, %v836_v45  ;;  %v852_v5 = vsel %vm547_vm2, %v836_v45, 0.0  ;;  %2134 = vrcp.f32 %v756_v4  ;;  %v790_v21 = vrot.slane %v789_v15, 1 }
 0x273   :  { %v781_v3 = vrot.slane %v780_v61, 2  ;;  %853 = vadd.xlane.f32.xlu1 %v852_v5  ;;  %2136 = vrcp.f32 %v777_v63  ;;  %v838_v17 = vmul.f32 %v2119_v60, %v2433_v26 }
 0x274   :  { %v2510_v7 = vpop.eup %2120  ;;  %2138 = vpow2.f32 %v704_v0  ;;  %v791_v56 = vadd.f32 %v790_v21, %v789_v15 }
 0x275   :  { %v2123_v25 = vpop.eup %2122  ;;  %v782_v39 = vadd.f32 %v781_v3, %v780_v61  ;;  %v799_v34 = vsel %vm547_vm2, %v2510_v7, 0.0  ;;  %2140 = vrcp.f32 %v763_v59  ;;  %v858_v40 = vsel %vm547_vm2, %v838_v17, 0.0 }
 0x276   :  { %v2125_v8 = vpop.eup %2124  ;;  %v800_v9 = vrot.slane %v799_v34, 4  ;;  %v837_v18 = vmul.f32 %v2123_v25, %v2416_v10  ;;  %2142 = vrcp.f32 %v770_v58 }
 0x277   :  { %v2515_v4 = vpop.eup %2126  ;;  %v783_v11 = vrot.slane %v782_v39, 1  ;;  %2144 = vrcp.f32 %v791_v56  ;;  %v840_v32 = vmul.f32 %v2125_v8, %v2444_v30 }
 0x278   :  { %v801_v19 = vadd.f32 %v800_v9, %v799_v34  ;;  %v792_v37 = vsel %vm547_vm2, %v2515_v4, 0.0  ;;  %v855_v49 = vsel %vm547_vm2, %v837_v18, 0.0  ;;  %1967 = vmatmul.mubr.msk.f32.vlgmr.msra.gmra.mrb[4].mxu0 %vm547_vm2, %v837_v18 }
 0x279   :  { %v2129_v13 = vpop.eup %2128  ;;  %v784_v23 = vadd.f32 %v783_v11, %v782_v39  ;;  %v793_v24 = vrot.slane %v792_v37, 4  ;;  %856 = vadd.xlane.f32.xlu0 %v855_v49  ;;  %1969 = vmatprep.mubr.msk.f32.mxu0 %vm547_vm2, %v838_v17  ;;  %v864_v25 = vsel %vm547_vm2, %v840_v32, 0.0 }
 0x27a   :  { %v2523_v10 = vpop.eup %2130  ;;  %v802_v27 = vrot.slane %v801_v19, 2  ;;  %v839_v26 = vmul.f32 %v2129_v13, %v2421_v16 }
 0x27b   :  { %v2133_v28 = vpop.eup %2132  ;;  %v794_v48 = vadd.f32 %v793_v24, %v792_v37  ;;  %v813_v31 = vsel %vm547_vm2, %v2523_v10, 0.0  ;;  %2146 = vrcp.f32 %v784_v23 }
 0x27c   :  { %v2135_v35 = vpop.eup %2134  ;;  %v814_v29 = vrot.slane %v813_v31, 4  ;;  %v861_v38 = vsel %vm547_vm2, %v839_v26, 0.0  ;;  %1970 = vmatmul.mubr.msk.f32.gmra.mrb[6].mxu0 %vm547_vm2, %v839_v26  ;;  %v803_v41 = vadd.f32 %v802_v27, %v801_v19  ;;  %v841_v22 = vmul.f32 %v2133_v28, %v2438_v36  ;;  %v1357_v27 = vld [vmem:[%s2767_s5] sm:$0xff]  ;;  %v2577_v28 = vpop.permute.xlu1 %1223 }
 0x27d   :  { %v2137_v42 = vpop.eup %2136  ;;  %v795_v12 = vrot.slane %v794_v48, 2  ;;  %862 = vadd.xlane.f32.xlu0 %v861_v38  ;;  %1972 = vmatprep.mubr.msk.f32.mxu0 %vm547_vm2, %v840_v32  ;;  %v842_v53 = vmul.f32 %v2135_v35, %v2458_v2  ;;  %v2585_v35 = vpop.permute.xlu0 %1525  ;;  %v1773_v38 = vld [vmem:[%s2775_s13] sm:$0xff] }
 0x27e   :  { %v2532_v16 = vpop.eup %2138  ;;  %v815_v46 = vadd.f32 %v814_v29, %v813_v31  ;;  %v845_v30 = vmul.f32 %v2137_v42, %v2467_v33  ;;  %v804_v43 = vrot.slane %v803_v41, 1  ;;  %v867_v0 = vsel %vm547_vm2, %v841_v22, 0.0  ;;  %v1360_v31 = vld [vmem:[%s2767_s5 + $0x18] sm:$0xff] }
 0x27f   :  { %v2141_v51 = vpop.eup %2140  ;;  %v796_v50 = vadd.f32 %v795_v12, %v794_v48  ;;  %v806_v47 = vsel %vm547_vm2, %v2532_v16, 0.0  ;;  %v870_v11 = vsel %vm547_vm2, %v842_v53, 0.0  ;;  %v1359_v48 = vld [vmem:[%s2767_s5 + $0x10] sm:$0xff] }
 0x280   :  { %v2143_v54 = vpop.eup %2142  ;;  %v816_v55 = vrot.slane %v815_v46, 2  ;;  %v807_v57 = vrot.slane %v806_v47, 4  ;;  %1973 = vmatmul.mubr.msk.f32.gmra.mrb[8].mxu0 %vm547_vm2, %v841_v22  ;;  %v879_v6 = vsel %vm547_vm2, %v845_v30, 0.0  ;;  %v805_v33 = vadd.f32 %v804_v43, %v803_v41  ;;  %v2587_v29 = vpop.permute.xlu1 %1225  ;;  %v1781_v41 = vld [vmem:[%s2776_s14] sm:$0xff] }
 0x281   :  { %v2145_v36 = vpop.eup %2144  ;;  %v797_v62 = vrot.slane %v796_v50, 1  ;;  %859 = vadd.xlane.f32.xlu0 %v858_v40  ;;  %1975 = vmatprep.mubr.msk.f32.mxu0 %vm547_vm2, %v842_v53  ;;  %v843_v2 = vmul.f32 %v2141_v51, %v2453_v52  ;;  %v844_v61 = vmul.f32 %v2143_v54, %v2486_v1  ;;  %v2051_v32 = vpack.c.bf16 %v1360_v31, %v1359_v48 }
 0x282   :  { %v817_v45 = vadd.f32 %v816_v55, %v815_v46  ;;  %v808_v15 = vadd.f32 %v807_v57, %v806_v47  ;;  %880 = vadd.xlane.f32.xlu1 %v879_v6  ;;  %v847_v60 = vmul.f32 %v2145_v36, %v2491_v20  ;;  %2148 = vrcp.f32 %v805_v33 }
 0x283   :  { %v798_v59 = vadd.f32 %v797_v62, %v796_v50  ;;  %v873_v56 = vsel %vm547_vm2, %v843_v2, 0.0  ;;  %v876_v37 = vsel %vm547_vm2, %v844_v61, 0.0 }
 0x284   :  { %v818_v63 = vrot.slane %v817_v45, 1  ;;  %v809_v58 = vrot.slane %v808_v15, 2  ;;  %1976 = vmatmul.mubr.msk.f32.gmra.mrb[10].mxu0 %vm547_vm2, %v843_v2  ;;  %v885_v5 = vsel %vm547_vm2, %v847_v60, 0.0  ;;  %v2595_v42 = vpop.permute.xlu1 %1533 }
 0x285   :  { %v2147_v3 = vpop.eup %2146  ;;  %868 = vadd.xlane.f32.xlu0 %v867_v0  ;;  %1978 = vmatprep.mubr.msk.f32.mxu0 %vm547_vm2, %v844_v61  ;;  %2150 = vrcp.f32 %v798_v59 }
 0x286   :  { %v819_v52 = vadd.f32 %v818_v63, %v817_v45  ;;  %v810_v21 = vadd.f32 %v809_v58, %v808_v15  ;;  %886 = vadd.xlane.f32.xlu1 %v885_v5  ;;  %v846_v20 = vmul.f32 %v2147_v3, %v2498_v44 }
 0x288   :  { %v811_v1 = vrot.slane %v810_v21, 1  ;;  %1979 = vmatmul.mubr.msk.f32.gmra.mrb[12].mxu0 %vm547_vm2, %v845_v30  ;;  %2152 = vrcp.f32 %v819_v52  ;;  %v882_v39 = vsel %vm547_vm2, %v846_v20, 0.0 }
 0x289   :  { %865 = vadd.xlane.f32.xlu0 %v864_v25  ;;  %1981 = vmatprep.mubr.msk.f32.mxu0 %vm547_vm2, %v846_v20 }
 0x28a   :  { %v812_v34 = vadd.f32 %v811_v1, %v810_v21  ;;  %883 = vadd.xlane.f32.xlu1 %v882_v39 }
 0x28c   :  { %1982 = vmatmul.mubr.msk.f32.gmra.mrb[14].mxu0 %vm547_vm2, %v847_v60  ;;  %2154 = vrcp.f32 %v812_v34  ;;  %v2149_v8 = vpop.eup %2148 }
 0x28d   :  { %874 = vadd.xlane.f32.xlu0 %v873_v56  ;;  %v849_v44 = vmul.f32 %v2149_v8, %v2510_v7 }
 0x28f   :  { %v2151_v9 = vpop.eup %2150  ;;  %v891_v17 = vsel %vm547_vm2, %v849_v44, 0.0 }
 0x290   :  { %v848_v18 = vmul.f32 %v2151_v9, %v2515_v4  ;;  %892 = vadd.xlane.f32.xlu1 %v891_v17 }
 0x291   :  { %871 = vadd.xlane.f32.xlu0 %v870_v11 }
 0x292   :  { %v2153_v19 = vpop.eup %2152  ;;  %1984 = vmatprep.mubr.msk.f32.mxu0 %vm547_vm2, %v848_v18  ;;  %v888_v49 = vsel %vm547_vm2, %v848_v18, 0.0 }
 0x293   :  { %1985 = vmatmul.mubr.msk.f32.gmra.mrb[16].mxu0 %vm547_vm2, %v849_v44  ;;  %v851_v7 = vmul.f32 %v2153_v19, %v2523_v10  ;;  %v1358_v10 = vld [vmem:[%s2767_s5 + $0x8] sm:$0xff] }
 0x294   :  { %889 = vadd.xlane.f32.xlu1 %v888_v49  ;;  %v2047_v26 = vpack.c.bf16 %v1358_v10, %v1357_v27 }
 0x295   :  { %877 = vadd.xlane.f32.xlu0 %v876_v37  ;;  %v897_v23 = vsel %vm547_vm2, %v851_v7, 0.0 }
 0x296   :  { %v2155_v4 = vpop.eup %2154  ;;  %2048 = vmatprep.subr.bf16.mxu1 %v2047_v26 }
 0x297   :  { %v850_v13 = vmul.f32 %v2155_v4, %v2532_v16  ;;  %2050 = vmatpush3.bf16.msra.mxu1 %v2047_v26 }
 0x298   :  { %898 = vadd.xlane.f32.xlu1 %v897_v23  ;;  %2052 = vmatprep.subr.bf16.mxu1 %v2051_v32 }
 0x299   :  { %1987 = vmatprep.mubr.msk.f32.mxu0 %vm547_vm2, %v850_v13  ;;  %v894_v24 = vsel %vm547_vm2, %v850_v13, 0.0 }
 0x29a   :  { %1988 = vmatmul.mubr.msk.f32.gmra.mrb[18].mxu0 %vm547_vm2, %v851_v7 }
 0x29b   :  { %2054 = vmatpush3.bf16.msra.mxu1 %v2051_v32 }
 0x29c   :  { %895 = vadd.xlane.f32.xlu1 %v894_v24 }
 0x2ab   :  { %1776 = vperm.xlu0 %2090, %v1773_v38  }
 0x2ad   :  { %1784 = vperm.xlu1 %2091, %v1781_v41  }
 0x300   :  { %v854_v46 = vpop.xlane.xlu1 %853 }
 0x301   :  { %v901_v51 = vmul.f32 0.25, %v854_v46 }
 0x303   :  { %v938_v55 = vrot.slane %v901_v51, %v2311_v14 }
 0x306   :  { %v857_v12 = vpop.xlane.xlu0 %856 }
 0x307   :  { %v902_v43 = vmul.f32 0.25, %v857_v12 }
 0x309   :  { %v942_v54 = vrot.slane %v902_v43, %v2311_v14 }
 0x30a   :  { %v863_v16 = vpop.xlane.xlu0 %862 }
 0x30b   :  { %v904_v36 = vmul.f32 0.25, %v863_v16  ;;  %v1000_v33 = vsel %vm999_vm3, %v942_v54, %v938_v55 }
 0x30d   :  { %v950_v60 = vrot.slane %v904_v36, %v2311_v14 }
 0x30e   :  { %v860_v22 = vpop.xlane.xlu0 %859 }
 0x30f   :  { %v881_v30 = vpop.xlane.xlu1 %880  ;;  %v903_v47 = vmul.f32 0.25, %v860_v22 }
 0x310   :  { %v910_v21 = vmul.f32 0.25, %v881_v30 }
 0x311   :  { %v946_v40 = vrot.slane %v903_v47, %v2311_v14 }
 0x312   :  { %v869_v50 = vpop.xlane.xlu0 %868  ;;  %v974_v11 = vrot.slane %v910_v21, %v2311_v14 }
 0x313   :  { %v887_v53 = vpop.xlane.xlu1 %886  ;;  %v1002_v15 = vsel %vm1001_vm4, %v946_v40, %v1000_v33  ;;  %v906_v59 = vmul.f32 0.25, %v869_v50 }
 0x314   :  { %v1004_v61 = vsel %vm1003_vm5, %v950_v60, %v1002_v15  ;;  %v912_v8 = vmul.f32 0.25, %v887_v53 }
 0x315   :  { %v958_v52 = vrot.slane %v906_v59, %v2311_v14 }
 0x316   :  { %v866_v57 = vpop.xlane.xlu0 %865  ;;  %v982_v7 = vrot.slane %v912_v8, %v2311_v14 }
 0x317   :  { %v905_v6 = vmul.f32 0.25, %v866_v57  ;;  %v884_v62 = vpop.xlane.xlu1 %883 }
 0x318   :  { %v911_v25 = vmul.f32 0.25, %v884_v62 }
 0x319   :  { %v954_v2 = vrot.slane %v905_v6, %v2311_v14 }
 0x31a   :  { %v875_v45 = vpop.xlane.xlu0 %874  ;;  %v978_v37 = vrot.slane %v911_v25, %v2311_v14 }
 0x31b   :  { %v908_v63 = vmul.f32 0.25, %v875_v45  ;;  %v1006_v5 = vsel %vm1005_vm6, %v954_v2, %v1004_v61 }
 0x31c   :  { %v1008_v39 = vsel %vm1007_vm7, %v958_v52, %v1006_v5 }
 0x31d   :  { %v893_v0 = vpop.xlane.xlu1 %892  ;;  %v966_v1 = vrot.slane %v908_v63, %v2311_v14 }
 0x31e   :  { %v872_v58 = vpop.xlane.xlu0 %871  ;;  %v914_v13 = vmul.f32 0.25, %v893_v0 }
 0x31f   :  { %v907_v3 = vmul.f32 0.25, %v872_v58 }
 0x320   :  { %v990_v32 = vrot.slane %v914_v13, %v2311_v14 }
 0x321   :  { %v962_v20 = vrot.slane %v907_v3, %v2311_v14  ;;  %v890_v56 = vpop.xlane.xlu1 %889 }
 0x322   :  { %v878_v34 = vpop.xlane.xlu0 %877  ;;  %v913_v19 = vmul.f32 0.25, %v890_v56 }
 0x323   :  { %v1010_v44 = vsel %vm1009_vm8, %v962_v20, %v1008_v39  ;;  %v909_v9 = vmul.f32 0.25, %v878_v34 }
 0x324   :  { %v1012_v18 = vsel %vm1011_vm9, %v966_v1, %v1010_v44  ;;  %v986_v27 = vrot.slane %v913_v19, %v2311_v14 }
 0x325   :  { %v970_v17 = vrot.slane %v909_v9, %v2311_v14  ;;  %1023 = vst.msk [vmem:[#allocation2] sm:$0xff] %vm1022_vm10, %v1012_v18  ;;  %v899_v49 = vpop.xlane.xlu1 %898 }
 0x326   :  { %v916_v10 = vmul.f32 0.25, %v899_v49 }
 0x327   :  { %v1013_v4 = vsel %vm999_vm3, %v974_v11, %v970_v17 }
 0x328   :  { %v1014_v23 = vsel %vm1001_vm4, %v978_v37, %v1013_v4  ;;  %v998_v41 = vrot.slane %v916_v10, %v2311_v14 }
 0x329   :  { %v1015_v24 = vsel %vm1003_vm5, %v982_v7, %v1014_v23  ;;  %v896_v26 = vpop.xlane.xlu1 %895 }
 0x32a   :  { %v1016_v48 = vsel %vm1005_vm6, %v986_v27, %v1015_v24  ;;  %v915_v31 = vmul.f32 0.25, %v896_v26 }
 0x32b   :  { %v1017_v12 = vsel %vm1007_vm7, %v990_v32, %v1016_v48 }
 0x32c   :  { %v994_v38 = vrot.slane %v915_v31, %v2311_v14 }
 0x32e   :  { %v1018_v16 = vsel %vm1009_vm8, %v994_v38, %v1017_v12 }
 0x32f   :  { %v1019_v46 = vsel %vm1011_vm9, %v998_v41, %v1018_v16 }
 0x330   :  { %1024 = vst.msk [vmem:[#allocation2 + $0x8] sm:$0xff] %vm1022_vm10, %v1019_v46 }
 0x34b   :  { %v1968_v22 = vpop.f32.mrb[4].mxu0 }
 0x34c   :  { %v1230_v30 = vmul.f32 %v1968_v22, %v2577_v28  ;;  %v1144_v43 = vpop.f32.mrb[5].mxu0 }
 0x34d   :  { %v1229_v51 = vmul.f32 %v2577_v28, %v1144_v43 }
 0x34e   :  { %v1252_v50 = vsel %vm66_vm0, %v1230_v30, 0.0 }
 0x34f   :  { %v1253_v47 = vrot.slane %v1252_v50, 4  ;;  %v1245_v53 = vsel %vm66_vm0, %v1229_v51, 0.0  ;;  %v1971_v14 = vpop.f32.mrb[6].mxu0 }
 0x350   :  { %v1246_v54 = vrot.slane %v1245_v53, 4  ;;  %v1232_v55 = vmul.f32 %v1971_v14, %v2577_v28  ;;  %v1154_v57 = vpop.f32.mrb[7].mxu0 }
 0x351   :  { %v1254_v40 = vadd.f32 %v1253_v47, %v1252_v50  ;;  %v1231_v6 = vmul.f32 %v2577_v28, %v1154_v57 }
 0x352   :  { %v1247_v36 = vadd.f32 %v1246_v54, %v1245_v53  ;;  %v1266_v62 = vsel %vm66_vm0, %v1232_v55, 0.0 }
 0x353   :  { %v1255_v33 = vrot.slane %v1254_v40, 2  ;;  %v1267_v45 = vrot.slane %v1266_v62, 4  ;;  %v1259_v15 = vsel %vm66_vm0, %v1231_v6, 0.0  ;;  %v1974_v2 = vpop.f32.mrb[8].mxu0 }
 0x354   :  { %v1248_v60 = vrot.slane %v1247_v36, 2  ;;  %v1260_v59 = vrot.slane %v1259_v15, 4  ;;  %v1234_v61 = vmul.f32 %v1974_v2, %v2577_v28  ;;  %v1164_v63 = vpop.f32.mrb[9].mxu0 }
 0x355   :  { %v1256_v58 = vadd.f32 %v1255_v33, %v1254_v40  ;;  %v1268_v0 = vadd.f32 %v1267_v45, %v1266_v62  ;;  %v1233_v5 = vmul.f32 %v2577_v28, %v1164_v63 }
 0x356   :  { %v1249_v3 = vadd.f32 %v1248_v60, %v1247_v36  ;;  %v1261_v52 = vadd.f32 %v1260_v59, %v1259_v15  ;;  %v1280_v21 = vsel %vm66_vm0, %v1234_v61, 0.0 }
 0x357   :  { %v1257_v20 = vrot.slane %v1256_v58, 1  ;;  %v1269_v1 = vrot.slane %v1268_v0, 2  ;;  %v1281_v25 = vrot.slane %v1280_v21, 4  ;;  %v1273_v39 = vsel %vm66_vm0, %v1233_v5, 0.0  ;;  %v1977_v34 = vpop.f32.mrb[10].mxu0 }
 0x358   :  { %v1250_v56 = vrot.slane %v1249_v3, 1  ;;  %v1262_v8 = vrot.slane %v1261_v52, 2  ;;  %v1274_v44 = vrot.slane %v1273_v39, 4  ;;  %v1236_v9 = vmul.f32 %v1977_v34, %v2577_v28  ;;  %v1174_v18 = vpop.f32.mrb[11].mxu0 }
 0x359   :  { %v1258_v11 = vadd.f32 %v1257_v20, %v1256_v58  ;;  %v1270_v17 = vadd.f32 %v1269_v1, %v1268_v0  ;;  %v1282_v19 = vadd.f32 %v1281_v25, %v1280_v21  ;;  %v1235_v37 = vmul.f32 %v2577_v28, %v1174_v18 }
 0x35a   :  { %v1251_v49 = vadd.f32 %v1250_v56, %v1249_v3  ;;  %v1263_v7 = vadd.f32 %v1262_v8, %v1261_v52  ;;  %v1275_v4 = vadd.f32 %v1274_v44, %v1273_v39  ;;  %v1294_v13 = vsel %vm66_vm0, %v1236_v9, 0.0 }
 0x35b   :  { %v1271_v23 = vrot.slane %v1270_v17, 1  ;;  %v1283_v24 = vrot.slane %v1282_v19, 2  ;;  %v1295_v27 = vrot.slane %v1294_v13, 4  ;;  %v1287_v10 = vsel %vm66_vm0, %v1235_v37, 0.0  ;;  %v1980_v26 = vpop.f32.mrb[12].mxu0 }
 0x35c   :  { %v1384_v48 = vsel %vm999_vm3, %v1258_v11, %v1251_v49  ;;  %v1264_v31 = vrot.slane %v1263_v7, 1  ;;  %v1276_v32 = vrot.slane %v1275_v4, 2  ;;  %v1288_v38 = vrot.slane %v1287_v10, 4  ;;  %v1184_v41 = vpop.f32.mrb[13].mxu0 }
 0x35d   :  { %v1284_v12 = vadd.f32 %v1283_v24, %v1282_v19  ;;  %v1296_v16 = vadd.f32 %v1295_v27, %v1294_v13  ;;  %v1238_v28 = vmul.f32 %v1980_v26, %v2587_v29  ;;  %v1237_v43 = vmul.f32 %v2587_v29, %v1184_v41 }
 0x35e   :  { %v1265_v46 = vadd.f32 %v1264_v31, %v1263_v7  ;;  %v1277_v22 = vadd.f32 %v1276_v32, %v1275_v4  ;;  %v1289_v30 = vadd.f32 %v1288_v38, %v1287_v10  ;;  %v1272_v51 = vadd.f32 %v1271_v23, %v1270_v17 }
 0x35f   :  { %v1297_v50 = vrot.slane %v1296_v16, 2  ;;  %v1308_v47 = vsel %vm66_vm0, %v1238_v28, 0.0  ;;  %v1983_v53 = vpop.f32.mrb[14].mxu0  ;;  %v1285_v6 = vrot.slane %v1284_v12, 1  ;;  %v1301_v62 = vsel %vm66_vm0, %v1237_v43, 0.0 }
 0x360   :  { %v1385_v14 = vsel %vm1001_vm4, %v1265_v46, %v1384_v48  ;;  %v1278_v54 = vrot.slane %v1277_v22, 1  ;;  %v1290_v55 = vrot.slane %v1289_v30, 2  ;;  %v1309_v57 = vrot.slane %v1308_v47, 4  ;;  %v1194_v40 = vpop.f32.mrb[15].mxu0 }
 0x361   :  { %v1298_v36 = vadd.f32 %v1297_v50, %v1296_v16  ;;  %v1240_v33 = vmul.f32 %v1983_v53, %v2587_v29  ;;  %v1302_v60 = vrot.slane %v1301_v62, 4  ;;  %v1239_v61 = vmul.f32 %v2587_v29, %v1194_v40 }
 0x362   :  { %v1279_v45 = vadd.f32 %v1278_v54, %v1277_v22  ;;  %v1291_v15 = vadd.f32 %v1290_v55, %v1289_v30  ;;  %v1310_v2 = vadd.f32 %v1309_v57, %v1308_v47  ;;  %v1386_v63 = vsel %vm1003_vm5, %v1272_v51, %v1385_v14 }
 0x363   :  { %v1322_v59 = vsel %vm66_vm0, %v1240_v33, 0.0  ;;  %v1303_v5 = vadd.f32 %v1302_v60, %v1301_v62  ;;  %v1286_v52 = vadd.f32 %v1285_v6, %v1284_v12  ;;  %v1299_v21 = vrot.slane %v1298_v36, 1 }
 0x364   :  { %v1292_v58 = vrot.slane %v1291_v15, 1  ;;  %v1311_v0 = vrot.slane %v1310_v2, 2  ;;  %v1323_v3 = vrot.slane %v1322_v59, 4  ;;  %v1315_v20 = vsel %vm66_vm0, %v1239_v61, 0.0 }
 0x365   :  { %v1387_v1 = vsel %vm1005_vm6, %v1279_v45, %v1386_v63  ;;  %v1304_v34 = vrot.slane %v1303_v5, 2  ;;  %v1316_v44 = vrot.slane %v1315_v20, 4  ;;  %v1300_v7 = vadd.f32 %v1299_v21, %v1298_v36 }
 0x366   :  { %v1293_v25 = vadd.f32 %v1292_v58, %v1291_v15  ;;  %v1312_v39 = vadd.f32 %v1311_v0, %v1310_v2  ;;  %v1324_v56 = vadd.f32 %v1323_v3, %v1322_v59  ;;  %v1986_v8 = vpop.f32.mrb[16].mxu0  ;;  %v1388_v11 = vsel %vm1007_vm7, %v1286_v52, %v1387_v1 }
 0x367   :  { %v1242_v9 = vmul.f32 %v1986_v8, %v2587_v29  ;;  %v1204_v18 = vpop.f32.mrb[17].mxu0  ;;  %v1305_v19 = vadd.f32 %v1304_v34, %v1303_v5  ;;  %v1317_v4 = vadd.f32 %v1316_v44, %v1315_v20  ;;  %v1538_v8 = vld [vmem:[%s2771_s9] sm:$0xff]  ;;  %v1539_v44 = vld [vmem:[%s2771_s9 + $0x8] sm:$0xff] }
 0x368   :  { %v1313_v17 = vrot.slane %v1312_v39, 1  ;;  %v1325_v37 = vrot.slane %v1324_v56, 2  ;;  %v1241_v49 = vmul.f32 %v2587_v29, %v1204_v18  ;;  %v1389_v23 = vsel %vm1009_vm8, %v1293_v25, %v1388_v11  ;;  %v1540_v18 = vld [vmem:[%s2771_s9 + $0x10] sm:$0xff]  ;;  %v1541_v11 = vld [vmem:[%s2771_s9 + $0x18] sm:$0xff] }
 0x369   :  { %v1336_v13 = vsel %vm66_vm0, %v1242_v9, 0.0  ;;  %v1306_v27 = vrot.slane %v1305_v19, 1  ;;  %v1318_v48 = vrot.slane %v1317_v4, 2  ;;  %v1390_v32 = vsel %vm1011_vm9, %v1300_v7, %v1389_v23  ;;  %v1636_v23 = vld [vmem:[%s2773_s11 + $0x20] sm:$0xff] }
 0x36a   :  { %v1314_v24 = vadd.f32 %v1313_v17, %v1312_v39  ;;  %v1326_v10 = vadd.f32 %v1325_v37, %v1324_v56  ;;  %v1337_v26 = vrot.slane %v1336_v13, 4  ;;  %v1329_v31 = vsel %vm66_vm0, %v1241_v49, 0.0  ;;  %1998 = vmatprep.mubr.msk.f32.mxu1 %vm66_vm0, %v1390_v32  ;;  %v1633_v37 = vld [vmem:[%s2773_s11 + $0x8] sm:$0xff]  ;;  %v1634_v49 = vld [vmem:[%s2773_s11 + $0x10] sm:$0xff] }
 0x36b   :  { %v1307_v38 = vadd.f32 %v1306_v27, %v1305_v19  ;;  %v1330_v12 = vrot.slane %v1329_v31, 4  ;;  %v1319_v16 = vadd.f32 %v1318_v48, %v1317_v4  ;;  %v2055_v9 = vpack.c.bf16 %v1539_v44, %v1538_v8  ;;  %v1632_v19 = vld [vmem:[%s2773_s11] sm:$0xff]  ;;  %v1635_v4 = vld [vmem:[%s2773_s11 + $0x18] sm:$0xff] }
 0x36c   :  { %v1338_v41 = vadd.f32 %v1337_v26, %v1336_v13  ;;  %v1327_v22 = vrot.slane %v1326_v10, 1  ;;  %v2059_v17 = vpack.c.bf16 %v1541_v11, %v1540_v18  ;;  %v2063_v7 = vpack.c.bf16 %v1633_v37, %v1632_v19 }
 0x36d   :  { %v1989_v28 = vpop.f32.mrb[18].mxu0  ;;  %v1391_v46 = vsel %vm999_vm3, %v1314_v24, %v1307_v38  ;;  %v1331_v43 = vadd.f32 %v1330_v12, %v1329_v31  ;;  %v1320_v50 = vrot.slane %v1319_v16, 1  ;;  %2056 = vmatprep.subr.bf16.mxu0 %v2055_v9  ;;  %v2067_v13 = vpack.c.bf16 %v1635_v4, %v1634_v49  ;;  %v1637_v24 = vld [vmem:[%s2773_s11 + $0x28] sm:$0xff]  ;;  %v2165_v12 = vld [vmem:[%s2781_s0] sm:$0xff]  ;;  %v1638_v49 = vld [vmem:[%s2773_s11 + $0x30] sm:$0xff] }
 0x36e   :  { %v1339_v30 = vrot.slane %v1338_v41, 2  ;;  %v1214_v51 = vpop.f32.mrb[19].mxu0  ;;  %v1244_v47 = vmul.f32 %v1989_v28, %v2587_v29  ;;  %v1328_v6 = vadd.f32 %v1327_v22, %v1326_v10  ;;  %2058 = vmatpush3.bf16.msra.mxu0 %v2055_v9  ;;  %2064 = vmatprep.subr.bf16.mxu1 %v2063_v7  ;;  %v2071_v27 = vpack.c.bf16 %v1637_v24, %v1636_v23  ;;  %v1847_v10 = vld [vmem:[%s2768_s6] ss:$0 sm:$0xff]  ;;  %v2164_v38 = vld [vmem:[%s2781_s0 + $0x8] sm:$0xff] }
 0x36f   :  { %v1243_v53 = vmul.f32 %v2587_v29, %v1214_v51  ;;  %v1332_v54 = vrot.slane %v1331_v43, 2  ;;  %v1321_v55 = vadd.f32 %v1320_v50, %v1319_v16  ;;  %2060 = vmatprep.subr.bf16.mxu0 %v2059_v17 }
 0x370   :  { %v1340_v14 = vadd.f32 %v1339_v30, %v1338_v41  ;;  %v1350_v57 = vsel %vm66_vm0, %v1244_v47, 0.0 }
 0x371   :  { %v1343_v40 = vsel %vm66_vm0, %v1243_v53, 0.0  ;;  %v1333_v36 = vadd.f32 %v1332_v54, %v1331_v43  ;;  %v1351_v62 = vrot.slane %v1350_v57, 4  ;;  %v1392_v45 = vsel %vm1001_vm4, %v1321_v55, %v1391_v46 }
 0x372   :  { %v1344_v33 = vrot.slane %v1343_v40, 4  ;;  %v1341_v15 = vrot.slane %v1340_v14, 1  ;;  %v1393_v60 = vsel %vm1003_vm5, %v1328_v6, %v1392_v45  ;;  %2062 = vmatpush3.bf16.msra.mxu0 %v2059_v17 }
 0x373   :  { %v1334_v2 = vrot.slane %v1333_v36, 1  ;;  %v1352_v59 = vadd.f32 %v1351_v62, %v1350_v57 }
 0x374   :  { %v1345_v61 = vadd.f32 %v1344_v33, %v1343_v40  ;;  %v1342_v58 = vadd.f32 %v1341_v15, %v1340_v14 }
 0x375   :  { %v1335_v29 = vadd.f32 %v1334_v2, %v1333_v36  ;;  %v1353_v63 = vrot.slane %v1352_v59, 2 }
 0x376   :  { %v1346_v0 = vrot.slane %v1345_v61, 2 }
 0x377   :  { %v1394_v5 = vsel %vm1005_vm6, %v1335_v29, %v1393_v60  ;;  %v1354_v3 = vadd.f32 %v1353_v63, %v1352_v59 }
 0x378   :  { %v1347_v52 = vadd.f32 %v1346_v0, %v1345_v61  ;;  %v1395_v21 = vsel %vm1007_vm7, %v1342_v58, %v1394_v5 }
 0x379   :  { %v1355_v20 = vrot.slane %v1354_v3, 1 }
 0x37a   :  { %v1348_v1 = vrot.slane %v1347_v52, 1 }
 0x37b   :  { %v1356_v39 = vadd.f32 %v1355_v20, %v1354_v3 }
 0x37c   :  { %v1349_v25 = vadd.f32 %v1348_v1, %v1347_v52 }
 0x37e   :  { %v1396_v34 = vsel %vm1009_vm8, %v1349_v25, %v1395_v21 }
 0x37f   :  { %v1397_v56 = vsel %vm1011_vm9, %v1356_v39, %v1396_v34 }
 0x380   :  { %1999 = vmatmul.mubr.msk.f32.vlgmr.msra.gmra.mrb[14].mxu1 %vm66_vm0, %v1397_v56 }
 0x381   :  { %2066 = vmatpush3.bf16.msra.mxu1 %v2063_v7  ;;  %v1639_v7 = vld [vmem:[%s2773_s11 + $0x38] sm:$0xff]  ;;  %s2166_s11 = scalar_lea.vmem %s1799_s30, 256 }
 0x382   :  { %2068 = vmatprep.subr.bf16.mxu1 %v2067_v13  ;;  %v2075_v4 = vpack.c.bf16 %v1639_v7, %v1638_v49  ;;  %p2167_p0 = scmp.ne.s32.totalorder %s1799_s30, %s2166_s11  ;;  %p2172_p2 = scmp.lt.s32.totalorder %s2166_s11, %s2166_s11 }
 0x384   :  { %p2173_p3 = por %p2172_p2, %p2171_p1 }
 0x385   :  { %2070 = vmatpush3.bf16.msra.mxu1 %v2067_v13 }
 0x386   :  { %2072 = vmatprep.subr.bf16.mxu1 %v2071_v27  ;;  %p2174_p4 = pnand %p2173_p3, %p2167_p0 }
 0x389   :  { %2074 = vmatpush3.bf16.msra.mxu1 %v2071_v27 }
 0x38a   :  { %2076 = vmatprep.subr.bf16.mxu1 %v2075_v4 }
 0x38d   :  { %2078 = vmatpush3.bf16.msra.mxu1 %v2075_v4 }
 0x453   :  { %v2000_v26 = vpop.f32.mrb[14].mxu1 }
 0x454   :  { %v1474_v48 = vadd.f32 %v2000_v26, %v1847_v10  ;;  %v1468_v31 = vpop.f32.mrb[15].mxu1 }
 0x455   :  { %v1469_v32 = vadd.f32 %v1847_v10, %v1468_v31 }
 0x456   :  { %v1478_v41 = vadd.f32 %v2164_v38, %v1474_v48 }
 0x457   :  { %v1477_v16 = vadd.f32 %v2165_v12, %v1469_v32 }
 0x458   :  { %v1486_v28 = vsel %vm66_vm0, %v1478_v41, 0.0 }
 0x459   :  { %v1487_v46 = vrot.slane %v1486_v28, 4  ;;  %v1479_v22 = vsel %vm66_vm0, %v1477_v16, 0.0 }
 0x45a   :  { %v1480_v30 = vrot.slane %v1479_v22, 4 }
 0x45b   :  { %v1488_v43 = vadd.f32 %v1487_v46, %v1486_v28 }
 0x45c   :  { %v1481_v51 = vadd.f32 %v1480_v30, %v1479_v22 }
 0x45d   :  { %v1489_v50 = vrot.slane %v1488_v43, 2 }
 0x45e   :  { %v1482_v47 = vrot.slane %v1481_v51, 2 }
 0x45f   :  { %v1490_v53 = vadd.f32 %v1489_v50, %v1488_v43 }
 0x460   :  { %v1483_v14 = vadd.f32 %v1482_v47, %v1481_v51 }
 0x461   :  { %v1491_v54 = vrot.slane %v1490_v53, 1 }
 0x462   :  { %v1484_v55 = vrot.slane %v1483_v14, 1 }
 0x463   :  { %v1492_v57 = vadd.f32 %v1491_v54, %v1490_v53 }
 0x464   :  { %v1485_v40 = vadd.f32 %v1484_v55, %v1483_v14 }
 0x465   :  { %v1495_v6 = vmul.f32 0.125, %v1492_v57 }
 0x466   :  { %v1494_v36 = vmul.f32 0.125, %v1485_v40 }
 0x467   :  { %v1497_v62 = vsub.f32 %v1478_v41, %v1495_v6 }
 0x468   :  { %v1496_v33 = vsub.f32 %v1477_v16, %v1494_v36 }
 0x469   :  { %v1499_v45 = vmul.f32 %v1497_v62, %v1497_v62 }
 0x46a   :  { %v1498_v15 = vmul.f32 %v1496_v33, %v1496_v33 }
 0x46b   :  { %v1507_v2 = vsel %vm66_vm0, %v1499_v45, 0.0 }
 0x46c   :  { %v1508_v60 = vrot.slane %v1507_v2, 4  ;;  %v1500_v59 = vsel %vm66_vm0, %v1498_v15, 0.0 }
 0x46d   :  { %v1501_v61 = vrot.slane %v1500_v59, 4 }
 0x46e   :  { %v1509_v29 = vadd.f32 %v1508_v60, %v1507_v2 }
 0x46f   :  { %v1502_v63 = vadd.f32 %v1501_v61, %v1500_v59 }
 0x470   :  { %v1510_v58 = vrot.slane %v1509_v29, 2 }
 0x471   :  { %v1503_v0 = vrot.slane %v1502_v63, 2 }
 0x472   :  { %v1511_v5 = vadd.f32 %v1510_v58, %v1509_v29 }
 0x473   :  { %v1504_v3 = vadd.f32 %v1503_v0, %v1502_v63 }
 0x474   :  { %v1512_v52 = vrot.slane %v1511_v5, 1 }
 0x475   :  { %v1505_v21 = vrot.slane %v1504_v3, 1 }
 0x476   :  { %v1513_v20 = vadd.f32 %v1512_v52, %v1511_v5 }
 0x477   :  { %v1506_v1 = vadd.f32 %v1505_v21, %v1504_v3 }
 0x478   :  { %v1515_v25 = vmul.f32 0.125, %v1513_v20 }
 0x479   :  { %v1514_v39 = vmul.f32 0.125, %v1506_v1 }
 0x47a   :  { %v1517_v34 = vadd.f32 1e-05, %v1515_v25 }
 0x47b   :  { %v1516_v56 = vadd.f32 1e-05, %v1514_v39 }
 0x47c   :  { %2156 = vrsqrt.f32 %v1517_v34 }
 0x47d   :  { %2158 = vrsqrt.f32 %v1516_v56 }
 0x486   :  { %v2157_v8 = vpop.eup %2156 }
 0x487   :  { %v2159_v44 = vpop.eup %2158  ;;  %v1521_v9 = vmul.f32 %v2157_v8, %v1497_v62 }
 0x488   :  { %v1520_v18 = vmul.f32 %v2159_v44, %v1496_v33 }
 0x489   :  { %v1529_v11 = vmul.f32 %v2585_v35, %v1521_v9 }
 0x48a   :  { %v1528_v17 = vmul.f32 %v2585_v35, %v1520_v18  ;;  %v1850_v35 = vld [vmem:[%s2772_s10] ss:$0 sm:$0xff] }
 0x48b   :  { %v1537_v37 = vadd.f32 %v2595_v42, %v1529_v11 }
 0x48c   :  { %v1536_v19 = vadd.f32 %v2595_v42, %v1528_v17 }
 0x48e   :  { %2009 = vmatprep.mubr.msk.f32.mxu0 %vm66_vm0, %v1536_v19 }
 0x48f   :  { %2010 = vmatmul.mubr.msk.f32.vlgmr.msra.gmra.mrb[20].mxu0 %vm66_vm0, %v1537_v37 }
 0x562   :  { %v2011_v42 = vpop.f32.mrb[20].mxu0 }
 0x563   :  { %v1627_v13 = vadd.f32 %v2011_v42, %v1850_v35  ;;  %v1621_v23 = vpop.f32.mrb[21].mxu0 }
 0x564   :  { %v1622_v24 = vadd.f32 %v1850_v35, %v1621_v23 }
 0x565   :  { %v1631_v10 = vmax.f32 %v1627_v13, 0.0 }
 0x566   :  { %v1630_v27 = vmax.f32 %v1622_v24, 0.0 }
 0x568   :  { %2028 = vmatprep.mubr.msk.f32.mxu1 %vm1647_vm11, %v1630_v27 }
 0x569   :  { %2029 = vmatmul.mubr.msk.f32.vlgmr.msra.gmra.mrb[16].mxu1 %vm1647_vm11, %v1631_v10 }
 0x56a   :  { %2177 = shalt.err (!%p2174_p4)
}
 0x56b   :  { %s2178_s18 = scalar_lea.hbm %s2778_s16, 256 }
 0x56c   :  { %p2179_p5 = scmp.ne.s32.totalorder %s2778_s16, %s2178_s18  ;;  %p2182_p6 = scmp.lt.u32.totalorder %s2178_s18, %s2778_s16 }
 0x56e   :  { %p2184_p7 = pnand %p2182_p6, %p2179_p5 }
 0x570   :  { %2187 = shalt.err (!%p2184_p7)
}
 0x571   :  { %s2195_s19 = smov 128   ;;  %s2196_s20 = smov 8   ;;  %v1853_v26 = vld [vmem:[%s2774_s12] ss:$0 sm:$0xff]  ;;  %v1777_v9 = vpop.permute.xlu0 %1776  ;;  %v1785_v17 = vpop.permute.xlu1 %1784 }
 0x572   :  { %1804 = dma.vmem_to_hbm [thread:$0]  %s1799_s30, 256, %s2778_s16, [#allocation3], %s2195_s19, %s2195_s19, %s2196_s20  }
 0x63c   :  { %v2030_v48 = vpop.f32.mrb[16].mxu1 }
 0x63d   :  { %v1726_v31 = vadd.f32 %v2030_v48, %v1853_v26  ;;  %v1720_v32 = vpop.f32.mrb[17].mxu1 }
 0x63e   :  { %v1721_v38 = vadd.f32 %v1853_v26, %v1720_v32 }
 0x63f   :  { %v1730_v41 = vadd.f32 %v1726_v31, %v1537_v37 }
 0x640   :  { %v1729_v12 = vadd.f32 %v1721_v38, %v1536_v19 }
 0x641   :  { %v1738_v16 = vsel %vm66_vm0, %v1730_v41, 0.0 }
 0x642   :  { %v1739_v28 = vrot.slane %v1738_v16, 4  ;;  %v1731_v46 = vsel %vm66_vm0, %v1729_v12, 0.0 }
 0x643   :  { %v1732_v22 = vrot.slane %v1731_v46, 4 }
 0x644   :  { %v1740_v30 = vadd.f32 %v1739_v28, %v1738_v16 }
 0x645   :  { %v1733_v43 = vadd.f32 %v1732_v22, %v1731_v46 }
 0x646   :  { %v1741_v51 = vrot.slane %v1740_v30, 2 }
 0x647   :  { %v1734_v50 = vrot.slane %v1733_v43, 2 }
 0x648   :  { %v1742_v47 = vadd.f32 %v1741_v51, %v1740_v30 }
 0x649   :  { %v1735_v53 = vadd.f32 %v1734_v50, %v1733_v43 }
 0x64a   :  { %v1743_v14 = vrot.slane %v1742_v47, 1 }
 0x64b   :  { %v1736_v54 = vrot.slane %v1735_v53, 1 }
 0x64c   :  { %v1744_v55 = vadd.f32 %v1743_v14, %v1742_v47 }
 0x64d   :  { %v1737_v57 = vadd.f32 %v1736_v54, %v1735_v53 }
 0x64e   :  { %v1746_v40 = vmul.f32 0.125, %v1744_v55 }
 0x64f   :  { %v1745_v6 = vmul.f32 0.125, %v1737_v57 }
 0x650   :  { %v1748_v36 = vsub.f32 %v1730_v41, %v1746_v40 }
 0x651   :  { %v1747_v62 = vsub.f32 %v1729_v12, %v1745_v6 }
 0x652   :  { %v1750_v33 = vmul.f32 %v1748_v36, %v1748_v36 }
 0x653   :  { %v1749_v45 = vmul.f32 %v1747_v62, %v1747_v62 }
 0x654   :  { %v1758_v15 = vsel %vm66_vm0, %v1750_v33, 0.0 }
 0x655   :  { %v1759_v2 = vrot.slane %v1758_v15, 4  ;;  %v1751_v60 = vsel %vm66_vm0, %v1749_v45, 0.0 }
 0x656   :  { %v1752_v59 = vrot.slane %v1751_v60, 4 }
 0x657   :  { %v1760_v61 = vadd.f32 %v1759_v2, %v1758_v15 }
 0x658   :  { %v1753_v29 = vadd.f32 %v1752_v59, %v1751_v60 }
 0x659   :  { %v1761_v63 = vrot.slane %v1760_v61, 2 }
 0x65a   :  { %v1754_v58 = vrot.slane %v1753_v29, 2 }
 0x65b   :  { %v1762_v0 = vadd.f32 %v1761_v63, %v1760_v61 }
 0x65c   :  { %v1755_v5 = vadd.f32 %v1754_v58, %v1753_v29 }
 0x65d   :  { %v1763_v3 = vrot.slane %v1762_v0, 1 }
 0x65e   :  { %v1756_v52 = vrot.slane %v1755_v5, 1 }
 0x65f   :  { %v1764_v21 = vadd.f32 %v1763_v3, %v1762_v0 }
 0x660   :  { %v1757_v20 = vadd.f32 %v1756_v52, %v1755_v5 }
 0x661   :  { %v1766_v1 = vmul.f32 0.125, %v1764_v21 }
 0x662   :  { %v1765_v25 = vmul.f32 0.125, %v1757_v20 }
 0x663   :  { %v1768_v39 = vadd.f32 1e-05, %v1766_v1 }
 0x664   :  { %v1767_v34 = vadd.f32 1e-05, %v1765_v25 }
 0x665   :  { %2160 = vrsqrt.f32 %v1768_v39 }
 0x666   :  { %2162 = vrsqrt.f32 %v1767_v34 }
 0x66f   :  { %v2161_v56 = vpop.eup %2160 }
 0x670   :  { %v2163_v8 = vpop.eup %2162  ;;  %v1772_v44 = vmul.f32 %v2161_v56, %v1748_v36 }
 0x671   :  { %v1771_v18 = vmul.f32 %v2163_v8, %v1747_v62 }
 0x672   :  { %v1780_v11 = vmul.f32 %v1777_v9, %v1772_v44 }
 0x673   :  { %v1779_v19 = vmul.f32 %v1777_v9, %v1771_v18 }
 0x674   :  { %v1788_v37 = vadd.f32 %v1785_v17, %v1780_v11 }
 0x675   :  { %v1787_v49 = vadd.f32 %v1785_v17, %v1779_v19 }
 0x676   :  { %1790 = vst.msk [vmem:[%s2777_s15 + $0x8] sm:$0xff] %vm66_vm0, %v1788_v37 }
 0x677   :  { %1789 = vst.msk [vmem:[%s2777_s15] sm:$0xff] %vm66_vm0, %v1787_v49 }
 0x678   :  { %2188 = dma.done.wait [#allocation3], 256  }
 0x679   :  { %2189 = vsyncadd [#allocation3], 4294967040 }
 0x67a   :  { %1810 = vsyncpa [#allocation3], 1 }

// kernel: sparse_encoder_layer.1
= control target key start
LH: loop header
LB: loop body
LE: loop exit
PB: predicated region body
PF: predicated region fallthrough
CT: control target
= control target key end

     0   :  { %vm65_vm0 = vcmask 261120   ;;  %s2374_s29 = smov 64   ;;  %v2376_v19 = vmov 1966171168   ;;  %v153_v21 = vlaneseq  ;;  %vm1179_vm1 = vcmask 1043456   ;;  %s2382_s27 = smov 8   ;;  %s3011_s1 = inlined_call_operand.vmem [shape: f32[32,96], index: 1, kind: input, shape index: {}]   ;;  %s3012_s0 = inlined_call_operand.vmem [shape: f32[2,8,32], index: 0, kind: input, shape index: {}]   ;;  %s3013_s3 = inlined_call_operand.vmem [shape: f32[32,4], index: 3, kind: input, shape index: {}]   ;;  %s3014_s2 = inlined_call_operand.vmem [shape: f32[1,96], index: 2, kind: input, shape index: {}]   ;;  %s3015_s8 = inlined_call_operand.vmem [shape: f32[8,1], index: 8, kind: input, shape index: {}]   ;;  %s3016_s7 = inlined_call_operand.vmem [shape: f32[8,1], index: 7, kind: input, shape index: {}]   ;;  %s3017_s4 = inlined_call_operand.vmem [shape: f32[4,32], index: 4, kind: input, shape index: {}]   ;;  %s3018_s13 = inlined_call_operand.vmem [shape: f32[8,1], index: 13, kind: input, shape index: {}]   ;;  %s3019_s14 = inlined_call_operand.vmem [shape: f32[8,1], index: 14, kind: input, shape index: {}]   ;;  %s3020_s5 = inlined_call_operand.vmem [shape: f32[32,32], index: 5, kind: input, shape index: {}]   ;;  %s3021_s9 = inlined_call_operand.vmem [shape: f32[32,64], index: 9, kind: input, shape index: {}]   ;;  %s3022_s11 = inlined_call_operand.vmem [shape: f32[64,32], index: 11, kind: input, shape index: {}]   ;;  %s3023_s6 = inlined_call_operand.vmem [shape: f32[1,32], index: 6, kind: input, shape index: {}]   ;;  %s3024_s10 = inlined_call_operand.vmem [shape: f32[1,64], index: 10, kind: input, shape index: {}]   ;;  %s3025_s12 = inlined_call_operand.vmem [shape: f32[1,32], index: 12, kind: input, shape index: {}]   ;;  %s3026_s15 = inlined_call_operand.vmem [shape: f32[2,256], index: 15, kind: output, shape index: {0}]   ;;  %s3027_s16 = inlined_call_operand.vmem [shape: f32[2,64], index: 16, kind: output, shape index: {1}]  }
   0x1   :  { %3029 = sst [smem:[#allocation2_spill]] %s3011_s1  ;;  %v52_v5 = vld [vmem:[%s3012_s0] sm:$0xff]  ;;  %v53_v7 = vld [vmem:[%s3012_s0 + $0x8] sm:$0xff]  ;;  %v351_v10 = vld [vmem:[%s3013_s3 + $0x10] sm:$0xff]  ;;  %v151_v20 = vunpack.c.l.s4 %v2376_v19  ;;  %vm546_vm2 = vcmask 31744   ;;  %vm998_vm3 = vcmask 1041409  }
   0x2   :  { %s3030_s23 = sld [smem:[#allocation2_spill]]  ;;  %2130 = vmatprep.mubr.msk.f32.mxu0 %vm65_vm0, %v52_v5  ;;  %v349_v8 = vld [vmem:[%s3013_s3] sm:$0xff]  ;;  %v350_v9 = vld [vmem:[%s3013_s3 + $0x8] sm:$0xff]  ;;  %v352_v12 = vld [vmem:[%s3013_s3 + $0x18] sm:$0xff]  ;;  %s2375_s3 = smov 96   ;;  %v2513_v23 = vshrl.u32 %v153_v21, 7 }
   0x3   :  { %v2240_v11 = vpack.c.bf16 %v350_v9, %v349_v8  ;;  %v2244_v13 = vpack.c.bf16 %v352_v12, %v351_v10  ;;  %v2011_v14 = vld [vmem:[%s3014_s2] ss:$0 sm:$0xff]  ;;  %v152_v22 = vunpack.c.0.s8 %v151_v20  ;;  %vm1000_vm4 = vcmask 1042434   ;;  %s2383_s28 = smov 32   ;;  %s2384_s2 = smov 24  }
   0x4   :  { %v2517_v31 = vsub.s32 0, %v2513_v23  ;;  %vm1002_vm5 = vcmask 1043459   ;;  %vm1004_vm6 = vcmask 1044484   ;;  %vm1006_vm7 = vcmask 1045509   ;;  %s2385_s30 = smov 40  }
   0x5   :  { %2280 = vmatprep.subr.bf16.mxu1 %v2240_v11  ;;  %v155_v24 = vsub.s32 %v152_v22, %v2513_v23  ;;  %vm1008_vm8 = vcmask 1046534   ;;  %vm1010_vm9 = vcmask 1047559   ;;  %vm1752_vm10 = vcmask 523264  }
   0x6   :  { %2282 = vmatpush3.bf16.msra.mxu1 %v2240_v11  ;;  %vm1115_vm11 = vcmask 64512   ;;  %vm1117_vm12 = vcmask 130048   ;;  %vm1119_vm13 = vcmask 195584   ;;  %vm1986_vm14 = vcmask 785408  }
   0x7   :  { %2281 = vmatprep.subr.bf16.mxu1 %v2244_v13  ;;  %vm1122_vm15 = vcmask 326656  }
   0x8   :  { %v54_v0 = vld [vmem:[%s3030_s23] sm:$0xff]  ;;  %v55_v1 = vld [vmem:[%s3030_s23 + $0x8] sm:$0xff]  ;;  %v56_v2 = vld [vmem:[%s3030_s23 + $0x10] sm:$0xff] }
   0x9   :  { %v2232_v3 = vpack.c.bf16 %v55_v1, %v54_v0  ;;  %v57_v4 = vld [vmem:[%s3030_s23 + $0x18] sm:$0xff] }
   0xa   :  { %v2236_v6 = vpack.c.bf16 %v57_v4, %v56_v2  ;;  %2283 = vmatpush3.bf16.msra.mxu1 %v2244_v13 }
   0xb   :  { %2233 = vmatprep.subr.bf16.mxu0 %v2232_v3 }
   0xc   :  { %2235 = vmatpush3.bf16.msra.mxu0 %v2232_v3 }
   0xd   :  { %2237 = vmatprep.subr.bf16.mxu0 %v2236_v6 }
  0x10   :  { %2239 = vmatpush3.bf16.msra.mxu0 %v2236_v6 }
  0x11   :  { %2241 = vmatprep.subr.bf16.mxu0 %v2240_v11 }
  0x13   :  { %2131 = vmatmul.mubr.msk.f32.vlgmr.msra.gmra.mrb[0].mxu0 %vm65_vm0, %v53_v7 }
  0x14   :  { %2243 = vmatpush3.bf16.msra.mxu0 %v2240_v11 }
  0x15   :  { %2245 = vmatprep.subr.bf16.mxu0 %v2244_v13 }
  0x18   :  { %2247 = vmatpush3.bf16.msra.mxu0 %v2244_v13 }
  0xe6   :  { %v2132_v15 = vpop.f32.mrb[0].mxu0 }
  0xe7   :  { %v138_v16 = vpop.f32.mrb[1].mxu0  ;;  %v144_v18 = vadd.f32 %v2132_v15, %v2011_v14 }
  0xe8   :  { %v139_v17 = vadd.f32 %v2011_v14, %v138_v16 }
  0xe9   :  { %v205_v40 = vrot.slane %v144_v18, %v155_v24  ;;  %v198_v49 = vcombine.high %v144_v18, %v144_v18 }
  0xea   :  { %1328 = vrot.lane.b32.xlu1 %v139_v17, %s2374_s29  ;;  %327 = vrot.lane.b32.xlu0 %v139_v17, %s2375_s3  ;;  %v156_v25 = vrot.slane %v139_v17, %v155_v24  ;;  %v149_v27 = vcombine.high %v139_v17, %v139_v17 }
  0xeb   :  { %v213_v51 = vcombine.high %v205_v40, %v205_v40  ;;  %v221_v54 = vrot.slane %v205_v40, %v155_v24  ;;  %v212_v58 = vrot.slane %v198_v49, %v155_v24 }
  0xec   :  { %v164_v26 = vcombine.high %v156_v25, %v156_v25  ;;  %v172_v28 = vrot.slane %v156_v25, %v155_v24  ;;  %v163_v30 = vrot.slane %v149_v27, %v155_v24  ;;  %v1635_v25 = vld [vmem:[%s3015_s8] sm:$0xff] }
  0xed   :  { %v235_v61 = vrot.slane %v213_v51, %v155_v24  ;;  %v282_v62 = vrot.slane %v221_v54, %v2517_v31  ;;  %v243_v63 = vcombine.high %v221_v54, %v221_v54  ;;  %v214_v2 = vcombine.high %v212_v58, %v212_v58  ;;  %v1130_v27 = vld [vmem:[%s3017_s4] sm:$0xf] }
  0xee   :  { %1330 = vrot.lane.b32.xlu1 %v144_v18, %s2374_s29  ;;  %329 = vrot.lane.b32.xlu0 %v144_v18, %s2375_s3  ;;  %v186_v29 = vrot.slane %v164_v26, %v155_v24  ;;  %v194_v32 = vcombine.high %v172_v28, %v172_v28  ;;  %v165_v34 = vcombine.high %v163_v30, %v163_v30  ;;  %v1627_v26 = vld [vmem:[%s3016_s7] sm:$0xff] }
  0xef   :  { %v179_v35 = vrot.slane %v163_v30, %v155_v24  ;;  %v250_v36 = vrot.slane %v172_v28, %v2517_v31  ;;  %v286_v3 = vrot.slane %v235_v61, %v2517_v31  ;;  %v245_v4 = vcombine.high %v235_v61, %v235_v61  ;;  %2165 = vmatprep.subr.msk.mxu0 %vm1179_vm1, %v1130_v27 }
  0xf0   :  { %v196_v33 = vcombine.high %v186_v29, %v186_v29  ;;  %v258_v37 = vrot.slane %v194_v32, %v2517_v31  ;;  %v254_v38 = vrot.slane %v186_v29, %v2517_v31  ;;  %v193_v43 = vrot.slane %v165_v34, %v155_v24 }
  0xf1   :  { %v266_v42 = vrot.slane %v179_v35, %v2517_v31  ;;  %v195_v44 = vcombine.high %v179_v35, %v179_v35  ;;  %v290_v5 = vrot.slane %v243_v63, %v2517_v31  ;;  %v228_v6 = vrot.slane %v212_v58, %v155_v24 }
  0xf2   :  { %v262_v39 = vrot.slane %v196_v33, %v2517_v31  ;;  %v270_v52 = vrot.slane %v193_v43, %v2517_v31  ;;  %v197_v53 = vcombine.high %v193_v43, %v193_v43  ;;  %v294_v9 = vrot.slane %v245_v4, %v2517_v31 }
  0xf3   :  { %v274_v55 = vrot.slane %v195_v44, %v2517_v31  ;;  %v242_v10 = vrot.slane %v214_v2, %v155_v24  ;;  %v298_v11 = vrot.slane %v228_v6, %v2517_v31  ;;  %v244_v12 = vcombine.high %v228_v6, %v228_v6 }
  0xf4   :  { %v278_v60 = vrot.slane %v197_v53, %v2517_v31  ;;  %v2377_v24 = vmov 0  }
  0xf5   :  { %v302_v15 = vrot.slane %v242_v10, %v2517_v31  ;;  %v246_v16 = vcombine.high %v242_v10, %v242_v10  ;;  %v306_v17 = vrot.slane %v244_v12, %v2517_v31  ;;  %2299 = vset.pattern.permute.xlu1 %v2377_v24  ;;  %2298 = vset.pattern.permute.xlu0 %v2377_v24 }
  0xf6   :  { %1638 = vperm.xlu1 %2299, %v1635_v25   ;;  %1630 = vperm.xlu0 %2298, %v1627_v26  }
  0xf7   :  { %v310_v20 = vrot.slane %v246_v16, %v2517_v31 }
 0x15c   :  { %v328_v41 = vpop.permute.xlu0 %327 }
 0x15d   :  { %v333_v45 = vmul.f32 %v328_v41, %v250_v36  ;;  %v335_v46 = vmul.f32 %v328_v41, %v258_v37  ;;  %v334_v47 = vmul.f32 %v328_v41, %v254_v38  ;;  %v336_v48 = vmul.f32 %v328_v41, %v262_v39 }
 0x15e   :  { %v337_v50 = vmul.f32 %v328_v41, %v266_v42  ;;  %v338_v56 = vmul.f32 %v328_v41, %v270_v52  ;;  %v339_v57 = vmul.f32 %v328_v41, %v274_v55  ;;  %v340_v0 = vmul.f32 %v328_v41, %v278_v60 }
 0x15f   :  { %2141 = vmatprep.mubr.msk.f32.mxu0 %vm65_vm0, %v333_v45  ;;  %2144 = vmatprep.mubr.msk.f32.mxu1 %vm65_vm0, %v335_v46 }
 0x160   :  { %2142 = vmatmul.mubr.msk.f32.vlgmr.msra.gmra.mrb[2].mxu0 %vm65_vm0, %v334_v47  ;;  %2145 = vmatmul.mubr.msk.f32.vlgmr.msra.gmra.mrb[0].mxu1 %vm65_vm0, %v336_v48  ;;  %v330_v59 = vpop.permute.xlu0 %329 }
 0x161   :  { %2147 = vmatprep.mubr.msk.f32.mxu1 %vm65_vm0, %v337_v50  ;;  %v341_v1 = vmul.f32 %v330_v59, %v282_v62  ;;  %v342_v7 = vmul.f32 %v330_v59, %v286_v3  ;;  %v343_v8 = vmul.f32 %v330_v59, %v290_v5  ;;  %v344_v13 = vmul.f32 %v330_v59, %v294_v9 }
 0x162   :  { %v345_v14 = vmul.f32 %v330_v59, %v298_v11  ;;  %v346_v18 = vmul.f32 %v330_v59, %v302_v15  ;;  %v347_v19 = vmul.f32 %v330_v59, %v306_v17  ;;  %v348_v22 = vmul.f32 %v330_v59, %v310_v20  ;;  %2166 = vmatpush3.msk.msra.mxu0 %vm1179_vm1, %v1130_v27 }
 0x163   :  { %vm1124_vm1 = vcmask 392192  }
 0x164   :  { %2148 = vmatmul.mubr.msk.f32.gmra.mrb[2].mxu1 %vm65_vm0, %v338_v56 }
 0x165   :  { %2150 = vmatprep.mubr.msk.f32.mxu1 %vm65_vm0, %v339_v57 }
 0x168   :  { %2151 = vmatmul.mubr.msk.f32.gmra.mrb[4].mxu1 %vm65_vm0, %v340_v0 }
 0x169   :  { %2153 = vmatprep.mubr.msk.f32.mxu1 %vm65_vm0, %v341_v1 }
 0x16c   :  { %2154 = vmatmul.mubr.msk.f32.gmra.mrb[6].mxu1 %vm65_vm0, %v342_v7 }
 0x16d   :  { %2156 = vmatprep.mubr.msk.f32.mxu1 %vm65_vm0, %v343_v8 }
 0x170   :  { %2157 = vmatmul.mubr.msk.f32.gmra.mrb[8].mxu1 %vm65_vm0, %v344_v13 }
 0x171   :  { %2159 = vmatprep.mubr.msk.f32.mxu1 %vm65_vm0, %v345_v14 }
 0x174   :  { %2160 = vmatmul.mubr.msk.f32.gmra.mrb[10].mxu1 %vm65_vm0, %v346_v18 }
 0x175   :  { %2162 = vmatprep.mubr.msk.f32.mxu1 %vm65_vm0, %v347_v19 }
 0x178   :  { %2163 = vmatmul.mubr.msk.f32.gmra.mrb[12].mxu1 %vm65_vm0, %v348_v22 }
 0x233   :  { %v2143_v28 = vpop.f32.mrb[2].mxu0  ;;  %v2146_v29 = vpop.f32.mrb[0].mxu1 }
 0x234   :  { %v554_v30 = vsel %vm546_vm2, %v2143_v28, -inf  ;;  %v568_v31 = vsel %vm546_vm2, %v2146_v29, -inf  ;;  %v467_v32 = vpop.f32.mrb[3].mxu0  ;;  %v477_v33 = vpop.f32.mrb[1].mxu1 }
 0x235   :  { %v555_v34 = vrot.slane %v554_v30, 4  ;;  %v569_v35 = vrot.slane %v568_v31, 4  ;;  %v547_v36 = vsel %vm546_vm2, %v467_v32, -inf  ;;  %v561_v37 = vsel %vm546_vm2, %v477_v33, -inf }
 0x236   :  { %v548_v38 = vrot.slane %v547_v36, 4  ;;  %v562_v39 = vrot.slane %v561_v37, 4 }
 0x237   :  { %v556_v40 = vmax.f32 %v554_v30, %v555_v34  ;;  %v570_v41 = vmax.f32 %v568_v31, %v569_v35  ;;  %v2564_v42 = vpop.f32.mrb[2].mxu1 }
 0x238   :  { %v549_v43 = vmax.f32 %v547_v36, %v548_v38  ;;  %v563_v44 = vmax.f32 %v561_v37, %v562_v39  ;;  %v582_v45 = vsel %vm546_vm2, %v2564_v42, -inf  ;;  %v2568_v46 = vpop.f32.mrb[3].mxu1 }
 0x239   :  { %v557_v47 = vrot.slane %v556_v40, 2  ;;  %v571_v48 = vrot.slane %v570_v41, 2  ;;  %v583_v49 = vrot.slane %v582_v45, 4  ;;  %v575_v50 = vsel %vm546_vm2, %v2568_v46, -inf }
 0x23a   :  { %v550_v51 = vrot.slane %v549_v43, 2  ;;  %v564_v52 = vrot.slane %v563_v44, 2  ;;  %v576_v53 = vrot.slane %v575_v50, 4 }
 0x23b   :  { %v558_v54 = vmax.f32 %v556_v40, %v557_v47  ;;  %v572_v55 = vmax.f32 %v570_v41, %v571_v48  ;;  %v584_v56 = vmax.f32 %v582_v45, %v583_v49  ;;  %v2572_v57 = vpop.f32.mrb[4].mxu1 }
 0x23c   :  { %v551_v58 = vmax.f32 %v549_v43, %v550_v51  ;;  %v565_v59 = vmax.f32 %v563_v44, %v564_v52  ;;  %v577_v60 = vmax.f32 %v575_v50, %v576_v53  ;;  %v596_v61 = vsel %vm546_vm2, %v2572_v57, -inf  ;;  %v2576_v62 = vpop.f32.mrb[5].mxu1 }
 0x23d   :  { %v559_v63 = vrot.slane %v558_v54, 1  ;;  %v573_v0 = vrot.slane %v572_v55, 1  ;;  %v585_v1 = vrot.slane %v584_v56, 2  ;;  %v597_v2 = vrot.slane %v596_v61, 4 }
 0x23e   :  { %v552_v3 = vrot.slane %v551_v58, 1  ;;  %v566_v4 = vrot.slane %v565_v59, 1  ;;  %v578_v5 = vrot.slane %v577_v60, 2  ;;  %v589_v6 = vsel %vm546_vm2, %v2576_v62, -inf }
 0x23f   :  { %v560_v7 = vmax.f32 %v558_v54, %v559_v63  ;;  %v574_v8 = vmax.f32 %v572_v55, %v573_v0  ;;  %v586_v9 = vmax.f32 %v584_v56, %v585_v1  ;;  %v598_v10 = vmax.f32 %v596_v61, %v597_v2  ;;  %v2580_v11 = vpop.f32.mrb[6].mxu1 }
 0x240   :  { %v553_v12 = vmax.f32 %v551_v58, %v552_v3  ;;  %v567_v13 = vmax.f32 %v565_v59, %v566_v4  ;;  %v579_v14 = vmax.f32 %v577_v60, %v578_v5  ;;  %v590_v15 = vrot.slane %v589_v6, 4  ;;  %v2582_v16 = vpop.f32.mrb[7].mxu1 }
 0x241   :  { %v660_v17 = vsub.f32 %v2143_v28, %v560_v7  ;;  %v662_v18 = vsub.f32 %v2146_v29, %v574_v8  ;;  %v587_v19 = vrot.slane %v586_v9, 1  ;;  %v599_v20 = vrot.slane %v598_v10, 2 }
 0x242   :  { %v659_v22 = vsub.f32 %v467_v32, %v553_v12  ;;  %v661_v24 = vsub.f32 %v477_v33, %v567_v13  ;;  %v580_v25 = vrot.slane %v579_v14, 1  ;;  %v591_v26 = vmax.f32 %v589_v6, %v590_v15 }
 0x243   :  { %v677_v27 = vmul.f32 1.442695, %v660_v17  ;;  %v681_v30 = vmul.f32 1.442695, %v662_v18  ;;  %v588_v31 = vmax.f32 %v586_v9, %v587_v19  ;;  %v600_v34 = vmax.f32 %v598_v10, %v599_v20  ;;  %v2584_v35 = vpop.f32.mrb[8].mxu1 }
 0x244   :  { %v675_v36 = vmul.f32 1.442695, %v659_v22  ;;  %v679_v37 = vmul.f32 1.442695, %v661_v24  ;;  %v581_v38 = vmax.f32 %v579_v14, %v580_v25  ;;  %v592_v39 = vrot.slane %v591_v26, 2  ;;  %v2586_v40 = vpop.f32.mrb[9].mxu1 }
 0x245   :  { %2300 = vpow2.f32 %v677_v27  ;;  %v664_v28 = vsub.f32 %v2564_v42, %v588_v31  ;;  %v601_v29 = vrot.slane %v600_v34, 1  ;;  %v610_v32 = vsel %vm546_vm2, %v2580_v11, -inf }
 0x246   :  { %2302 = vpow2.f32 %v681_v30  ;;  %v663_v33 = vsub.f32 %v2568_v46, %v581_v38  ;;  %v593_v41 = vmax.f32 %v591_v26, %v592_v39  ;;  %v611_v43 = vrot.slane %v610_v32, 4 }
 0x247   :  { %2304 = vpow2.f32 %v675_v36  ;;  %v685_v44 = vmul.f32 1.442695, %v664_v28  ;;  %v602_v45 = vmax.f32 %v600_v34, %v601_v29  ;;  %v603_v47 = vsel %vm546_vm2, %v2582_v16, -inf  ;;  %v2594_v48 = vpop.f32.mrb[10].mxu1 }
 0x248   :  { %2306 = vpow2.f32 %v679_v37  ;;  %v683_v49 = vmul.f32 1.442695, %v663_v33  ;;  %v594_v42 = vrot.slane %v593_v41, 1  ;;  %v612_v50 = vmax.f32 %v610_v32, %v611_v43  ;;  %v2596_v51 = vpop.f32.mrb[11].mxu1 }
 0x249   :  { %2308 = vpow2.f32 %v685_v44  ;;  %v666_v52 = vsub.f32 %v2572_v57, %v602_v45  ;;  %v604_v46 = vrot.slane %v603_v47, 4  ;;  %v624_v53 = vsel %vm546_vm2, %v2584_v35, -inf }
 0x24a   :  { %2310 = vpow2.f32 %v683_v49  ;;  %v595_v54 = vmax.f32 %v593_v41, %v594_v42  ;;  %v613_v55 = vrot.slane %v612_v50, 2  ;;  %v625_v56 = vrot.slane %v624_v53, 4 }
 0x24b   :  { %v689_v58 = vmul.f32 1.442695, %v666_v52  ;;  %v605_v59 = vmax.f32 %v603_v47, %v604_v46  ;;  %v617_v60 = vsel %vm546_vm2, %v2586_v40, -inf  ;;  %v638_v61 = vsel %vm546_vm2, %v2594_v48, -inf  ;;  %v2605_v63 = vpop.f32.mrb[12].mxu1 }
 0x24c   :  { %v665_v57 = vsub.f32 %v2576_v62, %v595_v54  ;;  %v614_v0 = vmax.f32 %v612_v50, %v613_v55  ;;  %v626_v1 = vmax.f32 %v624_v53, %v625_v56  ;;  %v618_v2 = vrot.slane %v617_v60, 4  ;;  %v2608_v3 = vpop.f32.mrb[13].mxu1 }
 0x24d   :  { %2312 = vpow2.f32 %v689_v58  ;;  %v606_v4 = vrot.slane %v605_v59, 2  ;;  %v639_v5 = vrot.slane %v638_v61, 4  ;;  %v2612_v6 = vsel %vm546_vm2, %v2596_v51, -inf }
 0x24e   :  { %v687_v7 = vmul.f32 1.442695, %v665_v57  ;;  %v615_v8 = vrot.slane %v614_v0, 1  ;;  %v627_v9 = vrot.slane %v626_v1, 2  ;;  %v619_v13 = vmax.f32 %v617_v60, %v618_v2 }
 0x24f   :  { %v2614_v10 = vpop.eup %2300  ;;  %v607_v12 = vmax.f32 %v605_v59, %v606_v4  ;;  %v2616_v62 = vmax.f32 %v638_v61, %v639_v5  ;;  %v632_v14 = vrot.slane %v2612_v6, 4  ;;  %v2629_v26 = vsel %vm546_vm2, %v2605_v63, -inf }
 0x250   :  { %v2619_v15 = vpop.eup %2302  ;;  %v714_v17 = vsel %vm546_vm2, %v2614_v10, 0.0  ;;  %2314 = vpow2.f32 %v687_v7  ;;  %v616_v18 = vmax.f32 %v614_v0, %v615_v8  ;;  %v628_v19 = vmax.f32 %v626_v1, %v627_v9 }
 0x251   :  { %v2623_v20 = vpop.eup %2304  ;;  %v715_v22 = vrot.slane %v714_v17, 4  ;;  %v728_v24 = vsel %vm546_vm2, %v2619_v15, 0.0  ;;  %v608_v25 = vrot.slane %v607_v12, 1  ;;  %v620_v44 = vrot.slane %v619_v13, 2 }
 0x252   :  { %v2631_v27 = vpop.eup %2306  ;;  %v729_v30 = vrot.slane %v728_v24, 4  ;;  %v707_v31 = vsel %vm546_vm2, %v2623_v20, 0.0  ;;  %v668_v34 = vsub.f32 %v2580_v11, %v616_v18  ;;  %v629_v36 = vrot.slane %v628_v19, 1 }
 0x253   :  { %v2636_v37 = vpop.eup %2308  ;;  %v2638_v38 = vadd.f32 %v715_v22, %v714_v17  ;;  %v708_v39 = vrot.slane %v707_v31, 4  ;;  %v721_v28 = vsel %vm546_vm2, %v2631_v27, 0.0  ;;  %v609_v29 = vmax.f32 %v607_v12, %v608_v25 }
 0x254   :  { %v2642_v32 = vpop.eup %2310  ;;  %v722_v33 = vrot.slane %v721_v28, 4  ;;  %v742_v41 = vsel %vm546_vm2, %v2636_v37, 0.0  ;;  %v693_v43 = vmul.f32 1.442695, %v668_v34  ;;  %v2646_v45 = vadd.f32 %v729_v30, %v728_v24 }
 0x255   :  { %v709_v11 = vadd.f32 %v708_v39, %v707_v31  ;;  %v743_v47 = vrot.slane %v742_v41, 4  ;;  %v735_v49 = vsel %vm546_vm2, %v2642_v32, 0.0  ;;  %v717_v42 = vrot.slane %v2638_v38, 2 }
 0x256   :  { %v723_v50 = vadd.f32 %v722_v33, %v721_v28  ;;  %v736_v52 = vrot.slane %v735_v49, 4  ;;  %2316 = vpow2.f32 %v693_v43  ;;  %v667_v55 = vsub.f32 %v2582_v16, %v609_v29 }
 0x257   :  { %v2651_v46 = vpop.eup %2312  ;;  %v710_v53 = vrot.slane %v709_v11, 2  ;;  %v744_v54 = vadd.f32 %v743_v47, %v742_v41  ;;  %v630_v56 = vmax.f32 %v628_v19, %v629_v36  ;;  %v621_v61 = vmax.f32 %v619_v13, %v620_v44 }
 0x258   :  { %v724_v58 = vrot.slane %v723_v50, 2  ;;  %v737_v59 = vadd.f32 %v736_v52, %v735_v49  ;;  %v756_v60 = vsel %vm546_vm2, %v2651_v46, 0.0  ;;  %v691_v2 = vmul.f32 1.442695, %v667_v55 }
 0x259   :  { %v711_v57 = vadd.f32 %v710_v53, %v709_v11  ;;  %v745_v0 = vrot.slane %v744_v54, 2  ;;  %v757_v1 = vrot.slane %v756_v60, 4  ;;  %v670_v8 = vsub.f32 %v2584_v35, %v630_v56 }
 0x25a   :  { %v2656_v4 = vpop.eup %2314  ;;  %v725_v5 = vadd.f32 %v724_v58, %v723_v50  ;;  %v738_v7 = vrot.slane %v737_v59, 2  ;;  %v622_v9 = vrot.slane %v621_v61, 1  ;;  %2318 = vpow2.f32 %v691_v2 }
 0x25b   :  { %v712_v12 = vrot.slane %v711_v57, 1  ;;  %v746_v16 = vadd.f32 %v745_v0, %v744_v54  ;;  %v758_v17 = vadd.f32 %v757_v1, %v756_v60  ;;  %v749_v18 = vsel %vm546_vm2, %v2656_v4, 0.0 }
 0x25c   :  { %v726_v19 = vrot.slane %v725_v5, 1  ;;  %v739_v22 = vadd.f32 %v738_v7, %v737_v59  ;;  %v750_v13 = vrot.slane %v749_v18, 4  ;;  %v731_v24 = vrot.slane %v2646_v45, 2 }
 0x25d   :  { %v747_v25 = vrot.slane %v746_v16, 1  ;;  %v759_v30 = vrot.slane %v758_v17, 2  ;;  %v697_v31 = vmul.f32 1.442695, %v670_v8  ;;  %v713_v34 = vadd.f32 %v712_v12, %v711_v57 }
 0x25e   :  { %v740_v36 = vrot.slane %v739_v22, 1  ;;  %v751_v39 = vadd.f32 %v750_v13, %v749_v18  ;;  %v623_v35 = vmax.f32 %v621_v61, %v622_v9  ;;  %v727_v28 = vadd.f32 %v726_v19, %v725_v5 }
 0x25f   :  { %v2662_v29 = vadd.f32 %v759_v30, %v758_v17  ;;  %2320 = vpow2.f32 %v697_v31  ;;  %v641_v33 = vrot.slane %v2616_v62, 2  ;;  %v2667_v43 = vadd.f32 %v747_v25, %v746_v16 }
 0x260   :  { %v2665_v41 = vpop.eup %2316  ;;  %v752_v44 = vrot.slane %v751_v39, 2  ;;  %v669_v11 = vsub.f32 %v2586_v40, %v623_v35  ;;  %v633_v47 = vmax.f32 %v2612_v6, %v632_v14  ;;  %v741_v49 = vadd.f32 %v740_v36, %v739_v22 }
 0x261   :  { %v770_v50 = vsel %vm546_vm2, %v2665_v41, 0.0  ;;  %v642_v52 = vmax.f32 %v2616_v62, %v641_v33  ;;  %v653_v53 = vrot.slane %v2629_v26, 4  ;;  %v761_v59 = vrot.slane %v2662_v29, 1 }
 0x262   :  { %v753_v54 = vadd.f32 %v752_v44, %v751_v39  ;;  %v771_v55 = vrot.slane %v770_v50, 4  ;;  %v695_v56 = vmul.f32 1.442695, %v669_v11  ;;  %v634_v58 = vrot.slane %v633_v47, 2 }
 0x263   :  { %v643_v60 = vrot.slane %v642_v52, 1  ;;  %v654_v40 = vmax.f32 %v2629_v26, %v653_v53  ;;  %v645_v6 = vsel %vm546_vm2, %v2608_v3, -inf  ;;  %v718_v2 = vadd.f32 %v717_v42, %v2638_v38 }
 0x264   :  { %v754_v14 = vrot.slane %v753_v54, 1  ;;  %v772_v61 = vadd.f32 %v771_v55, %v770_v50  ;;  %2322 = vpow2.f32 %v695_v56  ;;  %v635_v57 = vmax.f32 %v633_v47, %v634_v58  ;;  %v2684_v5 = vpop.eup %2318 }
 0x265   :  { %v644_v0 = vmax.f32 %v642_v52, %v643_v60  ;;  %v655_v62 = vrot.slane %v654_v40, 2  ;;  %v646_v1 = vrot.slane %v645_v6, 4  ;;  %2324 = vrcp.f32 %v713_v34 }
 0x266   :  { %v755_v7 = vadd.f32 %v754_v14, %v753_v54  ;;  %v773_v8 = vrot.slane %v772_v61, 2  ;;  %v636_v9 = vrot.slane %v635_v57, 1  ;;  %v763_v26 = vsel %vm546_vm2, %v2684_v5, 0.0 }
 0x267   :  { %v672_v12 = vsub.f32 %v2594_v48, %v644_v0  ;;  %v656_v16 = vmax.f32 %v654_v40, %v655_v62  ;;  %v647_v17 = vmax.f32 %v645_v6, %v646_v1  ;;  %v764_v18 = vrot.slane %v763_v26, 4 }
 0x268   :  { %v637_v19 = vmax.f32 %v635_v57, %v636_v9  ;;  %v719_v22 = vrot.slane %v718_v2, 1  ;;  %2326 = vrcp.f32 %v727_v28  ;;  %v732_v30 = vadd.f32 %v731_v24, %v2646_v45 }
 0x269   :  { %v2689_v13 = vpop.eup %2320  ;;  %v701_v38 = vmul.f32 1.442695, %v672_v12  ;;  %v657_v42 = vrot.slane %v656_v16, 1  ;;  %v648_v25 = vrot.slane %v647_v17, 2  ;;  %v765_v31 = vadd.f32 %v764_v18, %v763_v26 }
 0x26a   :  { %v784_v34 = vsel %vm546_vm2, %v2689_v13, 0.0  ;;  %v671_v36 = vsub.f32 %v2596_v51, %v637_v19  ;;  %v720_v48 = vadd.f32 %v719_v22, %v718_v2  ;;  %v733_v11 = vrot.slane %v732_v30, 1 }
 0x26b   :  { %v785_v39 = vrot.slane %v784_v34, 4  ;;  %2328 = vpow2.f32 %v701_v38  ;;  %v658_v35 = vmax.f32 %v656_v16, %v657_v42  ;;  %v649_v33 = vmax.f32 %v647_v17, %v648_v25 }
 0x26c   :  { %v766_v44 = vrot.slane %v765_v31, 2  ;;  %v699_v28 = vmul.f32 1.442695, %v671_v36  ;;  %2330 = vrcp.f32 %v720_v48  ;;  %v734_v53 = vadd.f32 %v733_v11, %v732_v30 }
 0x26d   :  { %v786_v47 = vadd.f32 %v785_v39, %v784_v34  ;;  %v674_v50 = vsub.f32 %v2605_v63, %v658_v35  ;;  %v650_v52 = vrot.slane %v649_v33, 1  ;;  %2332 = vrcp.f32 %v741_v49 }
 0x26e   :  { %v2696_v45 = vpop.eup %2322  ;;  %v767_v24 = vadd.f32 %v766_v44, %v765_v31  ;;  %2334 = vpow2.f32 %v699_v28  ;;  %v774_v51 = vadd.f32 %v773_v8, %v772_v61  ;;  %v762_v61 = vadd.f32 %v761_v59, %v2662_v29 }
 0x26f   :  { %v787_v54 = vrot.slane %v786_v47, 2  ;;  %v777_v55 = vsel %vm546_vm2, %v2696_v45, 0.0  ;;  %v705_v56 = vmul.f32 1.442695, %v674_v50  ;;  %v651_v58 = vmax.f32 %v649_v33, %v650_v52  ;;  %v2325_v60 = vpop.eup %2324 }
 0x270   :  { %v768_v40 = vrot.slane %v767_v24, 1  ;;  %v778_v6 = vrot.slane %v777_v55, 4  ;;  %2336 = vrcp.f32 %v734_v53  ;;  %v775_v14 = vrot.slane %v774_v51, 1 }
 0x271   :  { %2338 = vpow2.f32 %v705_v56  ;;  %v673_v63 = vsub.f32 %v2608_v3, %v651_v58  ;;  %v835_v49 = vmul.f32 %v2325_v60, %v2623_v20  ;;  %v788_v57 = vadd.f32 %v787_v54, %v786_v47 }
 0x272   :  { %v2327_v0 = vpop.eup %2326  ;;  %v779_v62 = vadd.f32 %v778_v6, %v777_v55  ;;  %2340 = vrcp.f32 %v2667_v43  ;;  %v776_v1 = vadd.f32 %v775_v14, %v774_v51  ;;  %v769_v2 = vadd.f32 %v768_v40, %v767_v24 }
 0x273   :  { %v703_v8 = vmul.f32 1.442695, %v673_v63  ;;  %2167 = vmatprep.mubr.msk.f32.mxu0 %vm546_vm2, %v835_v49  ;;  %v851_v9 = vsel %vm546_vm2, %v835_v49, 0.0  ;;  %2342 = vrcp.f32 %v755_v7  ;;  %v789_v20 = vrot.slane %v788_v57, 1 }
 0x274   :  { %v780_v3 = vrot.slane %v779_v62, 2  ;;  %852 = vadd.xlane.f32.xlu1 %v851_v9  ;;  %2344 = vrcp.f32 %v776_v1  ;;  %v837_v22 = vmul.f32 %v2327_v0, %v2631_v27 }
 0x275   :  { %v2708_v26 = vpop.eup %2328  ;;  %2346 = vpow2.f32 %v703_v8  ;;  %v790_v59 = vadd.f32 %v789_v20, %v788_v57 }
 0x276   :  { %v2331_v12 = vpop.eup %2330  ;;  %v781_v29 = vadd.f32 %v780_v3, %v779_v62  ;;  %v798_v43 = vsel %vm546_vm2, %v2708_v26, 0.0  ;;  %2348 = vrcp.f32 %v762_v61  ;;  %v857_v14 = vsel %vm546_vm2, %v837_v22, 0.0 }
 0x277   :  { %v2333_v16 = vpop.eup %2332  ;;  %v799_v17 = vrot.slane %v798_v43, 4  ;;  %v836_v18 = vmul.f32 %v2331_v12, %v2614_v10  ;;  %2350 = vrcp.f32 %v769_v2 }
 0x278   :  { %v2713_v7 = vpop.eup %2334  ;;  %v782_v19 = vrot.slane %v781_v29, 1  ;;  %2352 = vrcp.f32 %v790_v59  ;;  %v839_v33 = vmul.f32 %v2333_v16, %v2642_v32 }
 0x279   :  { %v800_v38 = vadd.f32 %v799_v17, %v798_v43  ;;  %v791_v42 = vsel %vm546_vm2, %v2713_v7, 0.0  ;;  %v854_v25 = vsel %vm546_vm2, %v836_v18, 0.0  ;;  %2168 = vmatmul.mubr.msk.f32.vlgmr.msra.gmra.mrb[4].mxu0 %vm546_vm2, %v836_v18 }
 0x27a   :  { %v2337_v30 = vpop.eup %2336  ;;  %v783_v31 = vadd.f32 %v782_v19, %v781_v29  ;;  %v792_v34 = vrot.slane %v791_v42, 4  ;;  %855 = vadd.xlane.f32.xlu0 %v854_v25  ;;  %2170 = vmatprep.mubr.msk.f32.mxu0 %vm546_vm2, %v837_v22  ;;  %v863_v29 = vsel %vm546_vm2, %v839_v33, 0.0 }
 0x27b   :  { %v2721_v10 = vpop.eup %2338  ;;  %v801_v36 = vrot.slane %v800_v38, 2  ;;  %v838_v27 = vmul.f32 %v2337_v30, %v2619_v15 }
 0x27c   :  { %v2341_v48 = vpop.eup %2340  ;;  %v793_v39 = vadd.f32 %v792_v34, %v791_v42  ;;  %v812_v35 = vsel %vm546_vm2, %v2721_v10, 0.0  ;;  %2354 = vrcp.f32 %v783_v31 }
 0x27d   :  { %v2343_v44 = vpop.eup %2342  ;;  %v813_v28 = vrot.slane %v812_v35, 4  ;;  %v860_v11 = vsel %vm546_vm2, %v838_v27, 0.0  ;;  %2171 = vmatmul.mubr.msk.f32.gmra.mrb[6].mxu0 %vm546_vm2, %v838_v27  ;;  %v802_v47 = vadd.f32 %v801_v36, %v800_v38  ;;  %v840_v53 = vmul.f32 %v2341_v48, %v2636_v37  ;;  %v1878_v27 = vld [vmem:[%s3018_s13] sm:$0xff] }
 0x27e   :  { %v2345_v50 = vpop.eup %2344  ;;  %v794_v52 = vrot.slane %v793_v39, 2  ;;  %861 = vadd.xlane.f32.xlu0 %v860_v11  ;;  %2173 = vmatprep.mubr.msk.f32.mxu0 %vm546_vm2, %v839_v33  ;;  %v841_v58 = vmul.f32 %v2343_v44, %v2656_v4  ;;  %v1462_v48 = vld [vmem:[%s3020_s5] sm:$0xff]  ;;  %v2781_v33 = vpop.permute.xlu1 %1328  ;;  %v1464_v44 = vld [vmem:[%s3020_s5 + $0x10] sm:$0xff] }
 0x27f   :  { %v2730_v15 = vpop.eup %2346  ;;  %v814_v24 = vadd.f32 %v813_v28, %v812_v35  ;;  %v844_v32 = vmul.f32 %v2345_v50, %v2665_v41  ;;  %v803_v51 = vrot.slane %v802_v47, 1  ;;  %v866_v9 = vsel %vm546_vm2, %v840_v53, 0.0  ;;  %v1465_v28 = vld [vmem:[%s3020_s5 + $0x18] sm:$0xff] }
 0x280   :  { %v2349_v54 = vpop.eup %2348  ;;  %v795_v55 = vadd.f32 %v794_v52, %v793_v39  ;;  %v805_v56 = vsel %vm546_vm2, %v2730_v15, 0.0  ;;  %v869_v22 = vsel %vm546_vm2, %v841_v58, 0.0  ;;  %v1463_v39 = vld [vmem:[%s3020_s5 + $0x8] sm:$0xff]  ;;  %v2252_v11 = vpack.c.bf16 %v1465_v28, %v1464_v44  ;;  %s2381_s5 = smov 16  }
 0x281   :  { %v2351_v60 = vpop.eup %2350  ;;  %v815_v40 = vrot.slane %v814_v24, 2  ;;  %v806_v6 = vrot.slane %v805_v56, 4  ;;  %2174 = vmatmul.mubr.msk.f32.gmra.mrb[8].mxu0 %vm546_vm2, %v840_v53  ;;  %v878_v63 = vsel %vm546_vm2, %v844_v32, 0.0  ;;  %v804_v41 = vadd.f32 %v803_v51, %v802_v47  ;;  %v2789_v47 = vpop.permute.xlu0 %1630 }
 0x282   :  { %v2353_v37 = vpop.eup %2352  ;;  %v796_v49 = vrot.slane %v795_v55, 1  ;;  %858 = vadd.xlane.f32.xlu0 %v857_v14  ;;  %2176 = vmatprep.mubr.msk.f32.mxu0 %vm546_vm2, %v841_v58  ;;  %v842_v4 = vmul.f32 %v2349_v54, %v2651_v46  ;;  %v843_v1 = vmul.f32 %v2351_v60, %v2684_v5  ;;  %v2248_v35 = vpack.c.bf16 %v1463_v39, %v1462_v48  ;;  %v2791_v50 = vpop.permute.xlu1 %1330 }
 0x283   :  { %v816_v57 = vadd.f32 %v815_v40, %v814_v24  ;;  %v807_v0 = vadd.f32 %v806_v6, %v805_v56  ;;  %879 = vadd.xlane.f32.xlu1 %v878_v63  ;;  %v846_v61 = vmul.f32 %v2353_v37, %v2689_v13  ;;  %2356 = vrcp.f32 %v804_v41 }
 0x284   :  { %v797_v62 = vadd.f32 %v796_v49, %v795_v55  ;;  %v872_v16 = vsel %vm546_vm2, %v842_v4, 0.0  ;;  %v875_v25 = vsel %vm546_vm2, %v843_v1, 0.0  ;;  %2249 = vmatprep.subr.bf16.mxu1 %v2248_v35  ;;  %v933_v56 = vand.u32 127, %v153_v21 }
 0x285   :  { %v817_v2 = vrot.slane %v816_v57, 1  ;;  %v808_v8 = vrot.slane %v807_v0, 2  ;;  %2177 = vmatmul.mubr.msk.f32.gmra.mrb[10].mxu0 %vm546_vm2, %v842_v4  ;;  %v884_v3 = vsel %vm546_vm2, %v846_v61, 0.0  ;;  %2251 = vmatpush3.bf16.msra.mxu1 %v2248_v35  ;;  %v2379_v35 = vmov 1934713408  }
 0x286   :  { %v2355_v20 = vpop.eup %2354  ;;  %867 = vadd.xlane.f32.xlu0 %v866_v9  ;;  %2179 = vmatprep.mubr.msk.f32.mxu0 %vm546_vm2, %v843_v1  ;;  %2358 = vrcp.f32 %v797_v62  ;;  %v2793_v52 = vpop.permute.xlu1 %1638  ;;  %v2797_v60 = vsub.s32 %v933_v56, %v2513_v23  ;;  %v1054_v44 = vunpack.c.l.s4 %v2379_v35 }
 0x287   :  { %v818_v46 = vadd.f32 %v817_v2, %v816_v57  ;;  %v809_v12 = vadd.f32 %v808_v8, %v807_v0  ;;  %885 = vadd.xlane.f32.xlu1 %v884_v3  ;;  %v845_v13 = vmul.f32 %v2355_v20, %v2696_v45  ;;  %2253 = vmatprep.subr.bf16.mxu1 %v2252_v11 }
 0x288   :  { %v1055_v56 = vunpack.c.0.s8 %v1054_v44 }
 0x289   :  { %v810_v5 = vrot.slane %v809_v12, 1  ;;  %2180 = vmatmul.mubr.msk.f32.gmra.mrb[12].mxu0 %vm546_vm2, %v844_v32  ;;  %2360 = vrcp.f32 %v818_v46  ;;  %v881_v43 = vsel %vm546_vm2, %v845_v13, 0.0  ;;  %2255 = vmatpush3.bf16.msra.mxu1 %v2252_v11 }
 0x28a   :  { %864 = vadd.xlane.f32.xlu0 %v863_v29  ;;  %2182 = vmatprep.mubr.msk.f32.mxu0 %vm546_vm2, %v845_v13 }
 0x28b   :  { %v811_v59 = vadd.f32 %v810_v5, %v809_v12  ;;  %882 = vadd.xlane.f32.xlu1 %v881_v43  ;;  %v2378_v43 = vmov 1983009808  }
 0x28d   :  { %2183 = vmatmul.mubr.msk.f32.gmra.mrb[14].mxu0 %vm546_vm2, %v846_v61  ;;  %2362 = vrcp.f32 %v811_v59  ;;  %v2357_v17 = vpop.eup %2356  ;;  %v1023_v59 = vunpack.c.l.s4 %v2378_v43 }
 0x28e   :  { %873 = vadd.xlane.f32.xlu0 %v872_v16  ;;  %v848_v45 = vmul.f32 %v2357_v17, %v2708_v26 }
 0x290   :  { %v2359_v18 = vpop.eup %2358  ;;  %v890_v38 = vsel %vm546_vm2, %v848_v45, 0.0 }
 0x291   :  { %v847_v19 = vmul.f32 %v2359_v18, %v2713_v7  ;;  %891 = vadd.xlane.f32.xlu1 %v890_v38 }
 0x292   :  { %870 = vadd.xlane.f32.xlu0 %v869_v22 }
 0x293   :  { %v2361_v42 = vpop.eup %2360  ;;  %2185 = vmatprep.mubr.msk.f32.mxu0 %vm546_vm2, %v847_v19  ;;  %v887_v30 = vsel %vm546_vm2, %v847_v19, 0.0 }
 0x294   :  { %2186 = vmatmul.mubr.msk.f32.gmra.mrb[16].mxu0 %vm546_vm2, %v848_v45  ;;  %v850_v26 = vmul.f32 %v2361_v42, %v2721_v10  ;;  %v1886_v10 = vld [vmem:[%s3019_s14] sm:$0xff] }
 0x295   :  { %888 = vadd.xlane.f32.xlu1 %v887_v30 }
 0x296   :  { %876 = vadd.xlane.f32.xlu0 %v875_v25  ;;  %v896_v34 = vsel %vm546_vm2, %v850_v26, 0.0 }
 0x297   :  { %v2363_v7 = vpop.eup %2362 }
 0x298   :  { %v849_v31 = vmul.f32 %v2363_v7, %v2730_v15 }
 0x299   :  { %897 = vadd.xlane.f32.xlu1 %v896_v34 }
 0x29a   :  { %2188 = vmatprep.mubr.msk.f32.mxu0 %vm546_vm2, %v849_v31  ;;  %v893_v36 = vsel %vm546_vm2, %v849_v31, 0.0  ;;  %v1024_v31 = vunpack.c.0.s8 %v1023_v59 }
 0x29b   :  { %2189 = vmatmul.mubr.msk.f32.gmra.mrb[18].mxu0 %vm546_vm2, %v850_v26  ;;  %vm1126_vm2 = vcmask 457728  }
 0x29d   :  { %894 = vadd.xlane.f32.xlu1 %v893_v36 }
 0x2ac   :  { %1881 = vperm.xlu0 %2298, %v1878_v27  }
 0x2ae   :  { %1889 = vperm.xlu1 %2299, %v1886_v10  }
 0x301   :  { %v853_v53 = vpop.xlane.xlu1 %852 }
 0x302   :  { %v900_v6 = vmul.f32 0.25, %v853_v53 }
 0x304   :  { %v937_v41 = vrot.slane %v900_v6, %v2797_v60 }
 0x307   :  { %v856_v15 = vpop.xlane.xlu0 %855 }
 0x308   :  { %v901_v40 = vmul.f32 0.25, %v856_v15 }
 0x30a   :  { %v941_v49 = vrot.slane %v901_v40, %v2797_v60 }
 0x30b   :  { %v862_v24 = vpop.xlane.xlu0 %861 }
 0x30c   :  { %v903_v4 = vmul.f32 0.25, %v862_v24  ;;  %v999_v62 = vsel %vm998_vm3, %v941_v49, %v937_v41 }
 0x30e   :  { %v949_v3 = vrot.slane %v903_v4, %v2797_v60 }
 0x30f   :  { %v859_v32 = vpop.xlane.xlu0 %858 }
 0x310   :  { %v880_v51 = vpop.xlane.xlu1 %879  ;;  %v902_v63 = vmul.f32 0.25, %v859_v32 }
 0x311   :  { %v909_v1 = vmul.f32 0.25, %v880_v51 }
 0x312   :  { %v945_v57 = vrot.slane %v902_v63, %v2797_v60 }
 0x313   :  { %v868_v54 = vpop.xlane.xlu0 %867  ;;  %v973_v16 = vrot.slane %v909_v1, %v2797_v60 }
 0x314   :  { %v886_v55 = vpop.xlane.xlu1 %885  ;;  %v1001_v2 = vsel %vm1000_vm4, %v945_v57, %v999_v62  ;;  %v905_v20 = vmul.f32 0.25, %v868_v54  ;;  %v2836_v57 = vsub.s32 %v1055_v56, %v2513_v23 }
 0x315   :  { %v911_v5 = vmul.f32 0.25, %v886_v55  ;;  %v1003_v17 = vsel %vm1002_vm5, %v949_v3, %v1001_v2  ;;  %v2826_v55 = vsub.s32 %v1024_v31, %v2513_v23 }
 0x316   :  { %v957_v38 = vrot.slane %v905_v20, %v2797_v60 }
 0x317   :  { %v865_v58 = vpop.xlane.xlu0 %864  ;;  %v981_v26 = vrot.slane %v911_v5, %v2797_v60 }
 0x318   :  { %v883_v14 = vpop.xlane.xlu1 %882  ;;  %v904_v0 = vmul.f32 0.25, %v865_v58 }
 0x319   :  { %v910_v46 = vmul.f32 0.25, %v883_v14  ;;  %v2380_v14 = vmov 0.0  }
 0x31a   :  { %v953_v8 = vrot.slane %v904_v0, %v2797_v60 }
 0x31b   :  { %v874_v37 = vpop.xlane.xlu0 %873  ;;  %v977_v25 = vrot.slane %v910_v46, %v2797_v60 }
 0x31c   :  { %v1005_v45 = vsel %vm1004_vm6, %v953_v8, %v1003_v17  ;;  %v907_v42 = vmul.f32 0.25, %v874_v37 }
 0x31d   :  { %v1007_v34 = vsel %vm1006_vm7, %v957_v38, %v1005_v45 }
 0x31e   :  { %v892_v61 = vpop.xlane.xlu1 %891  ;;  %v965_v28 = vrot.slane %v907_v42, %v2797_v60 }
 0x31f   :  { %v871_v21 = vpop.xlane.xlu0 %870  ;;  %v913_v36 = vmul.f32 0.25, %v892_v61 }
 0x320   :  { %v906_v9 = vmul.f32 0.25, %v871_v21 }
 0x321   :  { %v989_v32 = vrot.slane %v913_v36, %v2797_v60 }
 0x322   :  { %v889_v13 = vpop.xlane.xlu1 %888  ;;  %v961_v18 = vrot.slane %v906_v9, %v2797_v60 }
 0x323   :  { %v877_v12 = vpop.xlane.xlu0 %876  ;;  %v912_v22 = vmul.f32 0.25, %v889_v13 }
 0x324   :  { %v908_v29 = vmul.f32 0.25, %v877_v12  ;;  %v1009_v10 = vsel %vm1008_vm8, %v961_v18, %v1007_v34 }
 0x325   :  { %v985_v39 = vrot.slane %v912_v22, %v2797_v60  ;;  %v1011_v51 = vsel %vm1010_vm9, %v965_v28, %v1009_v10 }
 0x326   :  { %v969_v19 = vrot.slane %v908_v29, %v2797_v60  ;;  %v898_v30 = vpop.xlane.xlu1 %897  ;;  %v1021_v63 = vcombine.high %v1011_v51, %v2380_v14  ;;  %v1028_v49 = vrot.slane %v1011_v51, %v2826_v55 }
 0x327   :  { %v915_v11 = vmul.f32 0.25, %v898_v30 }
 0x328   :  { %v1012_v7 = vsel %vm998_vm3, %v973_v16, %v969_v19  ;;  %v2840_v21 = vrot.slane %v1021_v63, %v2826_v55 }
 0x329   :  { %v1013_v27 = vsel %vm1000_vm4, %v977_v25, %v1012_v7  ;;  %v997_v58 = vrot.slane %v915_v11, %v2797_v60 }
 0x32a   :  { %v1014_v48 = vsel %vm1002_vm5, %v981_v26, %v1013_v27  ;;  %v895_v15 = vpop.xlane.xlu1 %894 }
 0x32b   :  { %v1015_v24 = vsel %vm1004_vm6, %v985_v39, %v1014_v48  ;;  %v914_v53 = vmul.f32 0.25, %v895_v15 }
 0x32c   :  { %v1016_v40 = vsel %vm1006_vm7, %v989_v32, %v1015_v24 }
 0x32d   :  { %v993_v54 = vrot.slane %v914_v53, %v2797_v60 }
 0x32f   :  { %v1017_v6 = vsel %vm1008_vm8, %v993_v54, %v1016_v40 }
 0x330   :  { %v1018_v37 = vsel %vm1010_vm9, %v997_v58, %v1017_v6 }
 0x331   :  { %v1043_v41 = vrot.slane %v1018_v37, %v2826_v55  ;;  %v1036_v0 = vcombine.high %v1018_v37, %v2380_v14 }
 0x333   :  { %v1052_v4 = vcombine.high %v1028_v49, %v1043_v41  ;;  %v1051_v60 = vcombine.low %v1028_v49, %v1043_v41  ;;  %v2843_v61 = vrot.slane %v1036_v0, %v2826_v55 }
 0x335   :  { %v1066_v62 = vrot.slane %v1052_v4, %v2836_v57  ;;  %v2847_v1 = vrot.slane %v1051_v60, %v2836_v57  ;;  %v1067_v2 = vcombine.low %v2840_v21, %v2843_v61  ;;  %v1068_v23 = vcombine.high %v2840_v21, %v2843_v61 }
 0x337   :  { %1092 = vrot.lane.b32.xlu0 %v1066_v62, %s2381_s5  ;;  %v1083_v8 = vcombine.high %v2847_v1, %v2380_v14  ;;  %v1075_v9 = vrot.slane %v1067_v2, %v2836_v57  ;;  %v1084_v3 = vcombine.high %v1066_v62, %v2380_v14 }
 0x339   :  { %1088 = vrot.lane.b32.xlu1 %v1083_v8, %s2382_s27  ;;  %v1085_v20 = vcombine.high %v1075_v9, %v2380_v14 }
 0x33b   :  { %1100 = vrot.lane.b32.xlu0 %v1075_v9, %s2383_s28 }
 0x33d   :  { %1096 = vrot.lane.b32.xlu1 %v1084_v3, %s2384_s2 }
 0x341   :  { %1104 = vrot.lane.b32.xlu1 %v1085_v20, %s2385_s30 }
 0x34c   :  { %v2169_v46 = vpop.f32.mrb[4].mxu0 }
 0x34d   :  { %v1335_v12 = vmul.f32 %v2169_v46, %v2781_v33  ;;  %v1249_v13 = vpop.f32.mrb[5].mxu0 }
 0x34e   :  { %v1334_v5 = vmul.f32 %v2781_v33, %v1249_v13 }
 0x34f   :  { %v1357_v29 = vsel %vm65_vm0, %v1335_v12, 0.0 }
 0x350   :  { %v1358_v43 = vrot.slane %v1357_v29, 4  ;;  %v1350_v59 = vsel %vm65_vm0, %v1334_v5, 0.0  ;;  %v2172_v16 = vpop.f32.mrb[6].mxu0 }
 0x351   :  { %v1351_v17 = vrot.slane %v1350_v59, 4  ;;  %v1337_v45 = vmul.f32 %v2172_v16, %v2781_v33  ;;  %v1259_v18 = vpop.f32.mrb[7].mxu0 }
 0x352   :  { %v1359_v19 = vadd.f32 %v1358_v43, %v1357_v29  ;;  %v1336_v22 = vmul.f32 %v2781_v33, %v1259_v18 }
 0x353   :  { %v1352_v38 = vadd.f32 %v1351_v17, %v1350_v59  ;;  %v1371_v42 = vsel %vm65_vm0, %v1337_v45, 0.0 }
 0x354   :  { %v1360_v25 = vrot.slane %v1359_v19, 2  ;;  %v1372_v30 = vrot.slane %v1371_v42, 4  ;;  %v1364_v26 = vsel %vm65_vm0, %v1336_v22, 0.0  ;;  %v2175_v7 = vpop.f32.mrb[8].mxu0 }
 0x355   :  { %v1353_v31 = vrot.slane %v1352_v38, 2  ;;  %v1365_v34 = vrot.slane %v1364_v26, 4  ;;  %v1339_v36 = vmul.f32 %v2175_v7, %v2781_v33  ;;  %v1269_v27 = vpop.f32.mrb[9].mxu0 }
 0x356   :  { %v1361_v10 = vadd.f32 %v1360_v25, %v1359_v19  ;;  %v1373_v48 = vadd.f32 %v1372_v30, %v1371_v42  ;;  %v1338_v39 = vmul.f32 %v2781_v33, %v1269_v27 }
 0x357   :  { %v1354_v35 = vadd.f32 %v1353_v31, %v1352_v38  ;;  %v1366_v44 = vadd.f32 %v1365_v34, %v1364_v26  ;;  %v1385_v28 = vsel %vm65_vm0, %v1339_v36, 0.0 }
 0x358   :  { %v1362_v11 = vrot.slane %v1361_v10, 1  ;;  %v1374_v15 = vrot.slane %v1373_v48, 2  ;;  %v1386_v24 = vrot.slane %v1385_v28, 4  ;;  %v1378_v53 = vsel %vm65_vm0, %v1338_v39, 0.0  ;;  %v2178_v32 = vpop.f32.mrb[10].mxu0 }
 0x359   :  { %v1355_v51 = vrot.slane %v1354_v35, 1  ;;  %v1367_v54 = vrot.slane %v1366_v44, 2  ;;  %v1379_v56 = vrot.slane %v1378_v53, 4  ;;  %v1341_v58 = vmul.f32 %v2178_v32, %v2781_v33  ;;  %v1279_v40 = vpop.f32.mrb[11].mxu0 }
 0x35a   :  { %v1363_v6 = vadd.f32 %v1362_v11, %v1361_v10  ;;  %v1375_v63 = vadd.f32 %v1374_v15, %v1373_v48  ;;  %v1387_v37 = vadd.f32 %v1386_v24, %v1385_v28  ;;  %v1340_v49 = vmul.f32 %v2781_v33, %v1279_v40 }
 0x35b   :  { %v1356_v41 = vadd.f32 %v1355_v51, %v1354_v35  ;;  %v1368_v0 = vadd.f32 %v1367_v54, %v1366_v44  ;;  %v1380_v4 = vadd.f32 %v1379_v56, %v1378_v53  ;;  %v1399_v60 = vsel %vm65_vm0, %v1341_v58, 0.0 }
 0x35c   :  { %v1376_v62 = vrot.slane %v1375_v63, 1  ;;  %v1388_v2 = vrot.slane %v1387_v37, 2  ;;  %v1400_v8 = vrot.slane %v1399_v60, 4  ;;  %v1392_v9 = vsel %vm65_vm0, %v1340_v49, 0.0  ;;  %v2181_v3 = vpop.f32.mrb[12].mxu0 }
 0x35d   :  { %v1489_v20 = vsel %vm998_vm3, %v1363_v6, %v1356_v41  ;;  %v1369_v46 = vrot.slane %v1368_v0, 1  ;;  %v1381_v12 = vrot.slane %v1380_v4, 2  ;;  %v1393_v13 = vrot.slane %v1392_v9, 4  ;;  %v1289_v5 = vpop.f32.mrb[13].mxu0 }
 0x35e   :  { %v1389_v29 = vadd.f32 %v1388_v2, %v1387_v37  ;;  %v1401_v43 = vadd.f32 %v1400_v8, %v1399_v60  ;;  %v1343_v33 = vmul.f32 %v2181_v3, %v2791_v50  ;;  %v1342_v45 = vmul.f32 %v2791_v50, %v1289_v5 }
 0x35f   :  { %v1370_v59 = vadd.f32 %v1369_v46, %v1368_v0  ;;  %v1382_v16 = vadd.f32 %v1381_v12, %v1380_v4  ;;  %v1394_v17 = vadd.f32 %v1393_v13, %v1392_v9  ;;  %v1377_v18 = vadd.f32 %v1376_v62, %v1375_v63 }
 0x360   :  { %v1402_v19 = vrot.slane %v1401_v43, 2  ;;  %v1413_v22 = vsel %vm65_vm0, %v1343_v33, 0.0  ;;  %v2184_v38 = vpop.f32.mrb[14].mxu0  ;;  %v1390_v31 = vrot.slane %v1389_v29, 1  ;;  %v1406_v36 = vsel %vm65_vm0, %v1342_v45, 0.0 }
 0x361   :  { %v1490_v42 = vsel %vm1000_vm4, %v1370_v59, %v1489_v20  ;;  %v1383_v25 = vrot.slane %v1382_v16, 1  ;;  %v1395_v30 = vrot.slane %v1394_v17, 2  ;;  %v1414_v26 = vrot.slane %v1413_v22, 4  ;;  %v1299_v7 = vpop.f32.mrb[15].mxu0 }
 0x362   :  { %v1403_v34 = vadd.f32 %v1402_v19, %v1401_v43  ;;  %v1345_v27 = vmul.f32 %v2184_v38, %v2791_v50  ;;  %v1407_v35 = vrot.slane %v1406_v36, 4  ;;  %v1344_v28 = vmul.f32 %v2791_v50, %v1299_v7 }
 0x363   :  { %v1384_v10 = vadd.f32 %v1383_v25, %v1382_v16  ;;  %v1396_v48 = vadd.f32 %v1395_v30, %v1394_v17  ;;  %v1415_v39 = vadd.f32 %v1414_v26, %v1413_v22  ;;  %v1491_v11 = vsel %vm1002_vm5, %v1377_v18, %v1490_v42 }
 0x364   :  { %v1427_v44 = vsel %vm65_vm0, %v1345_v27, 0.0  ;;  %v1408_v53 = vadd.f32 %v1407_v35, %v1406_v36  ;;  %v1391_v51 = vadd.f32 %v1390_v31, %v1389_v29  ;;  %v1404_v54 = vrot.slane %v1403_v34, 1 }
 0x365   :  { %v1397_v15 = vrot.slane %v1396_v48, 1  ;;  %v1416_v24 = vrot.slane %v1415_v39, 2  ;;  %v1428_v32 = vrot.slane %v1427_v44, 4  ;;  %v1420_v56 = vsel %vm65_vm0, %v1344_v28, 0.0 }
 0x366   :  { %v1492_v58 = vsel %vm1004_vm6, %v1384_v10, %v1491_v11  ;;  %v1409_v63 = vrot.slane %v1408_v53, 2  ;;  %v1421_v41 = vrot.slane %v1420_v56, 4  ;;  %v1405_v3 = vadd.f32 %v1404_v54, %v1403_v34 }
 0x367   :  { %v1398_v40 = vadd.f32 %v1397_v15, %v1396_v48  ;;  %v1417_v6 = vadd.f32 %v1416_v24, %v1415_v39  ;;  %v1429_v37 = vadd.f32 %v1428_v32, %v1427_v44  ;;  %v2187_v49 = vpop.f32.mrb[16].mxu0  ;;  %v1493_v60 = vsel %vm1006_vm7, %v1391_v51, %v1492_v58 }
 0x368   :  { %v1347_v0 = vmul.f32 %v2187_v49, %v2791_v50  ;;  %v1309_v4 = vpop.f32.mrb[17].mxu0  ;;  %v1410_v2 = vadd.f32 %v1409_v63, %v1408_v53  ;;  %v1422_v20 = vadd.f32 %v1421_v41, %v1420_v56 }
 0x369   :  { %v1418_v62 = vrot.slane %v1417_v6, 1  ;;  %v1430_v8 = vrot.slane %v1429_v37, 2  ;;  %v1346_v9 = vmul.f32 %v2791_v50, %v1309_v4  ;;  %v1494_v12 = vsel %vm1008_vm8, %v1398_v40, %v1493_v60 }
 0x36a   :  { %v1441_v46 = vsel %vm65_vm0, %v1347_v0, 0.0  ;;  %v1411_v5 = vrot.slane %v1410_v2, 1  ;;  %v1423_v33 = vrot.slane %v1422_v20, 2  ;;  %v1495_v16 = vsel %vm1010_vm9, %v1405_v3, %v1494_v12 }
 0x36b   :  { %v1419_v13 = vadd.f32 %v1418_v62, %v1417_v6  ;;  %v1431_v29 = vadd.f32 %v1430_v8, %v1429_v37  ;;  %v1442_v43 = vrot.slane %v1441_v46, 4  ;;  %v1434_v59 = vsel %vm65_vm0, %v1346_v9, 0.0  ;;  %2199 = vmatprep.mubr.msk.f32.mxu1 %vm65_vm0, %v1495_v16  ;;  %v1643_v8 = vld [vmem:[%s3021_s9] sm:$0xff]  ;;  %v1644_v9 = vld [vmem:[%s3021_s9 + $0x8] sm:$0xff] }
 0x36c   :  { %v1412_v17 = vadd.f32 %v1411_v5, %v1410_v2  ;;  %v1435_v18 = vrot.slane %v1434_v59, 4  ;;  %v1424_v19 = vadd.f32 %v1423_v33, %v1422_v20  ;;  %v2256_v3 = vpack.c.bf16 %v1644_v9, %v1643_v8  ;;  %v1645_v20 = vld [vmem:[%s3021_s9 + $0x10] sm:$0xff]  ;;  %v1738_v5 = vld [vmem:[%s3022_s11 + $0x8] sm:$0xff]  ;;  %v1740_v33 = vld [vmem:[%s3022_s11 + $0x18] sm:$0xff] }
 0x36d   :  { %v1443_v45 = vadd.f32 %v1442_v43, %v1441_v46  ;;  %v1432_v42 = vrot.slane %v1431_v29, 1  ;;  %v1646_v46 = vld [vmem:[%s3021_s9 + $0x18] sm:$0xff]  ;;  %v1741_v16 = vld [vmem:[%s3022_s11 + $0x20] sm:$0xff] }
 0x36e   :  { %v2190_v22 = vpop.f32.mrb[18].mxu0  ;;  %v1496_v38 = vsel %vm998_vm3, %v1419_v13, %v1412_v17  ;;  %v1436_v30 = vadd.f32 %v1435_v18, %v1434_v59  ;;  %v1425_v7 = vrot.slane %v1424_v19, 1  ;;  %2257 = vmatprep.subr.bf16.mxu0 %v2256_v3  ;;  %v2260_v12 = vpack.c.bf16 %v1646_v46, %v1645_v20  ;;  %v1737_v13 = vld [vmem:[%s3022_s11] sm:$0xff]  ;;  %v1742_v17 = vld [vmem:[%s3022_s11 + $0x28] sm:$0xff] }
 0x36f   :  { %v1444_v25 = vrot.slane %v1443_v45, 2  ;;  %v1319_v26 = vpop.f32.mrb[19].mxu0  ;;  %v1349_v31 = vmul.f32 %v2190_v22, %v2791_v50  ;;  %v1433_v35 = vadd.f32 %v1432_v42, %v1431_v29  ;;  %2259 = vmatpush3.bf16.msra.mxu0 %v2256_v3  ;;  %v1739_v29 = vld [vmem:[%s3022_s11 + $0x10] sm:$0xff]  ;;  %v2264_v43 = vpack.c.bf16 %v1738_v5, %v1737_v13  ;;  %v2047_v18 = vld [vmem:[%s3023_s6] ss:$0 sm:$0xff] }
 0x370   :  { %v1348_v34 = vmul.f32 %v2791_v50, %v1319_v26  ;;  %v1437_v27 = vrot.slane %v1436_v30, 2  ;;  %v1426_v10 = vadd.f32 %v1425_v7, %v1424_v19  ;;  %2261 = vmatprep.subr.bf16.mxu0 %v2260_v12  ;;  %v2268_v59 = vpack.c.bf16 %v1740_v33, %v1739_v29  ;;  %v2373_v26 = vld [vmem:[%s3012_s0] sm:$0xff] }
 0x371   :  { %v1445_v36 = vadd.f32 %v1444_v25, %v1443_v45  ;;  %v1455_v48 = vsel %vm65_vm0, %v1349_v31, 0.0  ;;  %2265 = vmatprep.subr.bf16.mxu1 %v2264_v43  ;;  %v2272_v45 = vpack.c.bf16 %v1742_v17, %v1741_v16  ;;  %v2372_v25 = vld [vmem:[%s3012_s0 + $0x8] sm:$0xff]  ;;  %vm1128_vm3 = vcmask 517120  }
 0x372   :  { %v1448_v39 = vsel %vm65_vm0, %v1348_v34, 0.0  ;;  %v1438_v44 = vadd.f32 %v1437_v27, %v1436_v30  ;;  %v1456_v28 = vrot.slane %v1455_v48, 4  ;;  %v1497_v15 = vsel %vm1000_vm4, %v1426_v10, %v1496_v38 }
 0x373   :  { %v1449_v11 = vrot.slane %v1448_v39, 4  ;;  %v1446_v24 = vrot.slane %v1445_v36, 1  ;;  %v1498_v32 = vsel %vm1002_vm5, %v1433_v35, %v1497_v15  ;;  %2263 = vmatpush3.bf16.msra.mxu0 %v2260_v12 }
 0x374   :  { %v1439_v53 = vrot.slane %v1438_v44, 1  ;;  %v1457_v51 = vadd.f32 %v1456_v28, %v1455_v48 }
 0x375   :  { %v1450_v54 = vadd.f32 %v1449_v11, %v1448_v39  ;;  %v1447_v58 = vadd.f32 %v1446_v24, %v1445_v36 }
 0x376   :  { %v1440_v50 = vadd.f32 %v1439_v53, %v1438_v44  ;;  %v1458_v56 = vrot.slane %v1457_v51, 2 }
 0x377   :  { %v1451_v40 = vrot.slane %v1450_v54, 2 }
 0x378   :  { %v1499_v6 = vsel %vm1004_vm6, %v1440_v50, %v1498_v32  ;;  %v1459_v63 = vadd.f32 %v1458_v56, %v1457_v51 }
 0x379   :  { %v1452_v37 = vadd.f32 %v1451_v40, %v1450_v54  ;;  %v1500_v49 = vsel %vm1006_vm7, %v1447_v58, %v1499_v6 }
 0x37a   :  { %v1460_v41 = vrot.slane %v1459_v63, 1 }
 0x37b   :  { %v1453_v0 = vrot.slane %v1452_v37, 1 }
 0x37c   :  { %v1461_v60 = vadd.f32 %v1460_v41, %v1459_v63 }
 0x37d   :  { %v1454_v4 = vadd.f32 %v1453_v0, %v1452_v37 }
 0x37f   :  { %v1501_v62 = vsel %vm1008_vm8, %v1454_v4, %v1500_v49 }
 0x380   :  { %v1502_v2 = vsel %vm1010_vm9, %v1461_v60, %v1501_v62 }
 0x381   :  { %2200 = vmatmul.mubr.msk.f32.vlgmr.msra.gmra.mrb[14].mxu1 %vm65_vm0, %v1502_v2 }
 0x382   :  { %2267 = vmatpush3.bf16.msra.mxu1 %v2264_v43 }
 0x383   :  { %2269 = vmatprep.subr.bf16.mxu1 %v2268_v59 }
 0x386   :  { %2271 = vmatpush3.bf16.msra.mxu1 %v2268_v59 }
 0x387   :  { %2273 = vmatprep.subr.bf16.mxu1 %v2272_v45 }
 0x38a   :  { %2275 = vmatpush3.bf16.msra.mxu1 %v2272_v45 }
 0x454   :  { %v2201_v19 = vpop.f32.mrb[14].mxu1 }
 0x455   :  { %v1579_v22 = vadd.f32 %v2201_v19, %v2047_v18  ;;  %v1573_v38 = vpop.f32.mrb[15].mxu1  ;;  %v1744_v19 = vld [vmem:[%s3022_s11 + $0x38] sm:$0xff] }
 0x456   :  { %v1574_v42 = vadd.f32 %v2047_v18, %v1573_v38  ;;  %v1743_v18 = vld [vmem:[%s3022_s11 + $0x30] sm:$0xff] }
 0x457   :  { %v1583_v30 = vadd.f32 %v2372_v25, %v1579_v22  ;;  %v2276_v22 = vpack.c.bf16 %v1744_v19, %v1743_v18  ;;  %v1882_v19 = vpop.permute.xlu0 %1881 }
 0x458   :  { %v1582_v7 = vadd.f32 %v2373_v26, %v1574_v42 }
 0x459   :  { %v1591_v31 = vsel %vm65_vm0, %v1583_v30, 0.0  ;;  %2277 = vmatprep.subr.bf16.mxu1 %v2276_v22 }
 0x45a   :  { %v1592_v34 = vrot.slane %v1591_v31, 4  ;;  %v1584_v36 = vsel %vm65_vm0, %v1582_v7, 0.0  ;;  %2279 = vmatpush3.bf16.msra.mxu1 %v2276_v22 }
 0x45b   :  { %v1585_v27 = vrot.slane %v1584_v36, 4 }
 0x45c   :  { %v1593_v10 = vadd.f32 %v1592_v34, %v1591_v31 }
 0x45d   :  { %v1586_v48 = vadd.f32 %v1585_v27, %v1584_v36 }
 0x45e   :  { %v1594_v39 = vrot.slane %v1593_v10, 2 }
 0x45f   :  { %v1587_v35 = vrot.slane %v1586_v48, 2 }
 0x460   :  { %v1595_v44 = vadd.f32 %v1594_v39, %v1593_v10 }
 0x461   :  { %v1588_v28 = vadd.f32 %v1587_v35, %v1586_v48 }
 0x462   :  { %v1596_v11 = vrot.slane %v1595_v44, 1 }
 0x463   :  { %v1589_v15 = vrot.slane %v1588_v28, 1 }
 0x464   :  { %v1597_v24 = vadd.f32 %v1596_v11, %v1595_v44 }
 0x465   :  { %v1590_v53 = vadd.f32 %v1589_v15, %v1588_v28 }
 0x466   :  { %v1600_v32 = vmul.f32 0.125, %v1597_v24 }
 0x467   :  { %v1599_v51 = vmul.f32 0.125, %v1590_v53 }
 0x468   :  { %v1602_v54 = vsub.f32 %v1583_v30, %v1600_v32 }
 0x469   :  { %v1601_v50 = vsub.f32 %v1582_v7, %v1599_v51  ;;  %v2053_v7 = vld [vmem:[%s3025_s12] ss:$0 sm:$0xff]  ;;  %s2387_s12 = smov 48  }
 0x46a   :  { %v1604_v56 = vmul.f32 %v1602_v54, %v1602_v54 }
 0x46b   :  { %v1603_v58 = vmul.f32 %v1601_v50, %v1601_v50 }
 0x46c   :  { %v1612_v40 = vsel %vm65_vm0, %v1604_v56, 0.0 }
 0x46d   :  { %v1613_v6 = vrot.slane %v1612_v40, 4  ;;  %v1605_v63 = vsel %vm65_vm0, %v1603_v58, 0.0 }
 0x46e   :  { %v1606_v37 = vrot.slane %v1605_v63, 4 }
 0x46f   :  { %v1614_v49 = vadd.f32 %v1613_v6, %v1612_v40 }
 0x470   :  { %v1607_v41 = vadd.f32 %v1606_v37, %v1605_v63 }
 0x471   :  { %v1615_v0 = vrot.slane %v1614_v49, 2 }
 0x472   :  { %v1608_v4 = vrot.slane %v1607_v41, 2 }
 0x473   :  { %v1616_v60 = vadd.f32 %v1615_v0, %v1614_v49 }
 0x474   :  { %v1609_v62 = vadd.f32 %v1608_v4, %v1607_v41 }
 0x475   :  { %v1617_v2 = vrot.slane %v1616_v60, 1 }
 0x476   :  { %v1610_v8 = vrot.slane %v1609_v62, 1 }
 0x477   :  { %v1618_v9 = vadd.f32 %v1617_v2, %v1616_v60 }
 0x478   :  { %v1611_v3 = vadd.f32 %v1610_v8, %v1609_v62 }
 0x479   :  { %v1620_v20 = vmul.f32 0.125, %v1618_v9 }
 0x47a   :  { %v1619_v46 = vmul.f32 0.125, %v1611_v3 }
 0x47b   :  { %v1622_v12 = vadd.f32 1e-05, %v1620_v20 }
 0x47c   :  { %v1621_v13 = vadd.f32 1e-05, %v1619_v46 }
 0x47d   :  { %2364 = vrsqrt.f32 %v1622_v12 }
 0x47e   :  { %2366 = vrsqrt.f32 %v1621_v13 }
 0x487   :  { %v2365_v5 = vpop.eup %2364 }
 0x488   :  { %v2367_v29 = vpop.eup %2366  ;;  %v1626_v43 = vmul.f32 %v2365_v5, %v1602_v54 }
 0x489   :  { %v1625_v33 = vmul.f32 %v2367_v29, %v1601_v50 }
 0x48a   :  { %v1634_v59 = vmul.f32 %v2789_v47, %v1626_v43 }
 0x48b   :  { %v1633_v16 = vmul.f32 %v2789_v47, %v1625_v33  ;;  %v2050_v47 = vld [vmem:[%s3024_s10] ss:$0 sm:$0xff]  ;;  %s2386_s10 = smov 56  }
 0x48c   :  { %v1642_v45 = vadd.f32 %v2793_v52, %v1634_v59 }
 0x48d   :  { %v1641_v17 = vadd.f32 %v2793_v52, %v1633_v16 }
 0x48f   :  { %2210 = vmatprep.mubr.msk.f32.mxu0 %vm65_vm0, %v1641_v17 }
 0x490   :  { %2211 = vmatmul.mubr.msk.f32.vlgmr.msra.gmra.mrb[20].mxu0 %vm65_vm0, %v1642_v45 }
 0x563   :  { %v2212_v52 = vpop.f32.mrb[20].mxu0 }
 0x564   :  { %v1732_v38 = vadd.f32 %v2212_v52, %v2050_v47  ;;  %v1726_v42 = vpop.f32.mrb[21].mxu0  ;;  %v1890_v52 = vpop.permute.xlu1 %1889 }
 0x565   :  { %v1727_v25 = vadd.f32 %v2050_v47, %v1726_v42 }
 0x566   :  { %v1736_v26 = vmax.f32 %v1732_v38, 0.0 }
 0x567   :  { %v1735_v30 = vmax.f32 %v1727_v25, 0.0 }
 0x569   :  { %2229 = vmatprep.mubr.msk.f32.mxu1 %vm1752_vm10, %v1735_v30 }
 0x56a   :  { %2230 = vmatmul.mubr.msk.f32.vlgmr.msra.gmra.mrb[16].mxu1 %vm1752_vm10, %v1736_v26 }
 0x63d   :  { %v2231_v31 = vpop.f32.mrb[16].mxu1 }
 0x63e   :  { %v1831_v34 = vadd.f32 %v2231_v31, %v2053_v7  ;;  %v1825_v36 = vpop.f32.mrb[17].mxu1 }
 0x63f   :  { %v1826_v27 = vadd.f32 %v2053_v7, %v1825_v36 }
 0x640   :  { %v1835_v10 = vadd.f32 %v1831_v34, %v1642_v45 }
 0x641   :  { %v1834_v48 = vadd.f32 %v1826_v27, %v1641_v17 }
 0x642   :  { %v1843_v39 = vsel %vm65_vm0, %v1835_v10, 0.0 }
 0x643   :  { %v1844_v35 = vrot.slane %v1843_v39, 4  ;;  %v1836_v44 = vsel %vm65_vm0, %v1834_v48, 0.0 }
 0x644   :  { %v1837_v28 = vrot.slane %v1836_v44, 4 }
 0x645   :  { %v1845_v11 = vadd.f32 %v1844_v35, %v1843_v39 }
 0x646   :  { %v1838_v15 = vadd.f32 %v1837_v28, %v1836_v44 }
 0x647   :  { %v1846_v24 = vrot.slane %v1845_v11, 2 }
 0x648   :  { %v1839_v53 = vrot.slane %v1838_v15, 2 }
 0x649   :  { %v1847_v32 = vadd.f32 %v1846_v24, %v1845_v11 }
 0x64a   :  { %v1840_v51 = vadd.f32 %v1839_v53, %v1838_v15  ;;  %v1082_v53 = vrot.slane %v1068_v23, %v2836_v57 }
 0x64b   :  { %v1848_v54 = vrot.slane %v1847_v32, 1 }
 0x64c   :  { %v1841_v50 = vrot.slane %v1840_v51, 1 }
 0x64d   :  { %v1849_v56 = vadd.f32 %v1848_v54, %v1847_v32  ;;  %v1089_v54 = vpop.permute.xlu1 %1088 }
 0x64e   :  { %v1842_v58 = vadd.f32 %v1841_v50, %v1840_v51  ;;  %v1086_v51 = vcombine.high %v1082_v53, %v2380_v14  ;;  %v1116_v23 = vsel %vm1115_vm11, %v2847_v1, %v1089_v54 }
 0x64f   :  { %v1851_v40 = vmul.f32 0.125, %v1849_v56  ;;  %v1093_v56 = vpop.permute.xlu0 %1092 }
 0x650   :  { %v1850_v6 = vmul.f32 0.125, %v1842_v58 }
 0x651   :  { %v1853_v63 = vsub.f32 %v1835_v10, %v1851_v40  ;;  %v1097_v50 = vpop.permute.xlu1 %1096 }
 0x652   :  { %v1852_v37 = vsub.f32 %v1834_v48, %v1850_v6 }
 0x653   :  { %v1855_v49 = vmul.f32 %v1853_v63, %v1853_v63  ;;  %v1101_v40 = vpop.permute.xlu0 %1100 }
 0x654   :  { %v1854_v41 = vmul.f32 %v1852_v37, %v1852_v37 }
 0x655   :  { %v1863_v0 = vsel %vm65_vm0, %v1855_v49, 0.0  ;;  %v1105_v58 = vpop.permute.xlu1 %1104 }
 0x656   :  { %v1864_v4 = vrot.slane %v1863_v0, 4  ;;  %v1856_v60 = vsel %vm65_vm0, %v1854_v41, 0.0  ;;  %v1118_v41 = vsel %vm1117_vm12, %v1116_v23, %v1093_v56 }
 0x657   :  { %v1857_v62 = vrot.slane %v1856_v60, 4 }
 0x658   :  { %v1865_v2 = vadd.f32 %v1864_v4, %v1863_v0  ;;  %v1120_v0 = vsel %vm1119_vm13, %v1118_v41, %v1097_v50 }
 0x659   :  { %v1858_v8 = vadd.f32 %v1857_v62, %v1856_v60  ;;  %v1121_v1 = vsel %vm65_vm0, %v1120_v0, %v1101_v40 }
 0x65a   :  { %v1866_v9 = vrot.slane %v1865_v2, 2 }
 0x65b   :  { %v1859_v3 = vrot.slane %v1858_v8, 2 }
 0x65c   :  { %v1867_v20 = vadd.f32 %v1866_v9, %v1865_v2  ;;  %v1123_v9 = vsel %vm1122_vm15, %v1121_v1, %v1105_v58 }
 0x65d   :  { %v1860_v46 = vadd.f32 %v1859_v3, %v1858_v8 }
 0x65e   :  { %v1868_v12 = vrot.slane %v1867_v20, 1 }
 0x65f   :  { %v1861_v13 = vrot.slane %v1860_v46, 1 }
 0x660   :  { %v1869_v5 = vadd.f32 %v1868_v12, %v1867_v20 }
 0x661   :  { %v1862_v29 = vadd.f32 %v1861_v13, %v1860_v46 }
 0x662   :  { %v1871_v43 = vmul.f32 0.125, %v1869_v5 }
 0x663   :  { %v1870_v33 = vmul.f32 0.125, %v1862_v29 }
 0x664   :  { %v1873_v59 = vadd.f32 1e-05, %v1871_v43 }
 0x665   :  { %v1872_v16 = vadd.f32 1e-05, %v1870_v33 }
 0x666   :  { %2368 = vrsqrt.f32 %v1873_v59 }
 0x667   :  { %2370 = vrsqrt.f32 %v1872_v16 }
 0x670   :  { %v2369_v17 = vpop.eup %2368 }
 0x671   :  { %v2371_v45 = vpop.eup %2370  ;;  %v1877_v18 = vmul.f32 %v2369_v17, %v1853_v63 }
 0x672   :  { %v1876_v22 = vmul.f32 %v2371_v45, %v1852_v37 }
 0x673   :  { %v1885_v47 = vmul.f32 %v1882_v19, %v1877_v18 }
 0x674   :  { %v1884_v38 = vmul.f32 %v1882_v19, %v1876_v22 }
 0x675   :  { %v1893_v42 = vadd.f32 %v1890_v52, %v1885_v47 }
 0x676   :  { %v1892_v25 = vadd.f32 %v1890_v52, %v1884_v38 }
 0x677   :  { %v1916_v30 = vrot.slane %v1893_v42, %v2826_v55  ;;  %v1909_v26 = vcombine.high %v1893_v42, %v2380_v14 }
 0x678   :  { %v1901_v7 = vrot.slane %v1892_v25, %v2826_v55  ;;  %v1894_v31 = vcombine.high %v1892_v25, %v2380_v14 }
 0x679   :  { %v1923_v34 = vrot.slane %v1909_v26, %v2826_v55 }
 0x67a   :  { %v1925_v36 = vcombine.high %v1901_v7, %v1916_v30  ;;  %v1924_v27 = vcombine.low %v1901_v7, %v1916_v30  ;;  %v1908_v10 = vrot.slane %v1894_v31, %v2826_v55 }
 0x67c   :  { %v1939_v48 = vrot.slane %v1925_v36, %v2836_v57  ;;  %v1932_v39 = vrot.slane %v1924_v27, %v2836_v57  ;;  %v1940_v35 = vcombine.low %v1908_v10, %v1923_v34  ;;  %v1941_v44 = vcombine.high %v1908_v10, %v1923_v34 }
 0x67e   :  { %1965 = vrot.lane.b32.xlu1 %v1939_v48, %s2374_s29  ;;  %v1956_v28 = vcombine.high %v1932_v39, %v2380_v14  ;;  %v1948_v11 = vrot.slane %v1940_v35, %v2836_v57  ;;  %v1955_v24 = vrot.slane %v1941_v44, %v2836_v57  ;;  %v1957_v32 = vcombine.high %v1939_v48, %v2380_v14 }
 0x680   :  { %1961 = vrot.lane.b32.xlu0 %v1956_v28, %s2383_s28  ;;  %v1958_v15 = vcombine.high %v1948_v11, %v2380_v14  ;;  %v1959_v55 = vcombine.high %v1955_v24, %v2380_v14 }
 0x682   :  { %1973 = vrot.lane.b32.xlu1 %v1958_v15, %s2383_s28 }
 0x684   :  { %1977 = vrot.lane.b32.xlu0 %v1955_v24, %s2374_s29 }
 0x686   :  { %1981 = vrot.lane.b32.xlu1 %v1959_v55, %s2375_s3 }
 0x688   :  { %1969 = vrot.lane.b32.xlu0 %v1957_v32, %s2375_s3 }
 0x68a   :  { %1112 = vrot.lane.b32.xlu1 %v1086_v51, %s2386_s10 }
 0x68c   :  { %1108 = vrot.lane.b32.xlu0 %v1082_v53, %s2387_s12 }
 0x6f0   :  { %v1966_v6 = vpop.permute.xlu1 %1965 }
 0x6f2   :  { %v1962_v21 = vpop.permute.xlu0 %1961 }
 0x6f3   :  { %v1984_v14 = vsel %vm65_vm0, %v1932_v39, %v1962_v21 }
 0x6f4   :  { %v1974_v57 = vpop.permute.xlu1 %1973  ;;  %v1985_v60 = vsel %vm1752_vm10, %v1984_v14, %v1966_v6 }
 0x6f5   :  { %v1988_v61 = vsel %vm65_vm0, %v1948_v11, %v1974_v57 }
 0x6f6   :  { %v1978_v63 = vpop.permute.xlu0 %1977 }
 0x6f7   :  { %v1989_v37 = vsel %vm1752_vm10, %v1988_v61, %v1978_v63 }
 0x6f8   :  { %v1982_v49 = vpop.permute.xlu1 %1981 }
 0x6f9   :  { %v1990_v62 = vsel %vm1986_vm14, %v1989_v37, %v1982_v49 }
 0x6fa   :  { %v1970_v4 = vpop.permute.xlu0 %1969 }
 0x6fb   :  { %v1987_v2 = vsel %vm1986_vm14, %v1985_v60, %v1970_v4 }
 0x6fc   :  { %v1993_v8 = vcombine.low %v1987_v2, %v1990_v62  ;;  %v1113_v20 = vpop.permute.xlu1 %1112 }
 0x6fe   :  { %2056 = vst.sshfl [vmem:[%s3026_s15] sm:$0x33 pattern:$0x76325410] %v1993_v8  ;;  %v1109_v3 = vpop.permute.xlu0 %1108 }
 0x6ff   :  { %v1125_v46 = vsel %vm1124_vm1, %v1123_v9, %v1109_v3 }
 0x700   :  { %v1127_v12 = vsel %vm1126_vm2, %v1125_v46, %v1113_v20 }
 0x701   :  { %1129 = vst.msk [vmem:[%s3027_s16] sm:$0x3] %vm1128_vm3, %v1127_v12 }

// kernel: sparse_encoder_layer.1
= control target key start
LH: loop header
LB: loop body
LE: loop exit
PB: predicated region body
PF: predicated region fallthrough
CT: control target
= control target key end

     0   :  { %s2762_s0 = inlined_call_operand.vmem [shape: f32[2,8,32], index: 0, kind: input, shape index: {}]   ;;  %s2763_s1 = inlined_call_operand.vmem [shape: f32[32,96], index: 1, kind: input, shape index: {}]   ;;  %s2764_s2 = inlined_call_operand.vmem [shape: f32[1,96], index: 2, kind: input, shape index: {}]   ;;  %s2765_s3 = inlined_call_operand.vmem [shape: f32[32,4], index: 3, kind: input, shape index: {}]   ;;  %s2766_s4 = inlined_call_operand.vmem [shape: f32[4,32], index: 4, kind: input, shape index: {}]   ;;  %s2767_s5 = inlined_call_operand.vmem [shape: f32[32,32], index: 5, kind: input, shape index: {}]   ;;  %s2768_s6 = inlined_call_operand.vmem [shape: f32[1,32], index: 6, kind: input, shape index: {}]   ;;  %s2769_s7 = inlined_call_operand.vmem [shape: f32[8,1], index: 7, kind: input, shape index: {}]   ;;  %s2770_s8 = inlined_call_operand.vmem [shape: f32[8,1], index: 8, kind: input, shape index: {}]   ;;  %s2771_s9 = inlined_call_operand.vmem [shape: f32[32,64], index: 9, kind: input, shape index: {}]   ;;  %s2772_s10 = inlined_call_operand.vmem [shape: f32[1,64], index: 10, kind: input, shape index: {}]   ;;  %s2773_s11 = inlined_call_operand.vmem [shape: f32[64,32], index: 11, kind: input, shape index: {}]   ;;  %s2774_s12 = inlined_call_operand.vmem [shape: f32[1,32], index: 12, kind: input, shape index: {}]   ;;  %s2775_s13 = inlined_call_operand.vmem [shape: f32[8,1], index: 13, kind: input, shape index: {}]   ;;  %s2776_s14 = inlined_call_operand.vmem [shape: f32[8,1], index: 14, kind: input, shape index: {}]   ;;  %s2777_s15 = inlined_call_operand.vmem [shape: f32[2,8,32], index: 15, kind: output, shape index: {0}]   ;;  %s2778_s16 = inlined_call_operand.hbm [shape: f32[2,8,8], index: 16, kind: output, shape index: {1}]  }
   0x1   :  { %2780 = sst [smem:[#allocation5_spill]] %s2762_s0 }
   0x2   :  { %v55_v0 = vld [vmem:[%s2763_s1] sm:$0xff]  ;;  %v56_v1 = vld [vmem:[%s2763_s1 + $0x8] sm:$0xff]  ;;  %v57_v2 = vld [vmem:[%s2763_s1 + $0x10] sm:$0xff]  ;;  %vm66_vm0 = vcmask 261120   ;;  %s2781_s0 = sld [smem:[#allocation5_spill]] }
   0x3   :  { %v2031_v3 = vpack.c.bf16 %v56_v1, %v55_v0  ;;  %v58_v4 = vld [vmem:[%s2763_s1 + $0x18] sm:$0xff] }
   0x4   :  { %v2035_v6 = vpack.c.bf16 %v58_v4, %v57_v2 }
   0x8   :  { %v53_v5 = vld [vmem:[%s2781_s0] sm:$0xff] }
   0x9   :  { %1929 = vmatprep.mubr.msk.f32.mxu0 %vm66_vm0, %v53_v5 }
   0xa   :  { %22 = vsyncpa [#allocation3], 0  ;;  %2032 = vmatprep.subr.bf16.mxu0 %v2031_v3  ;;  %v54_v7 = vld [vmem:[%s2781_s0 + $0x8] sm:$0xff]  ;;  %v154_v8 = vlaneseq  ;;  %v350_v11 = vld [vmem:[%s2765_s3] sm:$0xff]  ;;  %s2190_s28 = smov 64   ;;  %s2191_s29 = smov 96  }
   0xb   :  { %2034 = vmatpush3.bf16.msra.mxu0 %v2031_v3  ;;  %v351_v12 = vld [vmem:[%s2765_s3 + $0x8] sm:$0xff]  ;;  %v352_v13 = vld [vmem:[%s2765_s3 + $0x10] sm:$0xff]  ;;  %v353_v16 = vld [vmem:[%s2765_s3 + $0x18] sm:$0xff]  ;;  %v2192_v23 = vmov 1966171168   ;;  %vm1074_vm1 = vcmask 1043456  }
   0xc   :  { %2036 = vmatprep.subr.bf16.mxu0 %v2035_v6  ;;  %v155_v9 = vshrl.u32 %v154_v8, 7  ;;  %v934_v10 = vand.u32 127, %v154_v8  ;;  %v2039_v15 = vpack.c.bf16 %v351_v12, %v350_v11  ;;  %v2043_v17 = vpack.c.bf16 %v353_v16, %v352_v13  ;;  %v1811_v18 = vld [vmem:[%s2764_s2] ss:$0 sm:$0xff]  ;;  %s2194_s3 = smov [#allocation2]  }
   0xd   :  { %v152_v24 = vunpack.c.l.s4 %v2192_v23  ;;  %vm547_vm2 = vcmask 31744   ;;  %vm999_vm3 = vcmask 1041409   ;;  %vm1001_vm4 = vcmask 1042434   ;;  %s1798_s30 = sshll.u32 %s2194_s3, 4  ;;  %s1799_s30 = int_to_ptr.vmem [resolvable:$true] %s1798_s30 }
   0xe   :  { %v2311_v14 = vsub.s32 %v934_v10, %v155_v9  ;;  %2079 = vmatprep.subr.bf16.mxu1 %v2039_v15  ;;  %v2319_v33 = vsub.s32 0, %v155_v9  ;;  %vm1003_vm5 = vcmask 1043459   ;;  %vm1005_vm6 = vcmask 1044484   ;;  %p2171_p1 = scmp.lt.s32.totalorder %s1799_s30, %s1799_s30 }
   0xf   :  { %2038 = vmatpush3.bf16.msra.mxu0 %v2035_v6  ;;  %2081 = vmatpush3.bf16.msra.mxu1 %v2039_v15  ;;  %v153_v25 = vunpack.c.0.s8 %v152_v24  ;;  %vm1007_vm7 = vcmask 1045509   ;;  %vm1009_vm8 = vcmask 1046534   ;;  %vm1011_vm9 = vcmask 1047559  }
  0x10   :  { %2040 = vmatprep.subr.bf16.mxu0 %v2039_v15  ;;  %2080 = vmatprep.subr.bf16.mxu1 %v2043_v17  ;;  %vm1022_vm10 = vcmask 64512   ;;  %vm1647_vm11 = vcmask 523264  }
  0x11   :  { %v156_v26 = vsub.s32 %v153_v25, %v155_v9  ;;  %v2193_v25 = vmov 0  }
  0x12   :  { %1930 = vmatmul.mubr.msk.f32.vlgmr.msra.gmra.mrb[0].mxu0 %vm66_vm0, %v54_v7  ;;  %2091 = vset.pattern.permute.xlu1 %v2193_v25 }
  0x13   :  { %2042 = vmatpush3.bf16.msra.mxu0 %v2039_v15  ;;  %2082 = vmatpush3.bf16.msra.mxu1 %v2043_v17 }
  0x14   :  { %2044 = vmatprep.subr.bf16.mxu0 %v2043_v17  ;;  %2090 = vset.pattern.permute.xlu0 %v2193_v25 }
  0x17   :  { %2046 = vmatpush3.bf16.msra.mxu0 %v2043_v17 }
  0xe5   :  { %v1931_v19 = vpop.f32.mrb[0].mxu0 }
  0xe6   :  { %v139_v20 = vpop.f32.mrb[1].mxu0  ;;  %v145_v22 = vadd.f32 %v1931_v19, %v1811_v18 }
  0xe7   :  { %v140_v21 = vadd.f32 %v1811_v18, %v139_v20 }
  0xe8   :  { %v206_v42 = vrot.slane %v145_v22, %v156_v26  ;;  %v199_v51 = vcombine.high %v145_v22, %v145_v22 }
  0xe9   :  { %1223 = vrot.lane.b32.xlu1 %v140_v21, %s2190_s28  ;;  %328 = vrot.lane.b32.xlu0 %v140_v21, %s2191_s29  ;;  %v157_v27 = vrot.slane %v140_v21, %v156_v26  ;;  %v150_v29 = vcombine.high %v140_v21, %v140_v21 }
  0xea   :  { %v214_v53 = vcombine.high %v206_v42, %v206_v42  ;;  %v222_v56 = vrot.slane %v206_v42, %v156_v26  ;;  %v213_v60 = vrot.slane %v199_v51, %v156_v26 }
  0xeb   :  { %v165_v28 = vcombine.high %v157_v27, %v157_v27  ;;  %v173_v30 = vrot.slane %v157_v27, %v156_v26  ;;  %v164_v32 = vrot.slane %v150_v29, %v156_v26  ;;  %v1522_v27 = vld [vmem:[%s2769_s7] sm:$0xff] }
  0xec   :  { %v236_v63 = vrot.slane %v214_v53, %v156_v26  ;;  %v283_v0 = vrot.slane %v222_v56, %v2319_v33  ;;  %v244_v1 = vcombine.high %v222_v56, %v222_v56  ;;  %v215_v4 = vcombine.high %v213_v60, %v213_v60 }
  0xed   :  { %1225 = vrot.lane.b32.xlu1 %v145_v22, %s2190_s28  ;;  %330 = vrot.lane.b32.xlu0 %v145_v22, %s2191_s29  ;;  %v187_v31 = vrot.slane %v165_v28, %v156_v26  ;;  %v195_v34 = vcombine.high %v173_v30, %v173_v30  ;;  %v166_v36 = vcombine.high %v164_v32, %v164_v32  ;;  %v1025_v28 = vld [vmem:[%s2766_s4] sm:$0xf] }
  0xee   :  { %v180_v37 = vrot.slane %v164_v32, %v156_v26  ;;  %v251_v38 = vrot.slane %v173_v30, %v2319_v33  ;;  %v287_v5 = vrot.slane %v236_v63, %v2319_v33  ;;  %v246_v6 = vcombine.high %v236_v63, %v236_v63  ;;  %1964 = vmatprep.subr.msk.mxu0 %vm1074_vm1, %v1025_v28 }
  0xef   :  { %v197_v35 = vcombine.high %v187_v31, %v187_v31  ;;  %v259_v39 = vrot.slane %v195_v34, %v2319_v33  ;;  %v255_v40 = vrot.slane %v187_v31, %v2319_v33  ;;  %v194_v45 = vrot.slane %v166_v36, %v156_v26 }
  0xf0   :  { %v267_v44 = vrot.slane %v180_v37, %v2319_v33  ;;  %v196_v46 = vcombine.high %v180_v37, %v180_v37  ;;  %v291_v7 = vrot.slane %v244_v1, %v2319_v33  ;;  %v229_v8 = vrot.slane %v213_v60, %v156_v26 }
  0xf1   :  { %v263_v41 = vrot.slane %v197_v35, %v2319_v33  ;;  %v271_v54 = vrot.slane %v194_v45, %v2319_v33  ;;  %v198_v55 = vcombine.high %v194_v45, %v194_v45  ;;  %v295_v11 = vrot.slane %v246_v6, %v2319_v33  ;;  %1525 = vperm.xlu0 %2090, %v1522_v27  }
  0xf2   :  { %v275_v57 = vrot.slane %v196_v46, %v2319_v33  ;;  %v243_v12 = vrot.slane %v215_v4, %v156_v26  ;;  %v299_v13 = vrot.slane %v229_v8, %v2319_v33  ;;  %v245_v15 = vcombine.high %v229_v8, %v229_v8  ;;  %v1530_v26 = vld [vmem:[%s2770_s8] sm:$0xff] }
  0xf3   :  { %v279_v62 = vrot.slane %v198_v55, %v2319_v33  ;;  %1533 = vperm.xlu1 %2091, %v1530_v26  }
  0xf4   :  { %v303_v18 = vrot.slane %v243_v12, %v2319_v33  ;;  %v247_v19 = vcombine.high %v243_v12, %v243_v12  ;;  %v307_v20 = vrot.slane %v245_v15, %v2319_v33 }
  0xf6   :  { %v311_v23 = vrot.slane %v247_v19, %v2319_v33 }
 0x15b   :  { %v329_v43 = vpop.permute.xlu0 %328 }
 0x15c   :  { %v334_v47 = vmul.f32 %v329_v43, %v251_v38  ;;  %v336_v48 = vmul.f32 %v329_v43, %v259_v39  ;;  %v335_v49 = vmul.f32 %v329_v43, %v255_v40  ;;  %v337_v50 = vmul.f32 %v329_v43, %v263_v41 }
 0x15d   :  { %v338_v52 = vmul.f32 %v329_v43, %v267_v44  ;;  %v339_v58 = vmul.f32 %v329_v43, %v271_v54  ;;  %v340_v59 = vmul.f32 %v329_v43, %v275_v57  ;;  %v341_v2 = vmul.f32 %v329_v43, %v279_v62 }
 0x15e   :  { %1940 = vmatprep.mubr.msk.f32.mxu0 %vm66_vm0, %v334_v47  ;;  %1943 = vmatprep.mubr.msk.f32.mxu1 %vm66_vm0, %v336_v48 }
 0x15f   :  { %1941 = vmatmul.mubr.msk.f32.vlgmr.msra.gmra.mrb[2].mxu0 %vm66_vm0, %v335_v49  ;;  %1944 = vmatmul.mubr.msk.f32.vlgmr.msra.gmra.mrb[0].mxu1 %vm66_vm0, %v337_v50  ;;  %v331_v61 = vpop.permute.xlu0 %330 }
 0x160   :  { %1946 = vmatprep.mubr.msk.f32.mxu1 %vm66_vm0, %v338_v52  ;;  %v342_v3 = vmul.f32 %v331_v61, %v283_v0  ;;  %v343_v9 = vmul.f32 %v331_v61, %v287_v5  ;;  %v344_v10 = vmul.f32 %v331_v61, %v291_v7  ;;  %v345_v16 = vmul.f32 %v331_v61, %v295_v11 }
 0x161   :  { %v346_v17 = vmul.f32 %v331_v61, %v299_v13  ;;  %v347_v21 = vmul.f32 %v331_v61, %v303_v18  ;;  %v348_v22 = vmul.f32 %v331_v61, %v307_v20  ;;  %v349_v24 = vmul.f32 %v331_v61, %v311_v23  ;;  %1965 = vmatpush3.msk.msra.mxu0 %vm1074_vm1, %v1025_v28 }
 0x163   :  { %1947 = vmatmul.mubr.msk.f32.gmra.mrb[2].mxu1 %vm66_vm0, %v339_v58 }
 0x164   :  { %1949 = vmatprep.mubr.msk.f32.mxu1 %vm66_vm0, %v340_v59 }
 0x167   :  { %1950 = vmatmul.mubr.msk.f32.gmra.mrb[4].mxu1 %vm66_vm0, %v341_v2 }
 0x168   :  { %1952 = vmatprep.mubr.msk.f32.mxu1 %vm66_vm0, %v342_v3 }
 0x16b   :  { %1953 = vmatmul.mubr.msk.f32.gmra.mrb[6].mxu1 %vm66_vm0, %v343_v9 }
 0x16c   :  { %1955 = vmatprep.mubr.msk.f32.mxu1 %vm66_vm0, %v344_v10 }
 0x16f   :  { %1956 = vmatmul.mubr.msk.f32.gmra.mrb[8].mxu1 %vm66_vm0, %v345_v16 }
 0x170   :  { %1958 = vmatprep.mubr.msk.f32.mxu1 %vm66_vm0, %v346_v17 }
 0x173   :  { %1959 = vmatmul.mubr.msk.f32.gmra.mrb[10].mxu1 %vm66_vm0, %v347_v21 }
 0x174   :  { %1961 = vmatprep.mubr.msk.f32.mxu1 %vm66_vm0, %v348_v22 }
 0x177   :  { %1962 = vmatmul.mubr.msk.f32.gmra.mrb[12].mxu1 %vm66_vm0, %v349_v24 }
 0x232   :  { %v1942_v29 = vpop.f32.mrb[2].mxu0  ;;  %v1945_v30 = vpop.f32.mrb[0].mxu1 }
 0x233   :  { %v555_v31 = vsel %vm547_vm2, %v1942_v29, -inf  ;;  %v569_v32 = vsel %vm547_vm2, %v1945_v30, -inf  ;;  %v468_v33 = vpop.f32.mrb[3].mxu0  ;;  %v478_v34 = vpop.f32.mrb[1].mxu1 }
 0x234   :  { %v556_v35 = vrot.slane %v555_v31, 4  ;;  %v570_v36 = vrot.slane %v569_v32, 4  ;;  %v548_v37 = vsel %vm547_vm2, %v468_v33, -inf  ;;  %v562_v38 = vsel %vm547_vm2, %v478_v34, -inf }
 0x235   :  { %v549_v39 = vrot.slane %v548_v37, 4  ;;  %v563_v40 = vrot.slane %v562_v38, 4 }
 0x236   :  { %v557_v41 = vmax.f32 %v555_v31, %v556_v35  ;;  %v571_v42 = vmax.f32 %v569_v32, %v570_v36  ;;  %v2366_v43 = vpop.f32.mrb[2].mxu1 }
 0x237   :  { %v550_v44 = vmax.f32 %v548_v37, %v549_v39  ;;  %v564_v45 = vmax.f32 %v562_v38, %v563_v40  ;;  %v583_v46 = vsel %vm547_vm2, %v2366_v43, -inf  ;;  %v2370_v47 = vpop.f32.mrb[3].mxu1 }
 0x238   :  { %v558_v48 = vrot.slane %v557_v41, 2  ;;  %v572_v49 = vrot.slane %v571_v42, 2  ;;  %v584_v50 = vrot.slane %v583_v46, 4  ;;  %v576_v51 = vsel %vm547_vm2, %v2370_v47, -inf }
 0x239   :  { %v551_v52 = vrot.slane %v550_v44, 2  ;;  %v565_v53 = vrot.slane %v564_v45, 2  ;;  %v577_v54 = vrot.slane %v576_v51, 4 }
 0x23a   :  { %v559_v55 = vmax.f32 %v557_v41, %v558_v48  ;;  %v573_v56 = vmax.f32 %v571_v42, %v572_v49  ;;  %v585_v57 = vmax.f32 %v583_v46, %v584_v50  ;;  %v2374_v58 = vpop.f32.mrb[4].mxu1 }
 0x23b   :  { %v552_v59 = vmax.f32 %v550_v44, %v551_v52  ;;  %v566_v60 = vmax.f32 %v564_v45, %v565_v53  ;;  %v578_v61 = vmax.f32 %v576_v51, %v577_v54  ;;  %v597_v62 = vsel %vm547_vm2, %v2374_v58, -inf  ;;  %v2378_v63 = vpop.f32.mrb[5].mxu1 }
 0x23c   :  { %v560_v0 = vrot.slane %v559_v55, 1  ;;  %v574_v1 = vrot.slane %v573_v56, 1  ;;  %v586_v2 = vrot.slane %v585_v57, 2  ;;  %v598_v3 = vrot.slane %v597_v62, 4 }
 0x23d   :  { %v553_v4 = vrot.slane %v552_v59, 1  ;;  %v567_v5 = vrot.slane %v566_v60, 1  ;;  %v579_v6 = vrot.slane %v578_v61, 2  ;;  %v590_v7 = vsel %vm547_vm2, %v2378_v63, -inf }
 0x23e   :  { %v561_v8 = vmax.f32 %v559_v55, %v560_v0  ;;  %v575_v9 = vmax.f32 %v573_v56, %v574_v1  ;;  %v587_v10 = vmax.f32 %v585_v57, %v586_v2  ;;  %v599_v11 = vmax.f32 %v597_v62, %v598_v3  ;;  %v2382_v12 = vpop.f32.mrb[6].mxu1 }
 0x23f   :  { %v554_v13 = vmax.f32 %v552_v59, %v553_v4  ;;  %v568_v15 = vmax.f32 %v566_v60, %v567_v5  ;;  %v580_v16 = vmax.f32 %v578_v61, %v579_v6  ;;  %v591_v17 = vrot.slane %v590_v7, 4  ;;  %v2384_v18 = vpop.f32.mrb[7].mxu1 }
 0x240   :  { %v661_v19 = vsub.f32 %v1942_v29, %v561_v8  ;;  %v663_v20 = vsub.f32 %v1945_v30, %v575_v9  ;;  %v588_v21 = vrot.slane %v587_v10, 1  ;;  %v600_v22 = vrot.slane %v599_v11, 2 }
 0x241   :  { %v660_v23 = vsub.f32 %v468_v33, %v554_v13  ;;  %v662_v24 = vsub.f32 %v478_v34, %v568_v15  ;;  %v581_v25 = vrot.slane %v580_v16, 1  ;;  %v592_v26 = vmax.f32 %v590_v7, %v591_v17 }
 0x242   :  { %v678_v27 = vmul.f32 1.442695, %v661_v19  ;;  %v682_v28 = vmul.f32 1.442695, %v663_v20  ;;  %v589_v31 = vmax.f32 %v587_v10, %v588_v21  ;;  %v601_v32 = vmax.f32 %v599_v11, %v600_v22  ;;  %v2386_v35 = vpop.f32.mrb[8].mxu1 }
 0x243   :  { %v676_v36 = vmul.f32 1.442695, %v660_v23  ;;  %v680_v37 = vmul.f32 1.442695, %v662_v24  ;;  %v582_v38 = vmax.f32 %v580_v16, %v581_v25  ;;  %v593_v39 = vrot.slane %v592_v26, 2  ;;  %v2388_v40 = vpop.f32.mrb[9].mxu1 }
 0x244   :  { %2092 = vpow2.f32 %v678_v27  ;;  %v665_v29 = vsub.f32 %v2366_v43, %v589_v31  ;;  %v602_v30 = vrot.slane %v601_v32, 1  ;;  %v611_v33 = vsel %vm547_vm2, %v2382_v12, -inf }
 0x245   :  { %2094 = vpow2.f32 %v682_v28  ;;  %v664_v34 = vsub.f32 %v2370_v47, %v582_v38  ;;  %v594_v41 = vmax.f32 %v592_v26, %v593_v39  ;;  %v612_v42 = vrot.slane %v611_v33, 4 }
 0x246   :  { %2096 = vpow2.f32 %v676_v36  ;;  %v686_v44 = vmul.f32 1.442695, %v665_v29  ;;  %v603_v45 = vmax.f32 %v601_v32, %v602_v30  ;;  %v604_v46 = vsel %vm547_vm2, %v2384_v18, -inf  ;;  %v2396_v48 = vpop.f32.mrb[10].mxu1 }
 0x247   :  { %2098 = vpow2.f32 %v680_v37  ;;  %v684_v49 = vmul.f32 1.442695, %v664_v34  ;;  %v595_v43 = vrot.slane %v594_v41, 1  ;;  %v613_v50 = vmax.f32 %v611_v33, %v612_v42  ;;  %v2398_v51 = vpop.f32.mrb[11].mxu1 }
 0x248   :  { %2100 = vpow2.f32 %v686_v44  ;;  %v667_v52 = vsub.f32 %v2374_v58, %v603_v45  ;;  %v605_v47 = vrot.slane %v604_v46, 4  ;;  %v625_v53 = vsel %vm547_vm2, %v2386_v35, -inf }
 0x249   :  { %2102 = vpow2.f32 %v684_v49  ;;  %v596_v54 = vmax.f32 %v594_v41, %v595_v43  ;;  %v614_v55 = vrot.slane %v613_v50, 2  ;;  %v626_v56 = vrot.slane %v625_v53, 4 }
 0x24a   :  { %v690_v57 = vmul.f32 1.442695, %v667_v52  ;;  %v606_v59 = vmax.f32 %v604_v46, %v605_v47  ;;  %v618_v60 = vsel %vm547_vm2, %v2388_v40, -inf  ;;  %v639_v61 = vsel %vm547_vm2, %v2396_v48, -inf  ;;  %v2407_v62 = vpop.f32.mrb[12].mxu1 }
 0x24b   :  { %v666_v58 = vsub.f32 %v2378_v63, %v596_v54  ;;  %v615_v0 = vmax.f32 %v613_v50, %v614_v55  ;;  %v627_v1 = vmax.f32 %v625_v53, %v626_v56  ;;  %v619_v2 = vrot.slane %v618_v60, 4  ;;  %v2410_v3 = vpop.f32.mrb[13].mxu1 }
 0x24c   :  { %2104 = vpow2.f32 %v690_v57  ;;  %v607_v4 = vrot.slane %v606_v59, 2  ;;  %v640_v5 = vrot.slane %v639_v61, 4  ;;  %v2414_v6 = vsel %vm547_vm2, %v2398_v51, -inf }
 0x24d   :  { %v688_v7 = vmul.f32 1.442695, %v666_v58  ;;  %v616_v8 = vrot.slane %v615_v0, 1  ;;  %v628_v9 = vrot.slane %v627_v1, 2  ;;  %v620_v13 = vmax.f32 %v618_v60, %v619_v2 }
 0x24e   :  { %v2416_v10 = vpop.eup %2092  ;;  %v608_v11 = vmax.f32 %v606_v59, %v607_v4  ;;  %v2418_v63 = vmax.f32 %v639_v61, %v640_v5  ;;  %v633_v15 = vrot.slane %v2414_v6, 4  ;;  %v2431_v25 = vsel %vm547_vm2, %v2407_v62, -inf }
 0x24f   :  { %v2421_v16 = vpop.eup %2094  ;;  %v715_v17 = vsel %vm547_vm2, %v2416_v10, 0.0  ;;  %2106 = vpow2.f32 %v688_v7  ;;  %v617_v19 = vmax.f32 %v615_v0, %v616_v8  ;;  %v629_v20 = vmax.f32 %v627_v1, %v628_v9 }
 0x250   :  { %v2425_v21 = vpop.eup %2096  ;;  %v716_v22 = vrot.slane %v715_v17, 4  ;;  %v729_v23 = vsel %vm547_vm2, %v2421_v16, 0.0  ;;  %v609_v24 = vrot.slane %v608_v11, 1  ;;  %v621_v42 = vrot.slane %v620_v13, 2 }
 0x251   :  { %v2433_v26 = vpop.eup %2098  ;;  %v730_v27 = vrot.slane %v729_v23, 4  ;;  %v708_v28 = vsel %vm547_vm2, %v2425_v21, 0.0  ;;  %v669_v31 = vsub.f32 %v2382_v12, %v617_v19  ;;  %v630_v32 = vrot.slane %v629_v20, 1 }
 0x252   :  { %v2438_v36 = vpop.eup %2100  ;;  %v2440_v37 = vadd.f32 %v716_v22, %v715_v17  ;;  %v709_v38 = vrot.slane %v708_v28, 4  ;;  %v722_v39 = vsel %vm547_vm2, %v2433_v26, 0.0  ;;  %v610_v29 = vmax.f32 %v608_v11, %v609_v24 }
 0x253   :  { %v2444_v30 = vpop.eup %2102  ;;  %v723_v33 = vrot.slane %v722_v39, 4  ;;  %v743_v34 = vsel %vm547_vm2, %v2438_v36, 0.0  ;;  %v694_v41 = vmul.f32 1.442695, %v669_v31  ;;  %v2448_v44 = vadd.f32 %v730_v27, %v729_v23 }
 0x254   :  { %v710_v12 = vadd.f32 %v709_v38, %v708_v28  ;;  %v744_v45 = vrot.slane %v743_v34, 4  ;;  %v736_v46 = vsel %vm547_vm2, %v2444_v30, 0.0  ;;  %v718_v49 = vrot.slane %v2440_v37, 2 }
 0x255   :  { %v724_v43 = vadd.f32 %v723_v33, %v722_v39  ;;  %v737_v50 = vrot.slane %v736_v46, 4  ;;  %2108 = vpow2.f32 %v694_v41  ;;  %v668_v54 = vsub.f32 %v2384_v18, %v610_v29 }
 0x256   :  { %v2453_v52 = vpop.eup %2104  ;;  %v711_v47 = vrot.slane %v710_v12, 2  ;;  %v745_v53 = vadd.f32 %v744_v45, %v743_v34  ;;  %v631_v55 = vmax.f32 %v629_v20, %v630_v32  ;;  %v622_v60 = vmax.f32 %v620_v13, %v621_v42 }
 0x257   :  { %v725_v56 = vrot.slane %v724_v43, 2  ;;  %v738_v57 = vadd.f32 %v737_v50, %v736_v46  ;;  %v757_v59 = vsel %vm547_vm2, %v2453_v52, 0.0  ;;  %v692_v1 = vmul.f32 1.442695, %v668_v54 }
 0x258   :  { %v712_v61 = vadd.f32 %v711_v47, %v710_v12  ;;  %v746_v58 = vrot.slane %v745_v53, 2  ;;  %v758_v0 = vrot.slane %v757_v59, 4  ;;  %v671_v7 = vsub.f32 %v2386_v35, %v631_v55 }
 0x259   :  { %v2458_v2 = vpop.eup %2106  ;;  %v726_v4 = vadd.f32 %v725_v56, %v724_v43  ;;  %v739_v5 = vrot.slane %v738_v57, 2  ;;  %v623_v8 = vrot.slane %v622_v60, 1  ;;  %2110 = vpow2.f32 %v692_v1 }
 0x25a   :  { %v713_v9 = vrot.slane %v712_v61, 1  ;;  %v747_v18 = vadd.f32 %v746_v58, %v745_v53  ;;  %v759_v11 = vadd.f32 %v758_v0, %v757_v59  ;;  %v750_v17 = vsel %vm547_vm2, %v2458_v2, 0.0 }
 0x25b   :  { %v727_v19 = vrot.slane %v726_v4, 1  ;;  %v740_v20 = vadd.f32 %v739_v5, %v738_v57  ;;  %v751_v13 = vrot.slane %v750_v17, 4  ;;  %v732_v22 = vrot.slane %v2448_v44, 2 }
 0x25c   :  { %v748_v23 = vrot.slane %v747_v18, 1  ;;  %v760_v24 = vrot.slane %v759_v11, 2  ;;  %v698_v27 = vmul.f32 1.442695, %v671_v7  ;;  %v714_v28 = vadd.f32 %v713_v9, %v712_v61 }
 0x25d   :  { %v741_v31 = vrot.slane %v740_v20, 1  ;;  %v752_v32 = vadd.f32 %v751_v13, %v750_v17  ;;  %v624_v35 = vmax.f32 %v622_v60, %v623_v8  ;;  %v728_v38 = vadd.f32 %v727_v19, %v726_v4 }
 0x25e   :  { %v2464_v39 = vadd.f32 %v760_v24, %v759_v11  ;;  %2112 = vpow2.f32 %v698_v27  ;;  %v642_v29 = vrot.slane %v2418_v63, 2  ;;  %v2469_v34 = vadd.f32 %v748_v23, %v747_v18 }
 0x25f   :  { %v2467_v33 = vpop.eup %2108  ;;  %v753_v41 = vrot.slane %v752_v32, 2  ;;  %v670_v42 = vsub.f32 %v2388_v40, %v624_v35  ;;  %v634_v12 = vmax.f32 %v2414_v6, %v633_v15  ;;  %v742_v45 = vadd.f32 %v741_v31, %v740_v20 }
 0x260   :  { %v771_v46 = vsel %vm547_vm2, %v2467_v33, 0.0  ;;  %v643_v43 = vmax.f32 %v2418_v63, %v642_v29  ;;  %v654_v50 = vrot.slane %v2431_v25, 4  ;;  %v762_v56 = vrot.slane %v2464_v39, 1 }
 0x261   :  { %v754_v47 = vadd.f32 %v753_v41, %v752_v32  ;;  %v772_v53 = vrot.slane %v771_v46, 4  ;;  %v696_v54 = vmul.f32 1.442695, %v670_v42  ;;  %v635_v55 = vrot.slane %v634_v12, 2 }
 0x262   :  { %v644_v57 = vrot.slane %v643_v43, 1  ;;  %v655_v40 = vmax.f32 %v2431_v25, %v654_v50  ;;  %v646_v6 = vsel %vm547_vm2, %v2410_v3, -inf  ;;  %v719_v0 = vadd.f32 %v718_v49, %v2440_v37 }
 0x263   :  { %v755_v15 = vrot.slane %v754_v47, 1  ;;  %v773_v59 = vadd.f32 %v772_v53, %v771_v46  ;;  %2114 = vpow2.f32 %v696_v54  ;;  %v636_v60 = vmax.f32 %v634_v12, %v635_v55  ;;  %v2486_v1 = vpop.eup %2110 }
 0x264   :  { %v645_v61 = vmax.f32 %v643_v43, %v644_v57  ;;  %v656_v63 = vrot.slane %v655_v40, 2  ;;  %v647_v58 = vrot.slane %v646_v6, 4  ;;  %2116 = vrcp.f32 %v714_v28 }
 0x265   :  { %v756_v4 = vadd.f32 %v755_v15, %v754_v47  ;;  %v774_v5 = vrot.slane %v773_v59, 2  ;;  %v637_v7 = vrot.slane %v636_v60, 1  ;;  %v764_v25 = vsel %vm547_vm2, %v2486_v1, 0.0 }
 0x266   :  { %v673_v8 = vsub.f32 %v2396_v48, %v645_v61  ;;  %v657_v9 = vmax.f32 %v655_v40, %v656_v63  ;;  %v648_v18 = vmax.f32 %v646_v6, %v647_v58  ;;  %v765_v11 = vrot.slane %v764_v25, 4 }
 0x267   :  { %v638_v17 = vmax.f32 %v636_v60, %v637_v7  ;;  %v720_v19 = vrot.slane %v719_v0, 1  ;;  %2118 = vrcp.f32 %v728_v38  ;;  %v733_v23 = vadd.f32 %v732_v22, %v2448_v44 }
 0x268   :  { %v2491_v20 = vpop.eup %2112  ;;  %v702_v37 = vmul.f32 1.442695, %v673_v8  ;;  %v658_v49 = vrot.slane %v657_v9, 1  ;;  %v649_v13 = vrot.slane %v648_v18, 2  ;;  %v766_v24 = vadd.f32 %v765_v11, %v764_v25 }
 0x269   :  { %v785_v27 = vsel %vm547_vm2, %v2491_v20, 0.0  ;;  %v672_v28 = vsub.f32 %v2398_v51, %v638_v17  ;;  %v721_v48 = vadd.f32 %v720_v19, %v719_v0  ;;  %v734_v41 = vrot.slane %v733_v23, 1 }
 0x26a   :  { %v786_v31 = vrot.slane %v785_v27, 4  ;;  %2120 = vpow2.f32 %v702_v37  ;;  %v659_v32 = vmax.f32 %v657_v9, %v658_v49  ;;  %v650_v35 = vmax.f32 %v648_v18, %v649_v13 }
 0x26b   :  { %v767_v29 = vrot.slane %v766_v24, 2  ;;  %v700_v38 = vmul.f32 1.442695, %v672_v28  ;;  %2122 = vrcp.f32 %v721_v48  ;;  %v735_v43 = vadd.f32 %v734_v41, %v733_v23 }
 0x26c   :  { %v787_v42 = vadd.f32 %v786_v31, %v785_v27  ;;  %v675_v12 = vsub.f32 %v2407_v62, %v659_v32  ;;  %v651_v46 = vrot.slane %v650_v35, 1  ;;  %2124 = vrcp.f32 %v742_v45 }
 0x26d   :  { %v2498_v44 = vpop.eup %2114  ;;  %v768_v22 = vadd.f32 %v767_v29, %v766_v24  ;;  %2126 = vpow2.f32 %v700_v38  ;;  %v775_v51 = vadd.f32 %v774_v5, %v773_v59  ;;  %v763_v59 = vadd.f32 %v762_v56, %v2464_v39 }
 0x26e   :  { %v788_v50 = vrot.slane %v787_v42, 2  ;;  %v778_v47 = vsel %vm547_vm2, %v2498_v44, 0.0  ;;  %v706_v53 = vmul.f32 1.442695, %v675_v12  ;;  %v652_v54 = vmax.f32 %v650_v35, %v651_v46  ;;  %v2117_v55 = vpop.eup %2116 }
 0x26f   :  { %v769_v57 = vrot.slane %v768_v22, 1  ;;  %v779_v40 = vrot.slane %v778_v47, 4  ;;  %2128 = vrcp.f32 %v735_v43  ;;  %v776_v6 = vrot.slane %v775_v51, 1 }
 0x270   :  { %2130 = vpow2.f32 %v706_v53  ;;  %v674_v62 = vsub.f32 %v2410_v3, %v652_v54  ;;  %v836_v45 = vmul.f32 %v2117_v55, %v2425_v21  ;;  %v789_v15 = vadd.f32 %v788_v50, %v787_v42 }
 0x271   :  { %v2119_v60 = vpop.eup %2118  ;;  %v780_v61 = vadd.f32 %v779_v40, %v778_v47  ;;  %2132 = vrcp.f32 %v2469_v34  ;;  %v777_v63 = vadd.f32 %v776_v6, %v775_v51  ;;  %v770_v58 = vadd.f32 %v769_v57, %v768_v22 }
 0x272   :  { %v704_v0 = vmul.f32 1.442695, %v674_v62  ;;  %1966 = vmatprep.mubr.msk.f32.mxu0 %vm547_vm2, %v836_v45  ;;  %v852_v5 = vsel %vm547_vm2, %v836_v45, 0.0  ;;  %2134 = vrcp.f32 %v756_v4  ;;  %v790_v21 = vrot.slane %v789_v15, 1 }
 0x273   :  { %v781_v3 = vrot.slane %v780_v61, 2  ;;  %853 = vadd.xlane.f32.xlu1 %v852_v5  ;;  %2136 = vrcp.f32 %v777_v63  ;;  %v838_v17 = vmul.f32 %v2119_v60, %v2433_v26 }
 0x274   :  { %v2510_v7 = vpop.eup %2120  ;;  %2138 = vpow2.f32 %v704_v0  ;;  %v791_v56 = vadd.f32 %v790_v21, %v789_v15 }
 0x275   :  { %v2123_v25 = vpop.eup %2122  ;;  %v782_v39 = vadd.f32 %v781_v3, %v780_v61  ;;  %v799_v34 = vsel %vm547_vm2, %v2510_v7, 0.0  ;;  %2140 = vrcp.f32 %v763_v59  ;;  %v858_v40 = vsel %vm547_vm2, %v838_v17, 0.0 }
 0x276   :  { %v2125_v8 = vpop.eup %2124  ;;  %v800_v9 = vrot.slane %v799_v34, 4  ;;  %v837_v18 = vmul.f32 %v2123_v25, %v2416_v10  ;;  %2142 = vrcp.f32 %v770_v58 }
 0x277   :  { %v2515_v4 = vpop.eup %2126  ;;  %v783_v11 = vrot.slane %v782_v39, 1  ;;  %2144 = vrcp.f32 %v791_v56  ;;  %v840_v32 = vmul.f32 %v2125_v8, %v2444_v30 }
 0x278   :  { %v801_v19 = vadd.f32 %v800_v9, %v799_v34  ;;  %v792_v37 = vsel %vm547_vm2, %v2515_v4, 0.0  ;;  %v855_v49 = vsel %vm547_vm2, %v837_v18, 0.0  ;;  %1967 = vmatmul.mubr.msk.f32.vlgmr.msra.gmra.mrb[4].mxu0 %vm547_vm2, %v837_v18 }
 0x279   :  { %v2129_v13 = vpop.eup %2128  ;;  %v784_v23 = vadd.f32 %v783_v11, %v782_v39  ;;  %v793_v24 = vrot.slane %v792_v37, 4  ;;  %856 = vadd.xlane.f32.xlu0 %v855_v49  ;;  %1969 = vmatprep.mubr.msk.f32.mxu0 %vm547_vm2, %v838_v17  ;;  %v864_v25 = vsel %vm547_vm2, %v840_v32, 0.0 }
 0x27a   :  { %v2523_v10 = vpop.eup %2130  ;;  %v802_v27 = vrot.slane %v801_v19, 2  ;;  %v839_v26 = vmul.f32 %v2129_v13, %v2421_v16 }
 0x27b   :  { %v2133_v28 = vpop.eup %2132  ;;  %v794_v48 = vadd.f32 %v793_v24, %v792_v37  ;;  %v813_v31 = vsel %vm547_vm2, %v2523_v10, 0.0  ;;  %2146 = vrcp.f32 %v784_v23 }
 0x27c   :  { %v2135_v35 = vpop.eup %2134  ;;  %v814_v29 = vrot.slane %v813_v31, 4  ;;  %v861_v38 = vsel %vm547_vm2, %v839_v26, 0.0  ;;  %1970 = vmatmul.mubr.msk.f32.gmra.mrb[6].mxu0 %vm547_vm2, %v839_v26  ;;  %v803_v41 = vadd.f32 %v802_v27, %v801_v19  ;;  %v841_v22 = vmul.f32 %v2133_v28, %v2438_v36  ;;  %v1357_v27 = vld [vmem:[%s2767_s5] sm:$0xff]  ;;  %v2577_v28 = vpop.permute.xlu1 %1223 }
 0x27d   :  { %v2137_v42 = vpop.eup %2136  ;;  %v795_v12 = vrot.slane %v794_v48, 2  ;;  %862 = vadd.xlane.f32.xlu0 %v861_v38  ;;  %1972 = vmatprep.mubr.msk.f32.mxu0 %vm547_vm2, %v840_v32  ;;  %v842_v53 = vmul.f32 %v2135_v35, %v2458_v2  ;;  %v2585_v35 = vpop.permute.xlu0 %1525  ;;  %v1773_v38 = vld [vmem:[%s2775_s13] sm:$0xff] }
 0x27e   :  { %v2532_v16 = vpop.eup %2138  ;;  %v815_v46 = vadd.f32 %v814_v29, %v813_v31  ;;  %v845_v30 = vmul.f32 %v2137_v42, %v2467_v33  ;;  %v804_v43 = vrot.slane %v803_v41, 1  ;;  %v867_v0 = vsel %vm547_vm2, %v841_v22, 0.0  ;;  %v1360_v31 = vld [vmem:[%s2767_s5 + $0x18] sm:$0xff] }
 0x27f   :  { %v2141_v51 = vpop.eup %2140  ;;  %v796_v50 = vadd.f32 %v795_v12, %v794_v48  ;;  %v806_v47 = vsel %vm547_vm2, %v2532_v16, 0.0  ;;  %v870_v11 = vsel %vm547_vm2, %v842_v53, 0.0  ;;  %v1359_v48 = vld [vmem:[%s2767_s5 + $0x10] sm:$0xff] }
 0x280   :  { %v2143_v54 = vpop.eup %2142  ;;  %v816_v55 = vrot.slane %v815_v46, 2  ;;  %v807_v57 = vrot.slane %v806_v47, 4  ;;  %1973 = vmatmul.mubr.msk.f32.gmra.mrb[8].mxu0 %vm547_vm2, %v841_v22  ;;  %v879_v6 = vsel %vm547_vm2, %v845_v30, 0.0  ;;  %v805_v33 = vadd.f32 %v804_v43, %v803_v41  ;;  %v2587_v29 = vpop.permute.xlu1 %1225  ;;  %v1781_v41 = vld [vmem:[%s2776_s14] sm:$0xff] }
 0x281   :  { %v2145_v36 = vpop.eup %2144  ;;  %v797_v62 = vrot.slane %v796_v50, 1  ;;  %859 = vadd.xlane.f32.xlu0 %v858_v40  ;;  %1975 = vmatprep.mubr.msk.f32.mxu0 %vm547_vm2, %v842_v53  ;;  %v843_v2 = vmul.f32 %v2141_v51, %v2453_v52  ;;  %v844_v61 = vmul.f32 %v2143_v54, %v2486_v1  ;;  %v2051_v32 = vpack.c.bf16 %v1360_v31, %v1359_v48 }
 0x282   :  { %v817_v45 = vadd.f32 %v816_v55, %v815_v46  ;;  %v808_v15 = vadd.f32 %v807_v57, %v806_v47  ;;  %880 = vadd.xlane.f32.xlu1 %v879_v6  ;;  %v847_v60 = vmul.f32 %v2145_v36, %v2491_v20  ;;  %2148 = vrcp.f32 %v805_v33 }
 0x283   :  { %v798_v59 = vadd.f32 %v797_v62, %v796_v50  ;;  %v873_v56 = vsel %vm547_vm2, %v843_v2, 0.0  ;;  %v876_v37 = vsel %vm547_vm2, %v844_v61, 0.0 }
 0x284   :  { %v818_v63 = vrot.slane %v817_v45, 1  ;;  %v809_v58 = vrot.slane %v808_v15, 2  ;;  %1976 = vmatmul.mubr.msk.f32.gmra.mrb[10].mxu0 %vm547_vm2, %v843_v2  ;;  %v885_v5 = vsel %vm547_vm2, %v847_v60, 0.0  ;;  %v2595_v42 = vpop.permute.xlu1 %1533 }
 0x285   :  { %v2147_v3 = vpop.eup %2146  ;;  %868 = vadd.xlane.f32.xlu0 %v867_v0  ;;  %1978 = vmatprep.mubr.msk.f32.mxu0 %vm547_vm2, %v844_v61  ;;  %2150 = vrcp.f32 %v798_v59 }
 0x286   :  { %v819_v52 = vadd.f32 %v818_v63, %v817_v45  ;;  %v810_v21 = vadd.f32 %v809_v58, %v808_v15  ;;  %886 = vadd.xlane.f32.xlu1 %v885_v5  ;;  %v846_v20 = vmul.f32 %v2147_v3, %v2498_v44 }
 0x288   :  { %v811_v1 = vrot.slane %v810_v21, 1  ;;  %1979 = vmatmul.mubr.msk.f32.gmra.mrb[12].mxu0 %vm547_vm2, %v845_v30  ;;  %2152 = vrcp.f32 %v819_v52  ;;  %v882_v39 = vsel %vm547_vm2, %v846_v20, 0.0 }
 0x289   :  { %865 = vadd.xlane.f32.xlu0 %v864_v25  ;;  %1981 = vmatprep.mubr.msk.f32.mxu0 %vm547_vm2, %v846_v20 }
 0x28a   :  { %v812_v34 = vadd.f32 %v811_v1, %v810_v21  ;;  %883 = vadd.xlane.f32.xlu1 %v882_v39 }
 0x28c   :  { %1982 = vmatmul.mubr.msk.f32.gmra.mrb[14].mxu0 %vm547_vm2, %v847_v60  ;;  %2154 = vrcp.f32 %v812_v34  ;;  %v2149_v8 = vpop.eup %2148 }
 0x28d   :  { %874 = vadd.xlane.f32.xlu0 %v873_v56  ;;  %v849_v44 = vmul.f32 %v2149_v8, %v2510_v7 }
 0x28f   :  { %v2151_v9 = vpop.eup %2150  ;;  %v891_v17 = vsel %vm547_vm2, %v849_v44, 0.0 }
 0x290   :  { %v848_v18 = vmul.f32 %v2151_v9, %v2515_v4  ;;  %892 = vadd.xlane.f32.xlu1 %v891_v17 }
 0x291   :  { %871 = vadd.xlane.f32.xlu0 %v870_v11 }
 0x292   :  { %v2153_v19 = vpop.eup %2152  ;;  %1984 = vmatprep.mubr.msk.f32.mxu0 %vm547_vm2, %v848_v18  ;;  %v888_v49 = vsel %vm547_vm2, %v848_v18, 0.0 }
 0x293   :  { %1985 = vmatmul.mubr.msk.f32.gmra.mrb[16].mxu0 %vm547_vm2, %v849_v44  ;;  %v851_v7 = vmul.f32 %v2153_v19, %v2523_v10  ;;  %v1358_v10 = vld [vmem:[%s2767_s5 + $0x8] sm:$0xff] }
 0x294   :  { %889 = vadd.xlane.f32.xlu1 %v888_v49  ;;  %v2047_v26 = vpack.c.bf16 %v1358_v10, %v1357_v27 }
 0x295   :  { %877 = vadd.xlane.f32.xlu0 %v876_v37  ;;  %v897_v23 = vsel %vm547_vm2, %v851_v7, 0.0 }
 0x296   :  { %v2155_v4 = vpop.eup %2154  ;;  %2048 = vmatprep.subr.bf16.mxu1 %v2047_v26 }
 0x297   :  { %v850_v13 = vmul.f32 %v2155_v4, %v2532_v16  ;;  %2050 = vmatpush3.bf16.msra.mxu1 %v2047_v26 }
 0x298   :  { %898 = vadd.xlane.f32.xlu1 %v897_v23  ;;  %2052 = vmatprep.subr.bf16.mxu1 %v2051_v32 }
 0x299   :  { %1987 = vmatprep.mubr.msk.f32.mxu0 %vm547_vm2, %v850_v13  ;;  %v894_v24 = vsel %vm547_vm2, %v850_v13, 0.0 }
 0x29a   :  { %1988 = vmatmul.mubr.msk.f32.gmra.mrb[18].mxu0 %vm547_vm2, %v851_v7 }
 0x29b   :  { %2054 = vmatpush3.bf16.msra.mxu1 %v2051_v32 }
 0x29c   :  { %895 = vadd.xlane.f32.xlu1 %v894_v24 }
 0x2ab   :  { %1776 = vperm.xlu0 %2090, %v1773_v38  }
 0x2ad   :  { %1784 = vperm.xlu1 %2091, %v1781_v41  }
 0x300   :  { %v854_v46 = vpop.xlane.xlu1 %853 }
 0x301   :  { %v901_v51 = vmul.f32 0.25, %v854_v46 }
 0x303   :  { %v938_v55 = vrot.slane %v901_v51, %v2311_v14 }
 0x306   :  { %v857_v12 = vpop.xlane.xlu0 %856 }
 0x307   :  { %v902_v43 = vmul.f32 0.25, %v857_v12 }
 0x309   :  { %v942_v54 = vrot.slane %v902_v43, %v2311_v14 }
 0x30a   :  { %v863_v16 = vpop.xlane.xlu0 %862 }
 0x30b   :  { %v904_v36 = vmul.f32 0.25, %v863_v16  ;;  %v1000_v33 = vsel %vm999_vm3, %v942_v54, %v938_v55 }
 0x30d   :  { %v950_v60 = vrot.slane %v904_v36, %v2311_v14 }
 0x30e   :  { %v860_v22 = vpop.xlane.xlu0 %859 }
 0x30f   :  { %v881_v30 = vpop.xlane.xlu1 %880  ;;  %v903_v47 = vmul.f32 0.25, %v860_v22 }
 0x310   :  { %v910_v21 = vmul.f32 0.25, %v881_v30 }
 0x311   :  { %v946_v40 = vrot.slane %v903_v47, %v2311_v14 }
 0x312   :  { %v869_v50 = vpop.xlane.xlu0 %868  ;;  %v974_v11 = vrot.slane %v910_v21, %v2311_v14 }
 0x313   :  { %v887_v53 = vpop.xlane.xlu1 %886  ;;  %v1002_v15 = vsel %vm1001_vm4, %v946_v40, %v1000_v33  ;;  %v906_v59 = vmul.f32 0.25, %v869_v50 }
 0x314   :  { %v1004_v61 = vsel %vm1003_vm5, %v950_v60, %v1002_v15  ;;  %v912_v8 = vmul.f32 0.25, %v887_v53 }
 0x315   :  { %v958_v52 = vrot.slane %v906_v59, %v2311_v14 }
 0x316   :  { %v866_v57 = vpop.xlane.xlu0 %865  ;;  %v982_v7 = vrot.slane %v912_v8, %v2311_v14 }
 0x317   :  { %v905_v6 = vmul.f32 0.25, %v866_v57  ;;  %v884_v62 = vpop.xlane.xlu1 %883 }
 0x318   :  { %v911_v25 = vmul.f32 0.25, %v884_v62 }
 0x319   :  { %v954_v2 = vrot.slane %v905_v6, %v2311_v14 }
 0x31a   :  { %v875_v45 = vpop.xlane.xlu0 %874  ;;  %v978_v37 = vrot.slane %v911_v25, %v2311_v14 }
 0x31b   :  { %v908_v63 = vmul.f32 0.25, %v875_v45  ;;  %v1006_v5 = vsel %vm1005_vm6, %v954_v2, %v1004_v61 }
 0x31c   :  { %v1008_v39 = vsel %vm1007_vm7, %v958_v52, %v1006_v5 }
 0x31d   :  { %v893_v0 = vpop.xlane.xlu1 %892  ;;  %v966_v1 = vrot.slane %v908_v63, %v2311_v14 }
 0x31e   :  { %v872_v58 = vpop.xlane.xlu0 %871  ;;  %v914_v13 = vmul.f32 0.25, %v893_v0 }
 0x31f   :  { %v907_v3 = vmul.f32 0.25, %v872_v58 }
 0x320   :  { %v990_v32 = vrot.slane %v914_v13, %v2311_v14 }
 0x321   :  { %v962_v20 = vrot.slane %v907_v3, %v2311_v14  ;;  %v890_v56 = vpop.xlane.xlu1 %889 }
 0x322   :  { %v878_v34 = vpop.xlane.xlu0 %877  ;;  %v913_v19 = vmul.f32 0.25, %v890_v56 }
 0x323   :  { %v1010_v44 = vsel %vm1009_vm8, %v962_v20, %v1008_v39  ;;  %v909_v9 = vmul.f32 0.25, %v878_v34 }
 0x324   :  { %v1012_v18 = vsel %vm1011_vm9, %v966_v1, %v1010_v44  ;;  %v986_v27 = vrot.slane %v913_v19, %v2311_v14 }
 0x325   :  { %v970_v17 = vrot.slane %v909_v9, %v2311_v14  ;;  %1023 = vst.msk [vmem:[#allocation2] sm:$0xff] %vm1022_vm10, %v1012_v18  ;;  %v899_v49 = vpop.xlane.xlu1 %898 }
 0x326   :  { %v916_v10 = vmul.f32 0.25, %v899_v49 }
 0x327   :  { %v1013_v4 = vsel %vm999_vm3, %v974_v11, %v970_v17 }
 0x328   :  { %v1014_v23 = vsel %vm1001_vm4, %v978_v37, %v1013_v4  ;;  %v998_v41 = vrot.slane %v916_v10, %v2311_v14 }
 0x329   :  { %v1015_v24 = vsel %vm1003_vm5, %v982_v7, %v1014_v23  ;;  %v896_v26 = vpop.xlane.xlu1 %895 }
 0x32a   :  { %v1016_v48 = vsel %vm1005_vm6, %v986_v27, %v1015_v24  ;;  %v915_v31 = vmul.f32 0.25, %v896_v26 }
 0x32b   :  { %v1017_v12 = vsel %vm1007_vm7, %v990_v32, %v1016_v48 }
 0x32c   :  { %v994_v38 = vrot.slane %v915_v31, %v2311_v14 }
 0x32e   :  { %v1018_v16 = vsel %vm1009_vm8, %v994_v38, %v1017_v12 }
 0x32f   :  { %v1019_v46 = vsel %vm1011_vm9, %v998_v41, %v1018_v16 }
 0x330   :  { %1024 = vst.msk [vmem:[#allocation2 + $0x8] sm:$0xff] %vm1022_vm10, %v1019_v46 }
 0x34b   :  { %v1968_v22 = vpop.f32.mrb[4].mxu0 }
 0x34c   :  { %v1230_v30 = vmul.f32 %v1968_v22, %v2577_v28  ;;  %v1144_v43 = vpop.f32.mrb[5].mxu0 }
 0x34d   :  { %v1229_v51 = vmul.f32 %v2577_v28, %v1144_v43 }
 0x34e   :  { %v1252_v50 = vsel %vm66_vm0, %v1230_v30, 0.0 }
 0x34f   :  { %v1253_v47 = vrot.slane %v1252_v50, 4  ;;  %v1245_v53 = vsel %vm66_vm0, %v1229_v51, 0.0  ;;  %v1971_v14 = vpop.f32.mrb[6].mxu0 }
 0x350   :  { %v1246_v54 = vrot.slane %v1245_v53, 4  ;;  %v1232_v55 = vmul.f32 %v1971_v14, %v2577_v28  ;;  %v1154_v57 = vpop.f32.mrb[7].mxu0 }
 0x351   :  { %v1254_v40 = vadd.f32 %v1253_v47, %v1252_v50  ;;  %v1231_v6 = vmul.f32 %v2577_v28, %v1154_v57 }
 0x352   :  { %v1247_v36 = vadd.f32 %v1246_v54, %v1245_v53  ;;  %v1266_v62 = vsel %vm66_vm0, %v1232_v55, 0.0 }
 0x353   :  { %v1255_v33 = vrot.slane %v1254_v40, 2  ;;  %v1267_v45 = vrot.slane %v1266_v62, 4  ;;  %v1259_v15 = vsel %vm66_vm0, %v1231_v6, 0.0  ;;  %v1974_v2 = vpop.f32.mrb[8].mxu0 }
 0x354   :  { %v1248_v60 = vrot.slane %v1247_v36, 2  ;;  %v1260_v59 = vrot.slane %v1259_v15, 4  ;;  %v1234_v61 = vmul.f32 %v1974_v2, %v2577_v28  ;;  %v1164_v63 = vpop.f32.mrb[9].mxu0 }
 0x355   :  { %v1256_v58 = vadd.f32 %v1255_v33, %v1254_v40  ;;  %v1268_v0 = vadd.f32 %v1267_v45, %v1266_v62  ;;  %v1233_v5 = vmul.f32 %v2577_v28, %v1164_v63 }
 0x356   :  { %v1249_v3 = vadd.f32 %v1248_v60, %v1247_v36  ;;  %v1261_v52 = vadd.f32 %v1260_v59, %v1259_v15  ;;  %v1280_v21 = vsel %vm66_vm0, %v1234_v61, 0.0 }
 0x357   :  { %v1257_v20 = vrot.slane %v1256_v58, 1  ;;  %v1269_v1 = vrot.slane %v1268_v0, 2  ;;  %v1281_v25 = vrot.slane %v1280_v21, 4  ;;  %v1273_v39 = vsel %vm66_vm0, %v1233_v5, 0.0  ;;  %v1977_v34 = vpop.f32.mrb[10].mxu0 }
 0x358   :  { %v1250_v56 = vrot.slane %v1249_v3, 1  ;;  %v1262_v8 = vrot.slane %v1261_v52, 2  ;;  %v1274_v44 = vrot.slane %v1273_v39, 4  ;;  %v1236_v9 = vmul.f32 %v1977_v34, %v2577_v28  ;;  %v1174_v18 = vpop.f32.mrb[11].mxu0 }
 0x359   :  { %v1258_v11 = vadd.f32 %v1257_v20, %v1256_v58  ;;  %v1270_v17 = vadd.f32 %v1269_v1, %v1268_v0  ;;  %v1282_v19 = vadd.f32 %v1281_v25, %v1280_v21  ;;  %v1235_v37 = vmul.f32 %v2577_v28, %v1174_v18 }
 0x35a   :  { %v1251_v49 = vadd.f32 %v1250_v56, %v1249_v3  ;;  %v1263_v7 = vadd.f32 %v1262_v8, %v1261_v52  ;;  %v1275_v4 = vadd.f32 %v1274_v44, %v1273_v39  ;;  %v1294_v13 = vsel %vm66_vm0, %v1236_v9, 0.0 }
 0x35b   :  { %v1271_v23 = vrot.slane %v1270_v17, 1  ;;  %v1283_v24 = vrot.slane %v1282_v19, 2  ;;  %v1295_v27 = vrot.slane %v1294_v13, 4  ;;  %v1287_v10 = vsel %vm66_vm0, %v1235_v37, 0.0  ;;  %v1980_v26 = vpop.f32.mrb[12].mxu0 }
 0x35c   :  { %v1384_v48 = vsel %vm999_vm3, %v1258_v11, %v1251_v49  ;;  %v1264_v31 = vrot.slane %v1263_v7, 1  ;;  %v1276_v32 = vrot.slane %v1275_v4, 2  ;;  %v1288_v38 = vrot.slane %v1287_v10, 4  ;;  %v1184_v41 = vpop.f32.mrb[13].mxu0 }
 0x35d   :  { %v1284_v12 = vadd.f32 %v1283_v24, %v1282_v19  ;;  %v1296_v16 = vadd.f32 %v1295_v27, %v1294_v13  ;;  %v1238_v28 = vmul.f32 %v1980_v26, %v2587_v29  ;;  %v1237_v43 = vmul.f32 %v2587_v29, %v1184_v41 }
 0x35e   :  { %v1265_v46 = vadd.f32 %v1264_v31, %v1263_v7  ;;  %v1277_v22 = vadd.f32 %v1276_v32, %v1275_v4  ;;  %v1289_v30 = vadd.f32 %v1288_v38, %v1287_v10  ;;  %v1272_v51 = vadd.f32 %v1271_v23, %v1270_v17 }
 0x35f   :  { %v1297_v50 = vrot.slane %v1296_v16, 2  ;;  %v1308_v47 = vsel %vm66_vm0, %v1238_v28, 0.0  ;;  %v1983_v53 = vpop.f32.mrb[14].mxu0  ;;  %v1285_v6 = vrot.slane %v1284_v12, 1  ;;  %v1301_v62 = vsel %vm66_vm0, %v1237_v43, 0.0 }
 0x360   :  { %v1385_v14 = vsel %vm1001_vm4, %v1265_v46, %v1384_v48  ;;  %v1278_v54 = vrot.slane %v1277_v22, 1  ;;  %v1290_v55 = vrot.slane %v1289_v30, 2  ;;  %v1309_v57 = vrot.slane %v1308_v47, 4  ;;  %v1194_v40 = vpop.f32.mrb[15].mxu0 }
 0x361   :  { %v1298_v36 = vadd.f32 %v1297_v50, %v1296_v16  ;;  %v1240_v33 = vmul.f32 %v1983_v53, %v2587_v29  ;;  %v1302_v60 = vrot.slane %v1301_v62, 4  ;;  %v1239_v61 = vmul.f32 %v2587_v29, %v1194_v40 }
 0x362   :  { %v1279_v45 = vadd.f32 %v1278_v54, %v1277_v22  ;;  %v1291_v15 = vadd.f32 %v1290_v55, %v1289_v30  ;;  %v1310_v2 = vadd.f32 %v1309_v57, %v1308_v47  ;;  %v1386_v63 = vsel %vm1003_vm5, %v1272_v51, %v1385_v14 }
 0x363   :  { %v1322_v59 = vsel %vm66_vm0, %v1240_v33, 0.0  ;;  %v1303_v5 = vadd.f32 %v1302_v60, %v1301_v62  ;;  %v1286_v52 = vadd.f32 %v1285_v6, %v1284_v12  ;;  %v1299_v21 = vrot.slane %v1298_v36, 1 }
 0x364   :  { %v1292_v58 = vrot.slane %v1291_v15, 1  ;;  %v1311_v0 = vrot.slane %v1310_v2, 2  ;;  %v1323_v3 = vrot.slane %v1322_v59, 4  ;;  %v1315_v20 = vsel %vm66_vm0, %v1239_v61, 0.0 }
 0x365   :  { %v1387_v1 = vsel %vm1005_vm6, %v1279_v45, %v1386_v63  ;;  %v1304_v34 = vrot.slane %v1303_v5, 2  ;;  %v1316_v44 = vrot.slane %v1315_v20, 4  ;;  %v1300_v7 = vadd.f32 %v1299_v21, %v1298_v36 }
 0x366   :  { %v1293_v25 = vadd.f32 %v1292_v58, %v1291_v15  ;;  %v1312_v39 = vadd.f32 %v1311_v0, %v1310_v2  ;;  %v1324_v56 = vadd.f32 %v1323_v3, %v1322_v59  ;;  %v1986_v8 = vpop.f32.mrb[16].mxu0  ;;  %v1388_v11 = vsel %vm1007_vm7, %v1286_v52, %v1387_v1 }
 0x367   :  { %v1242_v9 = vmul.f32 %v1986_v8, %v2587_v29  ;;  %v1204_v18 = vpop.f32.mrb[17].mxu0  ;;  %v1305_v19 = vadd.f32 %v1304_v34, %v1303_v5  ;;  %v1317_v4 = vadd.f32 %v1316_v44, %v1315_v20  ;;  %v1538_v8 = vld [vmem:[%s2771_s9] sm:$0xff]  ;;  %v1539_v44 = vld [vmem:[%s2771_s9 + $0x8] sm:$0xff] }
 0x368   :  { %v1313_v17 = vrot.slane %v1312_v39, 1  ;;  %v1325_v37 = vrot.slane %v1324_v56, 2  ;;  %v1241_v49 = vmul.f32 %v2587_v29, %v1204_v18  ;;  %v1389_v23 = vsel %vm1009_vm8, %v1293_v25, %v1388_v11  ;;  %v1540_v18 = vld [vmem:[%s2771_s9 + $0x10] sm:$0xff]  ;;  %v1541_v11 = vld [vmem:[%s2771_s9 + $0x18] sm:$0xff] }
 0x369   :  { %v1336_v13 = vsel %vm66_vm0, %v1242_v9, 0.0  ;;  %v1306_v27 = vrot.slane %v1305_v19, 1  ;;  %v1318_v48 = vrot.slane %v1317_v4, 2  ;;  %v1390_v32 = vsel %vm1011_vm9, %v1300_v7, %v1389_v23  ;;  %v1636_v23 = vld [vmem:[%s2773_s11 + $0x20] sm:$0xff] }
 0x36a   :  { %v1314_v24 = vadd.f32 %v1313_v17, %v1312_v39  ;;  %v1326_v10 = vadd.f32 %v1325_v37, %v1324_v56  ;;  %v1337_v26 = vrot.slane %v1336_v13, 4  ;;  %v1329_v31 = vsel %vm66_vm0, %v1241_v49, 0.0  ;;  %1998 = vmatprep.mubr.msk.f32.mxu1 %vm66_vm0, %v1390_v32  ;;  %v1633_v37 = vld [vmem:[%s2773_s11 + $0x8] sm:$0xff]  ;;  %v1634_v49 = vld [vmem:[%s2773_s11 + $0x10] sm:$0xff] }
 0x36b   :  { %v1307_v38 = vadd.f32 %v1306_v27, %v1305_v19  ;;  %v1330_v12 = vrot.slane %v1329_v31, 4  ;;  %v1319_v16 = vadd.f32 %v1318_v48, %v1317_v4  ;;  %v2055_v9 = vpack.c.bf16 %v1539_v44, %v1538_v8  ;;  %v1632_v19 = vld [vmem:[%s2773_s11] sm:$0xff]  ;;  %v1635_v4 = vld [vmem:[%s2773_s11 + $0x18] sm:$0xff] }
 0x36c   :  { %v1338_v41 = vadd.f32 %v1337_v26, %v1336_v13  ;;  %v1327_v22 = vrot.slane %v1326_v10, 1  ;;  %v2059_v17 = vpack.c.bf16 %v1541_v11, %v1540_v18  ;;  %v2063_v7 = vpack.c.bf16 %v1633_v37, %v1632_v19 }
 0x36d   :  { %v1989_v28 = vpop.f32.mrb[18].mxu0  ;;  %v1391_v46 = vsel %vm999_vm3, %v1314_v24, %v1307_v38  ;;  %v1331_v43 = vadd.f32 %v1330_v12, %v1329_v31  ;;  %v1320_v50 = vrot.slane %v1319_v16, 1  ;;  %2056 = vmatprep.subr.bf16.mxu0 %v2055_v9  ;;  %v2067_v13 = vpack.c.bf16 %v1635_v4, %v1634_v49  ;;  %v1637_v24 = vld [vmem:[%s2773_s11 + $0x28] sm:$0xff]  ;;  %v2165_v12 = vld [vmem:[%s2781_s0] sm:$0xff]  ;;  %v1638_v49 = vld [vmem:[%s2773_s11 + $0x30] sm:$0xff] }
 0x36e   :  { %v1339_v30 = vrot.slane %v1338_v41, 2  ;;  %v1214_v51 = vpop.f32.mrb[19].mxu0  ;;  %v1244_v47 = vmul.f32 %v1989_v28, %v2587_v29  ;;  %v1328_v6 = vadd.f32 %v1327_v22, %v1326_v10  ;;  %2058 = vmatpush3.bf16.msra.mxu0 %v2055_v9  ;;  %2064 = vmatprep.subr.bf16.mxu1 %v2063_v7  ;;  %v2071_v27 = vpack.c.bf16 %v1637_v24, %v1636_v23  ;;  %v1847_v10 = vld [vmem:[%s2768_s6] ss:$0 sm:$0xff]  ;;  %v2164_v38 = vld [vmem:[%s2781_s0 + $0x8] sm:$0xff] }
 0x36f   :  { %v1243_v53 = vmul.f32 %v2587_v29, %v1214_v51  ;;  %v1332_v54 = vrot.slane %v1331_v43, 2  ;;  %v1321_v55 = vadd.f32 %v1320_v50, %v1319_v16  ;;  %2060 = vmatprep.subr.bf16.mxu0 %v2059_v17 }
 0x370   :  { %v1340_v14 = vadd.f32 %v1339_v30, %v1338_v41  ;;  %v1350_v57 = vsel %vm66_vm0, %v1244_v47, 0.0 }
 0x371   :  { %v1343_v40 = vsel %vm66_vm0, %v1243_v53, 0.0  ;;  %v1333_v36 = vadd.f32 %v1332_v54, %v1331_v43  ;;  %v1351_v62 = vrot.slane %v1350_v57, 4  ;;  %v1392_v45 = vsel %vm1001_vm4, %v1321_v55, %v1391_v46 }
 0x372   :  { %v1344_v33 = vrot.slane %v1343_v40, 4  ;;  %v1341_v15 = vrot.slane %v1340_v14, 1  ;;  %v1393_v60 = vsel %vm1003_vm5, %v1328_v6, %v1392_v45  ;;  %2062 = vmatpush3.bf16.msra.mxu0 %v2059_v17 }
 0x373   :  { %v1334_v2 = vrot.slane %v1333_v36, 1  ;;  %v1352_v59 = vadd.f32 %v1351_v62, %v1350_v57 }
 0x374   :  { %v1345_v61 = vadd.f32 %v1344_v33, %v1343_v40  ;;  %v1342_v58 = vadd.f32 %v1341_v15, %v1340_v14 }
 0x375   :  { %v1335_v29 = vadd.f32 %v1334_v2, %v1333_v36  ;;  %v1353_v63 = vrot.slane %v1352_v59, 2 }
 0x376   :  { %v1346_v0 = vrot.slane %v1345_v61, 2 }
 0x377   :  { %v1394_v5 = vsel %vm1005_vm6, %v1335_v29, %v1393_v60  ;;  %v1354_v3 = vadd.f32 %v1353_v63, %v1352_v59 }
 0x378   :  { %v1347_v52 = vadd.f32 %v1346_v0, %v1345_v61  ;;  %v1395_v21 = vsel %vm1007_vm7, %v1342_v58, %v1394_v5 }
 0x379   :  { %v1355_v20 = vrot.slane %v1354_v3, 1 }
 0x37a   :  { %v1348_v1 = vrot.slane %v1347_v52, 1 }
 0x37b   :  { %v1356_v39 = vadd.f32 %v1355_v20, %v1354_v3 }
 0x37c   :  { %v1349_v25 = vadd.f32 %v1348_v1, %v1347_v52 }
 0x37e   :  { %v1396_v34 = vsel %vm1009_vm8, %v1349_v25, %v1395_v21 }
 0x37f   :  { %v1397_v56 = vsel %vm1011_vm9, %v1356_v39, %v1396_v34 }
 0x380   :  { %1999 = vmatmul.mubr.msk.f32.vlgmr.msra.gmra.mrb[14].mxu1 %vm66_vm0, %v1397_v56 }
 0x381   :  { %2066 = vmatpush3.bf16.msra.mxu1 %v2063_v7  ;;  %v1639_v7 = vld [vmem:[%s2773_s11 + $0x38] sm:$0xff]  ;;  %s2166_s11 = scalar_lea.vmem %s1799_s30, 256 }
 0x382   :  { %2068 = vmatprep.subr.bf16.mxu1 %v2067_v13  ;;  %v2075_v4 = vpack.c.bf16 %v1639_v7, %v1638_v49  ;;  %p2167_p0 = scmp.ne.s32.totalorder %s1799_s30, %s2166_s11  ;;  %p2172_p2 = scmp.lt.s32.totalorder %s2166_s11, %s2166_s11 }
 0x384   :  { %p2173_p3 = por %p2172_p2, %p2171_p1 }
 0x385   :  { %2070 = vmatpush3.bf16.msra.mxu1 %v2067_v13 }
 0x386   :  { %2072 = vmatprep.subr.bf16.mxu1 %v2071_v27  ;;  %p2174_p4 = pnand %p2173_p3, %p2167_p0 }
 0x389   :  { %2074 = vmatpush3.bf16.msra.mxu1 %v2071_v27 }
 0x38a   :  { %2076 = vmatprep.subr.bf16.mxu1 %v2075_v4 }
 0x38d   :  { %2078 = vmatpush3.bf16.msra.mxu1 %v2075_v4 }
 0x453   :  { %v2000_v26 = vpop.f32.mrb[14].mxu1 }
 0x454   :  { %v1474_v48 = vadd.f32 %v2000_v26, %v1847_v10  ;;  %v1468_v31 = vpop.f32.mrb[15].mxu1 }
 0x455   :  { %v1469_v32 = vadd.f32 %v1847_v10, %v1468_v31 }
 0x456   :  { %v1478_v41 = vadd.f32 %v2164_v38, %v1474_v48 }
 0x457   :  { %v1477_v16 = vadd.f32 %v2165_v12, %v1469_v32 }
 0x458   :  { %v1486_v28 = vsel %vm66_vm0, %v1478_v41, 0.0 }
 0x459   :  { %v1487_v46 = vrot.slane %v1486_v28, 4  ;;  %v1479_v22 = vsel %vm66_vm0, %v1477_v16, 0.0 }
 0x45a   :  { %v1480_v30 = vrot.slane %v1479_v22, 4 }
 0x45b   :  { %v1488_v43 = vadd.f32 %v1487_v46, %v1486_v28 }
 0x45c   :  { %v1481_v51 = vadd.f32 %v1480_v30, %v1479_v22 }
 0x45d   :  { %v1489_v50 = vrot.slane %v1488_v43, 2 }
 0x45e   :  { %v1482_v47 = vrot.slane %v1481_v51, 2 }
 0x45f   :  { %v1490_v53 = vadd.f32 %v1489_v50, %v1488_v43 }
 0x460   :  { %v1483_v14 = vadd.f32 %v1482_v47, %v1481_v51 }
 0x461   :  { %v1491_v54 = vrot.slane %v1490_v53, 1 }
 0x462   :  { %v1484_v55 = vrot.slane %v1483_v14, 1 }
 0x463   :  { %v1492_v57 = vadd.f32 %v1491_v54, %v1490_v53 }
 0x464   :  { %v1485_v40 = vadd.f32 %v1484_v55, %v1483_v14 }
 0x465   :  { %v1495_v6 = vmul.f32 0.125, %v1492_v57 }
 0x466   :  { %v1494_v36 = vmul.f32 0.125, %v1485_v40 }
 0x467   :  { %v1497_v62 = vsub.f32 %v1478_v41, %v1495_v6 }
 0x468   :  { %v1496_v33 = vsub.f32 %v1477_v16, %v1494_v36 }
 0x469   :  { %v1499_v45 = vmul.f32 %v1497_v62, %v1497_v62 }
 0x46a   :  { %v1498_v15 = vmul.f32 %v1496_v33, %v1496_v33 }
 0x46b   :  { %v1507_v2 = vsel %vm66_vm0, %v1499_v45, 0.0 }
 0x46c   :  { %v1508_v60 = vrot.slane %v1507_v2, 4  ;;  %v1500_v59 = vsel %vm66_vm0, %v1498_v15, 0.0 }
 0x46d   :  { %v1501_v61 = vrot.slane %v1500_v59, 4 }
 0x46e   :  { %v1509_v29 = vadd.f32 %v1508_v60, %v1507_v2 }
 0x46f   :  { %v1502_v63 = vadd.f32 %v1501_v61, %v1500_v59 }
 0x470   :  { %v1510_v58 = vrot.slane %v1509_v29, 2 }
 0x471   :  { %v1503_v0 = vrot.slane %v1502_v63, 2 }
 0x472   :  { %v1511_v5 = vadd.f32 %v1510_v58, %v1509_v29 }
 0x473   :  { %v1504_v3 = vadd.f32 %v1503_v0, %v1502_v63 }
 0x474   :  { %v1512_v52 = vrot.slane %v1511_v5, 1 }
 0x475   :  { %v1505_v21 = vrot.slane %v1504_v3, 1 }
 0x476   :  { %v1513_v20 = vadd.f32 %v1512_v52, %v1511_v5 }
 0x477   :  { %v1506_v1 = vadd.f32 %v1505_v21, %v1504_v3 }
 0x478   :  { %v1515_v25 = vmul.f32 0.125, %v1513_v20 }
 0x479   :  { %v1514_v39 = vmul.f32 0.125, %v1506_v1 }
 0x47a   :  { %v1517_v34 = vadd.f32 1e-05, %v1515_v25 }
 0x47b   :  { %v1516_v56 = vadd.f32 1e-05, %v1514_v39 }
 0x47c   :  { %2156 = vrsqrt.f32 %v1517_v34 }
 0x47d   :  { %2158 = vrsqrt.f32 %v1516_v56 }
 0x486   :  { %v2157_v8 = vpop.eup %2156 }
 0x487   :  { %v2159_v44 = vpop.eup %2158  ;;  %v1521_v9 = vmul.f32 %v2157_v8, %v1497_v62 }
 0x488   :  { %v1520_v18 = vmul.f32 %v2159_v44, %v1496_v33 }
 0x489   :  { %v1529_v11 = vmul.f32 %v2585_v35, %v1521_v9 }
 0x48a   :  { %v1528_v17 = vmul.f32 %v2585_v35, %v1520_v18  ;;  %v1850_v35 = vld [vmem:[%s2772_s10] ss:$0 sm:$0xff] }
 0x48b   :  { %v1537_v37 = vadd.f32 %v2595_v42, %v1529_v11 }
 0x48c   :  { %v1536_v19 = vadd.f32 %v2595_v42, %v1528_v17 }
 0x48e   :  { %2009 = vmatprep.mubr.msk.f32.mxu0 %vm66_vm0, %v1536_v19 }
 0x48f   :  { %2010 = vmatmul.mubr.msk.f32.vlgmr.msra.gmra.mrb[20].mxu0 %vm66_vm0, %v1537_v37 }
 0x562   :  { %v2011_v42 = vpop.f32.mrb[20].mxu0 }
 0x563   :  { %v1627_v13 = vadd.f32 %v2011_v42, %v1850_v35  ;;  %v1621_v23 = vpop.f32.mrb[21].mxu0 }
 0x564   :  { %v1622_v24 = vadd.f32 %v1850_v35, %v1621_v23 }
 0x565   :  { %v1631_v10 = vmax.f32 %v1627_v13, 0.0 }
 0x566   :  { %v1630_v27 = vmax.f32 %v1622_v24, 0.0 }
 0x568   :  { %2028 = vmatprep.mubr.msk.f32.mxu1 %vm1647_vm11, %v1630_v27 }
 0x569   :  { %2029 = vmatmul.mubr.msk.f32.vlgmr.msra.gmra.mrb[16].mxu1 %vm1647_vm11, %v1631_v10 }
 0x56a   :  { %2177 = shalt.err (!%p2174_p4)
}
 0x56b   :  { %s2178_s18 = scalar_lea.hbm %s2778_s16, 256 }
 0x56c   :  { %p2179_p5 = scmp.ne.s32.totalorder %s2778_s16, %s2178_s18  ;;  %p2182_p6 = scmp.lt.u32.totalorder %s2178_s18, %s2778_s16 }
 0x56e   :  { %p2184_p7 = pnand %p2182_p6, %p2179_p5 }
 0x570   :  { %2187 = shalt.err (!%p2184_p7)
}
 0x571   :  { %s2195_s19 = smov 128   ;;  %s2196_s20 = smov 8   ;;  %v1853_v26 = vld [vmem:[%s2774_s12] ss:$0 sm:$0xff]  ;;  %v1777_v9 = vpop.permute.xlu0 %1776  ;;  %v1785_v17 = vpop.permute.xlu1 %1784 }
 0x572   :  { %1804 = dma.vmem_to_hbm [thread:$0]  %s1799_s30, 256, %s2778_s16, [#allocation3], %s2195_s19, %s2195_s19, %s2196_s20  }
 0x63c   :  { %v2030_v48 = vpop.f32.mrb[16].mxu1 }
 0x63d   :  { %v1726_v31 = vadd.f32 %v2030_v48, %v1853_v26  ;;  %v1720_v32 = vpop.f32.mrb[17].mxu1 }
 0x63e   :  { %v1721_v38 = vadd.f32 %v1853_v26, %v1720_v32 }
 0x63f   :  { %v1730_v41 = vadd.f32 %v1726_v31, %v1537_v37 }
 0x640   :  { %v1729_v12 = vadd.f32 %v1721_v38, %v1536_v19 }
 0x641   :  { %v1738_v16 = vsel %vm66_vm0, %v1730_v41, 0.0 }
 0x642   :  { %v1739_v28 = vrot.slane %v1738_v16, 4  ;;  %v1731_v46 = vsel %vm66_vm0, %v1729_v12, 0.0 }
 0x643   :  { %v1732_v22 = vrot.slane %v1731_v46, 4 }
 0x644   :  { %v1740_v30 = vadd.f32 %v1739_v28, %v1738_v16 }
 0x645   :  { %v1733_v43 = vadd.f32 %v1732_v22, %v1731_v46 }
 0x646   :  { %v1741_v51 = vrot.slane %v1740_v30, 2 }
 0x647   :  { %v1734_v50 = vrot.slane %v1733_v43, 2 }
 0x648   :  { %v1742_v47 = vadd.f32 %v1741_v51, %v1740_v30 }
 0x649   :  { %v1735_v53 = vadd.f32 %v1734_v50, %v1733_v43 }
 0x64a   :  { %v1743_v14 = vrot.slane %v1742_v47, 1 }
 0x64b   :  { %v1736_v54 = vrot.slane %v1735_v53, 1 }
 0x64c   :  { %v1744_v55 = vadd.f32 %v1743_v14, %v1742_v47 }
 0x64d   :  { %v1737_v57 = vadd.f32 %v1736_v54, %v1735_v53 }
 0x64e   :  { %v1746_v40 = vmul.f32 0.125, %v1744_v55 }
 0x64f   :  { %v1745_v6 = vmul.f32 0.125, %v1737_v57 }
 0x650   :  { %v1748_v36 = vsub.f32 %v1730_v41, %v1746_v40 }
 0x651   :  { %v1747_v62 = vsub.f32 %v1729_v12, %v1745_v6 }
 0x652   :  { %v1750_v33 = vmul.f32 %v1748_v36, %v1748_v36 }
 0x653   :  { %v1749_v45 = vmul.f32 %v1747_v62, %v1747_v62 }
 0x654   :  { %v1758_v15 = vsel %vm66_vm0, %v1750_v33, 0.0 }
 0x655   :  { %v1759_v2 = vrot.slane %v1758_v15, 4  ;;  %v1751_v60 = vsel %vm66_vm0, %v1749_v45, 0.0 }
 0x656   :  { %v1752_v59 = vrot.slane %v1751_v60, 4 }
 0x657   :  { %v1760_v61 = vadd.f32 %v1759_v2, %v1758_v15 }
 0x658   :  { %v1753_v29 = vadd.f32 %v1752_v59, %v1751_v60 }
 0x659   :  { %v1761_v63 = vrot.slane %v1760_v61, 2 }
 0x65a   :  { %v1754_v58 = vrot.slane %v1753_v29, 2 }
 0x65b   :  { %v1762_v0 = vadd.f32 %v1761_v63, %v1760_v61 }
 0x65c   :  { %v1755_v5 = vadd.f32 %v1754_v58, %v1753_v29 }
 0x65d   :  { %v1763_v3 = vrot.slane %v1762_v0, 1 }
 0x65e   :  { %v1756_v52 = vrot.slane %v1755_v5, 1 }
 0x65f   :  { %v1764_v21 = vadd.f32 %v1763_v3, %v1762_v0 }
 0x660   :  { %v1757_v20 = vadd.f32 %v1756_v52, %v1755_v5 }
 0x661   :  { %v1766_v1 = vmul.f32 0.125, %v1764_v21 }
 0x662   :  { %v1765_v25 = vmul.f32 0.125, %v1757_v20 }
 0x663   :  { %v1768_v39 = vadd.f32 1e-05, %v1766_v1 }
 0x664   :  { %v1767_v34 = vadd.f32 1e-05, %v1765_v25 }
 0x665   :  { %2160 = vrsqrt.f32 %v1768_v39 }
 0x666   :  { %2162 = vrsqrt.f32 %v1767_v34 }
 0x66f   :  { %v2161_v56 = vpop.eup %2160 }
 0x670   :  { %v2163_v8 = vpop.eup %2162  ;;  %v1772_v44 = vmul.f32 %v2161_v56, %v1748_v36 }
 0x671   :  { %v1771_v18 = vmul.f32 %v2163_v8, %v1747_v62 }
 0x672   :  { %v1780_v11 = vmul.f32 %v1777_v9, %v1772_v44 }
 0x673   :  { %v1779_v19 = vmul.f32 %v1777_v9, %v1771_v18 }
 0x674   :  { %v1788_v37 = vadd.f32 %v1785_v17, %v1780_v11 }
 0x675   :  { %v1787_v49 = vadd.f32 %v1785_v17, %v1779_v19 }
 0x676   :  { %1790 = vst.msk [vmem:[%s2777_s15 + $0x8] sm:$0xff] %vm66_vm0, %v1788_v37 }
 0x677   :  { %1789 = vst.msk [vmem:[%s2777_s15] sm:$0xff] %vm66_vm0, %v1787_v49 }
 0x678   :  { %2188 = dma.done.wait [#allocation3], 256  }
 0x679   :  { %2189 = vsyncadd [#allocation3], 4294967040 }
 0x67a   :  { %1810 = vsyncpa [#allocation3], 1 }

</bundles_post_ra>
